<compile_context>
chip_gen: v5e
topology: v5e:2x2
jax: 0.10.0
libtpu: 0.0.40
codegen_flags: <defaults>
</compile_context>

<pallas_src>
import functools

import jax
import jax.numpy as jnp
from jax import lax
from jax.experimental import pallas as pl
from jax.experimental.pallas import tpu as pltpu

NUM_GROUPS = 32
EPS = 1e-5


# ----------------------------- in-kernel helpers -----------------------------

def _affine_silu(v, scale, shift):
    """GroupNorm affine + SiLU in f32. v: (..., W, C); scale/shift: (1, C)."""
    v = v.astype(jnp.float32) * scale + shift
    return v * jax.nn.sigmoid(v)


def _tile_stats(v):
    """Per-channel tile sum and *centered* sum of squares (f32), shape (2, C)."""
    n = v.shape[0]
    s1 = jnp.sum(v, axis=0, keepdims=True)                       # (1, C)
    mu = s1 * (1.0 / n)
    d = v - mu
    m2 = jnp.sum(d * d, axis=0, keepdims=True)
    return jnp.concatenate([s1, m2], axis=0)                     # (2, C)


def _conv3x3_rows(top, mid, bot, scale, shift, w_ref, bias, rt, n_rt):
    """'SAME' 3x3 conv of silu(v*scale + shift) for one row tile.

    top/bot: (1, W, C) halo rows (border-clamped copies); mid: (T, W, C) bf16.
    scale/shift: (1, C) f32.  w_ref: (3, 3*C, Cout) bf16 (ky major, kx within K).
    bias: (1, Cout) f32.  Returns (T, W, Cout) f32.

    Out-of-image halo rows are zeroed *after* the activation (a 1-row scalar
    multiply), which is exactly the zero padding a 'SAME' conv of
    silu(groupnorm(x)) needs.  The three horizontal taps are lane-concatenated
    so the whole conv is 3 matmuls with K = 3*C.
    """
    T, W, C = mid.shape
    cout = w_ref.shape[-1]
    top = _affine_silu(top, scale, shift) * (rt > 0).astype(jnp.float32)
    bot = _affine_silu(bot, scale, shift) * (rt < n_rt - 1).astype(jnp.float32)
    mid = _affine_silu(mid, scale, shift)
    y = jnp.concatenate([top, mid, bot], axis=0).astype(jnp.bfloat16)  # (T+2, W, C)

    zc = jnp.zeros((T + 2, 1, C), jnp.bfloat16)
    z = jnp.concatenate(
        [jnp.concatenate([zc, y[:, :W - 1, :]], axis=1),   # kx = 0 tap (left pad)
         y,                                                # kx = 1 tap
         jnp.concatenate([y[:, 1:, :], zc], axis=1)],      # kx = 2 tap (right pad)
        axis=-1)                                           # (T+2, W, 3*C)

    acc = jnp.zeros((T * W, cout), jnp.float32)
    for ky in range(3):                                    # 3 matmuls, K = 3*C
        acc = acc + jnp.dot(z[ky:ky + T].reshape(T * W, 3 * C), w_ref[ky],
                            preferred_element_type=jnp.float32)
    return acc.reshape(T, W, cout) + bias


# --------------------------------- kernels -----------------------------------

def _stats_kernel(x_ref, st_ref):
    """Per-tile GroupNorm-1 statistics of x (channel sums + centered M2)."""
    x = x_ref[0].astype(jnp.float32)                             # (T, W, C)
    T, W, C = x.shape
    st_ref[0, 0] = _tile_stats(x.reshape(T * W, C))


def _gn1_conv1_kernel(xt_ref, xm_ref, xb_ref, sc_ref, sh_ref, w_ref, b_ref,
                      h_ref, st_ref):
    rt, n_rt = pl.program_id(1), pl.num_programs(1)
    h = _conv3x3_rows(xt_ref[0], xm_ref[0], xb_ref[0], sc_ref[0], sh_ref[0],
                      w_ref, b_ref[...], rt, n_rt)               # (T, W, Cout) f32
    hb = h.astype(jnp.bfloat16)                                  # bf16 intermediate
    h_ref[0] = hb
    T, W, cout = h.shape
    # GroupNorm-2 partial stats, computed from the bf16-rounded values that
    # pass 3 will actually normalise.
    st_ref[0, 0] = _tile_stats(hb.astype(jnp.float32).reshape(T * W, cout))


def _gn2_conv2_kernel_proj(ht_ref, hm_ref, hb_ref, sc_ref, sh_ref, w_ref, b_ref,
                           xr_ref, wr_ref, br_ref, o_ref):
    rt, n_rt = pl.program_id(1), pl.num_programs(1)
    h = _conv3x3_rows(ht_ref[0], hm_ref[0], hb_ref[0], sc_ref[0], sh_ref[0],
                      w_ref, b_ref[...], rt, n_rt)               # (T, W, Cout) f32
    T, W, cout = h.shape
    xr = xr_ref[0]                                               # (T, W, Cin) bf16
    cin = xr.shape[-1]
    res = jnp.dot(xr.reshape(T * W, cin), wr_ref[...],
                  preferred_element_type=jnp.float32).reshape(T, W, cout)
    o_ref[0] = h + res + br_ref[...]


def _gn2_conv2_kernel_id(ht_ref, hm_ref, hb_ref, sc_ref, sh_ref, w_ref, b_ref,
                         xr_ref, o_ref):
    rt, n_rt = pl.program_id(1), pl.num_programs(1)
    h = _conv3x3_rows(ht_ref[0], hm_ref[0], hb_ref[0], sc_ref[0], sh_ref[0],
                      w_ref, b_ref[...], rt, n_rt)
    o_ref[0] = h + xr_ref[0].astype(jnp.float32)


# --------------------------- wrapper-side helpers -----------------------------

def _vmem_capacity_bytes():
    try:
        cap = getattr(pltpu.get_tpu_info(), "vmem_capacity_bytes", None)
        return int(cap) if cap else 64 * 2**20
    except Exception:
        return 64 * 2**20          # conservative fallback (v7x-sized VMEM)


def _conv_pass_vmem(th, W, c_conv, c_out, c_res=0, out_itemsize=2):
    """Coarse explicit per-buffer VMEM estimate (bytes) for one conv pass."""
    t2 = th + 2
    blocks = 2 * (t2 * W * c_conv * 2)             # conv input mid + halos, bf16, x2 buffers
    blocks += 2 * (th * W * c_res * 2)             # residual input (pass 3 only), bf16
    blocks += 2 * (th * W * c_out * out_itemsize)  # main output, x2 buffers
    blocks += 2 * (2 * c_out * 4)                  # stats output
    weights = 2 * (9 * c_conv * c_out + c_res * c_out) * 2 + 4 * (c_conv + c_out) * 4
    temps = t2 * W * c_conv * (4 + 2 + 6)          # f32 act + bf16 copy + lane-concat taps
    temps += th * W * c_out * 8                    # f32 matmul accumulator + conv result
    return int(blocks + weights + temps)


def _pick_tile_rows(H, W, cin, cout, B, vmem_budget, requested=None):
    """Largest divisor of H (<= requested or 32) whose conv pass fits VMEM,
    while keeping at least 2 grid steps so the v7x megacore has work."""
    cap = min(H, requested if requested else 32)
    cmax = max(cin, cout)
    fallback = 1
    for th in range(cap, 0, -1):
        if H % th:
            continue
        if fallback == 1:
            fallback = th
        fits = _conv_pass_vmem(th, W, cmax, cmax, cmax, 4) <= vmem_budget
        feeds_both_cores = B * (H // th) >= 2
        if fits and feeds_both_cores:
            return th
    return fallback


def _gn_scale_shift(stats, gamma, beta, n_tile):
    """Fold GroupNorm into a per-(batch, channel) affine: gn(v) = v*scale + shift.

    stats: (B, RT, 2, C); [..., 0, :] = per-tile channel sums, [..., 1, :] =
    per-tile centered sums of squares.  A Chan/Welford combine across tiles and
    channels-in-group avoids the E[x^2] - mean^2 cancellation.  Tiny O(B*C)
    work, done in plain JAX between the Pallas passes.
    """
    s1 = stats[:, :, 0, :].astype(jnp.float32)                   # (B, RT, C)
    m2 = stats[:, :, 1, :].astype(jnp.float32)
    B, RT, C = s1.shape
    gs = C // NUM_GROUPS
    n_total = RT * gs * n_tile                                   # = H*W*gs

    def grp(a):
        return a.reshape(B, RT, NUM_GROUPS, gs)

    gmean = grp(s1).sum(axis=(1, 3)) / n_total                   # (B, G)
    dmean = grp(s1 / n_tile) - gmean[:, None, :, None]
    gm2 = grp(m2).sum(axis=(1, 3)) + n_tile * (dmean * dmean).sum(axis=(1, 3))
    var = jnp.maximum(gm2 / n_total, 0.0)
    rstd = lax.rsqrt(var + EPS)
    scale = jnp.repeat(rstd, gs, axis=1) * gamma[None, :]        # (B, C)
    shift = beta[None, :] - jnp.repeat(gmean, gs, axis=1) * scale
    return (scale[:, None, :].astype(jnp.float32),               # (B, 1, C)
            shift[:, None, :].astype(jnp.float32))


# --------------------------------- wrapper -----------------------------------

def vae_residual_block(x_nchw, params, *, tile_rows=None):
    """x_nchw: (B, Cin, H, W) f32 (PyTorch layout). Returns (B, Cout, H, W) f32."""
    B, Cin, H, W = x_nchw.shape
    Cout = params["w1"].shape[-1]
    assert Cin % NUM_GROUPS == 0 and Cout % NUM_GROUPS == 0

    budget = int(0.75 * _vmem_capacity_bytes())                  # <=48 MiB on v7x
    th = _pick_tile_rows(H, W, Cin, Cout, B, budget, tile_rows)
    n_rt = H // th

    # NHWC bf16 working copy (transpose fused with the down-cast; halves the
    # HBM traffic of the old f32 copy and of every x read in passes 2/3).
    x = jnp.transpose(x_nchw, (0, 2, 3, 1)).astype(jnp.bfloat16)

    # Conv weights reshaped so each ky slab is the kx-major (3*C, Cout) matrix
    # matching the lane-concatenated taps in the kernel.
    w1 = params["w1"].astype(jnp.bfloat16).reshape(3, 3 * Cin, Cout)
    w2 = params["w2"].astype(jnp.bfloat16).reshape(3, 3 * Cout, Cout)
    b1 = params["b1"].reshape(1, Cout).astype(jnp.float32)
    b2 = params["b2"].reshape(1, Cout).astype(jnp.float32)

    # Row-tile BlockSpecs: main tile plus 1-row top/bottom halo blocks (clamped
    # at the image border; the kernel zeroes out-of-image halo rows).
    def _mid(c):
        return pl.BlockSpec((1, th, W, c), lambda b, r: (b, r, 0, 0))

    def _halo_top(c):
        return pl.BlockSpec((1, 1, W, c),
                            lambda b, r: (b, jnp.maximum(r * th - 1, 0), 0, 0))

    def _halo_bot(c):
        return pl.BlockSpec((1, 1, W, c),
                            lambda b, r: (b, jnp.minimum(r * th + th, H - 1), 0, 0))

    def _per_batch(c):                                           # (B, 1, C) scale/shift
        return pl.BlockSpec((1, 1, c), lambda b, r: (b, 0, 0))

    def _const(shape):                                           # grid-invariant params
        nd = len(shape)
        return pl.BlockSpec(shape, lambda b, r: (0,) * nd)

    def _stats_out(c):
        return pl.BlockSpec((1, 1, 2, c), lambda b, r: (b, r, 0, 0))

    def _cp(block_bytes):
        limit = int(min(budget, max(32 * 2**20, int(1.3 * block_bytes) + (4 << 20))))
        return pltpu.CompilerParams(
            dimension_semantics=("parallel", "parallel"),        # megacore on v7x
            vmem_limit_bytes=limit)

    fp32, bf16 = jnp.float32, jnp.bfloat16

    # ---- pass 1: GroupNorm-1 statistics of x ---------------------------------
    st_x = pl.pallas_call(
        _stats_kernel,
        grid=(B, n_rt),
        in_specs=[_mid(Cin)],
        out_specs=_stats_out(Cin),
        out_shape=jax.ShapeDtypeStruct((B, n_rt, 2, Cin), fp32),
        compiler_params=_cp(2 * th * W * Cin * 2 + 4 * 2 * Cin * 4 + th * W * Cin * 8),
    )(x)
    sc1, sh1 = _gn_scale_shift(st_x, params["g1"], params["be1"], th * W)

    # ---- pass 2: GN1 affine + SiLU + conv1 (+ GroupNorm-2 partial stats) -----
    h1, st_h = pl.pallas_call(
        _gn1_conv1_kernel,
        grid=(B, n_rt),
        in_specs=[_halo_top(Cin), _mid(Cin), _halo_bot(Cin),
                  _per_batch(Cin), _per_batch(Cin),
                  _const((3, 3 * Cin, Cout)), _const((1, Cout))],
        out_specs=(_mid(Cout), _stats_out(Cout)),
        out_shape=(jax.ShapeDtypeStruct((B, H, W, Cout), bf16),  # bf16 intermediate
                   jax.ShapeDtypeStruct((B, n_rt, 2, Cout), fp32)),
        compiler_params=_cp(_conv_pass_vmem(th, W, Cin, Cout)),
    )(x, x, x, sc1, sh1, w1, b1)
    sc2, sh2 = _gn_scale_shift(st_h, params["g2"], params["be2"], th * W)

    # ---- pass 3: GN2 affine + SiLU + conv2 + residual ------------------------
    in_specs = [_halo_top(Cout), _mid(Cout), _halo_bot(Cout),
                _per_batch(Cout), _per_batch(Cout),
                _const((3, 3 * Cout, Cout)), _const((1, Cout)),
                _mid(Cin)]
    args = [h1, h1, h1, sc2, sh2, w2, b2, x]
    if Cin != Cout:                                              # 1x1-conv residual
        in_specs += [_const((Cin, Cout)), _const((1, Cout))]
        args += [params["wr"].astype(bf16),
                 params["br"].reshape(1, Cout).astype(fp32)]
        kernel3 = _gn2_conv2_kernel_proj
    else:                                                        # identity residual
        kernel3 = _gn2_conv2_kernel_id

    out_nhwc = pl.pallas_call(
        kernel3,
        grid=(B, n_rt),
        in_specs=in_specs,
        out_specs=_mid(Cout),
        out_shape=jax.ShapeDtypeStruct((B, H, W, Cout), fp32),
        compiler_params=_cp(_conv_pass_vmem(th, W, Cout, Cout, Cin, 4)),
    )(*args)

    return jnp.transpose(out_nhwc, (0, 3, 1, 2))                 # back to NCHW


# ------------------------- pure-JAX reference (check) -------------------------

def _reference(x_nchw, params):
    """Reference with the same bf16 roundings (x copy, conv operands, h1)."""
    def bf(v):
        return v.astype(jnp.bfloat16)

    x = bf(jnp.transpose(x_nchw, (0, 2, 3, 1)))                  # NHWC bf16

    def gn(v, gamma, beta):
        v = v.astype(jnp.float32)
        B, H, W, C = v.shape
        gs = C // NUM_GROUPS
        vr = v.reshape(B, H, W, NUM_GROUPS, gs)
        mean = vr.mean(axis=(1, 2, 4), keepdims=True)
        var = vr.var(axis=(1, 2, 4), keepdims=True)
        vn = ((vr - mean) * lax.rsqrt(var + EPS)).reshape(B, H, W, C)
        return vn * gamma + beta

    def silu(v):
        return v * jax.nn.sigmoid(v)

    def conv(v, w, b):
        y = lax.conv_general_dilated(
            bf(v), bf(w), (1, 1), "SAME",
            dimension_numbers=("NHWC", "HWIO", "NHWC"),
            preferred_element_type=jnp.float32)
        return y + b

    h = conv(silu(gn(x, params["g1"], params["be1"])), params["w1"], params["b1"])
    h = bf(h)                                                    # matches bf16 h1
    h = conv(silu(gn(h, params["g2"], params["be2"])), params["w2"], params["b2"])
    B, H, W, Cin = x.shape
    if "wr" in params:
        res = jnp.dot(x.reshape(-1, Cin), bf(params["wr"]),
                      preferred_element_type=jnp.float32)
        res = res.reshape(B, H, W, -1) + params["br"]
    else:
        res = x.astype(jnp.float32)
    return jnp.transpose(h + res, (0, 3, 1, 2))


# ----------------------------------- main -------------------------------------

def _run_case(key, B, Cin, Cout, H, W, tile_rows):
    ks = jax.random.split(key, 11)
    x = jax.random.normal(ks[0], (B, Cin, H, W), jnp.float32)
    params = {
        "g1": 1.0 + 0.1 * jax.random.normal(ks[1], (Cin,), jnp.float32),
        "be1": 0.1 * jax.random.normal(ks[2], (Cin,), jnp.float32),
        "w1": jax.random.normal(ks[3], (3, 3, Cin, Cout), jnp.float32) / (9 * Cin) ** 0.5,
        "b1": 0.01 * jax.random.normal(ks[4], (Cout,), jnp.float32),
        "g2": 1.0 + 0.1 * jax.random.normal(ks[5], (Cout,), jnp.float32),
        "be2": 0.1 * jax.random.normal(ks[6], (Cout,), jnp.float32),
        "w2": jax.random.normal(ks[7], (3, 3, Cout, Cout), jnp.float32) / (9 * Cout) ** 0.5,
        "b2": 0.01 * jax.random.normal(ks[8], (Cout,), jnp.float32),
    }
    if Cin != Cout:
        params["wr"] = jax.random.normal(ks[9], (Cin, Cout), jnp.float32) / Cin ** 0.5
        params["br"] = 0.01 * jax.random.normal(ks[10], (Cout,), jnp.float32)

    fn = jax.jit(functools.partial(vae_residual_block, tile_rows=tile_rows))
    out = jax.block_until_ready(fn(x, params))
    assert out.shape == (B, Cout, H, W), out.shape

    ref = _reference(x, params)
    err = float(jnp.max(jnp.abs(out - ref)))
    if err > 3e-3:   # bf16 MXU operands / bf16 x, h1 with f32 accumulation
        raise SystemExit(
            f"mismatch vs reference (Cin={Cin}, Cout={Cout}): max abs err = {err}")


if __name__ == "__main__":
    key = jax.random.PRNGKey(0)
    k1, k2 = jax.random.split(key)
    # Small but lane-dense channel counts (multiples of 128, like the real
    # SD-VAE decoder).
    # Case 1: Cin != Cout -> 1x1-conv residual; tile_rows=8 gives 2 row tiles
    # so the vertical-halo exchange path is exercised.
    _run_case(k1, B=2, Cin=128, Cout=256, H=16, W=16, tile_rows=8)
    # Case 2: Cin == Cout -> identity residual; auto tile (full height).
    _run_case(k2, B=2, Cin=128, Cout=128, H=16, W=16, tile_rows=None)
    print("KERNEL_OK")
</pallas_src>

<mosaic_0001>
module attributes {stable_mosaic.version = 11 : i64} {
  func.func @_stats_kernel(%arg0: i32, %arg1: i32, %arg2: memref<1x8x16x128xbf16, #tpu.memory_space<vmem>>, %arg3: memref<1x1x2x128xf32, #tpu.memory_space<vmem>>) attributes {dimension_semantics = [#tpu.dimension_semantics<parallel>, #tpu.dimension_semantics<parallel>], iteration_bounds = array<i64: 2, 2>, scalar_prefetch = 0 : i64, scratch_operands = 0 : i64, tpu.core_type = #tpu.core_type<tc>, window_params = [{transform_indices = @transform_0, window_bounds = array<i64: 1, 8, 16, 128>}, {transform_indices = @transform_1, window_bounds = array<i64: 1, 1, 2, 128>}]} {
    %c0 = arith.constant 0 : index
    %c0_0 = arith.constant 0 : index
    %c0_1 = arith.constant 0 : index
    %c0_2 = arith.constant 0 : index
    %0 = vector.load %arg2[%c0, %c0_0, %c0_1, %c0_2] : memref<1x8x16x128xbf16, #tpu.memory_space<vmem>>, vector<1x8x16x128xbf16>
    %1 = vector.shape_cast %0 : vector<1x8x16x128xbf16> to vector<8x16x128xbf16>
    %2 = arith.extf %1 : vector<8x16x128xbf16> to vector<8x16x128xf32>
    %3 = vector.shape_cast %2 : vector<8x16x128xf32> to vector<128x128xf32>
    %cst = arith.constant dense<0.000000e+00> : vector<128xf32>
    %4 = vector.multi_reduction <add>, %3, %cst [0] : vector<128x128xf32> to vector<128xf32>
    %5 = vector.shape_cast %4 : vector<128xf32> to vector<1x128xf32>
    %cst_3 = arith.constant 7.812500e-03 : f32
    %6 = vector.broadcast %cst_3 : f32 to vector<1x128xf32>
    %7 = arith.mulf %5, %6 : vector<1x128xf32>
    %8 = vector.broadcast %7 : vector<1x128xf32> to vector<128x128xf32>
    %9 = arith.subf %3, %8 : vector<128x128xf32>
    %10 = arith.mulf %9, %9 : vector<128x128xf32>
    %cst_4 = arith.constant dense<0.000000e+00> : vector<128xf32>
    %11 = vector.multi_reduction <add>, %10, %cst_4 [0] : vector<128x128xf32> to vector<128xf32>
    %12 = vector.shape_cast %11 : vector<128xf32> to vector<1x128xf32>
    %13 = tpu.concatenate %5, %12 in 0 : vector<1x128xf32>, vector<1x128xf32> -> vector<2x128xf32>
    %c0_5 = arith.constant 0 : index
    %c0_6 = arith.constant 0 : index
    %c0_7 = arith.constant 0 : index
    %c0_8 = arith.constant 0 : index
    %14 = vector.load %arg3[%c0_5, %c0_6, %c0_7, %c0_8] : memref<1x1x2x128xf32, #tpu.memory_space<vmem>>, vector<1x1x2x128xf32>
    %15 = vector.shape_cast %14 : vector<1x1x2x128xf32> to vector<2x128xf32>
    %16 = vector.shape_cast %13 : vector<2x128xf32> to vector<1x1x2x128xf32>
    tpu.vector_store %arg3[%c0_5, %c0_6, %c0_7, %c0_8], %16 {strides = array<i32>} : memref<1x1x2x128xf32, #tpu.memory_space<vmem>>, vector<1x1x2x128xf32>,
    return
  }
  func.func @transform_0(%arg0: i32, %arg1: i32) -> (i32, i32, i32, i32) {
    %c0_i32 = arith.constant 0 : i32
    %c0_i32_0 = arith.constant 0 : i32
    %c0_i32_1 = arith.constant 0 : i32
    return %arg0, %arg1, %c0_i32, %c0_i32_0 : i32, i32, i32, i32
  }
  func.func @transform_1(%arg0: i32, %arg1: i32) -> (i32, i32, i32, i32) {
    %c0_i32 = arith.constant 0 : i32
    %c0_i32_0 = arith.constant 0 : i32
    %c0_i32_1 = arith.constant 0 : i32
    return %arg0, %arg1, %c0_i32, %c0_i32_0 : i32, i32, i32, i32
  }
}

module attributes {stable_mosaic.version = 11 : i64} {
  func.func @_gn1_conv1_kernel(%arg0: i32, %arg1: i32, %arg2: memref<1x1x16x128xbf16, #tpu.memory_space<vmem>>, %arg3: memref<1x8x16x128xbf16, #tpu.memory_space<vmem>>, %arg4: memref<1x1x16x128xbf16, #tpu.memory_space<vmem>>, %arg5: memref<1x1x128xf32, #tpu.memory_space<vmem>>, %arg6: memref<1x1x128xf32, #tpu.memory_space<vmem>>, %arg7: memref<3x384x256xbf16, #tpu.memory_space<vmem>>, %arg8: memref<1x256xf32, #tpu.memory_space<vmem>>, %arg9: memref<1x8x16x256xbf16, #tpu.memory_space<vmem>>, %arg10: memref<1x1x2x256xf32, #tpu.memory_space<vmem>>) attributes {dimension_semantics = [#tpu.dimension_semantics<parallel>, #tpu.dimension_semantics<parallel>], iteration_bounds = array<i64: 2, 2>, scalar_prefetch = 0 : i64, scratch_operands = 0 : i64, tpu.core_type = #tpu.core_type<tc>, window_params = [{transform_indices = @transform_0, window_bounds = array<i64: 1, 1, 16, 128>}, {transform_indices = @transform_1, window_bounds = array<i64: 1, 8, 16, 128>}, {transform_indices = @transform_2, window_bounds = array<i64: 1, 1, 16, 128>}, {transform_indices = @transform_3, window_bounds = array<i64: 1, 1, 128>}, {transform_indices = @transform_4, window_bounds = array<i64: 1, 1, 128>}, {pipeline_mode = #tpu.pipeline_mode<synchronous>, transform_indices = @transform_5, window_bounds = array<i64: 3, 384, 256>}, {pipeline_mode = #tpu.pipeline_mode<synchronous>, transform_indices = @transform_6, window_bounds = array<i64: 1, 256>}, {transform_indices = @transform_7, window_bounds = array<i64: 1, 8, 16, 256>}, {transform_indices = @transform_8, window_bounds = array<i64: 1, 1, 2, 256>}]} {
    %c0 = arith.constant 0 : index
    %c0_0 = arith.constant 0 : index
    %c0_1 = arith.constant 0 : index
    %c0_2 = arith.constant 0 : index
    %0 = vector.load %arg2[%c0, %c0_0, %c0_1, %c0_2] : memref<1x1x16x128xbf16, #tpu.memory_space<vmem>>, vector<1x1x16x128xbf16>
    %1 = vector.shape_cast %0 : vector<1x1x16x128xbf16> to vector<1x16x128xbf16>
    %c0_3 = arith.constant 0 : index
    %c0_4 = arith.constant 0 : index
    %c0_5 = arith.constant 0 : index
    %c0_6 = arith.constant 0 : index
    %2 = vector.load %arg3[%c0_3, %c0_4, %c0_5, %c0_6] : memref<1x8x16x128xbf16, #tpu.memory_space<vmem>>, vector<1x8x16x128xbf16>
    %3 = vector.shape_cast %2 : vector<1x8x16x128xbf16> to vector<8x16x128xbf16>
    %c0_7 = arith.constant 0 : index
    %c0_8 = arith.constant 0 : index
    %c0_9 = arith.constant 0 : index
    %c0_10 = arith.constant 0 : index
    %4 = vector.load %arg4[%c0_7, %c0_8, %c0_9, %c0_10] : memref<1x1x16x128xbf16, #tpu.memory_space<vmem>>, vector<1x1x16x128xbf16>
    %5 = vector.shape_cast %4 : vector<1x1x16x128xbf16> to vector<1x16x128xbf16>
    %c0_11 = arith.constant 0 : index
    %c0_12 = arith.constant 0 : index
    %c0_13 = arith.constant 0 : index
    %6 = vector.load %arg5[%c0_11, %c0_12, %c0_13] : memref<1x1x128xf32, #tpu.memory_space<vmem>>, vector<1x1x128xf32>
    %7 = vector.shape_cast %6 : vector<1x1x128xf32> to vector<1x128xf32>
    %c0_14 = arith.constant 0 : index
    %c0_15 = arith.constant 0 : index
    %c0_16 = arith.constant 0 : index
    %8 = vector.load %arg6[%c0_14, %c0_15, %c0_16] : memref<1x1x128xf32, #tpu.memory_space<vmem>>, vector<1x1x128xf32>
    %9 = vector.shape_cast %8 : vector<1x1x128xf32> to vector<1x128xf32>
    %c0_17 = arith.constant 0 : index
    %c0_18 = arith.constant 0 : index
    %10 = vector.load %arg8[%c0_17, %c0_18] : memref<1x256xf32, #tpu.memory_space<vmem>>, vector<1x256xf32>
    %11 = arith.extf %1 : vector<1x16x128xbf16> to vector<1x16x128xf32>
    %12 = vector.shape_cast %7 : vector<1x128xf32> to vector<1x1x128xf32>
    %13 = vector.broadcast %12 : vector<1x1x128xf32> to vector<1x16x128xf32>
    %14 = arith.mulf %11, %13 : vector<1x16x128xf32>
    %15 = vector.shape_cast %9 : vector<1x128xf32> to vector<1x1x128xf32>
    %16 = vector.broadcast %15 : vector<1x1x128xf32> to vector<1x16x128xf32>
    %17 = arith.addf %14, %16 : vector<1x16x128xf32>
    %18 = arith.negf %17 : vector<1x16x128xf32>
    %19 = math.exp %18 : vector<1x16x128xf32>
    %cst = arith.constant 1.000000e+00 : f32
    %20 = vector.broadcast %cst : f32 to vector<1x16x128xf32>
    %21 = arith.addf %20, %19 : vector<1x16x128xf32>
    %22 = arith.divf %20, %21 : vector<1x16x128xf32>
    %23 = arith.mulf %17, %22 : vector<1x16x128xf32>
    %c0_i32 = arith.constant 0 : i32
    %24 = arith.cmpi sgt, %arg1, %c0_i32 : i32
    %25 = arith.extui %24 : i1 to i32
    %26 = arith.sitofp %25 : i32 to f32
    %27 = vector.broadcast %26 : f32 to vector<1x16x128xf32>
    %28 = arith.mulf %23, %27 : vector<1x16x128xf32>
    %29 = arith.extf %5 : vector<1x16x128xbf16> to vector<1x16x128xf32>
    %30 = vector.shape_cast %7 : vector<1x128xf32> to vector<1x1x128xf32>
    %31 = vector.broadcast %30 : vector<1x1x128xf32> to vector<1x16x128xf32>
    %32 = arith.mulf %29, %31 : vector<1x16x128xf32>
    %33 = vector.shape_cast %9 : vector<1x128xf32> to vector<1x1x128xf32>
    %34 = vector.broadcast %33 : vector<1x1x128xf32> to vector<1x16x128xf32>
    %35 = arith.addf %32, %34 : vector<1x16x128xf32>
    %36 = arith.negf %35 : vector<1x16x128xf32>
    %37 = math.exp %36 : vector<1x16x128xf32>
    %cst_19 = arith.constant 1.000000e+00 : f32
    %38 = vector.broadcast %cst_19 : f32 to vector<1x16x128xf32>
    %39 = arith.addf %38, %37 : vector<1x16x128xf32>
    %40 = arith.divf %38, %39 : vector<1x16x128xf32>
    %41 = arith.mulf %35, %40 : vector<1x16x128xf32>
    %c1_i32 = arith.constant 1 : i32
    %42 = arith.cmpi slt, %arg1, %c1_i32 : i32
    %43 = arith.extui %42 : i1 to i32
    %44 = arith.sitofp %43 : i32 to f32
    %45 = vector.broadcast %44 : f32 to vector<1x16x128xf32>
    %46 = arith.mulf %41, %45 : vector<1x16x128xf32>
    %47 = arith.extf %3 : vector<8x16x128xbf16> to vector<8x16x128xf32>
    %48 = vector.shape_cast %7 : vector<1x128xf32> to vector<1x1x128xf32>
    %49 = vector.broadcast %48 : vector<1x1x128xf32> to vector<8x16x128xf32>
    %50 = arith.mulf %47, %49 : vector<8x16x128xf32>
    %51 = vector.shape_cast %9 : vector<1x128xf32> to vector<1x1x128xf32>
    %52 = vector.broadcast %51 : vector<1x1x128xf32> to vector<8x16x128xf32>
    %53 = arith.addf %50, %52 : vector<8x16x128xf32>
    %54 = arith.negf %53 : vector<8x16x128xf32>
    %55 = math.exp %54 : vector<8x16x128xf32>
    %cst_20 = arith.constant 1.000000e+00 : f32
    %56 = vector.broadcast %cst_20 : f32 to vector<8x16x128xf32>
    %57 = arith.addf %56, %55 : vector<8x16x128xf32>
    %58 = arith.divf %56, %57 : vector<8x16x128xf32>
    %59 = arith.mulf %53, %58 : vector<8x16x128xf32>
    %60 = tpu.concatenate %28, %59, %46 in 0 : vector<1x16x128xf32>, vector<8x16x128xf32>, vector<1x16x128xf32> -> vector<10x16x128xf32>
    %61 = arith.truncf %60 : vector<10x16x128xf32> to vector<10x16x128xbf16>
    %cst_21 = arith.constant 0.000000e+00 : bf16
    %62 = vector.broadcast %cst_21 : bf16 to vector<10x1x128xbf16>
    %63 = vector.extract_strided_slice %61 {offsets = [0, 0, 0], sizes = [10, 15, 128], strides = [1, 1, 1]} : vector<10x16x128xbf16> to vector<10x15x128xbf16>
    %64 = tpu.concatenate %62, %63 in 1 : vector<10x1x128xbf16>, vector<10x15x128xbf16> -> vector<10x16x128xbf16>
    %65 = vector.extract_strided_slice %61 {offsets = [0, 1, 0], sizes = [10, 15, 128], strides = [1, 1, 1]} : vector<10x16x128xbf16> to vector<10x15x128xbf16>
    %66 = tpu.concatenate %65, %62 in 1 : vector<10x15x128xbf16>, vector<10x1x128xbf16> -> vector<10x16x128xbf16>
    %67 = tpu.concatenate %64, %61, %66 in 2 : vector<10x16x128xbf16>, vector<10x16x128xbf16>, vector<10x16x128xbf16> -> vector<10x16x384xbf16>
    %cst_22 = arith.constant 0.000000e+00 : f32
    %68 = vector.broadcast %cst_22 : f32 to vector<128x256xf32>
    %69 = vector.extract_strided_slice %67 {offsets = [0, 0, 0], sizes = [8, 16, 384], strides = [1, 1, 1]} : vector<10x16x384xbf16> to vector<8x16x384xbf16>
    %70 = vector.shape_cast %69 : vector<8x16x384xbf16> to vector<128x384xbf16>
    %c0_23 = arith.constant 0 : index
    %c0_24 = arith.constant 0 : index
    %c0_25 = arith.constant 0 : index
    %71 = vector.load %arg7[%c0_23, %c0_24, %c0_25] : memref<3x384x256xbf16, #tpu.memory_space<vmem>>, vector<1x384x256xbf16>
    %72 = vector.shape_cast %71 : vector<1x384x256xbf16> to vector<384x256xbf16>
    %cst_26 = arith.constant dense<0.000000e+00> : vector<128x256xf32>
    %73 = tpu.matmul %70, %72, %cst_26 {dimension_numbers = #tpu.dot_dimension_numbers<[1], [0], [0], [1], [0, 0, 1, 1], [], []>} : vector<128x384xbf16>, vector<384x256xbf16>, vector<128x256xf32> -> vector<128x256xf32>
    %74 = arith.addf %68, %73 : vector<128x256xf32>
    %75 = vector.extract_strided_slice %67 {offsets = [1, 0, 0], sizes = [8, 16, 384], strides = [1, 1, 1]} : vector<10x16x384xbf16> to vector<8x16x384xbf16>
    %76 = vector.shape_cast %75 : vector<8x16x384xbf16> to vector<128x384xbf16>
    %c1 = arith.constant 1 : index
    %c0_27 = arith.constant 0 : index
    %c0_28 = arith.constant 0 : index
    %77 = vector.load %arg7[%c1, %c0_27, %c0_28] : memref<3x384x256xbf16, #tpu.memory_space<vmem>>, vector<1x384x256xbf16>
    %78 = vector.shape_cast %77 : vector<1x384x256xbf16> to vector<384x256xbf16>
    %cst_29 = arith.constant dense<0.000000e+00> : vector<128x256xf32>
    %79 = tpu.matmul %76, %78, %cst_29 {dimension_numbers = #tpu.dot_dimension_numbers<[1], [0], [0], [1], [0, 0, 1, 1], [], []>} : vector<128x384xbf16>, vector<384x256xbf16>, vector<128x256xf32> -> vector<128x256xf32>
    %80 = arith.addf %74, %79 : vector<128x256xf32>
    %81 = vector.extract_strided_slice %67 {offsets = [2, 0, 0], sizes = [8, 16, 384], strides = [1, 1, 1]} : vector<10x16x384xbf16> to vector<8x16x384xbf16>
    %82 = vector.shape_cast %81 : vector<8x16x384xbf16> to vector<128x384xbf16>
    %c2 = arith.constant 2 : index
    %c0_30 = arith.constant 0 : index
    %c0_31 = arith.constant 0 : index
    %83 = vector.load %arg7[%c2, %c0_30, %c0_31] : memref<3x384x256xbf16, #tpu.memory_space<vmem>>, vector<1x384x256xbf16>
    %84 = vector.shape_cast %83 : vector<1x384x256xbf16> to vector<384x256xbf16>
    %cst_32 = arith.constant dense<0.000000e+00> : vector<128x256xf32>
    %85 = tpu.matmul %82, %84, %cst_32 {dimension_numbers = #tpu.dot_dimension_numbers<[1], [0], [0], [1], [0, 0, 1, 1], [], []>} : vector<128x384xbf16>, vector<384x256xbf16>, vector<128x256xf32> -> vector<128x256xf32>
    %86 = arith.addf %80, %85 : vector<128x256xf32>
    %87 = vector.shape_cast %86 : vector<128x256xf32> to vector<8x16x256xf32>
    %88 = vector.shape_cast %10 : vector<1x256xf32> to vector<1x1x256xf32>
    %89 = vector.broadcast %88 : vector<1x1x256xf32> to vector<8x16x256xf32>
    %90 = arith.addf %87, %89 : vector<8x16x256xf32>
    %91 = arith.truncf %90 : vector<8x16x256xf32> to vector<8x16x256xbf16>
    %c0_33 = arith.constant 0 : index
    %c0_34 = arith.constant 0 : index
    %c0_35 = arith.constant 0 : index
    %c0_36 = arith.constant 0 : index
    %92 = vector.load %arg9[%c0_33, %c0_34, %c0_35, %c0_36] : memref<1x8x16x256xbf16, #tpu.memory_space<vmem>>, vector<1x8x16x256xbf16>
    %93 = vector.shape_cast %92 : vector<1x8x16x256xbf16> to vector<8x16x256xbf16>
    %94 = vector.shape_cast %91 : vector<8x16x256xbf16> to vector<1x8x16x256xbf16>
    tpu.vector_store %arg9[%c0_33, %c0_34, %c0_35, %c0_36], %94 {strides = array<i32>} : memref<1x8x16x256xbf16, #tpu.memory_space<vmem>>, vector<1x8x16x256xbf16>,
    %95 = arith.extf %91 : vector<8x16x256xbf16> to vector<8x16x256xf32>
    %96 = vector.shape_cast %95 : vector<8x16x256xf32> to vector<128x256xf32>
    %cst_37 = arith.constant dense<0.000000e+00> : vector<256xf32>
    %97 = vector.multi_reduction <add>, %96, %cst_37 [0] : vector<128x256xf32> to vector<256xf32>
    %98 = vector.shape_cast %97 : vector<256xf32> to vector<1x256xf32>
    %cst_38 = arith.constant 7.812500e-03 : f32
    %99 = vector.broadcast %cst_38 : f32 to vector<1x256xf32>
    %100 = arith.mulf %98, %99 : vector<1x256xf32>
    %101 = vector.broadcast %100 : vector<1x256xf32> to vector<128x256xf32>
    %102 = arith.subf %96, %101 : vector<128x256xf32>
    %103 = arith.mulf %102, %102 : vector<128x256xf32>
    %cst_39 = arith.constant dense<0.000000e+00> : vector<256xf32>
    %104 = vector.multi_reduction <add>, %103, %cst_39 [0] : vector<128x256xf32> to vector<256xf32>
    %105 = vector.shape_cast %104 : vector<256xf32> to vector<1x256xf32>
    %106 = tpu.concatenate %98, %105 in 0 : vector<1x256xf32>, vector<1x256xf32> -> vector<2x256xf32>
    %c0_40 = arith.constant 0 : index
    %c0_41 = arith.constant 0 : index
    %c0_42 = arith.constant 0 : index
    %c0_43 = arith.constant 0 : index
    %107 = vector.load %arg10[%c0_40, %c0_41, %c0_42, %c0_43] : memref<1x1x2x256xf32, #tpu.memory_space<vmem>>, vector<1x1x2x256xf32>
    %108 = vector.shape_cast %107 : vector<1x1x2x256xf32> to vector<2x256xf32>
    %109 = vector.shape_cast %106 : vector<2x256xf32> to vector<1x1x2x256xf32>
    tpu.vector_store %arg10[%c0_40, %c0_41, %c0_42, %c0_43], %109 {strides = array<i32>} : memref<1x1x2x256xf32, #tpu.memory_space<vmem>>, vector<1x1x2x256xf32>,
    return
  }
  func.func @transform_0(%arg0: i32, %arg1: i32) -> (i32, i32, i32, i32) {
    %c8_i32 = arith.constant 8 : i32
    %0 = arith.muli %arg1, %c8_i32 : i32
    %c1_i32 = arith.constant 1 : i32
    %1 = arith.subi %0, %c1_i32 : i32
    %c0_i32 = arith.constant 0 : i32
    %2 = arith.maxsi %1, %c0_i32 : i32
    %c0_i32_0 = arith.constant 0 : i32
    %c0_i32_1 = arith.constant 0 : i32
    %c0_i32_2 = arith.constant 0 : i32
    return %arg0, %2, %c0_i32_0, %c0_i32_1 : i32, i32, i32, i32
  }
  func.func @transform_1(%arg0: i32, %arg1: i32) -> (i32, i32, i32, i32) {
    %c0_i32 = arith.constant 0 : i32
    %c0_i32_0 = arith.constant 0 : i32
    %c0_i32_1 = arith.constant 0 : i32
    return %arg0, %arg1, %c0_i32, %c0_i32_0 : i32, i32, i32, i32
  }
  func.func @transform_2(%arg0: i32, %arg1: i32) -> (i32, i32, i32, i32) {
    %c8_i32 = arith.constant 8 : i32
    %0 = arith.muli %arg1, %c8_i32 : i32
    %c8_i32_0 = arith.constant 8 : i32
    %1 = arith.addi %0, %c8_i32_0 : i32
    %c15_i32 = arith.constant 15 : i32
    %2 = arith.minsi %1, %c15_i32 : i32
    %c0_i32 = arith.constant 0 : i32
    %c0_i32_1 = arith.constant 0 : i32
    %c0_i32_2 = arith.constant 0 : i32
    return %arg0, %2, %c0_i32, %c0_i32_1 : i32, i32, i32, i32
  }
  func.func @transform_3(%arg0: i32, %arg1: i32) -> (i32, i32, i32) {
    %c0_i32 = arith.constant 0 : i32
    %c0_i32_0 = arith.constant 0 : i32
    %c0_i32_1 = arith.constant 0 : i32
    return %arg0, %c0_i32, %c0_i32_0 : i32, i32, i32
  }
  func.func @transform_4(%arg0: i32, %arg1: i32) -> (i32, i32, i32) {
    %c0_i32 = arith.constant 0 : i32
    %c0_i32_0 = arith.constant 0 : i32
    %c0_i32_1 = arith.constant 0 : i32
    return %arg0, %c0_i32, %c0_i32_0 : i32, i32, i32
  }
  func.func @transform_5(%arg0: i32, %arg1: i32) -> (i32, i32, i32) {
    %c0_i32 = arith.constant 0 : i32
    %c0_i32_0 = arith.constant 0 : i32
    %c0_i32_1 = arith.constant 0 : i32
    %c0_i32_2 = arith.constant 0 : i32
    return %c0_i32, %c0_i32_0, %c0_i32_1 : i32, i32, i32
  }
  func.func @transform_6(%arg0: i32, %arg1: i32) -> (i32, i32) {
    %c0_i32 = arith.constant 0 : i32
    %c0_i32_0 = arith.constant 0 : i32
    %c0_i32_1 = arith.constant 0 : i32
    return %c0_i32, %c0_i32_0 : i32, i32
  }
  func.func @transform_7(%arg0: i32, %arg1: i32) -> (i32, i32, i32, i32) {
    %c0_i32 = arith.constant 0 : i32
    %c0_i32_0 = arith.constant 0 : i32
    %c0_i32_1 = arith.constant 0 : i32
    return %arg0, %arg1, %c0_i32, %c0_i32_0 : i32, i32, i32, i32
  }
  func.func @transform_8(%arg0: i32, %arg1: i32) -> (i32, i32, i32, i32) {
    %c0_i32 = arith.constant 0 : i32
    %c0_i32_0 = arith.constant 0 : i32
    %c0_i32_1 = arith.constant 0 : i32
    return %arg0, %arg1, %c0_i32, %c0_i32_0 : i32, i32, i32, i32
  }
}

module attributes {stable_mosaic.version = 11 : i64} {
  func.func @_gn2_conv2_kernel_proj(%arg0: i32, %arg1: i32, %arg2: memref<1x1x16x256xbf16, #tpu.memory_space<vmem>>, %arg3: memref<1x8x16x256xbf16, #tpu.memory_space<vmem>>, %arg4: memref<1x1x16x256xbf16, #tpu.memory_space<vmem>>, %arg5: memref<1x1x256xf32, #tpu.memory_space<vmem>>, %arg6: memref<1x1x256xf32, #tpu.memory_space<vmem>>, %arg7: memref<3x768x256xbf16, #tpu.memory_space<vmem>>, %arg8: memref<1x256xf32, #tpu.memory_space<vmem>>, %arg9: memref<1x8x16x128xbf16, #tpu.memory_space<vmem>>, %arg10: memref<128x256xbf16, #tpu.memory_space<vmem>>, %arg11: memref<1x256xf32, #tpu.memory_space<vmem>>, %arg12: memref<1x8x16x256xf32, #tpu.memory_space<vmem>>) attributes {dimension_semantics = [#tpu.dimension_semantics<parallel>, #tpu.dimension_semantics<parallel>], iteration_bounds = array<i64: 2, 2>, scalar_prefetch = 0 : i64, scratch_operands = 0 : i64, tpu.core_type = #tpu.core_type<tc>, window_params = [{transform_indices = @transform_0, window_bounds = array<i64: 1, 1, 16, 256>}, {transform_indices = @transform_1, window_bounds = array<i64: 1, 8, 16, 256>}, {transform_indices = @transform_2, window_bounds = array<i64: 1, 1, 16, 256>}, {transform_indices = @transform_3, window_bounds = array<i64: 1, 1, 256>}, {transform_indices = @transform_4, window_bounds = array<i64: 1, 1, 256>}, {pipeline_mode = #tpu.pipeline_mode<synchronous>, transform_indices = @transform_5, window_bounds = array<i64: 3, 768, 256>}, {pipeline_mode = #tpu.pipeline_mode<synchronous>, transform_indices = @transform_6, window_bounds = array<i64: 1, 256>}, {transform_indices = @transform_7, window_bounds = array<i64: 1, 8, 16, 128>}, {pipeline_mode = #tpu.pipeline_mode<synchronous>, transform_indices = @transform_8, window_bounds = array<i64: 128, 256>}, {pipeline_mode = #tpu.pipeline_mode<synchronous>, transform_indices = @transform_9, window_bounds = array<i64: 1, 256>}, {transform_indices = @transform_10, window_bounds = array<i64: 1, 8, 16, 256>}]} {
    %c0 = arith.constant 0 : index
    %c0_0 = arith.constant 0 : index
    %c0_1 = arith.constant 0 : index
    %c0_2 = arith.constant 0 : index
    %0 = vector.load %arg2[%c0, %c0_0, %c0_1, %c0_2] : memref<1x1x16x256xbf16, #tpu.memory_space<vmem>>, vector<1x1x16x256xbf16>
    %1 = vector.shape_cast %0 : vector<1x1x16x256xbf16> to vector<1x16x256xbf16>
    %c0_3 = arith.constant 0 : index
    %c0_4 = arith.constant 0 : index
    %c0_5 = arith.constant 0 : index
    %c0_6 = arith.constant 0 : index
    %2 = vector.load %arg3[%c0_3, %c0_4, %c0_5, %c0_6] : memref<1x8x16x256xbf16, #tpu.memory_space<vmem>>, vector<1x8x16x256xbf16>
    %3 = vector.shape_cast %2 : vector<1x8x16x256xbf16> to vector<8x16x256xbf16>
    %c0_7 = arith.constant 0 : index
    %c0_8 = arith.constant 0 : index
    %c0_9 = arith.constant 0 : index
    %c0_10 = arith.constant 0 : index
    %4 = vector.load %arg4[%c0_7, %c0_8, %c0_9, %c0_10] : memref<1x1x16x256xbf16, #tpu.memory_space<vmem>>, vector<1x1x16x256xbf16>
    %5 = vector.shape_cast %4 : vector<1x1x16x256xbf16> to vector<1x16x256xbf16>
    %c0_11 = arith.constant 0 : index
    %c0_12 = arith.constant 0 : index
    %c0_13 = arith.constant 0 : index
    %6 = vector.load %arg5[%c0_11, %c0_12, %c0_13] : memref<1x1x256xf32, #tpu.memory_space<vmem>>, vector<1x1x256xf32>
    %7 = vector.shape_cast %6 : vector<1x1x256xf32> to vector<1x256xf32>
    %c0_14 = arith.constant 0 : index
    %c0_15 = arith.constant 0 : index
    %c0_16 = arith.constant 0 : index
    %8 = vector.load %arg6[%c0_14, %c0_15, %c0_16] : memref<1x1x256xf32, #tpu.memory_space<vmem>>, vector<1x1x256xf32>
    %9 = vector.shape_cast %8 : vector<1x1x256xf32> to vector<1x256xf32>
    %c0_17 = arith.constant 0 : index
    %c0_18 = arith.constant 0 : index
    %10 = vector.load %arg8[%c0_17, %c0_18] : memref<1x256xf32, #tpu.memory_space<vmem>>, vector<1x256xf32>
    %11 = arith.extf %1 : vector<1x16x256xbf16> to vector<1x16x256xf32>
    %12 = vector.shape_cast %7 : vector<1x256xf32> to vector<1x1x256xf32>
    %13 = vector.broadcast %12 : vector<1x1x256xf32> to vector<1x16x256xf32>
    %14 = arith.mulf %11, %13 : vector<1x16x256xf32>
    %15 = vector.shape_cast %9 : vector<1x256xf32> to vector<1x1x256xf32>
    %16 = vector.broadcast %15 : vector<1x1x256xf32> to vector<1x16x256xf32>
    %17 = arith.addf %14, %16 : vector<1x16x256xf32>
    %18 = arith.negf %17 : vector<1x16x256xf32>
    %19 = math.exp %18 : vector<1x16x256xf32>
    %cst = arith.constant 1.000000e+00 : f32
    %20 = vector.broadcast %cst : f32 to vector<1x16x256xf32>
    %21 = arith.addf %20, %19 : vector<1x16x256xf32>
    %22 = arith.divf %20, %21 : vector<1x16x256xf32>
    %23 = arith.mulf %17, %22 : vector<1x16x256xf32>
    %c0_i32 = arith.constant 0 : i32
    %24 = arith.cmpi sgt, %arg1, %c0_i32 : i32
    %25 = arith.extui %24 : i1 to i32
    %26 = arith.sitofp %25 : i32 to f32
    %27 = vector.broadcast %26 : f32 to vector<1x16x256xf32>
    %28 = arith.mulf %23, %27 : vector<1x16x256xf32>
    %29 = arith.extf %5 : vector<1x16x256xbf16> to vector<1x16x256xf32>
    %30 = vector.shape_cast %7 : vector<1x256xf32> to vector<1x1x256xf32>
    %31 = vector.broadcast %30 : vector<1x1x256xf32> to vector<1x16x256xf32>
    %32 = arith.mulf %29, %31 : vector<1x16x256xf32>
    %33 = vector.shape_cast %9 : vector<1x256xf32> to vector<1x1x256xf32>
    %34 = vector.broadcast %33 : vector<1x1x256xf32> to vector<1x16x256xf32>
    %35 = arith.addf %32, %34 : vector<1x16x256xf32>
    %36 = arith.negf %35 : vector<1x16x256xf32>
    %37 = math.exp %36 : vector<1x16x256xf32>
    %cst_19 = arith.constant 1.000000e+00 : f32
    %38 = vector.broadcast %cst_19 : f32 to vector<1x16x256xf32>
    %39 = arith.addf %38, %37 : vector<1x16x256xf32>
    %40 = arith.divf %38, %39 : vector<1x16x256xf32>
    %41 = arith.mulf %35, %40 : vector<1x16x256xf32>
    %c1_i32 = arith.constant 1 : i32
    %42 = arith.cmpi slt, %arg1, %c1_i32 : i32
    %43 = arith.extui %42 : i1 to i32
    %44 = arith.sitofp %43 : i32 to f32
    %45 = vector.broadcast %44 : f32 to vector<1x16x256xf32>
    %46 = arith.mulf %41, %45 : vector<1x16x256xf32>
    %47 = arith.extf %3 : vector<8x16x256xbf16> to vector<8x16x256xf32>
    %48 = vector.shape_cast %7 : vector<1x256xf32> to vector<1x1x256xf32>
    %49 = vector.broadcast %48 : vector<1x1x256xf32> to vector<8x16x256xf32>
    %50 = arith.mulf %47, %49 : vector<8x16x256xf32>
    %51 = vector.shape_cast %9 : vector<1x256xf32> to vector<1x1x256xf32>
    %52 = vector.broadcast %51 : vector<1x1x256xf32> to vector<8x16x256xf32>
    %53 = arith.addf %50, %52 : vector<8x16x256xf32>
    %54 = arith.negf %53 : vector<8x16x256xf32>
    %55 = math.exp %54 : vector<8x16x256xf32>
    %cst_20 = arith.constant 1.000000e+00 : f32
    %56 = vector.broadcast %cst_20 : f32 to vector<8x16x256xf32>
    %57 = arith.addf %56, %55 : vector<8x16x256xf32>
    %58 = arith.divf %56, %57 : vector<8x16x256xf32>
    %59 = arith.mulf %53, %58 : vector<8x16x256xf32>
    %60 = tpu.concatenate %28, %59, %46 in 0 : vector<1x16x256xf32>, vector<8x16x256xf32>, vector<1x16x256xf32> -> vector<10x16x256xf32>
    %61 = arith.truncf %60 : vector<10x16x256xf32> to vector<10x16x256xbf16>
    %cst_21 = arith.constant 0.000000e+00 : bf16
    %62 = vector.broadcast %cst_21 : bf16 to vector<10x1x256xbf16>
    %63 = vector.extract_strided_slice %61 {offsets = [0, 0, 0], sizes = [10, 15, 256], strides = [1, 1, 1]} : vector<10x16x256xbf16> to vector<10x15x256xbf16>
    %64 = tpu.concatenate %62, %63 in 1 : vector<10x1x256xbf16>, vector<10x15x256xbf16> -> vector<10x16x256xbf16>
    %65 = vector.extract_strided_slice %61 {offsets = [0, 1, 0], sizes = [10, 15, 256], strides = [1, 1, 1]} : vector<10x16x256xbf16> to vector<10x15x256xbf16>
    %66 = tpu.concatenate %65, %62 in 1 : vector<10x15x256xbf16>, vector<10x1x256xbf16> -> vector<10x16x256xbf16>
    %67 = tpu.concatenate %64, %61, %66 in 2 : vector<10x16x256xbf16>, vector<10x16x256xbf16>, vector<10x16x256xbf16> -> vector<10x16x768xbf16>
    %cst_22 = arith.constant 0.000000e+00 : f32
    %68 = vector.broadcast %cst_22 : f32 to vector<128x256xf32>
    %69 = vector.extract_strided_slice %67 {offsets = [0, 0, 0], sizes = [8, 16, 768], strides = [1, 1, 1]} : vector<10x16x768xbf16> to vector<8x16x768xbf16>
    %70 = vector.shape_cast %69 : vector<8x16x768xbf16> to vector<128x768xbf16>
    %c0_23 = arith.constant 0 : index
    %c0_24 = arith.constant 0 : index
    %c0_25 = arith.constant 0 : index
    %71 = vector.load %arg7[%c0_23, %c0_24, %c0_25] : memref<3x768x256xbf16, #tpu.memory_space<vmem>>, vector<1x768x256xbf16>
    %72 = vector.shape_cast %71 : vector<1x768x256xbf16> to vector<768x256xbf16>
    %cst_26 = arith.constant dense<0.000000e+00> : vector<128x256xf32>
    %73 = tpu.matmul %70, %72, %cst_26 {dimension_numbers = #tpu.dot_dimension_numbers<[1], [0], [0], [1], [0, 0, 1, 1], [], []>} : vector<128x768xbf16>, vector<768x256xbf16>, vector<128x256xf32> -> vector<128x256xf32>
    %74 = arith.addf %68, %73 : vector<128x256xf32>
    %75 = vector.extract_strided_slice %67 {offsets = [1, 0, 0], sizes = [8, 16, 768], strides = [1, 1, 1]} : vector<10x16x768xbf16> to vector<8x16x768xbf16>
    %76 = vector.shape_cast %75 : vector<8x16x768xbf16> to vector<128x768xbf16>
    %c1 = arith.constant 1 : index
    %c0_27 = arith.constant 0 : index
    %c0_28 = arith.constant 0 : index
    %77 = vector.load %arg7[%c1, %c0_27, %c0_28] : memref<3x768x256xbf16, #tpu.memory_space<vmem>>, vector<1x768x256xbf16>
    %78 = vector.shape_cast %77 : vector<1x768x256xbf16> to vector<768x256xbf16>
    %cst_29 = arith.constant dense<0.000000e+00> : vector<128x256xf32>
    %79 = tpu.matmul %76, %78, %cst_29 {dimension_numbers = #tpu.dot_dimension_numbers<[1], [0], [0], [1], [0, 0, 1, 1], [], []>} : vector<128x768xbf16>, vector<768x256xbf16>, vector<128x256xf32> -> vector<128x256xf32>
    %80 = arith.addf %74, %79 : vector<128x256xf32>
    %81 = vector.extract_strided_slice %67 {offsets = [2, 0, 0], sizes = [8, 16, 768], strides = [1, 1, 1]} : vector<10x16x768xbf16> to vector<8x16x768xbf16>
    %82 = vector.shape_cast %81 : vector<8x16x768xbf16> to vector<128x768xbf16>
    %c2 = arith.constant 2 : index
    %c0_30 = arith.constant 0 : index
    %c0_31 = arith.constant 0 : index
    %83 = vector.load %arg7[%c2, %c0_30, %c0_31] : memref<3x768x256xbf16, #tpu.memory_space<vmem>>, vector<1x768x256xbf16>
    %84 = vector.shape_cast %83 : vector<1x768x256xbf16> to vector<768x256xbf16>
    %cst_32 = arith.constant dense<0.000000e+00> : vector<128x256xf32>
    %85 = tpu.matmul %82, %84, %cst_32 {dimension_numbers = #tpu.dot_dimension_numbers<[1], [0], [0], [1], [0, 0, 1, 1], [], []>} : vector<128x768xbf16>, vector<768x256xbf16>, vector<128x256xf32> -> vector<128x256xf32>
    %86 = arith.addf %80, %85 : vector<128x256xf32>
    %87 = vector.shape_cast %86 : vector<128x256xf32> to vector<8x16x256xf32>
    %88 = vector.shape_cast %10 : vector<1x256xf32> to vector<1x1x256xf32>
    %89 = vector.broadcast %88 : vector<1x1x256xf32> to vector<8x16x256xf32>
    %90 = arith.addf %87, %89 : vector<8x16x256xf32>
    %c0_33 = arith.constant 0 : index
    %c0_34 = arith.constant 0 : index
    %c0_35 = arith.constant 0 : index
    %c0_36 = arith.constant 0 : index
    %91 = vector.load %arg9[%c0_33, %c0_34, %c0_35, %c0_36] : memref<1x8x16x128xbf16, #tpu.memory_space<vmem>>, vector<1x8x16x128xbf16>
    %92 = vector.shape_cast %91 : vector<1x8x16x128xbf16> to vector<8x16x128xbf16>
    %93 = vector.shape_cast %92 : vector<8x16x128xbf16> to vector<128x128xbf16>
    %c0_37 = arith.constant 0 : index
    %c0_38 = arith.constant 0 : index
    %94 = vector.load %arg10[%c0_37, %c0_38] : memref<128x256xbf16, #tpu.memory_space<vmem>>, vector<128x256xbf16>
    %cst_39 = arith.constant dense<0.000000e+00> : vector<128x256xf32>
    %95 = tpu.matmul %93, %94, %cst_39 {dimension_numbers = #tpu.dot_dimension_numbers<[1], [0], [0], [1], [0, 0, 1, 1], [], []>} : vector<128x128xbf16>, vector<128x256xbf16>, vector<128x256xf32> -> vector<128x256xf32>
    %96 = vector.shape_cast %95 : vector<128x256xf32> to vector<8x16x256xf32>
    %97 = arith.addf %90, %96 : vector<8x16x256xf32>
    %c0_40 = arith.constant 0 : index
    %c0_41 = arith.constant 0 : index
    %98 = vector.load %arg11[%c0_40, %c0_41] : memref<1x256xf32, #tpu.memory_space<vmem>>, vector<1x256xf32>
    %99 = vector.shape_cast %98 : vector<1x256xf32> to vector<1x1x256xf32>
    %100 = vector.broadcast %99 : vector<1x1x256xf32> to vector<8x16x256xf32>
    %101 = arith.addf %97, %100 : vector<8x16x256xf32>
    %c0_42 = arith.constant 0 : index
    %c0_43 = arith.constant 0 : index
    %c0_44 = arith.constant 0 : index
    %c0_45 = arith.constant 0 : index
    %102 = vector.load %arg12[%c0_42, %c0_43, %c0_44, %c0_45] : memref<1x8x16x256xf32, #tpu.memory_space<vmem>>, vector<1x8x16x256xf32>
    %103 = vector.shape_cast %102 : vector<1x8x16x256xf32> to vector<8x16x256xf32>
    %104 = vector.shape_cast %101 : vector<8x16x256xf32> to vector<1x8x16x256xf32>
    tpu.vector_store %arg12[%c0_42, %c0_43, %c0_44, %c0_45], %104 {strides = array<i32>} : memref<1x8x16x256xf32, #tpu.memory_space<vmem>>, vector<1x8x16x256xf32>,
    return
  }
  func.func @transform_0(%arg0: i32, %arg1: i32) -> (i32, i32, i32, i32) {
    %c8_i32 = arith.constant 8 : i32
    %0 = arith.muli %arg1, %c8_i32 : i32
    %c1_i32 = arith.constant 1 : i32
    %1 = arith.subi %0, %c1_i32 : i32
    %c0_i32 = arith.constant 0 : i32
    %2 = arith.maxsi %1, %c0_i32 : i32
    %c0_i32_0 = arith.constant 0 : i32
    %c0_i32_1 = arith.constant 0 : i32
    %c0_i32_2 = arith.constant 0 : i32
    return %arg0, %2, %c0_i32_0, %c0_i32_1 : i32, i32, i32, i32
  }
  func.func @transform_1(%arg0: i32, %arg1: i32) -> (i32, i32, i32, i32) {
    %c0_i32 = arith.constant 0 : i32
    %c0_i32_0 = arith.constant 0 : i32
    %c0_i32_1 = arith.constant 0 : i32
    return %arg0, %arg1, %c0_i32, %c0_i32_0 : i32, i32, i32, i32
  }
  func.func @transform_2(%arg0: i32, %arg1: i32) -> (i32, i32, i32, i32) {
    %c8_i32 = arith.constant 8 : i32
    %0 = arith.muli %arg1, %c8_i32 : i32
    %c8_i32_0 = arith.constant 8 : i32
    %1 = arith.addi %0, %c8_i32_0 : i32
    %c15_i32 = arith.constant 15 : i32
    %2 = arith.minsi %1, %c15_i32 : i32
    %c0_i32 = arith.constant 0 : i32
    %c0_i32_1 = arith.constant 0 : i32
    %c0_i32_2 = arith.constant 0 : i32
    return %arg0, %2, %c0_i32, %c0_i32_1 : i32, i32, i32, i32
  }
  func.func @transform_3(%arg0: i32, %arg1: i32) -> (i32, i32, i32) {
    %c0_i32 = arith.constant 0 : i32
    %c0_i32_0 = arith.constant 0 : i32
    %c0_i32_1 = arith.constant 0 : i32
    return %arg0, %c0_i32, %c0_i32_0 : i32, i32, i32
  }
  func.func @transform_4(%arg0: i32, %arg1: i32) -> (i32, i32, i32) {
    %c0_i32 = arith.constant 0 : i32
    %c0_i32_0 = arith.constant 0 : i32
    %c0_i32_1 = arith.constant 0 : i32
    return %arg0, %c0_i32, %c0_i32_0 : i32, i32, i32
  }
  func.func @transform_5(%arg0: i32, %arg1: i32) -> (i32, i32, i32) {
    %c0_i32 = arith.constant 0 : i32
    %c0_i32_0 = arith.constant 0 : i32
    %c0_i32_1 = arith.constant 0 : i32
    %c0_i32_2 = arith.constant 0 : i32
    return %c0_i32, %c0_i32_0, %c0_i32_1 : i32, i32, i32
  }
  func.func @transform_6(%arg0: i32, %arg1: i32) -> (i32, i32) {
    %c0_i32 = arith.constant 0 : i32
    %c0_i32_0 = arith.constant 0 : i32
    %c0_i32_1 = arith.constant 0 : i32
    return %c0_i32, %c0_i32_0 : i32, i32
  }
  func.func @transform_7(%arg0: i32, %arg1: i32) -> (i32, i32, i32, i32) {
    %c0_i32 = arith.constant 0 : i32
    %c0_i32_0 = arith.constant 0 : i32
    %c0_i32_1 = arith.constant 0 : i32
    return %arg0, %arg1, %c0_i32, %c0_i32_0 : i32, i32, i32, i32
  }
  func.func @transform_8(%arg0: i32, %arg1: i32) -> (i32, i32) {
    %c0_i32 = arith.constant 0 : i32
    %c0_i32_0 = arith.constant 0 : i32
    %c0_i32_1 = arith.constant 0 : i32
    return %c0_i32, %c0_i32_0 : i32, i32
  }
  func.func @transform_9(%arg0: i32, %arg1: i32) -> (i32, i32) {
    %c0_i32 = arith.constant 0 : i32
    %c0_i32_0 = arith.constant 0 : i32
    %c0_i32_1 = arith.constant 0 : i32
    return %c0_i32, %c0_i32_0 : i32, i32
  }
  func.func @transform_10(%arg0: i32, %arg1: i32) -> (i32, i32, i32, i32) {
    %c0_i32 = arith.constant 0 : i32
    %c0_i32_0 = arith.constant 0 : i32
    %c0_i32_1 = arith.constant 0 : i32
    return %arg0, %arg1, %c0_i32, %c0_i32_0 : i32, i32, i32, i32
  }
}

</mosaic_0001>

<bundles_post_ra>
// kernel: vae_residual_block.3
= control target key start
LH: loop header
LB: loop body
LE: loop exit
PB: predicated region body
PF: predicated region fallthrough
CT: control target
= control target key end

     0   :  { %s497_s6 = smov 0   ;;  %s499_s7 = smov 0   ;;  %s571_s0 = inlined_call_operand.vmem [shape: bf16[2,16,16,128], index: 0, kind: input, shape index: {}]   ;;  %s572_s1 = inlined_call_operand.vmem [shape: f32[2,2,2,128], index: 1, kind: output, shape index: {}]  }
   0x1   :  { %s501_s8 = smov 0   ;;  %s503_s9 = smov 0  }
   0x2   :  { %s505_s10 = smov 0  }
   0x3 LB: > { %s20_s11 = sadd.s32 1, %s477_s8  ;;  %s23_s12 = sadd.s32 1, %s481_s9  ;;  %s485_s10 = sphi %s505_s10, %s11_s10   ;;  %s481_s9 = sphi %s503_s9, %s576_s9   ;;  %s477_s8 = sphi %s501_s8, %s575_s8   ;;  %s473_s7 = sphi %s499_s7, %s574_s7   ;;  %s469_s6 = sphi %s497_s6, %s573_s6  }
   0x4   : > { %p21_p0 = scmp.ge.s32.totalorder %s20_s11, 2  ;;  %p359_p1 = scmp.ge.s32.totalorder %s485_s10, 1 }
   0x5   : > { %p109_p2 = scmp.lt.s32.totalorder %s485_s10, 5 }
   0x6   : > { %s578_s11 = smov (%p21_p0, %s20_s11), 0  ;;  %s580_s12 = smov (!%p21_p0, %s23_s12), %s481_s9 }
   0x7   : > { %p110_p3 = pnand %p359_p1, %p109_p2  ;;  %p25_p4 = scmp.ge.s32.totalorder %s580_s12, 2 }
   0x8   : > { %s360_s13 = sshll.u32 (!%p110_p3), %s469_s6, 3  ;;  %p138_p5 = scmp.lt.s32.totalorder (!%p110_p3), %s473_s7, 1 }
   0x9   : > { %s582_s12 = smov (%p25_p4, %s580_s12), 0  ;;  %113 = sbr.rel (%p110_p3) target bundleno = 114 (0x72), region = 24 }
   0xa   : > { %p140_p6 = scmp.lt.s32.totalorder (!%p110_p3), %s360_s13, 15  ;;  %p150_p7 = scmp.lt.s32.totalorder (!%p110_p3), %s469_s6, 1 }
   0xe   : > { %s584_s7 = smov (!%p138_p5, %s473_s7), 1  ;;  %s586_s13 = smov (!%p140_p6, %s360_s13), 15  ;;  %vm263_vm0 = vcmask 1040384  }
   0xf   : > { %s362_s14 = sshll.u32 %s584_s7, 5  ;;  %s361_s15 = sshll.u32 %s586_s13, 1 }
  0x10   : > { %s144_s16 = sadd.s32 %s362_s14, %s361_s15  ;;  %s588_s6 = smov (!%p150_p7, %s469_s6), 1 }
  0x11   : > { %s363_s17 = sshll.u32 %s144_s16, 2  ;;  %s364_s21 = sshll.u32 %s584_s7, 1 }
  0x12   : > { %s536_s20 = scalar_lea.vmem %s571_s0, %s363_s17  ;;  %s153_s22 = sadd.s32 %s364_s21, %s588_s6 }
  0x13   : > { %v369_v0 = vld [vmem:[%s536_s20] sm:$0xff]   ;;  %v400_v1 = vld [vmem:[%s536_s20 + $0x8] sm:$0xff]   ;;  %v401_v5 = vld [vmem:[%s536_s20 + $0x10] sm:$0xff]   ;;  %s365_s23 = sshll.u32 %s153_s22, 1 }
  0x14   : > { %v370_v2 = vunpack.c.l.bf16 %v369_v0  ;;  %v371_v3 = vunpack.c.h.bf16 %v369_v0  ;;  %v374_v4 = vunpack.c.l.bf16 %v400_v1  ;;  %v375_v6 = vunpack.c.h.bf16 %v400_v1  ;;  %v402_v10 = vld [vmem:[%s536_s20 + $0x18] sm:$0xff]   ;;  %v403_v15 = vld [vmem:[%s536_s20 + $0x20] sm:$0xff]   ;;  %v404_v20 = vld [vmem:[%s536_s20 + $0x28] sm:$0xff]   ;;  %s155_s26 = scalar_lea.vmem %s572_s1, %s365_s23 }
  0x15   : > { %v378_v8 = vunpack.c.l.bf16 %v401_v5  ;;  %v379_v11 = vunpack.c.h.bf16 %v401_v5  ;;  %v382_v13 = vunpack.c.l.bf16 %v402_v10  ;;  %v383_v16 = vunpack.c.h.bf16 %v402_v10  ;;  %v405_v25 = vld [vmem:[%s536_s20 + $0x30] sm:$0xff]   ;;  %v406_v30 = vld [vmem:[%s536_s20 + $0x38] sm:$0xff]  }
  0x16   : > { %v188_v7 = vadd.f32 %v371_v3, %v370_v2  ;;  %v386_v18 = vunpack.c.l.bf16 %v403_v15  ;;  %v387_v21 = vunpack.c.h.bf16 %v403_v15  ;;  %v390_v23 = vunpack.c.l.bf16 %v404_v20 }
  0x17   : > { %v391_v26 = vunpack.c.h.bf16 %v404_v20  ;;  %v394_v28 = vunpack.c.l.bf16 %v405_v25  ;;  %v395_v31 = vunpack.c.h.bf16 %v405_v25  ;;  %v398_v33 = vunpack.c.l.bf16 %v406_v30 }
  0x18   : > { %v189_v9 = vadd.f32 %v374_v4, %v188_v7  ;;  %v399_v35 = vunpack.c.h.bf16 %v406_v30 }
  0x1a   : > { %v190_v12 = vadd.f32 %v375_v6, %v189_v9 }
  0x1c   : > { %v191_v14 = vadd.f32 %v378_v8, %v190_v12 }
  0x1e   : > { %v192_v17 = vadd.f32 %v379_v11, %v191_v14 }
  0x20   : > { %v193_v19 = vadd.f32 %v382_v13, %v192_v17 }
  0x22   : > { %v194_v22 = vadd.f32 %v383_v16, %v193_v19 }
  0x24   : > { %v195_v24 = vadd.f32 %v386_v18, %v194_v22 }
  0x26   : > { %v196_v27 = vadd.f32 %v387_v21, %v195_v24 }
  0x28   : > { %v197_v29 = vadd.f32 %v390_v23, %v196_v27 }
  0x2a   : > { %v198_v32 = vadd.f32 %v391_v26, %v197_v29 }
  0x2c   : > { %v199_v34 = vadd.f32 %v394_v28, %v198_v32 }
  0x2e   : > { %v200_v36 = vadd.f32 %v395_v31, %v199_v34 }
  0x30   : > { %v201_v37 = vadd.f32 %v398_v33, %v200_v36 }
  0x32   : > { %v202_v38 = vadd.f32 %v399_v35, %v201_v37 }
  0x34   : > { %v203_v39 = vrot.slane %v202_v38, 4 }
  0x36   : > { %v204_v40 = vadd.f32 %v203_v39, %v202_v38 }
  0x38   : > { %v205_v41 = vrot.slane %v204_v40, 2 }
  0x3a   : > { %v206_v42 = vadd.f32 %v205_v41, %v204_v40 }
  0x3c   : > { %v207_v43 = vrot.slane %v206_v42, 1 }
  0x3e   : > { %v546_v44 = vadd.f32 %v207_v43, %v206_v42 }
  0x40   : > { %v209_v45 = vmul.f32 0.0078125, %v546_v44 }
  0x42   : > { %v210_v46 = vsub.f32 %v370_v2, %v209_v45  ;;  %v211_v47 = vsub.f32 %v371_v3, %v209_v45  ;;  %v212_v48 = vsub.f32 %v374_v4, %v209_v45  ;;  %v213_v49 = vsub.f32 %v375_v6, %v209_v45 }
  0x43   : > { %v214_v52 = vsub.f32 %v378_v8, %v209_v45  ;;  %v215_v54 = vsub.f32 %v379_v11, %v209_v45  ;;  %v216_v57 = vsub.f32 %v382_v13, %v209_v45  ;;  %v217_v60 = vsub.f32 %v383_v16, %v209_v45 }
  0x44   : > { %v226_v50 = vmul.f32 %v210_v46, %v210_v46  ;;  %v227_v51 = vmul.f32 %v211_v47, %v211_v47  ;;  %v228_v53 = vmul.f32 %v212_v48, %v212_v48  ;;  %v229_v55 = vmul.f32 %v213_v49, %v213_v49 }
  0x45   : > { %v230_v58 = vmul.f32 %v214_v52, %v214_v52  ;;  %v231_v61 = vmul.f32 %v215_v54, %v215_v54  ;;  %v218_v63 = vsub.f32 %v386_v18, %v209_v45  ;;  %v232_v0 = vmul.f32 %v216_v57, %v216_v57 }
  0x46   : > { %v242_v56 = vadd.f32 %v227_v51, %v226_v50  ;;  %v219_v2 = vsub.f32 %v387_v21, %v209_v45  ;;  %v233_v3 = vmul.f32 %v217_v60, %v217_v60  ;;  %v220_v5 = vsub.f32 %v390_v23, %v209_v45 }
  0x47   : > { %v234_v6 = vmul.f32 %v218_v63, %v218_v63  ;;  %v221_v8 = vsub.f32 %v391_v26, %v209_v45  ;;  %v222_v11 = vsub.f32 %v394_v28, %v209_v45  ;;  %v223_v14 = vsub.f32 %v395_v31, %v209_v45 }
  0x48   : > { %v243_v59 = vadd.f32 %v242_v56, %v228_v53  ;;  %v235_v9 = vmul.f32 %v219_v2, %v219_v2  ;;  %v236_v12 = vmul.f32 %v220_v5, %v220_v5  ;;  %v224_v17 = vsub.f32 %v398_v33, %v209_v45 }
  0x49   : > { %v237_v15 = vmul.f32 %v221_v8, %v221_v8  ;;  %v238_v18 = vmul.f32 %v222_v11, %v222_v11  ;;  %v225_v20 = vsub.f32 %v399_v35, %v209_v45  ;;  %v239_v21 = vmul.f32 %v223_v14, %v223_v14 }
  0x4a   : > { %v244_v62 = vadd.f32 %v243_v59, %v229_v55  ;;  %v240_v23 = vmul.f32 %v224_v17, %v224_v17 }
  0x4b   : > { %v241_v25 = vmul.f32 %v225_v20, %v225_v20 }
  0x4c   : > { %v245_v1 = vadd.f32 %v244_v62, %v230_v58 }
  0x4e   : > { %v246_v4 = vadd.f32 %v245_v1, %v231_v61 }
  0x50   : > { %v247_v7 = vadd.f32 %v246_v4, %v232_v0 }
  0x52   : > { %v248_v10 = vadd.f32 %v247_v7, %v233_v3 }
  0x54   : > { %v249_v13 = vadd.f32 %v248_v10, %v234_v6 }
  0x56   : > { %v250_v16 = vadd.f32 %v249_v13, %v235_v9 }
  0x58   : > { %v251_v19 = vadd.f32 %v250_v16, %v236_v12 }
  0x5a   : > { %v252_v22 = vadd.f32 %v251_v19, %v237_v15 }
  0x5c   : > { %v253_v24 = vadd.f32 %v252_v22, %v238_v18 }
  0x5e   : > { %v254_v26 = vadd.f32 %v253_v24, %v239_v21 }
  0x60   : > { %v255_v27 = vadd.f32 %v254_v26, %v240_v23 }
  0x62   : > { %v256_v28 = vadd.f32 %v255_v27, %v241_v25 }
  0x64   : > { %v257_v29 = vrot.slane %v256_v28, 4 }
  0x66   : > { %v258_v30 = vadd.f32 %v257_v29, %v256_v28 }
  0x68   : > { %v259_v31 = vrot.slane %v258_v30, 2 }
  0x6a   : > { %v260_v32 = vadd.f32 %v259_v31, %v258_v30 }
  0x6c   : > { %v261_v33 = vrot.slane %v260_v32, 1 }
  0x6e   : > { %v262_v34 = vadd.f32 %v261_v33, %v260_v32 }
  0x70   : > { %v264_v35 = vsel %vm263_vm0, %v546_v44, %v262_v34 }
  0x71   : > { %265 = vst [vmem:[%s155_s26] sm:$0x3] %v264_v35 }
  0x72 PF: > { %s11_s10 = sadd.s32 1, %s485_s10   ;;  %s573_s6 = smov %s477_s8 }
  0x73   : > { %p8_p8 = scmp.ge.s32.totalorder %s11_s10, 6   ;;  %s574_s7 = smov %s481_s9 }
  0x74   : > { %s575_s8 = smov %s578_s11  ;;  %s576_s9 = smov %s582_s12 }
  0x75   :  { %10 = sbr.rel (!%p8_p8) target bundleno = 3 (0x3), region = 54 }

// kernel: vae_residual_block.4
= control target key start
LH: loop header
LB: loop body
LE: loop exit
PB: predicated region body
PF: predicated region fallthrough
CT: control target
= control target key end

     0   :  { %s4649_s27 = smov 0   ;;  %s4651_s28 = smov 0   ;;  %s7213_s0 = inlined_call_operand.vmem [shape: bf16[2,16,16,128], index: 0, kind: input, shape index: {}, may-alias: {0,1,2}]   ;;  %s7214_s1 = inlined_call_operand.vmem [shape: bf16[2,16,16,128], index: 1, kind: input, shape index: {}, may-alias: {0,1,2}]   ;;  %s7215_s2 = inlined_call_operand.vmem [shape: bf16[2,16,16,128], index: 2, kind: input, shape index: {}, may-alias: {0,1,2}]   ;;  %s7216_s3 = inlined_call_operand.vmem [shape: f32[2,1,128], index: 3, kind: input, shape index: {}]   ;;  %s7217_s4 = inlined_call_operand.vmem [shape: f32[2,1,128], index: 4, kind: input, shape index: {}]   ;;  %s7218_s5 = inlined_call_operand.vmem [shape: bf16[3,384,256], index: 5, kind: input, shape index: {}]   ;;  %s7219_s6 = inlined_call_operand.vmem [shape: f32[1,256], index: 6, kind: input, shape index: {}]   ;;  %s7220_s7 = inlined_call_operand.vmem [shape: bf16[2,16,16,256], index: 7, kind: output, shape index: {0}]   ;;  %s7221_s8 = inlined_call_operand.vmem [shape: f32[2,2,2,256], index: 8, kind: output, shape index: {1}]  }
   0x1   :  { %7242 = sst [smem:[#allocation25_spill]] %s7214_s1  ;;  %s4653_s29 = smov 0  }
   0x2   :  { %7243 = sst [smem:[#allocation26_spill]] %s7216_s3  ;;  %s4655_s30 = smov 0  }
   0x3   :  { %7244 = sst [smem:[#allocation27_spill]] %s7217_s4  ;;  %s4657_s9 = smov 0  }
   0x4 LB: > { %s28_s10 = sadd.s32 1, %s4594_s29  ;;  %s31_s11 = sadd.s32 1, %s4598_s30  ;;  %s4602_s9 = sphi %s4657_s9, %s19_s9   ;;  %s4598_s30 = sphi %s4655_s30, %s7374_s30   ;;  %s4594_s29 = sphi %s4653_s29, %s7373_s29   ;;  %s4590_s28 = sphi %s4651_s28, %s7372_s28   ;;  %s4586_s27 = sphi %s4649_s27, %s7371_s27  }
   0x5   : > { %p29_p0 = scmp.ge.s32.totalorder %s28_s10, 2  ;;  %p3506_p1 = scmp.ge.s32.totalorder %s4602_s9, 1 }
   0x6   : > { %p369_p2 = scmp.lt.s32.totalorder %s4602_s9, 5 }
   0x7   : > { %s7376_s10 = smov (%p29_p0, %s28_s10), 0  ;;  %s7378_s11 = smov (!%p29_p0, %s31_s11), %s4598_s30 }
   0x8   : > { %p370_p3 = pnand %p3506_p1, %p369_p2  ;;  %p33_p4 = scmp.ge.s32.totalorder %s7378_s11, 2 }
   0xa   : > { %s7380_s11 = smov (%p33_p4, %s7378_s11), 0  ;;  %373 = sbr.rel (%p370_p3) target bundleno = 898 (0x382), region = 48 }
   0xf   : > { %v3725_v0 = vld [vmem:[%s7218_s5 + $0x270] sm:$0xf]  ;;  %v4310_v1 = vld [vmem:[%s7218_s5 + $0x274] sm:$0xf0]  ;;  %v3717_v2 = vld [vmem:[%s7218_s5 + $0x260] sm:$0xf] }
  0x10   : > { %v3726_v3 = vor.u32 %v4310_v1, %v3725_v0  ;;  %v4308_v4 = vld [vmem:[%s7218_s5 + $0x264] sm:$0xf0]  ;;  %v3661_v5 = vld [vmem:[%s7218_s5 + $0x1f0] sm:$0xf]  ;;  %v4294_v6 = vld [vmem:[%s7218_s5 + $0x1f4] sm:$0xf0] }
  0x11   : > { %v3662_v7 = vor.u32 %v4294_v6, %v3661_v5  ;;  %v3653_v8 = vld [vmem:[%s7218_s5 + $0x1e0] sm:$0xf]  ;;  %v3718_v9 = vor.u32 %v4308_v4, %v3717_v2  ;;  %v4292_v10 = vld [vmem:[%s7218_s5 + $0x1e4] sm:$0xf0]  ;;  %v3709_v11 = vld [vmem:[%s7218_s5 + $0x250] sm:$0xf] }
  0x12   : > { %1629 = vmatpush.bf16.msra.mxu1 %v3726_v3  ;;  %4430 = vmatpush.bf16.msra.mxu3 %v3726_v3  ;;  %v4306_v12 = vld [vmem:[%s7218_s5 + $0x254] sm:$0xf0]  ;;  %v3654_v13 = vor.u32 %v4292_v10, %v3653_v8  ;;  %v3645_v14 = vld [vmem:[%s7218_s5 + $0x1d0] sm:$0xf]  ;;  %v3701_v17 = vld [vmem:[%s7218_s5 + $0x240] sm:$0xf] }
  0x13   : > { %1580 = vmatpush.bf16.msra.mxu0 %v3662_v7  ;;  %4422 = vmatpush.bf16.msra.mxu2 %v3662_v7  ;;  %v4290_v15 = vld [vmem:[%s7218_s5 + $0x1d4] sm:$0xf0]  ;;  %v3710_v16 = vor.u32 %v4306_v12, %v3709_v11  ;;  %v4304_v18 = vld [vmem:[%s7218_s5 + $0x244] sm:$0xf0]  ;;  %v3637_v20 = vld [vmem:[%s7218_s5 + $0x1c0] sm:$0xf] }
  0x14   : > { %v3646_v19 = vor.u32 %v4290_v15, %v3645_v14  ;;  %v4288_v21 = vld [vmem:[%s7218_s5 + $0x1c4] sm:$0xf0]  ;;  %s4732_s14 = sshll.u32 %s4586_s27, 3  ;;  %p458_p5 = scmp.lt.s32.totalorder %s4590_s28, 1  ;;  %v3702_v22 = vor.u32 %v4304_v18, %v3701_v17  ;;  %v3693_v23 = vld [vmem:[%s7218_s5 + $0x230] sm:$0xf] }
  0x15   : > { %p474_p6 = scmp.lt.s32.totalorder %s4732_s14, 15  ;;  %v4302_v24 = vld [vmem:[%s7218_s5 + $0x234] sm:$0xf0]  ;;  %v3638_v25 = vor.u32 %v4288_v21, %v3637_v20  ;;  %v3629_v26 = vld [vmem:[%s7218_s5 + $0x1b0] sm:$0xf]  ;;  %s7245_s3 = sld [smem:[#allocation26_spill]] }
  0x16   : > { %1630 = vmatpush.bf16.msra.mxu1 %v3718_v9  ;;  %4431 = vmatpush.bf16.msra.mxu3 %v3718_v9  ;;  %s7382_s28 = smov (!%p458_p5, %s4590_s28), 1  ;;  %v4286_v27 = vld [vmem:[%s7218_s5 + $0x1b4] sm:$0xf0]  ;;  %v3685_v28 = vld [vmem:[%s7218_s5 + $0x220] sm:$0xf]  ;;  %v3694_v31 = vor.u32 %v4302_v24, %v3693_v23  ;;  %s7246_s4 = sld [smem:[#allocation27_spill]] }
  0x17   : > { %1581 = vmatpush.bf16.msra.mxu0 %v3654_v13  ;;  %4423 = vmatpush.bf16.msra.mxu2 %v3654_v13  ;;  %s4752_s23 = scalar_select %p474_p6, %s4732_s14, 15  ;;  %v4300_v29 = vld [vmem:[%s7218_s5 + $0x224] sm:$0xf0]  ;;  %v3677_v30 = vld [vmem:[%s7218_s5 + $0x210] sm:$0xf]  ;;  %v3630_v33 = vor.u32 %v4286_v27, %v3629_v26 }
  0x18   : > { %s4764_s16 = sshll.u32 %s7382_s28, 5  ;;  %v4298_v32 = vld [vmem:[%s7218_s5 + $0x214] sm:$0xf0]  ;;  %v3621_v34 = vld [vmem:[%s7218_s5 + $0x1a0] sm:$0xf]  ;;  %s7247_s1 = sld [smem:[#allocation25_spill]]  ;;  %v3686_v38 = vor.u32 %v4300_v29, %v3685_v28 }
  0x19   : > { %s3518_s22 = sshll.u32 %s4752_s23, 1  ;;  %v4284_v35 = vld [vmem:[%s7218_s5 + $0x1a4] sm:$0xf0]  ;;  %v3613_v36 = vld [vmem:[%s7218_s5 + $0x190] sm:$0xf]  ;;  %v3678_v39 = vor.u32 %v4298_v32, %v3677_v30  ;;  %p601_p9 = scmp.gt.s32.totalorder %s4586_s27, 0 }
  0x1a   : > { %1631 = vmatpush.bf16.msra.mxu1 %v3710_v16  ;;  %4432 = vmatpush.bf16.msra.mxu3 %v3710_v16  ;;  %s478_s18 = sadd.s32 %s3518_s22, %s4764_s16  ;;  %v3622_v40 = vor.u32 %v4284_v35, %v3621_v34  ;;  %v4282_v44 = vld [vmem:[%s7218_s5 + $0x194] sm:$0xf0]  ;;  %v3669_v62 = vld [vmem:[%s7218_s5 + $0x200] sm:$0xf]  ;;  %v4296_v63 = vld [vmem:[%s7218_s5 + $0x204] sm:$0xf0] }
  0x1b   : > { %1582 = vmatpush.bf16.msra.mxu0 %v3646_v19  ;;  %4424 = vmatpush.bf16.msra.mxu2 %v3646_v19  ;;  %s4770_s19 = scalar_lea.vmem %s7245_s3, %s7382_s28  ;;  %s3520_s20 = sshll.u32 %s478_s18, 2  ;;  %v3614_v59 = vor.u32 %v4282_v44, %v3613_v36  ;;  %v3670_v10 = vor.u32 %v4296_v63, %v3669_v62  ;;  %v4280_v26 = vld [vmem:[%s7218_s5 + $0x184] sm:$0xf0]  ;;  %v4293_v34 = vld [vmem:[%s7218_s5 + $0x1f4] sm:$0xf] }
  0x1c   : > { %s4780_s26 = scalar_lea.vmem %s7246_s4, %s7382_s28  ;;  %v4798_v37 = vld [vmem:[%s4770_s19] ss:$0 sm:$0xff]  ;;  %v3663_v35 = vld [vmem:[%s7218_s5 + $0x1f8] sm:$0xf0]  ;;  %s483_s3 = sadd.s32 8, %s4732_s14 }
  0x1d   : > { %v4807_v47 = vld [vmem:[%s4780_s26] ss:$0 sm:$0xff]  ;;  %p6437_p10 = scmp.lt.s32.totalorder %s483_s3, 15  ;;  %p518_p11 = scmp.lt.s32.totalorder %s4586_s27, 1 }
  0x1e   : > { %1632 = vmatpush.bf16.msra.mxu1 %v3702_v22  ;;  %4433 = vmatpush.bf16.msra.mxu3 %v3702_v22  ;;  %s4795_s4 = scalar_lea.vmem %s7247_s1, %s3520_s20 }
  0x1f   : > { %1583 = vmatpush.bf16.msra.mxu0 %v3638_v25  ;;  %4425 = vmatpush.bf16.msra.mxu2 %v3638_v25  ;;  %v4380_v41 = vld [vmem:[%s4795_s4] sm:$0xff]   ;;  %v4415_v43 = vld [vmem:[%s4795_s4 + $0x8] sm:$0xff]   ;;  %v4416_v16 = vld [vmem:[%s4795_s4 + $0x10] sm:$0xff]   ;;  %s602_s20 = scalar_select %p601_p9, 1, 0 }
  0x20   : > { %v4418_v42 = vld [vmem:[%s4795_s4 + $0x20] sm:$0xff]   ;;  %v4381_v45 = vunpack.c.l.bf16 %v4380_v41  ;;  %v4382_v46 = vunpack.c.h.bf16 %v4380_v41  ;;  %v4419_v50 = vld [vmem:[%s4795_s4 + $0x28] sm:$0xff]   ;;  %v4385_v51 = vunpack.c.l.bf16 %v4415_v43  ;;  %v4386_v52 = vunpack.c.h.bf16 %v4415_v43  ;;  %s7386_s3 = smov (!%p6437_p10, %s483_s3), 15  ;;  %s7390_s27 = smov (!%p518_p11, %s4586_s27), 1 }
  0x21   : > { %v4397_v48 = vunpack.c.l.bf16 %v4418_v42  ;;  %v4398_v49 = vunpack.c.h.bf16 %v4418_v42  ;;  %v4401_v53 = vunpack.c.l.bf16 %v4419_v50  ;;  %v4402_v54 = vunpack.c.h.bf16 %v4419_v50  ;;  %v3605_v25 = vld [vmem:[%s7218_s5 + $0x180] sm:$0xf]  ;;  %v4897_v50 = vld [vmem:[%s4795_s4 + $0x30] sm:$0xff]   ;;  %s603_s21 = scvt.s32.f32 %s602_s20  ;;  %s7388_s3 = smov (!%p6437_p10, %s7386_s3), 15 }
  0x22   : > { %1633 = vmatpush.bf16.msra.mxu1 %v3694_v31  ;;  %4434 = vmatpush.bf16.msra.mxu3 %v3694_v31  ;;  %v675_v55 = vmul.f32 %v4798_v37, %v4381_v45  ;;  %v676_v56 = vmul.f32 %v4798_v37, %v4382_v46  ;;  %v677_v60 = vmul.f32 %v4798_v37, %v4385_v51  ;;  %v4389_v18 = vunpack.c.l.bf16 %v4416_v16  ;;  %s3525_s22 = sshll.u32 %s7388_s3, 1  ;;  %s3532_s18 = sshll.u32 %s7390_s27, 1 }
  0x23   : > { %1584 = vmatpush.bf16.msra.mxu0 %v3630_v33  ;;  %4426 = vmatpush.bf16.msra.mxu2 %v3630_v33  ;;  %v683_v57 = vmul.f32 %v4798_v37, %v4397_v48  ;;  %v684_v58 = vmul.f32 %v4798_v37, %v4398_v49  ;;  %v678_v61 = vmul.f32 %v4798_v37, %v4386_v52  ;;  %v4390_v19 = vunpack.c.h.bf16 %v4416_v16  ;;  %s492_s13 = sadd.s32 %s3525_s22, %s4764_s16 }
  0x24   : > { %v4823_v0 = vadd.f32 %v4807_v47, %v675_v55  ;;  %v4826_v1 = vadd.f32 %v4807_v47, %v676_v56  ;;  %v4835_v4 = vadd.f32 %v4807_v47, %v677_v60  ;;  %v685_v5 = vmul.f32 %v4798_v37, %v4401_v53  ;;  %v3789_v55 = vld [vmem:[%s7218_s5 + $0x2f0] sm:$0xf]  ;;  %v4309_v60 = vld [vmem:[%s7218_s5 + $0x274] sm:$0xf]  ;;  %s3527_s3 = sshll.u32 %s492_s13, 2 }
  0x25   : > { %v4829_v2 = vadd.f32 %v4807_v47, %v683_v57  ;;  %v4832_v3 = vadd.f32 %v4807_v47, %v684_v58  ;;  %v686_v9 = vmul.f32 %v4798_v37, %v4402_v54  ;;  %v4844_v12 = vadd.f32 %v4807_v47, %v678_v61 }
  0x26   : > { %1634 = vmatpush.bf16.msra.mxu1 %v3686_v38  ;;  %4435 = vmatpush.bf16.msra.mxu3 %v3686_v38  ;;  %v3539_v6 = vmul.f32 -1.442695, %v4823_v0  ;;  %v3540_v7 = vmul.f32 -1.442695, %v4826_v1  ;;  %v3541_v13 = vmul.f32 -1.442695, %v4835_v4  ;;  %v4848_v14 = vadd.f32 %v4807_v47, %v685_v5 }
  0x27   : > { %1585 = vmatpush.bf16.msra.mxu0 %v3622_v40  ;;  %4427 = vmatpush.bf16.msra.mxu2 %v3622_v40  ;;  %v3547_v8 = vmul.f32 -1.442695, %v4829_v2  ;;  %v3548_v11 = vmul.f32 -1.442695, %v4832_v3  ;;  %v4851_v15 = vadd.f32 %v4807_v47, %v686_v9  ;;  %v3542_v17 = vmul.f32 -1.442695, %v4844_v12 }
  0x28   : > { %4480 = vpow2.f32 %v3539_v6  ;;  %v3549_v21 = vmul.f32 -1.442695, %v4848_v14  ;;  %v3606_v29 = vor.u32 %v4280_v26, %v3605_v25  ;;  %v679_v30 = vmul.f32 %v4798_v37, %v4389_v18  ;;  %v3727_v5 = vld [vmem:[%s7218_s5 + $0x278] sm:$0xf0]  ;;  %v4291_v6 = vld [vmem:[%s7218_s5 + $0x1e4] sm:$0xf] }
  0x29   : > { %4482 = vpow2.f32 %v3540_v7  ;;  %v3550_v22 = vmul.f32 -1.442695, %v4851_v15  ;;  %v680_v31 = vmul.f32 %v4798_v37, %v4390_v19  ;;  %v3666_v43 = vor.u32 %v4293_v34, %v3663_v35  ;;  %v4325_v18 = vld [vmem:[%s7218_s5 + $0x2f4] sm:$0xf]  ;;  %v3781_v25 = vld [vmem:[%s7218_s5 + $0x2e0] sm:$0xf] }
  0x2a   : > { %1635 = vmatpush.bf16.msra.mxu1 %v3678_v39  ;;  %4436 = vmatpush.bf16.msra.mxu3 %v3678_v39  ;;  %4484 = vpow2.f32 %v3547_v8  ;;  %v4886_v44 = vadd.f32 %v4807_v47, %v679_v30  ;;  %v4405_v7 = vunpack.c.l.bf16 %v4897_v50  ;;  %v4406_v8 = vunpack.c.h.bf16 %v4897_v50 }
  0x2b   : > { %1586 = vmatpush.bf16.msra.mxu0 %v3614_v59  ;;  %4428 = vmatpush.bf16.msra.mxu2 %v3614_v59  ;;  %4486 = vpow2.f32 %v3548_v11  ;;  %v4889_v45 = vadd.f32 %v4807_v47, %v680_v31  ;;  %v4326_v59 = vld [vmem:[%s7218_s5 + $0x2f4] sm:$0xf0]  ;;  %v3730_v16 = vor.u32 %v4309_v60, %v3727_v5 }
  0x2c   : > { %4488 = vpow2.f32 %v3541_v13  ;;  %v3790_v13 = vor.u32 %v4326_v59, %v3789_v55 }
  0x2d   : > { %4490 = vpow2.f32 %v3542_v17  ;;  %v3655_v17 = vld [vmem:[%s7218_s5 + $0x1e8] sm:$0xf0] }
  0x2e   : > { %1636 = vmatpush.bf16.msra.mxu1 %v3670_v10  ;;  %4437 = vmatpush.bf16.msra.mxu3 %v3670_v10  ;;  %v4481_v20 = vpop.eup %4480 }
  0x2f   : > { %v4483_v23 = vpop.eup %4482  ;;  %v4857_v24 = vadd.f32 1.0, %v4481_v20  ;;  %1587 = vmatpush.bf16.msra.mxu0 %v3606_v29  ;;  %4429 = vmatpush.bf16.msra.mxu2 %v3606_v29 }
  0x30   : > { %v4485_v27 = vpop.eup %4484  ;;  %v4865_v28 = vadd.f32 1.0, %v4483_v23  ;;  %v3791_v23 = vld [vmem:[%s7218_s5 + $0x2f8] sm:$0xf0] }
  0x31   : > { %v4487_v32 = vpop.eup %4486  ;;  %4492 = vrcp.f32 %v4857_v24  ;;  %v782_v33 = vand.u32 2147483648, %v4857_v24  ;;  %v780_v36 = vand.u32 2147483647, %v4857_v24  ;;  %v4881_v40 = vadd.f32 1.0, %v4485_v27 }
  0x32   : > { %4494 = vrcp.f32 %v4865_v28  ;;  %v797_v38 = vand.u32 2147483648, %v4865_v28  ;;  %v795_v39 = vand.u32 2147483647, %v4865_v28  ;;  %v4883_v41 = vadd.f32 1.0, %v4487_v32  ;;  %v4489_v42 = vpop.eup %4488  ;;  %1727 = vmatpush.bf16.msrb.mxu3 %v3666_v43  ;;  %v4324_v32 = vld [vmem:[%s7218_s5 + $0x2e4] sm:$0xf0] }
  0x33   : > { %4496 = vpow2.f32 %v3549_v21  ;;  %v4491_v46 = vpop.eup %4490  ;;  %vm776_vm0 = vweird.f32 %v4857_v24  ;;  %v4892_v48 = vor.u32 1.1754944e-38, %v782_v33  ;;  %v902_v49 = vand.u32 2147483648, %v4881_v40  ;;  %1678 = vmatpush.bf16.msrb.mxu2 %v3790_v13  ;;  %1776 = vmatpush.bf16.msrb.mxu0 %v3730_v16 }
  0x34   : > { %4498 = vpow2.f32 %v3550_v22  ;;  %vm4899_vm1 = vcmp.eq.f32.partialorder %v780_v36, 8.507059e+37  ;;  %v4903_v52 = vor.u32 1.1754944e-38, %v797_v38  ;;  %v900_v53 = vand.u32 2147483647, %v4881_v40 }
  0x35   : > { %4500 = vrcp.f32 %v4881_v40  ;;  %v917_v54 = vand.u32 2147483648, %v4883_v41  ;;  %vm791_vm2 = vweird.f32 %v4865_v28  ;;  %vm4914_vm3 = vcmp.eq.f32.partialorder %v795_v39, 8.507059e+37 }
  0x36   : > { %4502 = vrcp.f32 %v4883_v41  ;;  %vm896_vm4 = vweird.f32 %v4881_v40  ;;  %vm911_vm5 = vweird.f32 %v4883_v41  ;;  %v915_v58 = vand.u32 2147483647, %v4883_v41 }
  0x37   : > { %v4911_v56 = vpop.eup %4492  ;;  %v4931_v63 = vor.u32 1.1754944e-38, %v902_v49  ;;  %v4943_v11 = vor.u32 1.1754944e-38, %v917_v54  ;;  %vm4954_vm7 = vcmp.eq.f32.partialorder %v900_v53, 8.507059e+37  ;;  %v3658_v22 = vor.u32 %v4291_v6, %v3655_v17 }
  0x38   : > { %v4927_v61 = vpop.eup %4494  ;;  %v772_v62 = vmul.f32 %v4911_v56, %v4857_v24  ;;  %vm777_vm6 = vweird.f32 %v4911_v56  ;;  %v4964_v26 = vadd.f32 1.0, %v4489_v42  ;;  %vm4967_vm9 = vcmp.eq.f32.partialorder %v915_v58, 8.507059e+37 }
  0x39   : > { %v4497_v9 = vpop.eup %4496  ;;  %v787_v10 = vmul.f32 %v4927_v61, %v4865_v28  ;;  %vm792_vm8 = vweird.f32 %v4927_v61  ;;  %v3794_v31 = vor.u32 %v4325_v18, %v3791_v23  ;;  %v4974_v33 = vadd.f32 1.0, %v4491_v46  ;;  %1728 = vmatpush.bf16.msrb.mxu3 %v3658_v22  ;;  %vm4985_vm10 = vmor %vm776_vm0, %vm777_vm6 }
  0x3a   : > { %v4951_v19 = vpop.eup %4498  ;;  %v773_v20 = vsub.f32 1.0, %v772_v62  ;;  %v3782_v38 = vor.u32 %v4324_v32, %v3781_v25  ;;  %v4979_v39 = vmul.f32 %v4798_v37, %v4405_v7  ;;  %4504 = vrcp.f32 %v4964_v26  ;;  %vm4997_vm12 = vmor %vm791_vm2, %vm792_vm8 }
  0x3b   : > { %v4501_v27 = vpop.eup %4500  ;;  %v788_v29 = vsub.f32 1.0, %v787_v10  ;;  %1825 = vmatpush.bf16.msrb.mxu1 %v3794_v31  ;;  %v810_v54 = vand.u32 2147483647, %v4964_v26  ;;  %v812_v59 = vand.u32 2147483648, %v4964_v26  ;;  %4506 = vrcp.f32 %v4974_v33 }
  0x3c   : > { %v4503_v34 = vpop.eup %4502  ;;  %v774_v35 = vmul.f32 %v4911_v56, %v773_v20  ;;  %v892_v36 = vmul.f32 %v4501_v27, %v4881_v40  ;;  %vm897_vm11 = vweird.f32 %v4501_v27  ;;  %1679 = vmatpush.bf16.msrb.mxu2 %v3782_v38  ;;  %vm806_vm14 = vweird.f32 %v4964_v26  ;;  %v3719_v40 = vld [vmem:[%s7218_s5 + $0x268] sm:$0xf0] }
  0x3d   : > { %v789_v43 = vmul.f32 %v4927_v61, %v788_v29  ;;  %v907_v46 = vmul.f32 %v4503_v34, %v4883_v41  ;;  %vm912_vm13 = vweird.f32 %v4503_v34  ;;  %v5009_v62 = vadd.f32 1.0, %v4497_v9  ;;  %vm5020_vm15 = vmor %vm896_vm4, %vm897_vm11 }
  0x3e   : > { %v775_v49 = vadd.f32 %v4911_v56, %v774_v35  ;;  %v893_v53 = vsub.f32 1.0, %v892_v36  ;;  %vm821_vm0 = vweird.f32 %v4974_v33  ;;  %vm5036_vm2 = vcmp.eq.f32.partialorder %v810_v54, 8.507059e+37 }
  0x3f   : > { %v790_v55 = vadd.f32 %v4927_v61, %v789_v43  ;;  %v908_v58 = vsub.f32 1.0, %v907_v46  ;;  %v813_v10 = vor.u32 1.1754944e-38, %v812_v59  ;;  %vm1178_vm4 = vsmask.f32 256 }
  0x40   : > { %v779_v28 = vsel %vm4985_vm10, %v4911_v56, %v775_v49  ;;  %v894_v60 = vmul.f32 %v4501_v27, %v893_v53  ;;  %v4505_v13 = vpop.eup %4504  ;;  %v5047_v20 = vadd.f32 1.0, %v4951_v19  ;;  %4508 = vrcp.f32 %v5009_v62 }
  0x41   : > { %v784_v5 = vsel %vm4899_vm1, %v4892_v48, %v779_v28  ;;  %v794_v6 = vsel %vm4997_vm12, %v4927_v61, %v790_v55  ;;  %v909_v56 = vmul.f32 %v4503_v34, %v908_v58  ;;  %vm5032_vm1 = vmor %vm911_vm5, %vm912_vm13  ;;  %v802_v18 = vmul.f32 %v4505_v13, %v4964_v26  ;;  %v4507_v22 = vpop.eup %4506  ;;  %v4320_v58 = vld [vmem:[%s7218_s5 + $0x2c4] sm:$0xf0] }
  0x42   : > { %v799_v9 = vsel %vm4914_vm3, %v4903_v52, %v794_v6  ;;  %v1011_v48 = vmul.f32 %v784_v5, %v4823_v0  ;;  %v895_v51 = vadd.f32 %v4501_v27, %v894_v60  ;;  %vm1177_vm3 = vcmask 1040384  }
  0x43   : > { %v1012_v16 = vmul.f32 %v799_v9, %v4826_v1  ;;  %v910_v57 = vadd.f32 %v4503_v34, %v909_v56  ;;  %v825_v0 = vand.u32 2147483647, %v4974_v33  ;;  %v827_v52 = vand.u32 2147483648, %v4974_v33  ;;  %vm5105_vm11 = vmand %vm1177_vm3, %vm1178_vm4 }
  0x44   : > { %v1029_v41 = vpack.c.bf16 %v1011_v48, %v1011_v48  ;;  %v899_v17 = vsel %vm5020_vm15, %v4501_v27, %v895_v51  ;;  %vm807_vm5 = vweird.f32 %v4505_v13  ;;  %v803_v32 = vsub.f32 1.0, %v802_v18 }
  0x45   : > { %v1030_v23 = vpack.c.bf16 %v1012_v16, %v1012_v16  ;;  %v904_v1 = vsel %vm4954_vm7, %v4931_v63, %v899_v17  ;;  %v914_v25 = vsel %vm5032_vm1, %v4503_v34, %v910_v57  ;;  %v817_v36 = vmul.f32 %v4507_v22, %v4974_v33  ;;  %vm5070_vm8 = vmor %vm806_vm14, %vm807_vm5  ;;  %v4307_v33 = vld [vmem:[%s7218_s5 + $0x264] sm:$0xf]  ;;  %v4289_v57 = vld [vmem:[%s7218_s5 + $0x1d4] sm:$0xf] }
  0x46   : > { %v1069_v29 = vunpack.c.l.b16 %v1029_v41  ;;  %v919_v27 = vsel %vm4967_vm9, %v4943_v11, %v914_v25  ;;  %v1019_v31 = vmul.f32 %v904_v1, %v4829_v2  ;;  %vm5060_vm6 = vcmp.eq.f32.partialorder %v825_v0, 8.507059e+37  ;;  %v5101_v7 = vpop.eup %4508  ;;  %v3647_v0 = vld [vmem:[%s7218_s5 + $0x1d8] sm:$0xf0]  ;;  %v4322_v1 = vld [vmem:[%s7218_s5 + $0x2d4] sm:$0xf0] }
  0x47   : > { %v1070_v19 = vunpack.c.l.b16 %v1030_v23  ;;  %v1020_v35 = vmul.f32 %v919_v27, %v4832_v3  ;;  %v804_v34 = vmul.f32 %v4505_v13, %v803_v32  ;;  %vm822_vm7 = vweird.f32 %v4507_v22  ;;  %v3773_v23 = vld [vmem:[%s7218_s5 + $0x2d0] sm:$0xf]  ;;  %v4305_v32 = vld [vmem:[%s7218_s5 + $0x254] sm:$0xf] }
  0x48   : > { %v1037_v63 = vpack.c.bf16 %v1019_v31, %v1019_v31  ;;  %v818_v3 = vsub.f32 1.0, %v817_v36  ;;  %v828_v30 = vor.u32 1.1754944e-38, %v827_v52  ;;  %v930_v46 = vand.u32 2147483647, %v5009_v62  ;;  %vm5084_vm9 = vmor %vm821_vm0, %vm822_vm7  ;;  %v4323_v52 = vld [vmem:[%s7218_s5 + $0x2e4] sm:$0xf] }
  0x49   : > { %v5065_v38 = vpack.c.b16 %v1070_v19, %v1069_v29  ;;  %v1038_v11 = vpack.c.bf16 %v1020_v35, %v1020_v35  ;;  %v805_v43 = vadd.f32 %v4505_v13, %v804_v34  ;;  %v932_v49 = vand.u32 2147483648, %v5009_v62  ;;  %v4287_v34 = vld [vmem:[%s7218_s5 + $0x1c4] sm:$0xf] }
  0x4a   : > { %v1077_v42 = vunpack.c.l.b16 %v1037_v63  ;;  %v819_v26 = vmul.f32 %v4507_v22, %v818_v3  ;;  %vm926_vm10 = vweird.f32 %v5009_v62  ;;  %4510 = vrcp.f32 %v5047_v20 }
  0x4b   : > { %1637 = vmatmul.bf16.vlgmr.msra.gmra.mxu1 %v5065_v38  ;;  %v1078_v24 = vunpack.c.l.b16 %v1038_v11  ;;  %v1105_v53 = vshrl.u32 %v5065_v38, 16  ;;  %v1108_v54 = vshll.u32 %v5065_v38, 16  ;;  %v809_v55 = vsel %vm5070_vm8, %v4505_v13, %v805_v43  ;;  %v3775_v43 = vld [vmem:[%s7218_s5 + $0x2d8] sm:$0xf0] }
  0x4c   : > { %v5089_v59 = vor.u32 1.1754944e-38, %v932_v49  ;;  %v814_v5 = vsel %vm5036_vm2, %v813_v10, %v809_v55  ;;  %v820_v6 = vadd.f32 %v4507_v22, %v819_v26  ;;  %v7272_v56 = vmov 0  ;;  %v3765_v55 = vld [vmem:[%s7218_s5 + $0x2c0] sm:$0xf] }
  0x4d   : > { %v5092_v28 = vpack.c.b16 %v1078_v24, %v1077_v42  ;;  %v1107_v60 = vrot.slane %v1105_v53, 7  ;;  %v7273_v56 = vsel %vm5105_vm11, 4294967295, %v7272_v56  ;;  %v1013_v9 = vmul.f32 %v814_v5, %v4835_v4  ;;  %v4321_v42 = vld [vmem:[%s7218_s5 + $0x2d4] sm:$0xf] }
  0x4e   : > { %7274 = vst [vmem:[#allocation2_spill] sm:$0xff] %v7273_v56  ;;  %vm5110_vm12 = vcmp.eq.f32.partialorder %v930_v46, 8.507059e+37  ;;  %vm941_vm13 = vweird.f32 %v5047_v20  ;;  %v945_v51 = vand.u32 2147483647, %v5047_v20  ;;  %v947_v61 = vand.u32 2147483648, %v5047_v20 }
  0x4f   : > { %1657 = vmatmul.bf16.vlgmr.msra.gmra.mxu3 %v5092_v28  ;;  %v1110_v10 = vor.u32 %v1108_v54, %v1107_v60  ;;  %v1133_v4 = vshrl.u32 %v5092_v28, 16  ;;  %v1136_v13 = vshll.u32 %v5092_v28, 16  ;;  %v824_v16 = vsel %vm5084_vm9, %v4507_v22, %v820_v6  ;;  %v3783_v22 = vld [vmem:[%s7218_s5 + $0x2e8] sm:$0xf0] }
  0x50   : > { %v829_v41 = vsel %vm5060_vm6, %v828_v30, %v824_v16  ;;  %v1031_v17 = vpack.c.bf16 %v1013_v9, %v1013_v9  ;;  %v922_v18 = vmul.f32 %v5101_v7, %v5009_v62  ;;  %vm927_vm14 = vweird.f32 %v5101_v7  ;;  %v5164_v19 = vpop.eup %4510  ;;  %v3639_v30 = vld [vmem:[%s7218_s5 + $0x1c8] sm:$0xf0] }
  0x51   : > { %v5152_v25 = vsel %vm5105_vm11, 0, %v1110_v10  ;;  %v1135_v29 = vrot.slane %v1133_v4, 7  ;;  %v1014_v27 = vmul.f32 %v829_v41, %v4844_v12  ;;  %vm5157_vm15 = vcmp.eq.f32.partialorder %v945_v51, 8.507059e+37  ;;  %v3711_v12 = vld [vmem:[%s7218_s5 + $0x258] sm:$0xf0]  ;;  %vm5202_vm1 = vmor %vm926_vm10, %vm927_vm14 }
  0x52   : > { %1588 = vmatmul.bf16.vlgmr.msra.gmra.mxu0 %v5152_v25  ;;  %v1071_v35 = vunpack.c.l.b16 %v1031_v17  ;;  %v923_v36 = vsub.f32 1.0, %v922_v18  ;;  %v948_v21 = vor.u32 1.1754944e-38, %v947_v61  ;;  %v3722_v63 = vor.u32 %v4307_v33, %v3719_v40 }
  0x53   : > { %v1138_v11 = vor.u32 %v1136_v13, %v1135_v29  ;;  %v1032_v2 = vpack.c.bf16 %v1014_v27, %v1014_v27  ;;  %v937_v3 = vmul.f32 %v5164_v19, %v5047_v20  ;;  %vm942_vm0 = vweird.f32 %v5164_v19 }
  0x54   : > { %v924_v46 = vmul.f32 %v5101_v7, %v923_v36  ;;  %1777 = vmatpush.bf16.msrb.mxu0 %v3722_v63  ;;  %v3650_v49 = vor.u32 %v4289_v57, %v3647_v0  ;;  %v3786_v24 = vor.u32 %v4323_v52, %v3783_v22  ;;  %v3774_v26 = vor.u32 %v4322_v1, %v3773_v23  ;;  %vm5220_vm2 = vmor %vm941_vm13, %vm942_vm0  ;;  %v4417_v22 = vld [vmem:[%s4795_s4 + $0x18] sm:$0xff]  }
  0x55   : > { %v5196_v60 = vsel %vm5105_vm11, 0, %v1138_v11  ;;  %v1072_v5 = vunpack.c.l.b16 %v1032_v2  ;;  %v938_v33 = vsub.f32 1.0, %v937_v3  ;;  %v3714_v9 = vor.u32 %v4305_v32, %v3711_v12  ;;  %v4421_v36 = vld [vmem:[%s4795_s4 + $0x38] sm:$0xff]   ;;  %s3508_s4 = sadd.s32 4294967295, %s4732_s14  ;;  %s494_s14 = scalar_lea.vmem %s7215_s2, %s3527_s3 }
  0x56   : > { %1608 = vmatmul.bf16.vlgmr.msra.gmra.mxu2 %v5196_v60  ;;  %v925_v51 = vadd.f32 %v5101_v7, %v924_v46  ;;  %1729 = vmatpush.bf16.msrb.mxu3 %v3650_v49  ;;  %v3642_v61 = vor.u32 %v4287_v34, %v3639_v30  ;;  %v3778_v40 = vor.u32 %v4321_v42, %v3775_v43  ;;  %v3543_v10 = vmul.f32 -1.442695, %v4886_v44  ;;  %v3703_v43 = vld [vmem:[%s7218_s5 + $0x248] sm:$0xf0]  ;;  %v4285_v46 = vld [vmem:[%s7218_s5 + $0x1b4] sm:$0xf] }
  0x57   : > { %v5209_v16 = vpack.c.b16 %v1072_v5, %v1071_v35  ;;  %v939_v62 = vmul.f32 %v5164_v19, %v938_v33  ;;  %1826 = vmatpush.bf16.msrb.mxu1 %v3786_v24  ;;  %1680 = vmatpush.bf16.msrb.mxu2 %v3774_v26  ;;  %v3766_v57 = vor.u32 %v4320_v58, %v3765_v55  ;;  %v3544_v0 = vmul.f32 -1.442695, %v4889_v45  ;;  %v3631_v55 = vld [vmem:[%s7218_s5 + $0x1b8] sm:$0xf0]  ;;  %p456_p7 = scmp.gt.s32.totalorder %s3508_s4, 0  ;;  %p3509_p8 = scmp.lt.s32.totalorder %s3508_s4, 15 }
  0x58   : > { %v929_v52 = vsel %vm5202_vm1, %v5101_v7, %v925_v51  ;;  %1778 = vmatpush.bf16.msrb.mxu0 %v3714_v9  ;;  %4512 = vpow2.f32 %v3543_v10  ;;  %v688_v17 = vmul.f32 %v4798_v37, %v4406_v8  ;;  %v5229_v18 = vadd.f32 %v4807_v47, %v4979_v39 }
  0x59   : > { %v934_v7 = vsel %vm5110_vm12, %v5089_v59, %v929_v52  ;;  %v940_v20 = vadd.f32 %v5164_v19, %v939_v62  ;;  %v1112_v23 = vshrl.u32 %v5209_v16, 16  ;;  %v1115_v1 = vshll.u32 %v5209_v16, 16  ;;  %s457_s15 = scalar_select %p456_p7, %s3508_s4, 0 }
  0x5a   : > { %v1021_v29 = vmul.f32 %v934_v7, %v4848_v14  ;;  %1730 = vmatpush.bf16.msrb.mxu3 %v3642_v61  ;;  %4514 = vpow2.f32 %v3544_v0  ;;  %v5240_v50 = vadd.f32 %v4807_v47, %v688_v17  ;;  %v3551_v8 = vmul.f32 -1.442695, %v5229_v18 }
  0x5b   : > { %1642 = vmatmul.bf16.gmra.mxu1 %v5209_v16  ;;  %v944_v39 = vsel %vm5220_vm2, %v5164_v19, %v940_v20  ;;  %v1114_v59 = vrot.slane %v1112_v23, 7  ;;  %1681 = vmatpush.bf16.msrb.mxu2 %v3766_v57  ;;  %v4393_v48 = vunpack.c.l.bf16 %v4417_v22  ;;  %v4394_v14 = vunpack.c.h.bf16 %v4417_v22  ;;  %v4319_v20 = vld [vmem:[%s7218_s5 + $0x2c4] sm:$0xf]  ;;  %s7384_s15 = smov (!%p3509_p8, %s457_s15), 15 }
  0x5c   : > { %v949_v27 = vsel %vm5157_vm15, %v948_v21, %v944_v39  ;;  %v1039_v32 = vpack.c.bf16 %v1021_v29, %v1021_v29  ;;  %1827 = vmatpush.bf16.msrb.mxu1 %v3778_v40  ;;  %4516 = vpow2.f32 %v3551_v8  ;;  %v3552_v35 = vmul.f32 -1.442695, %v5240_v50  ;;  %v3767_v39 = vld [vmem:[%s7218_s5 + $0x2c8] sm:$0xf0]  ;;  %s3514_s24 = sshll.u32 %s7384_s15, 1 }
  0x5d   : > { %v1022_v63 = vmul.f32 %v949_v27, %v4851_v15  ;;  %v1117_v19 = vor.u32 %v1115_v1, %v1114_v59  ;;  %v681_v12 = vmul.f32 %v4798_v37, %v4393_v48  ;;  %v682_v2 = vmul.f32 %v4798_v37, %v4394_v14  ;;  %v4303_v15 = vld [vmem:[%s7218_s5 + $0x244] sm:$0xf]  ;;  %s464_s4 = sadd.s32 %s4764_s16, %s3514_s24 }
  0x5e   : > { %v4513_v34 = vpop.eup %4512  ;;  %v1079_v11 = vunpack.c.l.b16 %v1039_v32  ;;  %4518 = vpow2.f32 %v3552_v35  ;;  %v4409_v30 = vunpack.c.l.bf16 %v4421_v36  ;;  %v4410_v49 = vunpack.c.h.bf16 %v4421_v36  ;;  %v3757_v32 = vld [vmem:[%s7218_s5 + $0x2b0] sm:$0xf]  ;;  %s3516_s25 = sshll.u32 %s464_s4, 2 }
  0x5f   : > { %v1040_v31 = vpack.c.bf16 %v1022_v63, %v1022_v63  ;;  %v5260_v21 = vsel %vm5105_vm11, 0, %v1117_v19  ;;  %v5262_v3 = vadd.f32 1.0, %v4513_v34  ;;  %v5280_v58 = vadd.f32 %v4807_v47, %v681_v12  ;;  %v4318_v19 = vld [vmem:[%s7218_s5 + $0x2b4] sm:$0xf0]  ;;  %v4301_v12 = vld [vmem:[%s7218_s5 + $0x234] sm:$0xf]  ;;  %s466_s15 = scalar_lea.vmem %s7213_s0, %s3516_s25 }
  0x60   : > { %v4515_v42 = vpop.eup %4514  ;;  %v3706_v9 = vor.u32 %v4303_v15, %v3703_v43  ;;  %v3634_v51 = vor.u32 %v4285_v46, %v3631_v55  ;;  %v5289_v40 = vadd.f32 %v4807_v47, %v682_v2  ;;  %v5292_v10 = vmul.f32 %v4798_v37, %v4409_v30  ;;  %v3695_v30 = vld [vmem:[%s7218_s5 + $0x238] sm:$0xf0] }
  0x61   : > { %v1080_v24 = vunpack.c.l.b16 %v1040_v31  ;;  %v5273_v26 = vadd.f32 1.0, %v4515_v42  ;;  %4520 = vrcp.f32 %v5262_v3  ;;  %v840_v6 = vand.u32 2147483647, %v5262_v3  ;;  %v4283_v42 = vld [vmem:[%s7218_s5 + $0x1a4] sm:$0xf] }
  0x62   : > { %v4517_v5 = vpop.eup %4516  ;;  %1593 = vmatmul.bf16.gmra.mxu0 %v5260_v21  ;;  %v842_v33 = vand.u32 2147483648, %v5262_v3  ;;  %1731 = vmatpush.bf16.msrb.mxu3 %v3634_v51  ;;  %v5299_v41 = vmul.f32 %v4798_v37, %v4410_v49  ;;  %vm836_vm4 = vweird.f32 %v5262_v3  ;;  %v3770_v31 = vor.u32 %v4319_v20, %v3767_v39  ;;  %v3623_v49 = vld [vmem:[%s7218_s5 + $0x1a8] sm:$0xf0]  ;;  %v3749_v51 = vld [vmem:[%s7218_s5 + $0x2a0] sm:$0xf] }
  0x63   : > { %v5285_v61 = vpack.c.b16 %v1080_v24, %v1079_v11  ;;  %4522 = vrcp.f32 %v5273_v26  ;;  %v855_v57 = vand.u32 2147483647, %v5273_v26  ;;  %v857_v0 = vand.u32 2147483648, %v5273_v26  ;;  %1779 = vmatpush.bf16.msrb.mxu0 %v3706_v9  ;;  %v4317_v24 = vld [vmem:[%s7218_s5 + $0x2b4] sm:$0xf] }
  0x64   : > { %v4519_v62 = vpop.eup %4518  ;;  %v5296_v52 = vadd.f32 1.0, %v4517_v5  ;;  %vm5310_vm5 = vcmp.eq.f32.partialorder %v840_v6, 8.507059e+37  ;;  %v5314_v37 = vor.u32 1.1754944e-38, %v842_v33  ;;  %vm851_vm6 = vweird.f32 %v5273_v26  ;;  %1828 = vmatpush.bf16.msrb.mxu1 %v3770_v31  ;;  %v3759_v9 = vld [vmem:[%s7218_s5 + $0x2b8] sm:$0xf0] }
  0x65   : > { %1662 = vmatmul.bf16.gmra.mxu3 %v5285_v61  ;;  %v1140_v17 = vshrl.u32 %v5285_v61, 16  ;;  %v1143_v22 = vshll.u32 %v5285_v61, 16  ;;  %v5305_v7 = vadd.f32 1.0, %v4519_v62  ;;  %v5316_v8 = vor.u32 1.1754944e-38, %v857_v0 }
  0x66   : > { %4524 = vrcp.f32 %v5296_v52  ;;  %v960_v14 = vand.u32 2147483647, %v5296_v52  ;;  %v962_v27 = vand.u32 2147483648, %v5296_v52  ;;  %vm5335_vm7 = vcmp.eq.f32.partialorder %v855_v57, 8.507059e+37 }
  0x67   : > { %v5322_v59 = vpop.eup %4520  ;;  %v1142_v48 = vrot.slane %v1140_v17, 7  ;;  %4526 = vrcp.f32 %v5305_v7  ;;  %vm956_vm8 = vweird.f32 %v5296_v52  ;;  %v975_v63 = vand.u32 2147483647, %v5305_v7 }
  0x68   : > { %v832_v35 = vmul.f32 %v5322_v59, %v5262_v3  ;;  %v5351_v2 = vor.u32 1.1754944e-38, %v962_v27  ;;  %vm971_vm9 = vweird.f32 %v5305_v7  ;;  %vm837_vm10 = vweird.f32 %v5322_v59 }
  0x69   : > { %v5347_v34 = vpop.eup %4522  ;;  %v1145_v11 = vor.u32 %v1143_v22, %v1142_v48  ;;  %v977_v46 = vand.u32 2147483648, %v5305_v7  ;;  %vm5375_vm13 = vcmp.eq.f32.partialorder %v960_v14, 8.507059e+37  ;;  %v3758_v6 = vor.u32 %v4318_v19, %v3757_v32  ;;  %v4316_v48 = vld [vmem:[%s7218_s5 + $0x2a4] sm:$0xf0]  ;;  %vm5394_vm14 = vmor %vm836_vm4, %vm837_vm10 }
  0x6a   : > { %v833_v15 = vsub.f32 1.0, %v832_v35  ;;  %v847_v43 = vmul.f32 %v5347_v34, %v5273_v26  ;;  %vm852_vm12 = vweird.f32 %v5347_v34  ;;  %v3698_v33 = vor.u32 %v4301_v12, %v3695_v30 }
  0x6b   : > { %v5372_v55 = vsel %vm5105_vm11, 0, %v1145_v11  ;;  %v3626_v20 = vor.u32 %v4283_v42, %v3623_v49  ;;  %v3762_v39 = vor.u32 %v4317_v24, %v3759_v9  ;;  %1682 = vmatpush.bf16.msrb.mxu2 %v3758_v6  ;;  %v3750_v35 = vor.u32 %v4316_v48, %v3749_v51  ;;  %vm5407_vm1 = vmor %vm851_vm6, %vm852_vm12 }
  0x6c   : > { %v4525_v62 = vpop.eup %4524  ;;  %1613 = vmatmul.bf16.gmra.mxu2 %v5372_v55  ;;  %v834_v57 = vmul.f32 %v5322_v59, %v833_v15  ;;  %v848_v0 = vsub.f32 1.0, %v847_v43  ;;  %1780 = vmatpush.bf16.msrb.mxu0 %v3698_v33  ;;  %v3545_v19 = vmul.f32 -1.442695, %v5280_v58  ;;  %v3546_v42 = vmul.f32 -1.442695, %v5289_v40 }
  0x6d   : > { %v4527_v14 = vpop.eup %4526  ;;  %v952_v32 = vmul.f32 %v4525_v62, %v5296_v52  ;;  %vm957_vm15 = vweird.f32 %v4525_v62  ;;  %1732 = vmatpush.bf16.msrb.mxu3 %v3626_v20  ;;  %1829 = vmatpush.bf16.msrb.mxu1 %v3762_v39  ;;  %v5414_v15 = vadd.f32 %v4807_v47, %v5292_v10  ;;  %v5422_v24 = vadd.f32 %v4807_v47, %v5299_v41 }
  0x6e   : > { %v835_v12 = vadd.f32 %v5322_v59, %v834_v57  ;;  %v849_v11 = vmul.f32 %v5347_v34, %v848_v0  ;;  %v967_v31 = vmul.f32 %v4527_v14, %v5305_v7  ;;  %vm972_vm0 = vweird.f32 %v4527_v14  ;;  %vm5435_vm2 = vmor %vm956_vm8, %vm957_vm15 }
  0x6f   : > { %v953_v30 = vsub.f32 1.0, %v952_v32  ;;  %4528 = vpow2.f32 %v3545_v19  ;;  %1683 = vmatpush.bf16.msrb.mxu2 %v3750_v35  ;;  %v3553_v10 = vmul.f32 -1.442695, %v5414_v15  ;;  %v3554_v29 = vmul.f32 -1.442695, %v5422_v24  ;;  %vm5446_vm4 = vmor %vm971_vm9, %vm972_vm0 }
  0x70   : > { %v839_v43 = vsel %vm5394_vm14, %v5322_v59, %v835_v12  ;;  %v850_v49 = vadd.f32 %v5347_v34, %v849_v11  ;;  %v968_v26 = vsub.f32 1.0, %v967_v31  ;;  %4530 = vpow2.f32 %v3546_v42  ;;  %v4299_v42 = vld [vmem:[%s7218_s5 + $0x224] sm:$0xf] }
  0x71   : > { %v844_v6 = vsel %vm5310_vm5, %v5314_v37, %v839_v43  ;;  %v954_v33 = vmul.f32 %v4525_v62, %v953_v30  ;;  %vm976_vm5 = vcmp.eq.f32.partialorder %v975_v63, 8.507059e+37  ;;  %v978_v52 = vor.u32 1.1754944e-38, %v977_v46 }
  0x72   : > { %v854_v59 = vsel %vm5407_vm1, %v5347_v34, %v850_v49  ;;  %v1015_v9 = vmul.f32 %v844_v6, %v4886_v44  ;;  %v969_v41 = vmul.f32 %v4527_v14, %v968_v26  ;;  %4532 = vpow2.f32 %v3553_v10  ;;  %v3687_v6 = vld [vmem:[%s7218_s5 + $0x228] sm:$0xf0] }
  0x73   : > { %v859_v37 = vsel %vm5335_vm7, %v5316_v8, %v854_v59  ;;  %v955_v51 = vadd.f32 %v4525_v62, %v954_v33  ;;  %4534 = vpow2.f32 %v3554_v29 }
  0x74   : > { %v1016_v34 = vmul.f32 %v859_v37, %v4889_v45  ;;  %v1033_v57 = vpack.c.bf16 %v1015_v9, %v1015_v9  ;;  %v970_v0 = vadd.f32 %v4527_v14, %v969_v41  ;;  %v3690_v9 = vor.u32 %v4299_v42, %v3687_v6 }
  0x75   : > { %v4529_v20 = vpop.eup %4528  ;;  %v959_v8 = vsel %vm5435_vm2, %v4525_v62, %v955_v51 }
  0x76   : > { %v1034_v36 = vpack.c.bf16 %v1016_v34, %v1016_v34  ;;  %v1073_v39 = vunpack.c.l.b16 %v1033_v57  ;;  %v964_v48 = vsel %vm5375_vm13, %v5351_v2, %v959_v8  ;;  %v974_v7 = vsel %vm5446_vm4, %v4527_v14, %v970_v0  ;;  %v4531_v63 = vpop.eup %4530  ;;  %1781 = vmatpush.bf16.msrb.mxu0 %v3690_v9  ;;  %v4281_v0 = vld [vmem:[%s7218_s5 + $0x194] sm:$0xf] }
  0x77   : > { %v979_v46 = vsel %vm976_vm5, %v978_v52, %v974_v7  ;;  %v1023_v45 = vmul.f32 %v964_v48, %v5229_v18  ;;  %v5461_v27 = vadd.f32 1.0, %v4529_v20  ;;  %v5464_v62 = vadd.f32 1.0, %v4531_v63  ;;  %v4315_v48 = vld [vmem:[%s7218_s5 + $0x2a4] sm:$0xf]  ;;  %v4297_v9 = vld [vmem:[%s7218_s5 + $0x214] sm:$0xf] }
  0x78   : > { %v1074_v32 = vunpack.c.l.b16 %v1034_v36  ;;  %v1024_v35 = vmul.f32 %v979_v46, %v5240_v50  ;;  %v4533_v12 = vpop.eup %4532 }
  0x79   : > { %v1041_v19 = vpack.c.bf16 %v1023_v45, %v1023_v45  ;;  %4536 = vrcp.f32 %v5461_v27  ;;  %v870_v14 = vand.u32 2147483647, %v5461_v27  ;;  %v4535_v11 = vpop.eup %4534  ;;  %v872_v31 = vand.u32 2147483648, %v5461_v27  ;;  %v3751_v45 = vld [vmem:[%s7218_s5 + $0x2a8] sm:$0xf0] }
  0x7a   : > { %v5467_v5 = vpack.c.b16 %v1074_v32, %v1073_v39  ;;  %v1042_v2 = vpack.c.bf16 %v1024_v35, %v1024_v35  ;;  %4538 = vrcp.f32 %v5464_v62  ;;  %vm866_vm6 = vweird.f32 %v5461_v27  ;;  %v3615_v39 = vld [vmem:[%s7218_s5 + $0x198] sm:$0xf0] }
  0x7b   : > { %v1081_v18 = vunpack.c.l.b16 %v1041_v19  ;;  %v885_v43 = vand.u32 2147483647, %v5464_v62  ;;  %v887_v49 = vand.u32 2147483648, %v5464_v62  ;;  %v5481_v26 = vadd.f32 1.0, %v4533_v12  ;;  %v4313_v19 = vld [vmem:[%s7218_s5 + $0x294] sm:$0xf] }
  0x7c   : > { %1647 = vmatmul.bf16.gmra.mxu1 %v5467_v5  ;;  %v1082_v50 = vunpack.c.l.b16 %v1042_v2  ;;  %v1119_v3 = vshrl.u32 %v5467_v5, 16  ;;  %v1122_v30 = vshll.u32 %v5467_v5, 16  ;;  %vm5490_vm7 = vcmp.eq.f32.partialorder %v870_v14, 8.507059e+37 }
  0x7d   : > { %v5496_v41 = vor.u32 1.1754944e-38, %v872_v31  ;;  %v5498_v29 = vadd.f32 1.0, %v4535_v11  ;;  %4540 = vrcp.f32 %v5481_v26  ;;  %v990_v37 = vand.u32 2147483647, %v5481_v26  ;;  %v3741_v11 = vld [vmem:[%s7218_s5 + $0x290] sm:$0xf] }
  0x7e   : > { %v5486_v33 = vpack.c.b16 %v1082_v50, %v1081_v18  ;;  %v1121_v10 = vrot.slane %v1119_v3, 7  ;;  %vm881_vm8 = vweird.f32 %v5464_v62  ;;  %vm5517_vm9 = vcmp.eq.f32.partialorder %v885_v43, 8.507059e+37  ;;  %v4314_v18 = vld [vmem:[%s7218_s5 + $0x294] sm:$0xf0]  ;;  %v3743_v31 = vld [vmem:[%s7218_s5 + $0x298] sm:$0xf0] }
  0x7f   : > { %v5494_v47 = vpop.eup %4536  ;;  %v888_v36 = vor.u32 1.1754944e-38, %v887_v49  ;;  %v992_v35 = vand.u32 2147483648, %v5481_v26  ;;  %4542 = vrcp.f32 %v5498_v29  ;;  %vm986_vm13 = vweird.f32 %v5481_v26 }
  0x80   : > { %v5502_v51 = vpop.eup %4538  ;;  %1667 = vmatmul.bf16.gmra.mxu3 %v5486_v33  ;;  %v1124_v44 = vor.u32 %v1122_v30, %v1121_v10  ;;  %v1147_v52 = vshrl.u32 %v5486_v33, 16  ;;  %v1150_v34 = vshll.u32 %v5486_v33, 16  ;;  %v862_v57 = vmul.f32 %v5494_v47, %v5461_v27 }
  0x81   : > { %v877_v20 = vmul.f32 %v5502_v51, %v5464_v62  ;;  %vm867_vm10 = vweird.f32 %v5494_v47  ;;  %vm882_vm12 = vweird.f32 %v5502_v51  ;;  %vm5548_vm14 = vcmp.eq.f32.partialorder %v990_v37, 8.507059e+37  ;;  %v3679_v37 = vld [vmem:[%s7218_s5 + $0x218] sm:$0xf0] }
  0x82   : > { %v5529_v7 = vsel %vm5105_vm11, 0, %v1124_v44  ;;  %v1149_v63 = vrot.slane %v1147_v52, 7  ;;  %v863_v46 = vsub.f32 1.0, %v862_v57  ;;  %vm5567_vm15 = vmor %vm866_vm6, %vm867_vm10  ;;  %v1005_v49 = vand.u32 2147483647, %v5498_v29 }
  0x83   : > { %1598 = vmatmul.bf16.gmra.mxu0 %v5529_v7  ;;  %v878_v32 = vsub.f32 1.0, %v877_v20  ;;  %v5561_v50 = vpop.eup %4540  ;;  %v3618_v6 = vor.u32 %v4281_v0, %v3615_v39  ;;  %v3754_v10 = vor.u32 %v4315_v48, %v3751_v45  ;;  %vm5588_vm0 = vmor %vm881_vm8, %vm882_vm12  ;;  %vm1001_vm1 = vweird.f32 %v5498_v29  ;;  %v4279_v20 = vld [vmem:[%s7218_s5 + $0x184] sm:$0xf]  ;;  %v3607_v39 = vld [vmem:[%s7218_s5 + $0x188] sm:$0xf0] }
  0x84   : > { %v1152_v12 = vor.u32 %v1150_v34, %v1149_v63  ;;  %v864_v2 = vmul.f32 %v5494_v47, %v863_v46  ;;  %v982_v0 = vmul.f32 %v5561_v50, %v5481_v26  ;;  %vm987_vm2 = vweird.f32 %v5561_v50  ;;  %v4311_v46 = vld [vmem:[%s7218_s5 + $0x284] sm:$0xf]  ;;  %v3735_v45 = vld [vmem:[%s7218_s5 + $0x288] sm:$0xf0] }
  0x85   : > { %v879_v43 = vmul.f32 %v5502_v51, %v878_v32  ;;  %1733 = vmatpush.bf16.msrb.mxu3 %v3618_v6  ;;  %v3742_v48 = vor.u32 %v4314_v18, %v3741_v11  ;;  %v3746_v63 = vor.u32 %v4313_v19, %v3743_v31  ;;  %1830 = vmatpush.bf16.msrb.mxu1 %v3754_v10  ;;  %v3733_v19 = vld [vmem:[%s7218_s5 + $0x280] sm:$0xf]  ;;  %v4312_v11 = vld [vmem:[%s7218_s5 + $0x284] sm:$0xf0]  ;;  %v4543_v18 = vpop.eup %4542  ;;  %v993_v42 = vor.u32 1.1754944e-38, %v992_v35  ;;  %vm5635_vm4 = vmor %vm986_vm13, %vm987_vm2 }
  0x86   : > { %v5581_v27 = vsel %vm5105_vm11, 0, %v1152_v12  ;;  %v865_v44 = vadd.f32 %v5494_v47, %v864_v2  ;;  %v983_v12 = vsub.f32 1.0, %v982_v0  ;;  %v3682_v2 = vor.u32 %v4297_v9, %v3679_v37 }
  0x87   : > { %1618 = vmatmul.bf16.gmra.mxu2 %v5581_v27  ;;  %v880_v62 = vadd.f32 %v5502_v51, %v879_v43  ;;  %v3610_v43 = vor.u32 %v4279_v20, %v3607_v39  ;;  %v3734_v6 = vor.u32 %v4312_v11, %v3733_v19  ;;  %v3738_v8 = vor.u32 %v4311_v46, %v3735_v45  ;;  %v3671_v20 = vld [vmem:[%s7218_s5 + $0x208] sm:$0xf0]  ;;  %v4262_v46 = vld [vmem:[%s7218_s5 + $0xf4] sm:$0xf0] }
  0x88   : > { %v869_v32 = vsel %vm5567_vm15, %v5494_v47, %v865_v44  ;;  %1684 = vmatpush.bf16.msrb.mxu2 %v3742_v48  ;;  %v984_v37 = vmul.f32 %v5561_v50, %v983_v12  ;;  %v997_v44 = vmul.f32 %v4543_v18, %v5498_v29  ;;  %1782 = vmatpush.bf16.msrb.mxu0 %v3682_v2  ;;  %vm1002_vm5 = vweird.f32 %v4543_v18 }
  0x89   : > { %v874_v31 = vsel %vm5490_vm7, %v5496_v41, %v869_v32  ;;  %v884_v47 = vsel %vm5588_vm0, %v5502_v51, %v880_v62  ;;  %v1007_v51 = vand.u32 2147483648, %v5498_v29  ;;  %1734 = vmatpush.bf16.msrb.mxu3 %v3610_v43  ;;  %1831 = vmatpush.bf16.msrb.mxu1 %v3746_v63  ;;  %vm1003_vm6 = vmor %vm1001_vm1, %vm1002_vm5  ;;  %vm1006_vm7 = vcmp.eq.f32.partialorder %v1005_v49, 8.507059e+37  ;;  %v3853_v29 = vld [vmem:[%s7218_s5 + $0x70] sm:$0xf] }
  0x8a   : > { %v889_v10 = vsel %vm5517_vm9, %v888_v36, %v884_v47  ;;  %v1017_v9 = vmul.f32 %v874_v31, %v5280_v58  ;;  %v1192_v58 = vrot.slane %v1108_v54, 1  ;;  %v985_v35 = vadd.f32 %v5561_v50, %v984_v37  ;;  %v3917_v54 = vld [vmem:[%s7218_s5 + $0xf0] sm:$0xf] }
  0x8b   : > { %v1018_v59 = vmul.f32 %v889_v10, %v5289_v40  ;;  %v998_v57 = vsub.f32 1.0, %v997_v44  ;;  %v4295_v40 = vld [vmem:[%s7218_s5 + $0x204] sm:$0xf]  ;;  %v1008_v32 = vor.u32 1.1754944e-38, %v1007_v51  ;;  %v3918_v12 = vor.u32 %v4262_v46, %v3917_v54  ;;  %v4245_v10 = vld [vmem:[%s7218_s5 + $0x74] sm:$0xf] }
  0x8c   : > { %v1035_v36 = vpack.c.bf16 %v1017_v9, %v1017_v9  ;;  %1685 = vmatpush.bf16.msrb.mxu2 %v3734_v6  ;;  %v1193_v0 = vor.u32 %v1192_v58, %v1105_v53  ;;  %v989_v62 = vsel %vm5635_vm4, %v5561_v50, %v985_v35  ;;  %v3674_v63 = vor.u32 %v4295_v40, %v3671_v20  ;;  %v4278_v6 = vld [vmem:[%s7218_s5 + $0x174] sm:$0xf0]  ;;  %v3845_v46 = vld [vmem:[%s7218_s5 + $0x60] sm:$0xf] }
  0x8d   : > { %v1036_v26 = vpack.c.bf16 %v1018_v59, %v1018_v59  ;;  %v999_v48 = vmul.f32 %v4543_v18, %v998_v57  ;;  %v994_v45 = vsel %vm5548_vm14, %v993_v42, %v989_v62  ;;  %1832 = vmatpush.bf16.msrb.mxu1 %v3738_v8  ;;  %2163 = vmatpush.bf16.msra.mxu3 %v3918_v12  ;;  %v1194_v8 = vrot.slane %v1115_v1, 1  ;;  %v4243_v12 = vld [vmem:[%s7218_s5 + $0x64] sm:$0xf] }
  0x8e   : > { %v1075_v39 = vunpack.c.l.b16 %v1035_v36  ;;  %v1025_v50 = vmul.f32 %v994_v45, %v5414_v15  ;;  %1783 = vmatpush.bf16.msrb.mxu0 %v3674_v63  ;;  %v4246_v15 = vld [vmem:[%s7218_s5 + $0x74] sm:$0xf0]  ;;  %vm1220_vm8 = vcmask 1047552   ;;  %vm1221_vm9 = vsmask.f32 7424 }
  0x8f   : > { %v1076_v53 = vunpack.c.l.b16 %v1036_v26  ;;  %v1000_v2 = vadd.f32 %v4543_v18, %v999_v48  ;;  %v3854_v42 = vor.u32 %v4246_v15, %v3853_v29  ;;  %v1195_v35 = vor.u32 %v1194_v8, %v1112_v23  ;;  %v3909_v26 = vld [vmem:[%s7218_s5 + $0xe0] sm:$0xf]  ;;  %v4260_v23 = vld [vmem:[%s7218_s5 + $0xe4] sm:$0xf0]  ;;  %vm5716_vm10 = vmand %vm1220_vm8, %vm1221_vm9 }
  0x90   : > { %v1043_v14 = vpack.c.bf16 %v1025_v50, %v1025_v50  ;;  %v7310_v20 = vmov 0  ;;  %v3910_v54 = vor.u32 %v4260_v23, %v3909_v26  ;;  %v5726_v48 = vsel %vm5716_vm10, %v1193_v0, 0  ;;  %v3973_v0 = vld [vmem:[%s7218_s5 + $0x160] sm:$0xf]  ;;  %v4256_v8 = vld [vmem:[%s7218_s5 + $0xc4] sm:$0xf0] }
  0x91   : > { %v5668_v43 = vpack.c.b16 %v1076_v53, %v1075_v39  ;;  %v1004_v19 = vsel %vm1003_vm6, %v4543_v18, %v1000_v2  ;;  %v3981_v18 = vld [vmem:[%s7218_s5 + $0x170] sm:$0xf]  ;;  %2114 = vmatpush.bf16.msra.mxu2 %v3854_v42  ;;  %v7311_v20 = vsel %vm5716_vm10, 4294967295, %v7310_v20  ;;  %v4244_v53 = vld [vmem:[%s7218_s5 + $0x64] sm:$0xf0]  ;;  %v5762_v15 = vsel %vm5716_vm10, %v1195_v35, 0 }
  0x92   : > { %v1009_v11 = vsel %vm1006_vm7, %v1008_v32, %v1004_v19  ;;  %v3982_v37 = vor.u32 %v4278_v6, %v3981_v18  ;;  %v1083_v59 = vunpack.c.l.b16 %v1043_v14  ;;  %7312 = vst [vmem:[#allocation4_spill] sm:$0xff] %v7311_v20  ;;  %2164 = vmatpush.bf16.msra.mxu3 %v3910_v54  ;;  %v3846_v45 = vor.u32 %v4244_v53, %v3845_v46  ;;  %v4276_v32 = vld [vmem:[%s7218_s5 + $0x164] sm:$0xf0]  ;;  %v3847_v2 = vld [vmem:[%s7218_s5 + $0x68] sm:$0xf0] }
  0x93   : > { %1652 = vmatmul.bf16.gmra.mxu1 %v5668_v43  ;;  %v1126_v31 = vshrl.u32 %v5668_v43, 16  ;;  %v1129_v47 = vshll.u32 %v5668_v43, 16  ;;  %v1026_v49 = vmul.f32 %v1009_v11, %v5422_v24  ;;  %v3855_v24 = vld [vmem:[%s7218_s5 + $0x78] sm:$0xf0]  ;;  %v3974_v50 = vor.u32 %v4276_v32, %v3973_v0  ;;  %v3901_v14 = vld [vmem:[%s7218_s5 + $0xd0] sm:$0xf] }
  0x94   : > { %v3858_v41 = vor.u32 %v4245_v10, %v3855_v24  ;;  %2212 = vmatpush.bf16.msra.mxu0 %v3982_v37  ;;  %v3850_v19 = vor.u32 %v4243_v12, %v3847_v2  ;;  %v4258_v11 = vld [vmem:[%s7218_s5 + $0xd4] sm:$0xf0]  ;;  %v3965_v18 = vld [vmem:[%s7218_s5 + $0x150] sm:$0xf]  ;;  %v3839_v37 = vld [vmem:[%s7218_s5 + $0x58] sm:$0xf0] }
  0x95   : > { %v1128_v9 = vrot.slane %v1126_v31, 7  ;;  %v1044_v44 = vpack.c.bf16 %v1026_v49, %v1026_v49  ;;  %2115 = vmatpush.bf16.msra.mxu2 %v3846_v45  ;;  %v3902_v29 = vor.u32 %v4258_v11, %v3901_v14  ;;  %v3837_v49 = vld [vmem:[%s7218_s5 + $0x50] sm:$0xf]  ;;  %v4242_v42 = vld [vmem:[%s7218_s5 + $0x54] sm:$0xf0]  ;;  %v1198_v0 = vrot.slane %v1129_v47, 1 }
  0x96   : > { %2261 = vmatpush.bf16.msra.mxu1 %v3858_v41  ;;  %v3838_v6 = vor.u32 %v4242_v42, %v3837_v49  ;;  %v4274_v10 = vld [vmem:[%s7218_s5 + $0x154] sm:$0xf0]  ;;  %v4240_v35 = vld [vmem:[%s7218_s5 + $0x44] sm:$0xf0]  ;;  %v3957_v26 = vld [vmem:[%s7218_s5 + $0x140] sm:$0xf] }
  0x97   : > { %v1131_v51 = vor.u32 %v1129_v47, %v1128_v9  ;;  %v1084_v58 = vunpack.c.l.b16 %v1044_v44  ;;  %2165 = vmatpush.bf16.msra.mxu3 %v3902_v29  ;;  %v4241_v9 = vld [vmem:[%s7218_s5 + $0x54] sm:$0xf]  ;;  %v3966_v24 = vor.u32 %v4274_v10, %v3965_v18  ;;  %v4272_v54 = vld [vmem:[%s7218_s5 + $0x144] sm:$0xf0]  ;;  %v1199_v32 = vor.u32 %v1198_v0, %v1126_v31  ;;  %v3885_v12 = vld [vmem:[%s7218_s5 + $0xb0] sm:$0xf] }
  0x98   : > { %2213 = vmatpush.bf16.msra.mxu0 %v3974_v50  ;;  %v3842_v44 = vor.u32 %v4241_v9, %v3839_v37  ;;  %v3958_v46 = vor.u32 %v4272_v54, %v3957_v26  ;;  %v4254_v2 = vld [vmem:[%s7218_s5 + $0xb4] sm:$0xf0]  ;;  %v3821_v31 = vld [vmem:[%s7218_s5 + $0x30] sm:$0xf]  ;;  %v4237_v18 = vld [vmem:[%s7218_s5 + $0x34] sm:$0xf] }
  0x99   : > { %v5700_v36 = vsel %vm5105_vm11, 0, %v1131_v51  ;;  %v5704_v57 = vpack.c.b16 %v1084_v58, %v1083_v59  ;;  %2116 = vmatpush.bf16.msra.mxu2 %v3838_v6  ;;  %v1196_v59 = vrot.slane %v1122_v30, 1  ;;  %v3893_v51 = vld [vmem:[%s7218_s5 + $0xc0] sm:$0xf]  ;;  %v3886_v47 = vor.u32 %v4254_v2, %v3885_v12  ;;  %v4238_v11 = vld [vmem:[%s7218_s5 + $0x34] sm:$0xf0] }
  0x9a   : > { %1603 = vmatmul.bf16.gmra.mxu0 %v5700_v36  ;;  %2262 = vmatpush.bf16.msra.mxu1 %v3850_v19  ;;  %v3894_v58 = vor.u32 %v4256_v8, %v3893_v51  ;;  %v5837_v19 = vsel %vm5716_vm10, %v1199_v32, 0  ;;  %v3949_v29 = vld [vmem:[%s7218_s5 + $0x130] sm:$0xf]  ;;  %v3822_v49 = vor.u32 %v4238_v11, %v3821_v31  ;;  %v4270_v42 = vld [vmem:[%s7218_s5 + $0x134] sm:$0xf0] }
  0x9b   : > { %7309 = vst [vmem:[#allocation3_spill] sm:$0xff] %v5704_v57  ;;  %1672 = vmatmul.bf16.gmra.mxu3 %v5704_v57  ;;  %v1154_v40 = vshrl.u32 %v5704_v57, 16  ;;  %v1157_v1 = vshll.u32 %v5704_v57, 16  ;;  %v1197_v41 = vor.u32 %v1196_v59, %v1119_v3  ;;  %v3829_v3 = vld [vmem:[%s7218_s5 + $0x40] sm:$0xf]  ;;  %v3950_v9 = vor.u32 %v4270_v42, %v3949_v29 }
  0x9c   : > { %2214 = vmatpush.bf16.msra.mxu0 %v3966_v24  ;;  %2166 = vmatpush.bf16.msra.mxu3 %v3894_v58  ;;  %v3830_v23 = vor.u32 %v4240_v35, %v3829_v3  ;;  %v3823_v6 = vld [vmem:[%s7218_s5 + $0x38] sm:$0xf0]  ;;  %v4376_v59 = vld [vmem:[%s466_s15] sm:$0xff]   ;;  %v4236_v31 = vld [vmem:[%s7218_s5 + $0x24] sm:$0xf0] }
  0x9d   : > { %v1156_v39 = vrot.slane %v1154_v40, 7  ;;  %v5799_v30 = vsel %vm5716_vm10, %v1197_v41, 0  ;;  %v3826_v37 = vor.u32 %v4237_v18, %v3823_v6  ;;  %v4377_v8 = vunpack.c.l.bf16 %v4376_v59  ;;  %v4560_v35 = vld [vmem:[%s4770_s19] ss:$0 sm:$0xff]  ;;  %v4235_v42 = vld [vmem:[%s7218_s5 + $0x24] sm:$0xf] }
  0x9e   : > { %2263 = vmatpush.bf16.msra.mxu1 %v3842_v44  ;;  %2117 = vmatpush.bf16.msra.mxu2 %v3830_v23  ;;  %v1200_v44 = vrot.slane %v1136_v13, 1  ;;  %v4378_v58 = vunpack.c.h.bf16 %v4376_v59  ;;  %v3877_v13 = vld [vmem:[%s7218_s5 + $0xa0] sm:$0xf]  ;;  %v3815_v18 = vld [vmem:[%s7218_s5 + $0x28] sm:$0xf0] }
  0x9f   : > { %v1159_v62 = vor.u32 %v1157_v1, %v1156_v39  ;;  %v4239_v39 = vld [vmem:[%s7218_s5 + $0x44] sm:$0xf]  ;;  %v554_v26 = vmul.f32 %v4560_v35, %v4377_v8  ;;  %v3941_v11 = vld [vmem:[%s7218_s5 + $0x120] sm:$0xf]  ;;  %s6644_s15 = scalar_select %p518_p11, 1, 0 }
  0xa0   : > { %2215 = vmatpush.bf16.msra.mxu0 %v3958_v46  ;;  %2167 = vmatpush.bf16.msra.mxu3 %v3886_v47  ;;  %v555_v23 = vmul.f32 %v4560_v35, %v4378_v58  ;;  %v1201_v54 = vor.u32 %v1200_v44, %v1133_v4  ;;  %v4561_v46 = vld [vmem:[%s4780_s26] ss:$0 sm:$0xff]  ;;  %v3818_v44 = vor.u32 %v4235_v42, %v3815_v18  ;;  %v3807_v42 = vld [vmem:[%s7218_s5 + $0x18] sm:$0xf0] }
  0xa1   : > { %v5730_v63 = vsel %vm5105_vm11, 0, %v1159_v62  ;;  %v3831_v62 = vld [vmem:[%s7218_s5 + $0x48] sm:$0xf0]  ;;  %s655_s20 = scvt.s32.f32 %s6644_s15  ;;  %s3529_s15 = sshll.u32 %s4752_s23, 2 }
  0xa2   : > { %7313 = vst [vmem:[#allocation5_spill] sm:$0xff] %v5730_v63  ;;  %1623 = vmatmul.bf16.gmra.mxu2 %v5730_v63  ;;  %v3834_v53 = vor.u32 %v4239_v39, %v3831_v62  ;;  %v4252_v39 = vld [vmem:[%s7218_s5 + $0xa4] sm:$0xf0]  ;;  %v5886_v0 = vadd.f32 %v4561_v46, %v555_v23  ;;  %v5892_v2 = vsel %vm5716_vm10, %v1201_v54, 0 }
  0xa3   : > { %1833 = vmatmul.bf16.vlgmr.msrb.gmra.mxu1 %v5726_v48  ;;  %2118 = vmatpush.bf16.msra.mxu2 %v3822_v49  ;;  %v3878_v62 = vor.u32 %v4252_v39, %v3877_v13  ;;  %7314 = vst [vmem:[#allocation6_spill] sm:$0xff] %v5892_v2  ;;  %v4268_v49 = vld [vmem:[%s7218_s5 + $0x124] sm:$0xf0] }
  0xa4   : > { %2264 = vmatpush.bf16.msra.mxu1 %v3834_v53  ;;  %2216 = vmatpush.bf16.msra.mxu0 %v3950_v9  ;;  %v5884_v53 = vadd.f32 %v4561_v46, %v554_v26  ;;  %v3536_v4 = vmul.f32 -1.442695, %v5886_v0  ;;  %v3869_v26 = vld [vmem:[%s7218_s5 + $0x90] sm:$0xf] }
  0xa5   : > { %2168 = vmatpush.bf16.msra.mxu3 %v3878_v62 }
  0xa6   : > { %v3535_v12 = vmul.f32 -1.442695, %v5884_v53 }
  0xa8   : > { %2265 = vmatpush.bf16.msra.mxu1 %v3826_v37  ;;  %4544 = vpow2.f32 %v3535_v12  ;;  %v3942_v37 = vor.u32 %v4268_v49, %v3941_v11  ;;  %v4233_v49 = vld [vmem:[%s7218_s5 + $0x14] sm:$0xf] }
  0xa9   : > { %4546 = vpow2.f32 %v3536_v4  ;;  %v3805_v4 = vld [vmem:[%s7218_s5 + $0x10] sm:$0xf] }
  0xaa   : > { %1784 = vmatmul.bf16.vlgmr.msrb.gmra.mxu0 %v5065_v38 }
  0xab   : > { %1735 = vmatmul.bf16.vlgmr.msrb.gmra.mxu3 %v5152_v25  ;;  %2217 = vmatpush.bf16.msra.mxu0 %v3942_v37  ;;  %v3810_v37 = vor.u32 %v4233_v49, %v3807_v42 }
  0xac   : > { %2266 = vmatpush.bf16.msra.mxu1 %v3818_v44 }
  0xae   : > { %v4545_v59 = vpop.eup %4544 }
  0xaf   : > { %v567_v8 = vadd.f32 1.0, %v4545_v59 }
  0xb0   : > { %2267 = vmatpush.bf16.msra.mxu1 %v3810_v37 }
  0xb1   : > { %4548 = vrcp.f32 %v567_v8  ;;  %vm574_vm12 = vweird.f32 %v567_v8 }
  0xb2   : > { %1686 = vmatmul.bf16.vlgmr.msrb.gmra.mxu2 %v5726_v48 }
  0xb3   : > { %1838 = vmatmul.bf16.gmra.mxu1 %v5762_v15 }
  0xba   : > { %1789 = vmatmul.bf16.gmra.mxu0 %v5209_v16 }
  0xbb   : > { %1740 = vmatmul.bf16.gmra.mxu3 %v5260_v21 }
  0xc2   : > { %1691 = vmatmul.bf16.gmra.mxu2 %v5762_v15 }
  0xc3   : > { %1843 = vmatmul.bf16.gmra.mxu1 %v5799_v30 }
  0xc8   : > { %v1638_v45 = vpop.f32.mrf.mxu1 }
  0xca   : > { %1794 = vmatmul.bf16.gmra.mxu0 %v5467_v5 }
  0xcb   : > { %1745 = vmatmul.bf16.gmra.mxu3 %v5529_v7 }
  0xcf   : > { %v1589_v50 = vpop.f32.mrf.mxu0 }
  0xd0   : > { %v5839_v14 = vadd.f32 %v1638_v45, %v1589_v50  ;;  %v5861_v10 = vpop.f32.mrf.mxu1  ;;  %v3813_v50 = vld [vmem:[%s7218_s5 + $0x20] sm:$0xf] }
  0xd1   : > { %v3814_v29 = vor.u32 %v4236_v31, %v3813_v50  ;;  %v4234_v50 = vld [vmem:[%s7218_s5 + $0x14] sm:$0xf0]  ;;  %v3933_v31 = vld [vmem:[%s7218_s5 + $0x110] sm:$0xf] }
  0xd2   : > { %1696 = vmatmul.bf16.gmra.mxu2 %v5799_v30  ;;  %v1658_v41 = vpop.f32.mrf.mxu3  ;;  %v3806_v11 = vor.u32 %v4234_v50, %v3805_v4 }
  0xd3   : > { %1848 = vmatmul.bf16.gmra.mxu1 %v5837_v19  ;;  %2119 = vmatpush.bf16.msra.mxu2 %v3814_v29  ;;  %v4266_v29 = vld [vmem:[%s7218_s5 + $0x114] sm:$0xf0] }
  0xd4   : > { %v3934_v18 = vor.u32 %v4266_v29, %v3933_v31 }
  0xd6   : > { %2218 = vmatpush.bf16.msra.mxu0 %v3934_v18 }
  0xd7   : > { %v5866_v24 = vpop.f32.mrf.mxu0  ;;  %2120 = vmatpush.bf16.msra.mxu2 %v3806_v11 }
  0xd8   : > { %v1643_v45 = vpop.f32.mrf.mxu1 }
  0xd9   : > { %v1609_v51 = vpop.f32.mrf.mxu2 }
  0xda   : > { %1799 = vmatmul.bf16.gmra.mxu0 %v5668_v43  ;;  %v5871_v3 = vadd.f32 %v1658_v41, %v1609_v51  ;;  %v5916_v6 = vpop.f32.mrf.mxu3  ;;  %v4547_v41 = vpop.eup %4546  ;;  %v1202_v51 = vrot.slane %v1143_v22, 1  ;;  %v4250_v22 = vld [vmem:[%s7218_s5 + $0x94] sm:$0xf0] }
  0xdb   : > { %1750 = vmatmul.bf16.gmra.mxu3 %v5700_v36  ;;  %7315 = vst [vmem:[#allocation7_spill] sm:$0xff] %v5916_v6  ;;  %v5922_v58 = vadd.f32 1.0, %v4547_v41  ;;  %v3870_v23 = vor.u32 %v4250_v22, %v3869_v26  ;;  %v4549_v39 = vpop.eup %4548  ;;  %v1204_v22 = vrot.slane %v1150_v34, 1 }
  0xdc   : > { %v1203_v35 = vor.u32 %v1202_v51, %v1140_v17  ;;  %v580_v51 = vand.u32 2147483648, %v567_v8  ;;  %vm575_vm13 = vweird.f32 %v4549_v39 }
  0xdd   : > { %4550 = vrcp.f32 %v5922_v58  ;;  %2169 = vmatpush.bf16.msra.mxu3 %v3870_v23  ;;  %vm5970_vm14 = vmor %vm574_vm12, %vm575_vm13  ;;  %vm589_vm15 = vweird.f32 %v5922_v58  ;;  %v593_v34 = vand.u32 2147483647, %v5922_v58  ;;  %v1205_v11 = vor.u32 %v1204_v22, %v1147_v52  ;;  %v3797_v22 = vld [vmem:[%s7218_s5] sm:$0xf]  ;;  %v4232_v23 = vld [vmem:[%s7218_s5 + $0x4] sm:$0xf0] }
  0xde   : > { %v5937_v62 = vsel %vm5716_vm10, %v1203_v35, 0  ;;  %v595_v35 = vand.u32 2147483648, %v5922_v58 }
  0xdf   : > { %v1594_v32 = vpop.f32.mrf.mxu0  ;;  %7317 = vst [vmem:[#allocation9_spill] sm:$0xff] %v5937_v62  ;;  %vm594_vm4 = vcmp.eq.f32.partialorder %v593_v34, 8.507059e+37  ;;  %v5994_v37 = vsel %vm5716_vm10, %v1205_v11, 0  ;;  %v4264_v34 = vld [vmem:[%s7218_s5 + $0x104] sm:$0xf0] }
  0xe0   : > { %v5894_v47 = vadd.f32 %v1643_v45, %v1594_v32  ;;  %v570_v45 = vmul.f32 %v4549_v39, %v567_v8  ;;  %v5941_v32 = vpop.f32.mrf.mxu1  ;;  %v596_v50 = vor.u32 1.1754944e-38, %v595_v35  ;;  %7321 = vst [vmem:[#allocation11_spill] sm:$0xff] %v5994_v37 }
  0xe1   : > { %v5918_v9 = vpop.f32.mrf.mxu2 }
  0xe2   : > { %1701 = vmatmul.bf16.gmra.mxu2 %v5837_v19  ;;  %7316 = vst [vmem:[#allocation8_spill] sm:$0xff] %v5918_v9  ;;  %v571_v44 = vsub.f32 1.0, %v570_v45 }
  0xe3   : > { %1853 = vmatmul.bf16.gmra.mxu1 %v5892_v2  ;;  %v4551_v17 = vpop.eup %4550 }
  0xe4   : > { %v585_v12 = vmul.f32 %v4551_v17, %v5922_v58  ;;  %v572_v26 = vmul.f32 %v4549_v39, %v571_v44  ;;  %vm590_vm0 = vweird.f32 %v4551_v17  ;;  %v3861_v58 = vld [vmem:[%s7218_s5 + $0x80] sm:$0xf] }
  0xe5   : > { %vm591_vm2 = vmor %vm589_vm15, %vm590_vm0 }
  0xe6   : > { %v586_v59 = vsub.f32 1.0, %v585_v12  ;;  %v573_v45 = vadd.f32 %v4549_v39, %v572_v26  ;;  %v581_v12 = vor.u32 1.1754944e-38, %v580_v51  ;;  %v604_v26 = vstv %s603_s21 }
  0xe7   : > { %v5965_v41 = vpop.f32.mrf.mxu0 }
  0xe8   : > { %v1663_v54 = vpop.f32.mrf.mxu3  ;;  %v577_v31 = vsel %vm5970_vm14, %v4549_v39, %v573_v45  ;;  %v4248_v39 = vld [vmem:[%s7218_s5 + $0x84] sm:$0xf0]  ;;  %v4231_v45 = vld [vmem:[%s7218_s5 + $0x4] sm:$0xf] }
  0xe9   : > { %v3862_v44 = vor.u32 %v4248_v39, %v3861_v58 }
  0xea   : > { %1804 = vmatmul.bf16.gmra.mxu0 %v5092_v28 }
  0xeb   : > { %1755 = vmatmul.bf16.gmra.mxu3 %v5196_v60 }
  0xec   : > { %2170 = vmatpush.bf16.msra.mxu3 %v3862_v44 }
  0xef   : > { %v1614_v13 = vpop.f32.mrf.mxu2 }
  0xf0   : > { %v5939_v46 = vadd.f32 %v1663_v54, %v1614_v13  ;;  %v578_v54 = vand.u32 2147483647, %v567_v8  ;;  %v587_v13 = vmul.f32 %v4551_v17, %v586_v59  ;;  %v5984_v18 = vpop.f32.mrf.mxu3 }
  0xf1   : > { %7320 = vst [vmem:[#allocation10_spill] sm:$0xff] %v5984_v18 }
  0xf2   : > { %1706 = vmatmul.bf16.gmra.mxu2 %v5892_v2  ;;  %vm579_vm1 = vcmp.eq.f32.partialorder %v578_v54, 8.507059e+37  ;;  %v588_v4 = vadd.f32 %v4551_v17, %v587_v13  ;;  %v3798_v54 = vor.u32 %v4232_v23, %v3797_v22  ;;  %v4277_v22 = vld [vmem:[%s7218_s5 + $0x174] sm:$0xf]  ;;  %v3983_v23 = vld [vmem:[%s7218_s5 + $0x178] sm:$0xf0] }
  0xf3   : > { %1858 = vmatmul.bf16.gmra.mxu1 %v5937_v62  ;;  %v582_v49 = vsel %vm579_vm1, %v581_v12, %v577_v31  ;;  %v3799_v12 = vld [vmem:[%s7218_s5 + $0x8] sm:$0xf0] }
  0xf4   : > { %v592_v29 = vsel %vm591_vm2, %v4551_v17, %v588_v4  ;;  %v599_v59 = vmul.f32 %v582_v49, %v5884_v53  ;;  %2121 = vmatpush.bf16.msra.mxu2 %v3798_v54  ;;  %v3925_v4 = vld [vmem:[%s7218_s5 + $0x100] sm:$0xf] }
  0xf5   : > { %v597_v42 = vsel %vm594_vm4, %v596_v50, %v592_v29  ;;  %v3802_v50 = vor.u32 %v4231_v45, %v3799_v12  ;;  %v3926_v11 = vor.u32 %v4264_v34, %v3925_v4  ;;  %v4261_v45 = vld [vmem:[%s7218_s5 + $0xf4] sm:$0xf]  ;;  %v3919_v12 = vld [vmem:[%s7218_s5 + $0xf8] sm:$0xf0] }
  0xf6   : > { %v600_v51 = vmul.f32 %v597_v42, %v5886_v0  ;;  %v605_v53 = vmul.f32 %v604_v26, %v599_v59  ;;  %v3922_v34 = vor.u32 %v4261_v45, %v3919_v12 }
  0xf7   : > { %v5996_v52 = vpop.f32.mrf.mxu2  ;;  %2268 = vmatpush.bf16.msra.mxu1 %v3802_v50  ;;  %2219 = vmatpush.bf16.msra.mxu0 %v3926_v11 }
  0xf8   : > { %7322 = vst [vmem:[#allocation12_spill] sm:$0xff] %v5996_v52  ;;  %v606_v13 = vmul.f32 %v604_v26, %v600_v51  ;;  %v1027_v29 = vpack.c.bf16 %v605_v53, %v605_v53  ;;  %2310 = vmatpush.bf16.msrb.mxu2 %v3922_v34  ;;  %v4275_v34 = vld [vmem:[%s7218_s5 + $0x164] sm:$0xf] }
  0xf9   : > { %v1648_v8 = vpop.f32.mrf.mxu1 }
  0xfa   : > { %1809 = vmatmul.bf16.gmra.mxu0 %v5285_v61  ;;  %v1028_v49 = vpack.c.bf16 %v606_v13, %v606_v13 }
  0xfb   : > { %1760 = vmatmul.bf16.gmra.mxu3 %v5372_v55 }
  0xfc   : > { %v1068_v44 = vunpack.c.l.b16 %v1028_v49 }
 0x100   : > { %v1599_v17 = vpop.f32.mrf.mxu0 }
 0x101   : > { %v6000_v35 = vadd.f32 %v1648_v8, %v1599_v17  ;;  %v6010_v0 = vpop.f32.mrf.mxu1  ;;  %v1206_v8 = vrot.slane %v1157_v1, 1  ;;  %v1067_v17 = vunpack.c.l.b16 %v1027_v29 }
 0x102   : > { %1711 = vmatmul.bf16.gmra.mxu2 %v5937_v62 }
 0x103   : > { %1863 = vmatmul.bf16.gmra.mxu1 %v5994_v37  ;;  %v1668_v31 = vpop.f32.mrf.mxu3  ;;  %v1207_v39 = vor.u32 %v1206_v8, %v1154_v40  ;;  %v6038_v26 = vpack.c.b16 %v1068_v44, %v1067_v17  ;;  %v3986_v40 = vor.u32 %v4277_v22, %v3983_v23  ;;  %v4342_v8 = vld [vmem:[%s7218_s5 + $0x374] sm:$0xf0]  ;;  %v4157_v17 = vld [vmem:[%s7218_s5 + $0x3f0] sm:$0xf] }
 0x104   : > { %v4358_v44 = vld [vmem:[%s7218_s5 + $0x3f4] sm:$0xf0] }
 0x105   : > { %v6036_v51 = vsel %vm5716_vm10, %v1207_v39, 0  ;;  %v1098_v4 = vshrl.u32 %v6038_v26, 16  ;;  %2359 = vmatpush.bf16.msrb.mxu3 %v3986_v40  ;;  %v4158_v22 = vor.u32 %v4358_v44, %v4157_v17 }
 0x106   : > { %7323 = vst [vmem:[#allocation13_spill] sm:$0xff] %v6036_v51 }
 0x107   : > { %v1100_v49 = vrot.slane %v1098_v4, 7  ;;  %2746 = vmatpush.bf16.msrb.mxu1 %v4158_v22 }
 0x108   : > { %v6032_v59 = vpop.f32.mrf.mxu0 }
 0x10a   : > { %1814 = vmatmul.bf16.gmra.mxu0 %v5486_v33  ;;  %v1619_v42 = vpop.f32.mrf.mxu2 }
 0x10b   : > { %v6027_v58 = vadd.f32 %v1668_v31, %v1619_v42  ;;  %1765 = vmatmul.bf16.gmra.mxu3 %v5581_v27  ;;  %v1670_v54 = vpop.f32.mrf.mxu3  ;;  %v4093_v31 = vld [vmem:[%s7218_s5 + $0x370] sm:$0xf]  ;;  %v1101_v42 = vshll.u32 %v6038_v26, 16 }
 0x10c   : > { %v4094_v39 = vor.u32 %v4342_v8, %v4093_v31 }
 0x10e   : > { %2697 = vmatpush.bf16.msrb.mxu0 %v4094_v39 }
 0x110   : > { %v1653_v1 = vpop.f32.mrf.mxu1 }
 0x112   : > { %v1621_v53 = vpop.f32.mrf.mxu2  ;;  %1716 = vmatmul.bf16.gmra.mxu2 %v5994_v37 }
 0x113   : > { %1868 = vmatmul.bf16.gmra.mxu1 %v6036_v51  ;;  %v6048_v13 = vadd.f32 %v1670_v54, %v1621_v53  ;;  %v1190_v54 = vrot.slane %v1101_v42, 1 }
 0x115   : > { %v1191_v8 = vor.u32 %v1190_v54, %v1098_v4  ;;  %v4085_v4 = vld [vmem:[%s7218_s5 + $0x360] sm:$0xf] }
 0x117   : > { %v1604_v50 = vpop.f32.mrf.mxu0 }
 0x118   : > { %v6063_v11 = vadd.f32 %v1653_v1, %v1604_v50  ;;  %v1655_v29 = vpop.f32.mrf.mxu1  ;;  %v1103_v1 = vor.u32 %v1101_v42, %v1100_v49  ;;  %v3975_v50 = vld [vmem:[%s7218_s5 + $0x168] sm:$0xf0] }
 0x119   : > { %v3978_v31 = vor.u32 %v4275_v34, %v3975_v50  ;;  %v3911_v49 = vld [vmem:[%s7218_s5 + $0xe8] sm:$0xf0]  ;;  %v4356_v50 = vld [vmem:[%s7218_s5 + $0x3e4] sm:$0xf0] }
 0x11a   : > { %1819 = vmatmul.bf16.gmra.mxu0 %v5704_v57  ;;  %v1180_v12 = vsel %vm5105_vm11, 0, %v1103_v1  ;;  %v6095_v1 = vsel %vm5716_vm10, %v1191_v8, 0 }
 0x11b   : > { %1770 = vmatmul.bf16.gmra.mxu3 %v5730_v63 }
 0x11c   : > { %2360 = vmatpush.bf16.msrb.mxu3 %v3978_v31 }
 0x11e   : > { %v1673_v23 = vpop.f32.mrf.mxu3 }
 0x11f   : > { %v1606_v40 = vpop.f32.mrf.mxu0 }
 0x120   : > { %v6074_v53 = vadd.f32 %v1655_v29, %v1606_v40  ;;  %v1834_v45 = vpop.f32.mrf.mxu1  ;;  %v4259_v29 = vld [vmem:[%s7218_s5 + $0xe4] sm:$0xf]  ;;  %v4340_v40 = vld [vmem:[%s7218_s5 + $0x364] sm:$0xf0] }
 0x121   : > { %v3914_v42 = vor.u32 %v4259_v29, %v3911_v49  ;;  %v4086_v34 = vor.u32 %v4340_v40, %v4085_v4  ;;  %v4273_v40 = vld [vmem:[%s7218_s5 + $0x154] sm:$0xf] }
 0x122   : > { %1721 = vmatmul.bf16.gmra.mxu2 %v6036_v51 }
 0x123   : > { %2269 = vmatmul.bf16.vlgmr.msra.gmra.mxu1 %v1180_v12  ;;  %2311 = vmatpush.bf16.msrb.mxu2 %v3914_v42 }
 0x124   : > { %2698 = vmatpush.bf16.msrb.mxu0 %v4086_v34 }
 0x125   : > { %v1624_v39 = vpop.f32.mrf.mxu2 }
 0x126   : > { %v6091_v17 = vadd.f32 %v1673_v23, %v1624_v39  ;;  %v1675_v44 = vpop.f32.mrf.mxu3  ;;  %v4149_v23 = vld [vmem:[%s7218_s5 + $0x3e0] sm:$0xf] }
 0x127   : > { %v1785_v22 = vpop.f32.mrf.mxu0  ;;  %v4150_v31 = vor.u32 %v4356_v50, %v4149_v23  ;;  %v3967_v23 = vld [vmem:[%s7218_s5 + $0x158] sm:$0xf0] }
 0x128   : > { %v1836_v54 = vpop.f32.mrf.mxu1  ;;  %v3970_v50 = vor.u32 %v4273_v40, %v3967_v23  ;;  %v4338_v40 = vld [vmem:[%s7218_s5 + $0x354] sm:$0xf0] }
 0x129   : > { %2747 = vmatpush.bf16.msrb.mxu1 %v4150_v31 }
 0x12a   : > { %2220 = vmatmul.bf16.vlgmr.msra.gmra.mxu0 %v6095_v1  ;;  %2361 = vmatpush.bf16.msrb.mxu3 %v3970_v50  ;;  %v4141_v50 = vld [vmem:[%s7218_s5 + $0x3d0] sm:$0xf] }
 0x12b   : > { %2171 = vmatmul.bf16.vlgmr.msra.gmra.mxu3 %v6038_v26 }
 0x12d   : > { %v1626_v8 = vpop.f32.mrf.mxu2 }
 0x12e   : > { %v6111_v29 = vadd.f32 %v1675_v44, %v1626_v8  ;;  %v1736_v49 = vpop.f32.mrf.mxu3  ;;  %v4257_v44 = vld [vmem:[%s7218_s5 + $0xd4] sm:$0xf] }
 0x12f   : > { %v1787_v42 = vpop.f32.mrf.mxu0  ;;  %v1786_v39 = vadd.f32 %v1785_v22, %v1736_v49  ;;  %v3903_v22 = vld [vmem:[%s7218_s5 + $0xd8] sm:$0xf0] }
 0x130   : > { %v1839_v4 = vpop.f32.mrf.mxu1  ;;  %v3906_v31 = vor.u32 %v4257_v44, %v3903_v22 }
 0x131   : > { %v6119_v34 = vadd.f32 %v1834_v45, %v1786_v39 }
 0x132   : > { %2122 = vmatmul.bf16.vlgmr.msra.gmra.mxu2 %v1180_v12  ;;  %v4077_v12 = vld [vmem:[%s7218_s5 + $0x350] sm:$0xf] }
 0x133   : > { %2274 = vmatmul.bf16.gmra.mxu1 %v5152_v25  ;;  %2312 = vmatpush.bf16.msrb.mxu2 %v3906_v31  ;;  %v4078_v51 = vor.u32 %v4338_v40, %v4077_v12  ;;  %v4271_v40 = vld [vmem:[%s7218_s5 + $0x144] sm:$0xf] }
 0x135   : > { %v1687_v8 = vpop.f32.mrf.mxu2  ;;  %2699 = vmatpush.bf16.msrb.mxu0 %v4078_v51  ;;  %v4255_v51 = vld [vmem:[%s7218_s5 + $0xc4] sm:$0xf] }
 0x136   : > { %v6129_v49 = vadd.f32 %v1687_v8, %v5839_v14  ;;  %v1738_v45 = vpop.f32.mrf.mxu3  ;;  %v4354_v14 = vld [vmem:[%s7218_s5 + $0x3d4] sm:$0xf0] }
 0x137   : > { %v1790_v39 = vpop.f32.mrf.mxu0  ;;  %v1788_v23 = vadd.f32 %v1787_v42, %v1738_v45  ;;  %v4142_v44 = vor.u32 %v4354_v14, %v4141_v50  ;;  %v3959_v50 = vld [vmem:[%s7218_s5 + $0x148] sm:$0xf0] }
 0x138   : > { %v1841_v20 = vpop.f32.mrf.mxu1 }
 0x139   : > { %v6144_v22 = vadd.f32 %v1836_v54, %v1788_v23  ;;  %2748 = vmatpush.bf16.msrb.mxu1 %v4142_v44  ;;  %v3962_v54 = vor.u32 %v4271_v40, %v3959_v50  ;;  %v4336_v40 = vld [vmem:[%s7218_s5 + $0x344] sm:$0xf0] }
 0x13a   : > { %2225 = vmatmul.bf16.gmra.mxu0 %v5726_v48 }
 0x13b   : > { %2176 = vmatmul.bf16.gmra.mxu3 %v5065_v38 }
 0x13c   : > { %2362 = vmatpush.bf16.msrb.mxu3 %v3962_v54  ;;  %v4133_v54 = vld [vmem:[%s7218_s5 + $0x3c0] sm:$0xf] }
 0x13d   : > { %v6147_v42 = vpop.f32.mrf.mxu2 }
 0x13e   : > { %v1741_v31 = vpop.f32.mrf.mxu3 }
 0x13f   : > { %v1792_v8 = vpop.f32.mrf.mxu0  ;;  %v1791_v45 = vadd.f32 %v1790_v39, %v1741_v31  ;;  %v3895_v39 = vld [vmem:[%s7218_s5 + $0xc8] sm:$0xf0] }
 0x140   : > { %v1844_v12 = vpop.f32.mrf.mxu1  ;;  %v3898_v14 = vor.u32 %v4255_v51, %v3895_v39 }
 0x141   : > { %v6155_v23 = vadd.f32 %v1839_v4, %v1791_v45 }
 0x142   : > { %2127 = vmatmul.bf16.gmra.mxu2 %v5152_v25  ;;  %v4069_v25 = vld [vmem:[%s7218_s5 + $0x340] sm:$0xf] }
 0x143   : > { %2279 = vmatmul.bf16.gmra.mxu1 %v5260_v21  ;;  %2313 = vmatpush.bf16.msrb.mxu2 %v3898_v14  ;;  %v4070_v18 = vor.u32 %v4336_v40, %v4069_v25  ;;  %v4269_v40 = vld [vmem:[%s7218_s5 + $0x134] sm:$0xf] }
 0x145   : > { %v1692_v44 = vpop.f32.mrf.mxu2  ;;  %2700 = vmatpush.bf16.msrb.mxu0 %v4070_v18  ;;  %v4253_v18 = vld [vmem:[%s7218_s5 + $0xb4] sm:$0xf] }
 0x146   : > { %v6166_v31 = vadd.f32 %v1692_v44, %v5894_v47  ;;  %v1743_v4 = vpop.f32.mrf.mxu3  ;;  %v4352_v47 = vld [vmem:[%s7218_s5 + $0x3c4] sm:$0xf0] }
 0x147   : > { %v1795_v45 = vpop.f32.mrf.mxu0  ;;  %v1793_v50 = vadd.f32 %v1792_v8, %v1743_v4  ;;  %v4134_v51 = vor.u32 %v4352_v47, %v4133_v54  ;;  %v3951_v54 = vld [vmem:[%s7218_s5 + $0x138] sm:$0xf0] }
 0x148   : > { %v1846_v56 = vpop.f32.mrf.mxu1 }
 0x149   : > { %v6181_v39 = vadd.f32 %v1841_v20, %v1793_v50  ;;  %2749 = vmatpush.bf16.msrb.mxu1 %v4134_v51  ;;  %v3954_v20 = vor.u32 %v4269_v40, %v3951_v54  ;;  %v4061_v40 = vld [vmem:[%s7218_s5 + $0x330] sm:$0xf]  ;;  %v4334_v54 = vld [vmem:[%s7218_s5 + $0x334] sm:$0xf0] }
 0x14a   : > { %2230 = vmatmul.bf16.gmra.mxu0 %v5762_v15  ;;  %v4062_v57 = vor.u32 %v4334_v54, %v4061_v40 }
 0x14b   : > { %2181 = vmatmul.bf16.gmra.mxu3 %v5209_v16 }
 0x14c   : > { %2363 = vmatpush.bf16.msrb.mxu3 %v3954_v20  ;;  %v4125_v20 = vld [vmem:[%s7218_s5 + $0x3b0] sm:$0xf]  ;;  %2701 = vmatpush.bf16.msrb.mxu0 %v4062_v57 }
 0x14d   : > { %v6184_v8 = vpop.f32.mrf.mxu2 }
 0x14e   : > { %v1746_v14 = vpop.f32.mrf.mxu3 }
 0x14f   : > { %v1797_v44 = vpop.f32.mrf.mxu0  ;;  %v1796_v4 = vadd.f32 %v1795_v45, %v1746_v14  ;;  %v3887_v45 = vld [vmem:[%s7218_s5 + $0xb8] sm:$0xf0] }
 0x150   : > { %v1849_v25 = vpop.f32.mrf.mxu1  ;;  %v3890_v47 = vor.u32 %v4253_v18, %v3887_v45 }
 0x151   : > { %v6192_v50 = vadd.f32 %v1844_v12, %v1796_v4 }
 0x152   : > { %2132 = vmatmul.bf16.gmra.mxu2 %v5260_v21 }
 0x153   : > { %2284 = vmatmul.bf16.gmra.mxu1 %v5529_v7  ;;  %2314 = vmatpush.bf16.msrb.mxu2 %v3890_v47 }
 0x155   : > { %v1697_v51 = vpop.f32.mrf.mxu2 }
 0x156   : > { %v6203_v14 = vadd.f32 %v1697_v51, %v6000_v35  ;;  %v1748_v12 = vpop.f32.mrf.mxu3  ;;  %v4350_v35 = vld [vmem:[%s7218_s5 + $0x3b4] sm:$0xf0] }
 0x157   : > { %v1800_v4 = vpop.f32.mrf.mxu0  ;;  %v1798_v52 = vadd.f32 %v1797_v44, %v1748_v12  ;;  %v4126_v18 = vor.u32 %v4350_v35, %v4125_v20  ;;  %v1651_v44 = vadd.f32 %v6010_v0, %v6032_v59  ;;  %v4267_v20 = vld [vmem:[%s7218_s5 + $0x124] sm:$0xf]  ;;  %v3879_v59 = vld [vmem:[%s7218_s5 + $0xa8] sm:$0xf0] }
 0x158   : > { %v1851_v63 = vpop.f32.mrf.mxu1  ;;  %v4251_v0 = vld [vmem:[%s7218_s5 + $0xa4] sm:$0xf] }
 0x159   : > { %v6218_v45 = vadd.f32 %v1846_v56, %v1798_v52  ;;  %2750 = vmatpush.bf16.msrb.mxu1 %v4126_v18  ;;  %v3943_v56 = vld [vmem:[%s7218_s5 + $0x128] sm:$0xf0] }
 0x15a   : > { %2235 = vmatmul.bf16.gmra.mxu0 %v5799_v30  ;;  %v3946_v57 = vor.u32 %v4267_v20, %v3943_v56 }
 0x15b   : > { %2186 = vmatmul.bf16.gmra.mxu3 %v5467_v5 }
 0x15c   : > { %2364 = vmatpush.bf16.msrb.mxu3 %v3946_v57  ;;  %v4117_v57 = vld [vmem:[%s7218_s5 + $0x3a0] sm:$0xf] }
 0x15d   : > { %v1699_v47 = vpop.f32.mrf.mxu2 }
 0x15e   : > { %v6223_v51 = vadd.f32 %v1699_v47, %v1651_v44  ;;  %v1751_v12 = vpop.f32.mrf.mxu3  ;;  %v4053_v47 = vld [vmem:[%s7218_s5 + $0x320] sm:$0xf] }
 0x15f   : > { %v1802_v40 = vpop.f32.mrf.mxu0  ;;  %v1801_v54 = vadd.f32 %v1800_v4, %v1751_v12  ;;  %v3882_v4 = vor.u32 %v4251_v0, %v3879_v59  ;;  %v4332_v12 = vld [vmem:[%s7218_s5 + $0x324] sm:$0xf0] }
 0x160   : > { %v1854_v6 = vpop.f32.mrf.mxu1  ;;  %v4054_v56 = vor.u32 %v4332_v12, %v4053_v47 }
 0x161   : > { %v6231_v52 = vadd.f32 %v1849_v25, %v1801_v54  ;;  %2315 = vmatpush.bf16.msrb.mxu2 %v3882_v4 }
 0x162   : > { %2137 = vmatmul.bf16.gmra.mxu2 %v5529_v7  ;;  %2702 = vmatpush.bf16.msrb.mxu0 %v4054_v56 }
 0x163   : > { %2289 = vmatmul.bf16.gmra.mxu1 %v5700_v36 }
 0x165   : > { %v1702_v35 = vpop.f32.mrf.mxu2 }
 0x166   : > { %v6242_v18 = vadd.f32 %v1702_v35, %v6063_v11  ;;  %v1753_v25 = vpop.f32.mrf.mxu3  ;;  %v4348_v11 = vld [vmem:[%s7218_s5 + $0x3a4] sm:$0xf0] }
 0x167   : > { %v1805_v44 = vpop.f32.mrf.mxu0  ;;  %v1803_v54 = vadd.f32 %v1802_v40, %v1753_v25  ;;  %v4118_v0 = vor.u32 %v4348_v11, %v4117_v57  ;;  %v4265_v57 = vld [vmem:[%s7218_s5 + $0x114] sm:$0xf] }
 0x168   : > { %v1856_v20 = vpop.f32.mrf.mxu1 }
 0x169   : > { %v6257_v59 = vadd.f32 %v1851_v63, %v1803_v54  ;;  %2751 = vmatpush.bf16.msrb.mxu1 %v4118_v0  ;;  %v3935_v63 = vld [vmem:[%s7218_s5 + $0x118] sm:$0xf0] }
 0x16a   : > { %2240 = vmatmul.bf16.gmra.mxu0 %v5837_v19  ;;  %v3938_v54 = vor.u32 %v4265_v57, %v3935_v63  ;;  %v4330_v57 = vld [vmem:[%s7218_s5 + $0x314] sm:$0xf0] }
 0x16b   : > { %2191 = vmatmul.bf16.gmra.mxu3 %v5668_v43 }
 0x16c   : > { %2365 = vmatpush.bf16.msrb.mxu3 %v3938_v54  ;;  %v4109_v54 = vld [vmem:[%s7218_s5 + $0x390] sm:$0xf] }
 0x16d   : > { %v1704_v40 = vpop.f32.mrf.mxu2 }
 0x16e   : > { %v6261_v4 = vadd.f32 %v1704_v40, %v6074_v53  ;;  %v1756_v35 = vpop.f32.mrf.mxu3  ;;  %v4249_v53 = vld [vmem:[%s7218_s5 + $0x94] sm:$0xf] }
 0x16f   : > { %v1807_v25 = vpop.f32.mrf.mxu0  ;;  %v1806_v47 = vadd.f32 %v1805_v44, %v1756_v35  ;;  %v3871_v44 = vld [vmem:[%s7218_s5 + $0x98] sm:$0xf0] }
 0x170   : > { %7324 = vst [vmem:[#allocation14_spill] sm:$0xff] %v6261_v4  ;;  %v1859_v12 = vpop.f32.mrf.mxu1  ;;  %v3874_v11 = vor.u32 %v4249_v53, %v3871_v44 }
 0x171   : > { %v6269_v56 = vadd.f32 %v1854_v6, %v1806_v47  ;;  %v4045_v47 = vld [vmem:[%s7218_s5 + $0x310] sm:$0xf] }
 0x172   : > { %2142 = vmatmul.bf16.gmra.mxu2 %v5700_v36  ;;  %v4046_v4 = vor.u32 %v4330_v57, %v4045_v47  ;;  %v4263_v57 = vld [vmem:[%s7218_s5 + $0x104] sm:$0xf] }
 0x173   : > { %2294 = vmatmul.bf16.gmra.mxu1 %v5196_v60  ;;  %2316 = vmatpush.bf16.msrb.mxu2 %v3874_v11 }
 0x174   : > { %2703 = vmatpush.bf16.msrb.mxu0 %v4046_v4  ;;  %v4247_v4 = vld [vmem:[%s7218_s5 + $0x84] sm:$0xf] }
 0x175   : > { %v1707_v0 = vpop.f32.mrf.mxu2 }
 0x176   : > { %v6280_v40 = vadd.f32 %v1707_v0, %v5871_v3  ;;  %v1758_v6 = vpop.f32.mrf.mxu3  ;;  %v4346_v3 = vld [vmem:[%s7218_s5 + $0x394] sm:$0xf0] }
 0x177   : > { %v1810_v35 = vpop.f32.mrf.mxu0  ;;  %v1808_v63 = vadd.f32 %v1807_v25, %v1758_v6  ;;  %v4110_v53 = vor.u32 %v4346_v3, %v4109_v54  ;;  %v3927_v54 = vld [vmem:[%s7218_s5 + $0x108] sm:$0xf0] }
 0x178   : > { %7325 = vst [vmem:[#allocation15_spill] sm:$0xff] %v6280_v40  ;;  %v1861_v9 = vpop.f32.mrf.mxu1 }
 0x179   : > { %v6295_v44 = vadd.f32 %v1856_v20, %v1808_v63  ;;  %2752 = vmatpush.bf16.msrb.mxu1 %v4110_v53  ;;  %v3930_v20 = vor.u32 %v4263_v57, %v3927_v54  ;;  %v4037_v57 = vld [vmem:[%s7218_s5 + $0x300] sm:$0xf]  ;;  %v4328_v54 = vld [vmem:[%s7218_s5 + $0x304] sm:$0xf0] }
 0x17a   : > { %2245 = vmatmul.bf16.gmra.mxu0 %v5892_v2  ;;  %v4038_v40 = vor.u32 %v4328_v54, %v4037_v57  ;;  %v4095_v57 = vld [vmem:[%s7218_s5 + $0x378] sm:$0xf0] }
 0x17b   : > { %2196 = vmatmul.bf16.gmra.mxu3 %v5092_v28 }
 0x17c   : > { %2366 = vmatpush.bf16.msrb.mxu3 %v3930_v20  ;;  %v4101_v20 = vld [vmem:[%s7218_s5 + $0x380] sm:$0xf]  ;;  %2704 = vmatpush.bf16.msrb.mxu0 %v4038_v40 }
 0x17d   : > { %v6298_v25 = vpop.f32.mrf.mxu2 }
 0x17e   : > { %7326 = vst [vmem:[#allocation16_spill] sm:$0xff] %v6298_v25  ;;  %v1761_v11 = vpop.f32.mrf.mxu3 }
 0x17f   : > { %v1812_v0 = vpop.f32.mrf.mxu0  ;;  %v1811_v6 = vadd.f32 %v1810_v35, %v1761_v11  ;;  %v3863_v35 = vld [vmem:[%s7218_s5 + $0x88] sm:$0xf0] }
 0x180   : > { %v1864_v47 = vpop.f32.mrf.mxu1  ;;  %v3866_v3 = vor.u32 %v4247_v4, %v3863_v35 }
 0x181   : > { %v6306_v63 = vadd.f32 %v1859_v12, %v1811_v6 }
 0x182   : > { %2147 = vmatmul.bf16.gmra.mxu2 %v5196_v60 }
 0x183   : > { %2299 = vmatmul.bf16.gmra.mxu1 %v5372_v55  ;;  %2317 = vmatpush.bf16.msrb.mxu2 %v3866_v3 }
 0x185   : > { %v1712_v53 = vpop.f32.mrf.mxu2 }
 0x186   : > { %v6317_v11 = vadd.f32 %v1712_v53, %v5939_v46  ;;  %v1763_v12 = vpop.f32.mrf.mxu3  ;;  %v4344_v46 = vld [vmem:[%s7218_s5 + $0x384] sm:$0xf0] }
 0x187   : > { %v1815_v6 = vpop.f32.mrf.mxu0  ;;  %v1813_v25 = vadd.f32 %v1812_v0, %v1763_v12  ;;  %v4102_v4 = vor.u32 %v4344_v46, %v4101_v20  ;;  %v4341_v12 = vld [vmem:[%s7218_s5 + $0x374] sm:$0xf]  ;;  %v4374_v46 = vld [vmem:[%s7218_s5 + $0x474] sm:$0xf0] }
 0x188   : > { %7327 = vst [vmem:[#allocation17_spill] sm:$0xff] %v6317_v11  ;;  %v1866_v2 = vpop.f32.mrf.mxu1 }
 0x189   : > { %v6332_v35 = vadd.f32 %v1861_v9, %v1813_v25  ;;  %2753 = vmatpush.bf16.msrb.mxu1 %v4102_v4  ;;  %v4098_v9 = vor.u32 %v4341_v12, %v4095_v57  ;;  %v4221_v25 = vld [vmem:[%s7218_s5 + $0x470] sm:$0xf] }
 0x18a   : > { %2250 = vmatmul.bf16.gmra.mxu0 %v5937_v62  ;;  %v4222_v4 = vor.u32 %v4374_v46, %v4221_v25  ;;  %v4373_v25 = vld [vmem:[%s7218_s5 + $0x474] sm:$0xf] }
 0x18b   : > { %2201 = vmatmul.bf16.gmra.mxu3 %v5285_v61 }
 0x18c   : > { %2844 = vmatpush.bf16.msra.mxu3 %v4098_v9  ;;  %2795 = vmatpush.bf16.msra.mxu2 %v4222_v4  ;;  %v4159_v9 = vld [vmem:[%s7218_s5 + $0x3f8] sm:$0xf0] }
 0x18d   : > { %v6335_v0 = vpop.f32.mrf.mxu2 }
 0x18e   : > { %7328 = vst [vmem:[#allocation18_spill] sm:$0xff] %v6335_v0  ;;  %v1766_v3 = vpop.f32.mrf.mxu3 }
 0x18f   : > { %v1817_v53 = vpop.f32.mrf.mxu0  ;;  %v1816_v54 = vadd.f32 %v1815_v6, %v1766_v3 }
 0x190   : > { %v1869_v20 = vpop.f32.mrf.mxu1 }
 0x191   : > { %v6343_v40 = vadd.f32 %v1864_v47, %v1816_v54  ;;  %v4357_v54 = vld [vmem:[%s7218_s5 + $0x3f4] sm:$0xf] }
 0x192   : > { %2152 = vmatmul.bf16.gmra.mxu2 %v5372_v55 }
 0x193   : > { %2304 = vmatmul.bf16.gmra.mxu1 %v5581_v27 }
 0x195   : > { %v1717_v0 = vpop.f32.mrf.mxu2 }
 0x196   : > { %v6354_v6 = vadd.f32 %v1717_v0, %v6027_v58  ;;  %v1768_v47 = vpop.f32.mrf.mxu3  ;;  %v4162_v58 = vor.u32 %v4357_v54, %v4159_v9  ;;  %v4223_v0 = vld [vmem:[%s7218_s5 + $0x478] sm:$0xf0] }
 0x197   : > { %v1820_v3 = vpop.f32.mrf.mxu0  ;;  %v1818_v12 = vadd.f32 %v1817_v53, %v1768_v47  ;;  %v4226_v46 = vor.u32 %v4373_v25, %v4223_v0 }
 0x198   : > { %7329 = vst [vmem:[#allocation19_spill] sm:$0xff] %v6354_v6  ;;  %v1871_v57 = vpop.f32.mrf.mxu1  ;;  %2893 = vmatpush.bf16.msra.mxu0 %v4162_v58 }
 0x199   : > { %v6369_v53 = vadd.f32 %v1866_v2, %v1818_v12  ;;  %2942 = vmatpush.bf16.msra.mxu1 %v4226_v46  ;;  %v4339_v2 = vld [vmem:[%s7218_s5 + $0x364] sm:$0xf]  ;;  %v4087_v12 = vld [vmem:[%s7218_s5 + $0x368] sm:$0xf0] }
 0x19a   : > { %2255 = vmatmul.bf16.gmra.mxu0 %v5994_v37  ;;  %v4090_v9 = vor.u32 %v4339_v2, %v4087_v12  ;;  %v4151_v2 = vld [vmem:[%s7218_s5 + $0x3e8] sm:$0xf0] }
 0x19b   : > { %2206 = vmatmul.bf16.gmra.mxu3 %v5486_v33 }
 0x19c   : > { %2845 = vmatpush.bf16.msra.mxu3 %v4090_v9 }
 0x19d   : > { %v1719_v4 = vpop.f32.mrf.mxu2 }
 0x19e   : > { %v6373_v47 = vadd.f32 %v1719_v4, %v6048_v13  ;;  %v1771_v6 = vpop.f32.mrf.mxu3  ;;  %v4372_v13 = vld [vmem:[%s7218_s5 + $0x464] sm:$0xf0]  ;;  %v4355_v4 = vld [vmem:[%s7218_s5 + $0x3e4] sm:$0xf] }
 0x19f   : > { %v1822_v62 = vpop.f32.mrf.mxu0  ;;  %v1821_v11 = vadd.f32 %v1820_v3, %v1771_v6  ;;  %v4154_v12 = vor.u32 %v4355_v4, %v4151_v2 }
 0x1a0   : > { %v2270_v37 = vpop.f32.mrf.mxu1 }
 0x1a1   : > { %v6376_v54 = vadd.f32 %v2270_v37, %v6119_v34  ;;  %v6384_v25 = vadd.f32 %v1869_v20, %v1821_v11  ;;  %v4213_v37 = vld [vmem:[%s7218_s5 + $0x460] sm:$0xf]  ;;  %2894 = vmatpush.bf16.msra.mxu0 %v4154_v12 }
 0x1a2   : > { %2157 = vmatmul.bf16.gmra.mxu2 %v5581_v27  ;;  %v4214_v34 = vor.u32 %v4372_v13, %v4213_v37 }
 0x1a3   : > { %2754 = vmatmul.bf16.vlgmr.msrb.gmra.mxu1 %v5209_v16 }
 0x1a4   : > { %2796 = vmatpush.bf16.msra.mxu2 %v4214_v34 }
 0x1a5   : > { %v1722_v6 = vpop.f32.mrf.mxu2 }
 0x1a6   : > { %v6395_v3 = vadd.f32 %v1722_v6, %v6091_v17  ;;  %v1773_v11 = vpop.f32.mrf.mxu3  ;;  %v4371_v17 = vld [vmem:[%s7218_s5 + $0x464] sm:$0xf] }
 0x1a7   : > { %v2221_v20 = vpop.f32.mrf.mxu0  ;;  %v1823_v58 = vadd.f32 %v1822_v62, %v1773_v11  ;;  %v4215_v62 = vld [vmem:[%s7218_s5 + $0x468] sm:$0xf0] }
 0x1a8   : > { %v2272_v0 = vpop.f32.mrf.mxu1  ;;  %v4218_v9 = vor.u32 %v4371_v17, %v4215_v62 }
 0x1a9   : > { %v6398_v46 = vadd.f32 %v2272_v0, %v6144_v22  ;;  %v6413_v22 = vadd.f32 %v1871_v57, %v1823_v58  ;;  %v4337_v57 = vld [vmem:[%s7218_s5 + $0x354] sm:$0xf] }
 0x1aa   : > { %2705 = vmatmul.bf16.vlgmr.msrb.gmra.mxu0 %v5260_v21  ;;  %2943 = vmatpush.bf16.msra.mxu1 %v4218_v9 }
 0x1ab   : > { %2367 = vmatmul.bf16.vlgmr.msrb.gmra.mxu3 %v6095_v1  ;;  %v4079_v1 = vld [vmem:[%s7218_s5 + $0x358] sm:$0xf0] }
 0x1ac   : > { %v4082_v58 = vor.u32 %v4337_v57, %v4079_v1  ;;  %v4143_v57 = vld [vmem:[%s7218_s5 + $0x3d8] sm:$0xf0] }
 0x1ad   : > { %v1724_v37 = vpop.f32.mrf.mxu2 }
 0x1ae   : > { %v6417_v13 = vadd.f32 %v1724_v37, %v6111_v29  ;;  %v2172_v34 = vpop.f32.mrf.mxu3  ;;  %v4205_v29 = vld [vmem:[%s7218_s5 + $0x450] sm:$0xf]  ;;  %2846 = vmatpush.bf16.msra.mxu3 %v4082_v58 }
 0x1af   : > { %v2223_v6 = vpop.f32.mrf.mxu0 }
 0x1b0   : > { %v2275_v11 = vpop.f32.mrf.mxu1 }
 0x1b1   : > { %v6420_v0 = vadd.f32 %v2275_v11, %v6155_v23  ;;  %v4370_v23 = vld [vmem:[%s7218_s5 + $0x454] sm:$0xf0]  ;;  %v4353_v11 = vld [vmem:[%s7218_s5 + $0x3d4] sm:$0xf] }
 0x1b2   : > { %2318 = vmatmul.bf16.vlgmr.msrb.gmra.mxu2 %v6038_v26  ;;  %v4206_v4 = vor.u32 %v4370_v23, %v4205_v29  ;;  %v4146_v1 = vor.u32 %v4353_v11, %v4143_v57 }
 0x1b3   : > { %2759 = vmatmul.bf16.gmra.mxu1 %v5467_v5 }
 0x1b4   : > { %2797 = vmatpush.bf16.msra.mxu2 %v4206_v4  ;;  %2895 = vmatpush.bf16.msra.mxu0 %v4146_v1 }
 0x1b5   : > { %v2123_v2 = vpop.f32.mrf.mxu2 }
 0x1b6   : > { %v2124_v26 = vadd.f32 %v2123_v2, %v6129_v49  ;;  %v2174_v17 = vpop.f32.mrf.mxu3  ;;  %v4369_v49 = vld [vmem:[%s7218_s5 + $0x454] sm:$0xf] }
 0x1b7   : > { %v2226_v12 = vpop.f32.mrf.mxu0 }
 0x1b8   : > { %v2277_v62 = vpop.f32.mrf.mxu1  ;;  %v2173_v9 = vadd.f32 %v2172_v34, %v2124_v26  ;;  %v1641_v34 = vadd.f32 %v5861_v10, %v5866_v24  ;;  %v4071_v24 = vld [vmem:[%s7218_s5 + $0x348] sm:$0xf0] }
 0x1b9   : > { %v6443_v37 = vadd.f32 %v2277_v62, %v6181_v39  ;;  %v4207_v39 = vld [vmem:[%s7218_s5 + $0x458] sm:$0xf0] }
 0x1ba   : > { %2710 = vmatmul.bf16.gmra.mxu0 %v5529_v7  ;;  %v4210_v58 = vor.u32 %v4369_v49, %v4207_v39  ;;  %v6462_v29 = vadd.f32 %v2221_v20, %v2173_v9  ;;  %v1690_v23 = vadd.f32 %v6147_v42, %v1641_v34  ;;  %v4197_v20 = vld [vmem:[%s7218_s5 + $0x440] sm:$0xf] }
 0x1bb   : > { %2372 = vmatmul.bf16.gmra.mxu3 %v5726_v48  ;;  %v4335_v48 = vld [vmem:[%s7218_s5 + $0x344] sm:$0xf] }
 0x1bc   : > { %2944 = vmatpush.bf16.msra.mxu1 %v4210_v58  ;;  %v4074_v42 = vor.u32 %v4335_v48, %v4071_v24 }
 0x1bd   : > { %v2125_v4 = vpop.f32.mrf.mxu2 }
 0x1be   : > { %v2126_v2 = vadd.f32 %v2125_v4, %v1690_v23  ;;  %v2177_v26 = vpop.f32.mrf.mxu3  ;;  %2847 = vmatpush.bf16.msra.mxu3 %v4074_v42  ;;  %v4135_v4 = vld [vmem:[%s7218_s5 + $0x3c8] sm:$0xf0] }
 0x1bf   : > { %v2228_v62 = vpop.f32.mrf.mxu0 }
 0x1c0   : > { %v2280_v11 = vpop.f32.mrf.mxu1  ;;  %v2175_v57 = vadd.f32 %v2174_v17, %v2126_v2 }
 0x1c1   : > { %v6469_v10 = vadd.f32 %v2280_v11, %v6192_v50  ;;  %v4368_v50 = vld [vmem:[%s7218_s5 + $0x444] sm:$0xf0] }
 0x1c2   : > { %2323 = vmatmul.bf16.gmra.mxu2 %v5065_v38  ;;  %v6485_v17 = vadd.f32 %v2223_v6, %v2175_v57  ;;  %v4198_v9 = vor.u32 %v4368_v50, %v4197_v20  ;;  %v4351_v6 = vld [vmem:[%s7218_s5 + $0x3c4] sm:$0xf] }
 0x1c3   : > { %2764 = vmatmul.bf16.gmra.mxu1 %v5668_v43  ;;  %v4138_v2 = vor.u32 %v4351_v6, %v4135_v4  ;;  %v4562_v6 = vld [vmem:[%s4770_s19] ss:$0 sm:$0xff] }
 0x1c4   : > { %2798 = vmatpush.bf16.msra.mxu2 %v4198_v9 }
 0x1c5   : > { %v2128_v49 = vpop.f32.mrf.mxu2  ;;  %2896 = vmatpush.bf16.msra.mxu0 %v4138_v2 }
 0x1c6   : > { %v2129_v1 = vadd.f32 %v2128_v49, %v6166_v31  ;;  %v2179_v38 = vpop.f32.mrf.mxu3  ;;  %v4367_v31 = vld [vmem:[%s7218_s5 + $0x444] sm:$0xf] }
 0x1c7   : > { %v6489_v39 = vpop.f32.mrf.mxu0 }
 0x1c8   : > { %v2282_v34 = vpop.f32.mrf.mxu1  ;;  %v2178_v58 = vadd.f32 %v2177_v26, %v2129_v1  ;;  %v1646_v26 = vadd.f32 %v5941_v32, %v5965_v41  ;;  %v4412_v32 = vld [vmem:[%s494_s14] sm:$0xff]   ;;  %s3530_s14 = sshll.u32 %s7382_s28, 6 }
 0x1c9   : > { %v6492_v23 = vadd.f32 %v2282_v34, %v6218_v45  ;;  %v4199_v45 = vld [vmem:[%s7218_s5 + $0x448] sm:$0xf0]  ;;  %v4414_v9 = vunpack.c.h.bf16 %v4412_v32  ;;  %v4333_v34 = vld [vmem:[%s7218_s5 + $0x334] sm:$0xf]  ;;  %s512_s13 = sadd.s32 %s3530_s14, %s3529_s15 }
 0x1ca   : > { %2715 = vmatmul.bf16.gmra.mxu0 %v5700_v36  ;;  %v4202_v11 = vor.u32 %v4367_v31, %v4199_v45  ;;  %v6509_v57 = vadd.f32 %v2226_v12, %v2178_v58  ;;  %v1695_v48 = vadd.f32 %v6184_v8, %v1646_v26  ;;  %v4413_v12 = vunpack.c.l.bf16 %v4412_v32  ;;  %v4063_v8 = vld [vmem:[%s7218_s5 + $0x338] sm:$0xf0]  ;;  %v4563_v26 = vld [vmem:[%s4780_s26] ss:$0 sm:$0xff]  ;;  %s3531_s23 = sshll.u32 %s512_s13, 2 }
 0x1cb   : > { %2377 = vmatmul.bf16.gmra.mxu3 %v5762_v15  ;;  %v4066_v58 = vor.u32 %v4333_v34, %v4063_v8  ;;  %v610_v31 = vmul.f32 %v4562_v6, %v4414_v9  ;;  %v4349_v8 = vld [vmem:[%s7218_s5 + $0x3b4] sm:$0xf]  ;;  %s6906_s1 = scalar_lea.vmem %s7220_s7, %s3531_s23 }
 0x1cc   : > { %7331 = vst [vmem:[#allocation20_spill] sm:$0xff] %v6509_v57  ;;  %2945 = vmatpush.bf16.msra.mxu1 %v4202_v11  ;;  %v609_v4 = vmul.f32 %v4562_v6, %v4413_v12 }
 0x1cd   : > { %v2130_v24 = vpop.f32.mrf.mxu2  ;;  %2848 = vmatpush.bf16.msra.mxu3 %v4066_v58  ;;  %v4127_v58 = vld [vmem:[%s7218_s5 + $0x3b8] sm:$0xf0] }
 0x1ce   : > { %v2131_v42 = vadd.f32 %v2130_v24, %v1695_v48  ;;  %v2182_v20 = vpop.f32.mrf.mxu3  ;;  %v6539_v11 = vadd.f32 %v4563_v26, %v609_v4  ;;  %v6541_v48 = vadd.f32 %v4563_v26, %v610_v31  ;;  %v4130_v6 = vor.u32 %v4349_v8, %v4127_v58 }
 0x1cf   : > { %v6516_v50 = vpop.f32.mrf.mxu0 }
 0x1d0   : > { %v2285_v41 = vpop.f32.mrf.mxu1  ;;  %v2180_v49 = vadd.f32 %v2179_v38, %v2131_v42  ;;  %v4366_v38 = vld [vmem:[%s7218_s5 + $0x434] sm:$0xf0]  ;;  %v3537_v42 = vmul.f32 -1.442695, %v6539_v11  ;;  %v3538_v32 = vmul.f32 -1.442695, %v6541_v48  ;;  %2897 = vmatpush.bf16.msra.mxu0 %v4130_v6 }
 0x1d1   : > { %v6519_v1 = vadd.f32 %v2285_v41, %v6231_v52  ;;  %v4189_v52 = vld [vmem:[%s7218_s5 + $0x430] sm:$0xf] }
 0x1d2   : > { %2328 = vmatmul.bf16.gmra.mxu2 %v5209_v16  ;;  %v6536_v2 = vadd.f32 %v2228_v62, %v2180_v49  ;;  %v4190_v45 = vor.u32 %v4366_v38, %v4189_v52  ;;  %4552 = vpow2.f32 %v3537_v42 }
 0x1d3   : > { %2769 = vmatmul.bf16.gmra.mxu1 %v5092_v28  ;;  %4554 = vpow2.f32 %v3538_v32 }
 0x1d4   : > { %7332 = vst [vmem:[#allocation21_spill] sm:$0xff] %v6536_v2  ;;  %2799 = vmatpush.bf16.msra.mxu2 %v4190_v45  ;;  %v656_v2 = vstv %s655_s20  ;;  %s3533_s20 = sshll.u32 %s7382_s28, 2 }
 0x1d5   : > { %v2133_v24 = vpop.f32.mrf.mxu2  ;;  %s522_s19 = sadd.s32 %s3533_s20, %s3532_s18 }
 0x1d6   : > { %v2134_v41 = vadd.f32 %v2133_v24, %v6203_v14  ;;  %v2184_v12 = vpop.f32.mrf.mxu3  ;;  %v4365_v14 = vld [vmem:[%s7218_s5 + $0x434] sm:$0xf]  ;;  %s3534_s26 = sshll.u32 %s522_s19, 1 }
 0x1d7   : > { %v2236_v9 = vpop.f32.mrf.mxu0  ;;  %s524_s28 = scalar_lea.vmem %s7221_s8, %s3534_s26 }
 0x1d8   : > { %v2287_v34 = vpop.f32.mrf.mxu1  ;;  %v2183_v62 = vadd.f32 %v2182_v20, %v2134_v41  ;;  %v4553_v31 = vpop.eup %4552 }
 0x1d9   : > { %v6547_v49 = vadd.f32 %v2287_v34, %v6257_v59  ;;  %v4191_v59 = vld [vmem:[%s7218_s5 + $0x438] sm:$0xf0]  ;;  %v4555_v38 = vpop.eup %4554  ;;  %v6569_v42 = vadd.f32 1.0, %v4553_v31 }
 0x1da   : > { %2720 = vmatmul.bf16.gmra.mxu0 %v5196_v60  ;;  %v4194_v20 = vor.u32 %v4365_v14, %v4191_v59  ;;  %v6563_v4 = vadd.f32 %v6489_v39, %v2183_v62  ;;  %v6571_v41 = vadd.f32 1.0, %v4555_v38  ;;  %v4331_v62 = vld [vmem:[%s7218_s5 + $0x324] sm:$0xf] }
 0x1db   : > { %2382 = vmatmul.bf16.gmra.mxu3 %v5799_v30  ;;  %4556 = vrcp.f32 %v6569_v42  ;;  %vm626_vm5 = vweird.f32 %v6569_v42 }
 0x1dc   : > { %7333 = vst [vmem:[#allocation22_spill] sm:$0xff] %v6563_v4  ;;  %2946 = vmatpush.bf16.msra.mxu1 %v4194_v20  ;;  %4558 = vrcp.f32 %v6571_v41  ;;  %vm641_vm8 = vweird.f32 %v6571_v41 }
 0x1dd   : > { %v2135_v52 = vpop.f32.mrf.mxu2 }
 0x1de   : > { %v2136_v45 = vadd.f32 %v2135_v52, %v6223_v51  ;;  %v2187_v26 = vpop.f32.mrf.mxu3  ;;  %v4055_v51 = vld [vmem:[%s7218_s5 + $0x328] sm:$0xf0] }
 0x1df   : > { %v6567_v24 = vpop.f32.mrf.mxu0  ;;  %v4058_v8 = vor.u32 %v4331_v62, %v4055_v51  ;;  %v4363_v51 = vld [vmem:[%s7218_s5 + $0x424] sm:$0xf] }
 0x1e0   : > { %v2290_v32 = vpop.f32.mrf.mxu1  ;;  %v2185_v34 = vadd.f32 %v2184_v12, %v2136_v45  ;;  %v4364_v12 = vld [vmem:[%s7218_s5 + $0x424] sm:$0xf0] }
 0x1e1   : > { %v6574_v39 = vadd.f32 %v2290_v32, %v6269_v56  ;;  %v4181_v56 = vld [vmem:[%s7218_s5 + $0x420] sm:$0xf]  ;;  %2849 = vmatpush.bf16.msra.mxu3 %v4058_v8  ;;  %v6595_v59 = vpop.eup %4556 }
 0x1e2   : > { %2333 = vmatmul.bf16.gmra.mxu2 %v5467_v5  ;;  %v6593_v58 = vadd.f32 %v6516_v50, %v2185_v34  ;;  %v4182_v14 = vor.u32 %v4364_v12, %v4181_v56  ;;  %v4559_v38 = vpop.eup %4558  ;;  %v622_v32 = vmul.f32 %v6595_v59, %v6569_v42  ;;  %v4347_v34 = vld [vmem:[%s7218_s5 + $0x3a4] sm:$0xf]  ;;  %vm627_vm6 = vweird.f32 %v6595_v59 }
 0x1e3   : > { %2774 = vmatmul.bf16.gmra.mxu1 %v5285_v61  ;;  %v637_v8 = vmul.f32 %v4559_v38, %v6571_v41  ;;  %vm6633_vm7 = vmor %vm626_vm5, %vm627_vm6  ;;  %vm642_vm9 = vweird.f32 %v4559_v38 }
 0x1e4   : > { %7334 = vst [vmem:[#allocation23_spill] sm:$0xff] %v6593_v58  ;;  %2800 = vmatpush.bf16.msra.mxu2 %v4182_v14  ;;  %v623_v56 = vsub.f32 1.0, %v622_v32  ;;  %vm643_vm13 = vmor %vm641_vm8, %vm642_vm9 }
 0x1e5   : > { %v2138_v6 = vpop.f32.mrf.mxu2  ;;  %v638_v14 = vsub.f32 1.0, %v637_v8 }
 0x1e6   : > { %v2139_v20 = vadd.f32 %v2138_v6, %v6242_v18  ;;  %v2189_v31 = vpop.f32.mrf.mxu3  ;;  %v4119_v18 = vld [vmem:[%s7218_s5 + $0x3a8] sm:$0xf0] }
 0x1e7   : > { %v6598_v52 = vpop.f32.mrf.mxu0  ;;  %v639_v58 = vmul.f32 %v4559_v38, %v638_v14 }
 0x1e8   : > { %v2292_v45 = vpop.f32.mrf.mxu1  ;;  %v2188_v62 = vadd.f32 %v2187_v26, %v2139_v20  ;;  %v4122_v26 = vor.u32 %v4347_v34, %v4119_v18  ;;  %v624_v20 = vmul.f32 %v6595_v59, %v623_v56  ;;  %v647_v34 = vand.u32 2147483648, %v6571_v41 }
 0x1e9   : > { %v6603_v50 = vadd.f32 %v2292_v45, %v6295_v44  ;;  %v4183_v44 = vld [vmem:[%s7218_s5 + $0x428] sm:$0xf0]  ;;  %v632_v45 = vand.u32 2147483648, %v6569_v42  ;;  %v640_v56 = vadd.f32 %v4559_v38, %v639_v58  ;;  %v4329_v58 = vld [vmem:[%s7218_s5 + $0x314] sm:$0xf] }
 0x1ea   : > { %2725 = vmatmul.bf16.gmra.mxu0 %v5372_v55  ;;  %v4186_v12 = vor.u32 %v4363_v51, %v4183_v44  ;;  %v6619_v6 = vadd.f32 %v2236_v9, %v2188_v62  ;;  %v625_v32 = vadd.f32 %v6595_v59, %v624_v20  ;;  %v630_v9 = vand.u32 2147483647, %v6569_v42  ;;  %v7336_v62 = vld [vmem:[#allocation14_spill] sm:$0xff]  ;;  %v4047_v44 = vld [vmem:[%s7218_s5 + $0x318] sm:$0xf0] }
 0x1eb   : > { %2387 = vmatmul.bf16.gmra.mxu3 %v5837_v19  ;;  %2898 = vmatpush.bf16.msra.mxu0 %v4122_v26  ;;  %v633_v20 = vor.u32 1.1754944e-38, %v632_v45  ;;  %v645_v42 = vand.u32 2147483647, %v6571_v41  ;;  %v4050_v41 = vor.u32 %v4329_v58, %v4047_v44  ;;  %v644_v45 = vsel %vm643_vm13, %v4559_v38, %v640_v56  ;;  %v7339_v56 = vld [vmem:[#allocation15_spill] sm:$0xff] }
 0x1ec   : > { %7335 = vst [vmem:[#allocation24_spill] sm:$0xff] %v6619_v6  ;;  %2947 = vmatpush.bf16.msra.mxu1 %v4186_v12  ;;  %v629_v14 = vsel %vm6633_vm7, %v6595_v59, %v625_v32  ;;  %vm631_vm12 = vcmp.eq.f32.partialorder %v630_v9, 8.507059e+37  ;;  %v648_v59 = vor.u32 1.1754944e-38, %v647_v34 }
 0x1ed   : > { %v2140_v18 = vpop.f32.mrf.mxu2  ;;  %vm646_vm14 = vcmp.eq.f32.partialorder %v645_v42, 8.507059e+37  ;;  %2850 = vmatpush.bf16.msra.mxu3 %v4050_v41  ;;  %v634_v9 = vsel %vm631_vm12, %v633_v20, %v629_v14  ;;  %v4345_v14 = vld [vmem:[%s7218_s5 + $0x394] sm:$0xf]  ;;  %v4111_v20 = vld [vmem:[%s7218_s5 + $0x398] sm:$0xf0] }
 0x1ee   : > { %v2141_v51 = vadd.f32 %v2140_v18, %v7336_v62  ;;  %v2192_v8 = vpop.f32.mrf.mxu3  ;;  %v649_v38 = vsel %vm646_vm14, %v648_v59, %v644_v45  ;;  %v651_v44 = vmul.f32 %v634_v9, %v6539_v11  ;;  %v4361_v11 = vld [vmem:[%s7218_s5 + $0x414] sm:$0xf] }
 0x1ef   : > { %v6631_v26 = vpop.f32.mrf.mxu0  ;;  %v652_v6 = vmul.f32 %v649_v38, %v6541_v48  ;;  %v7341_v48 = vld [vmem:[#allocation7_spill] sm:$0xff] }
 0x1f0   : > { %v2295_v12 = vpop.f32.mrf.mxu1  ;;  %v2190_v18 = vadd.f32 %v2189_v31, %v2141_v51  ;;  %v4362_v31 = vld [vmem:[%s7218_s5 + $0x414] sm:$0xf0]  ;;  %v657_v41 = vmul.f32 %v656_v2, %v651_v44 }
 0x1f1   : > { %v6647_v62 = vadd.f32 %v2295_v12, %v6306_v63  ;;  %v4173_v63 = vld [vmem:[%s7218_s5 + $0x410] sm:$0xf]  ;;  %v658_v45 = vmul.f32 %v656_v2, %v652_v6  ;;  %v4039_v2 = vld [vmem:[%s7218_s5 + $0x308] sm:$0xf0] }
 0x1f2   : > { %2338 = vmatmul.bf16.gmra.mxu2 %v5668_v43  ;;  %v6664_v32 = vadd.f32 %v6567_v24, %v2190_v18  ;;  %v4174_v34 = vor.u32 %v4362_v31, %v4173_v63  ;;  %v7340_v18 = vld [vmem:[#allocation8_spill] sm:$0xff]  ;;  %v7343_v31 = vld [vmem:[#allocation6_spill] sm:$0xff]  ;;  %v7345_v6 = vld [vmem:[#allocation3_spill] sm:$0xff] }
 0x1f3   : > { %2779 = vmatmul.bf16.gmra.mxu1 %v5486_v33  ;;  %v1661_v59 = vadd.f32 %v7341_v48, %v7340_v18 }
 0x1f4   : > { %2801 = vmatpush.bf16.msra.mxu2 %v4174_v34  ;;  %v7344_v34 = vld [vmem:[#allocation16_spill] sm:$0xff] }
 0x1f5   : > { %v2143_v51 = vpop.f32.mrf.mxu2  ;;  %v1710_v9 = vadd.f32 %v7344_v34, %v1661_v59 }
 0x1f6   : > { %v2144_v12 = vadd.f32 %v2143_v51, %v7339_v56  ;;  %v2194_v42 = vpop.f32.mrf.mxu3 }
 0x1f7   : > { %v2246_v58 = vpop.f32.mrf.mxu0 }
 0x1f8   : > { %v2297_v4 = vpop.f32.mrf.mxu1  ;;  %v2193_v57 = vadd.f32 %v2192_v8, %v2144_v12  ;;  %v4114_v8 = vor.u32 %v4345_v14, %v4111_v20  ;;  %v1045_v14 = vpack.c.bf16 %v657_v41, %v657_v41  ;;  %v1046_v20 = vpack.c.bf16 %v658_v45, %v658_v45  ;;  %v7347_v41 = vld [vmem:[#allocation17_spill] sm:$0xff] }
 0x1f9   : > { %v6671_v24 = vadd.f32 %v2297_v4, %v6332_v35  ;;  %v4175_v35 = vld [vmem:[%s7218_s5 + $0x418] sm:$0xf0] }
 0x1fa   : > { %2730 = vmatmul.bf16.gmra.mxu0 %v5581_v27  ;;  %v4178_v4 = vor.u32 %v4361_v11, %v4175_v35  ;;  %v6689_v63 = vadd.f32 %v6598_v52, %v2193_v57  ;;  %v4327_v57 = vld [vmem:[%s7218_s5 + $0x304] sm:$0xf]  ;;  %v1085_v11 = vunpack.c.l.b16 %v1045_v14  ;;  %v1086_v59 = vunpack.c.l.b16 %v1046_v20 }
 0x1fb   : > { %2392 = vmatmul.bf16.gmra.mxu3 %v7343_v31  ;;  %2899 = vmatpush.bf16.msra.mxu0 %v4114_v8  ;;  %v4042_v52 = vor.u32 %v4327_v57, %v4039_v2  ;;  %v7348_v57 = vld [vmem:[#allocation5_spill] sm:$0xff] }
 0x1fc   : > { %7342 = vst [vmem:[#allocation14_spill] sm:$0xff] %v6689_v63  ;;  %2948 = vmatpush.bf16.msra.mxu1 %v4178_v4 }
 0x1fd   : > { %v2145_v38 = vpop.f32.mrf.mxu2  ;;  %2851 = vmatpush.bf16.msra.mxu3 %v4042_v52  ;;  %v7350_v52 = vld [vmem:[#allocation10_spill] sm:$0xff] }
 0x1fe   : > { %v2146_v51 = vadd.f32 %v2145_v38, %v1710_v9  ;;  %v2197_v56 = vpop.f32.mrf.mxu3  ;;  %v6714_v38 = vpack.c.b16 %v1086_v59, %v1085_v11 }
 0x1ff   : > { %v2248_v12 = vpop.f32.mrf.mxu0 }
 0x200   : > { %v2300_v18 = vpop.f32.mrf.mxu1  ;;  %v2195_v48 = vadd.f32 %v2194_v42, %v2146_v51  ;;  %v4360_v42 = vld [vmem:[%s7218_s5 + $0x404] sm:$0xf0]  ;;  %v7236_v59 = vshrl.u32 %v6714_v38, 16 }
 0x201   : > { %v6694_v44 = vadd.f32 %v2300_v18, %v6343_v40  ;;  %v4165_v40 = vld [vmem:[%s7218_s5 + $0x400] sm:$0xf]  ;;  %v4103_v18 = vld [vmem:[%s7218_s5 + $0x388] sm:$0xf0] }
 0x202   : > { %2343 = vmatmul.bf16.gmra.mxu2 %v5092_v28  ;;  %v6711_v8 = vadd.f32 %v6631_v26, %v2195_v48  ;;  %v4166_v35 = vor.u32 %v4360_v42, %v4165_v40  ;;  %v4343_v26 = vld [vmem:[%s7218_s5 + $0x384] sm:$0xf] }
 0x203   : > { %2784 = vmatmul.bf16.gmra.mxu1 %v7345_v6  ;;  %v4359_v48 = vld [vmem:[%s7218_s5 + $0x404] sm:$0xf]  ;;  %v4106_v2 = vor.u32 %v4343_v26, %v4103_v18 }
 0x204   : > { %7346 = vst [vmem:[#allocation15_spill] sm:$0xff] %v6711_v8  ;;  %2802 = vmatpush.bf16.msra.mxu2 %v4166_v35  ;;  %v7351_v35 = vld [vmem:[#allocation9_spill] sm:$0xff]  ;;  %v1163_v8 = vrot.slane %v7236_v59, 7 }
 0x205   : > { %v2148_v4 = vpop.f32.mrf.mxu2  ;;  %2900 = vmatpush.bf16.msra.mxu0 %v4106_v2 }
 0x206   : > { %v2149_v45 = vadd.f32 %v2148_v4, %v7347_v41  ;;  %v2199_v34 = vpop.f32.mrf.mxu3  ;;  %v7352_v4 = vld [vmem:[#allocation18_spill] sm:$0xff] }
 0x207   : > { %v2251_v9 = vpop.f32.mrf.mxu0 }
 0x208   : > { %v2302_v51 = vpop.f32.mrf.mxu1  ;;  %v2198_v14 = vadd.f32 %v2197_v56, %v2149_v45  ;;  %v7349_v56 = vld [vmem:[#allocation12_spill] sm:$0xff] }
 0x209   : > { %v6717_v20 = vadd.f32 %v2302_v51, %v6369_v53  ;;  %v4167_v53 = vld [vmem:[%s7218_s5 + $0x408] sm:$0xf0]  ;;  %v1666_v11 = vadd.f32 %v7350_v52, %v7349_v56  ;;  %v7237_v56 = vshll.u32 %v6714_v38, 16 }
 0x20a   : > { %2735 = vmatmul.bf16.gmra.mxu0 %v7348_v57  ;;  %v4170_v40 = vor.u32 %v4359_v48, %v4167_v53  ;;  %v6735_v42 = vadd.f32 %v2246_v58, %v2198_v14  ;;  %v7353_v53 = vld [vmem:[#allocation19_spill] sm:$0xff] }
 0x20b   : > { %2397 = vmatmul.bf16.gmra.mxu3 %v7351_v35  ;;  %v1715_v41 = vadd.f32 %v7352_v4, %v1666_v11  ;;  %v1166_v14 = vor.u32 %v7237_v56, %v1163_v8 }
 0x20c   : > { %2949 = vmatpush.bf16.msra.mxu1 %v4170_v40 }
 0x20d   : > { %v2150_v45 = vpop.f32.mrf.mxu2 }
 0x20e   : > { %v2151_v51 = vadd.f32 %v2150_v45, %v1715_v41  ;;  %v2202_v26 = vpop.f32.mrf.mxu3 }
 0x20f   : > { %v2253_v18 = vpop.f32.mrf.mxu0 }
 0x210   : > { %v2305_v52 = vpop.f32.mrf.mxu1  ;;  %v2200_v63 = vadd.f32 %v2199_v34, %v2151_v51  ;;  %v6754_v34 = vsel %vm5105_vm11, 0, %v1166_v14  ;;  %vm3280_vm11 = vcmask 1041408  }
 0x211   : > { %v6743_v58 = vadd.f32 %v2305_v52, %v6384_v25 }
 0x212   : > { %2348 = vmatmul.bf16.gmra.mxu2 %v5285_v61  ;;  %v6749_v48 = vadd.f32 %v2248_v12, %v2200_v63  ;;  %v7355_v63 = vld [vmem:[#allocation11_spill] sm:$0xff] }
 0x213   : > { %2789 = vmatmul.bf16.gmra.mxu1 %v6714_v38 }
 0x215   : > { %v2153_v2 = vpop.f32.mrf.mxu2 }
 0x216   : > { %v2154_v11 = vadd.f32 %v2153_v2, %v7353_v53  ;;  %v2204_v40 = vpop.f32.mrf.mxu3 }
 0x217   : > { %v2256_v4 = vpop.f32.mrf.mxu0 }
 0x218   : > { %v2307_v25 = vpop.f32.mrf.mxu1  ;;  %v2203_v45 = vadd.f32 %v2202_v26, %v2154_v11 }
 0x219   : > { %v6757_v51 = vadd.f32 %v2307_v25, %v6413_v22 }
 0x21a   : > { %2740 = vmatmul.bf16.gmra.mxu0 %v6754_v34  ;;  %v6760_v52 = vadd.f32 %v2251_v9, %v2203_v45 }
 0x21b   : > { %2402 = vmatmul.bf16.gmra.mxu3 %v7355_v63 }
 0x21d   : > { %v2155_v12 = vpop.f32.mrf.mxu2 }
 0x21e   : > { %v2156_v8 = vadd.f32 %v2155_v12, %v6373_v47  ;;  %v2207_v2 = vpop.f32.mrf.mxu3 }
 0x21f   : > { %v2258_v53 = vpop.f32.mrf.mxu0 }
 0x220   : > { %v2755_v59 = vpop.f32.mrf.mxu1  ;;  %v2205_v41 = vadd.f32 %v2204_v40, %v2156_v8 }
 0x222   : > { %2353 = vmatmul.bf16.gmra.mxu2 %v5486_v33  ;;  %v6766_v26 = vadd.f32 %v2253_v18, %v2205_v41 }
 0x223   : > { %2950 = vmatmul.bf16.vlgmr.msra.gmra.mxu1 %v5762_v15 }
 0x225   : > { %v2158_v22 = vpop.f32.mrf.mxu2 }
 0x226   : > { %v2159_v14 = vadd.f32 %v2158_v22, %v6395_v3  ;;  %v2209_v9 = vpop.f32.mrf.mxu3 }
 0x227   : > { %v2706_v11 = vpop.f32.mrf.mxu0 }
 0x228   : > { %v6769_v25 = vadd.f32 %v2755_v59, %v2706_v11  ;;  %v2757_v45 = vpop.f32.mrf.mxu1  ;;  %v2208_v56 = vadd.f32 %v2207_v2, %v2159_v14 }
 0x22a   : > { %2901 = vmatmul.bf16.vlgmr.msra.gmra.mxu0 %v5209_v16  ;;  %v6772_v47 = vadd.f32 %v2256_v4, %v2208_v56 }
 0x22b   : > { %2852 = vmatmul.bf16.vlgmr.msra.gmra.mxu3 %v5260_v21 }
 0x22d   : > { %v2160_v40 = vpop.f32.mrf.mxu2 }
 0x22e   : > { %v2161_v12 = vadd.f32 %v2160_v40, %v6417_v13  ;;  %v2368_v18 = vpop.f32.mrf.mxu3 }
 0x22f   : > { %v2708_v8 = vpop.f32.mrf.mxu0 }
 0x230   : > { %v6776_v41 = vadd.f32 %v2757_v45, %v2708_v8  ;;  %v2760_v3 = vpop.f32.mrf.mxu1  ;;  %v2210_v22 = vadd.f32 %v2209_v9, %v2161_v12 }
 0x232   : > { %2803 = vmatmul.bf16.vlgmr.msra.gmra.mxu2 %v5762_v15  ;;  %v6780_v59 = vadd.f32 %v2258_v53, %v2210_v22 }
 0x233   : > { %2955 = vmatmul.bf16.gmra.mxu1 %v5799_v30 }
 0x235   : > { %v2319_v16 = vpop.f32.mrf.mxu2 }
 0x236   : > { %v2320_v56 = vadd.f32 %v2319_v16, %v6376_v54  ;;  %v2370_v4 = vpop.f32.mrf.mxu3 }
 0x237   : > { %v2711_v21 = vpop.f32.mrf.mxu0 }
 0x238   : > { %v6783_v2 = vadd.f32 %v2760_v3, %v2711_v21  ;;  %v2762_v13 = vpop.f32.mrf.mxu1  ;;  %v6785_v14 = vadd.f32 %v2368_v18, %v2320_v56 }
 0x23a   : > { %2906 = vmatmul.bf16.gmra.mxu0 %v5467_v5 }
 0x23b   : > { %2857 = vmatmul.bf16.gmra.mxu3 %v5529_v7 }
 0x23d   : > { %v2321_v9 = vpop.f32.mrf.mxu2 }
 0x23e   : > { %v2322_v15 = vadd.f32 %v2321_v9, %v6398_v46  ;;  %v2373_v11 = vpop.f32.mrf.mxu3 }
 0x23f   : > { %v2713_v53 = vpop.f32.mrf.mxu0 }
 0x240   : > { %v6790_v45 = vadd.f32 %v2762_v13, %v2713_v53  ;;  %v2765_v40 = vpop.f32.mrf.mxu1  ;;  %v6792_v54 = vadd.f32 %v2370_v4, %v2322_v15 }
 0x242   : > { %2808 = vmatmul.bf16.gmra.mxu2 %v5799_v30 }
 0x243   : > { %2960 = vmatmul.bf16.gmra.mxu1 %v5837_v19 }
 0x245   : > { %v2324_v12 = vpop.f32.mrf.mxu2 }
 0x246   : > { %v2325_v18 = vadd.f32 %v2324_v12, %v6420_v0  ;;  %v2375_v5 = vpop.f32.mrf.mxu3 }
 0x247   : > { %v2716_v8 = vpop.f32.mrf.mxu0 }
 0x248   : > { %v6797_v7 = vadd.f32 %v2765_v40, %v2716_v8  ;;  %v2767_v3 = vpop.f32.mrf.mxu1  ;;  %v6799_v46 = vadd.f32 %v2373_v11, %v2325_v18 }
 0x24a   : > { %2911 = vmatmul.bf16.gmra.mxu0 %v5668_v43 }
 0x24b   : > { %2862 = vmatmul.bf16.gmra.mxu3 %v5700_v36 }
 0x24d   : > { %v2326_v22 = vpop.f32.mrf.mxu2 }
 0x24e   : > { %v2327_v16 = vadd.f32 %v2326_v22, %v6443_v37  ;;  %v2378_v30 = vpop.f32.mrf.mxu3 }
 0x24f   : > { %v2718_v56 = vpop.f32.mrf.mxu0 }
 0x250   : > { %v6804_v4 = vadd.f32 %v2767_v3, %v2718_v56  ;;  %v2770_v21 = vpop.f32.mrf.mxu1  ;;  %v6806_v0 = vadd.f32 %v2375_v5, %v2327_v16 }
 0x252   : > { %2813 = vmatmul.bf16.gmra.mxu2 %v5837_v19 }
 0x253   : > { %2965 = vmatmul.bf16.gmra.mxu1 %v7343_v31 }
 0x255   : > { %v2329_v13 = vpop.f32.mrf.mxu2 }
 0x256   : > { %v2330_v9 = vadd.f32 %v2329_v13, %v6469_v10  ;;  %v2380_v43 = vpop.f32.mrf.mxu3 }
 0x257   : > { %v2721_v15 = vpop.f32.mrf.mxu0 }
 0x258   : > { %v6811_v36 = vadd.f32 %v2770_v21, %v2721_v15  ;;  %v2772_v11 = vpop.f32.mrf.mxu1  ;;  %v6813_v37 = vadd.f32 %v2378_v30, %v2330_v9 }
 0x25a   : > { %2916 = vmatmul.bf16.gmra.mxu0 %v5092_v28 }
 0x25b   : > { %2867 = vmatmul.bf16.gmra.mxu3 %v5196_v60 }
 0x25d   : > { %v2331_v53 = vpop.f32.mrf.mxu2 }
 0x25e   : > { %v2332_v40 = vadd.f32 %v2331_v53, %v6492_v23  ;;  %v2383_v19 = vpop.f32.mrf.mxu3 }
 0x25f   : > { %v2723_v12 = vpop.f32.mrf.mxu0 }
 0x260   : > { %v6818_v18 = vadd.f32 %v2772_v11, %v2723_v12  ;;  %v2775_v5 = vpop.f32.mrf.mxu1  ;;  %v6820_v10 = vadd.f32 %v2380_v43, %v2332_v40 }
 0x262   : > { %2818 = vmatmul.bf16.gmra.mxu2 %v7343_v31 }
 0x263   : > { %2970 = vmatmul.bf16.gmra.mxu1 %v7351_v35 }
 0x265   : > { %v2334_v8 = vpop.f32.mrf.mxu2 }
 0x266   : > { %v2335_v3 = vadd.f32 %v2334_v8, %v6519_v1  ;;  %v2385_v28 = vpop.f32.mrf.mxu3 }
 0x267   : > { %v2726_v22 = vpop.f32.mrf.mxu0 }
 0x268   : > { %v6825_v60 = vadd.f32 %v2775_v5, %v2726_v22  ;;  %v2777_v16 = vpop.f32.mrf.mxu1  ;;  %v6827_v23 = vadd.f32 %v2383_v19, %v2335_v3  ;;  %v7356_v3 = vld [vmem:[#allocation13_spill] sm:$0xff] }
 0x26a   : > { %2921 = vmatmul.bf16.gmra.mxu0 %v5285_v61 }
 0x26b   : > { %2872 = vmatmul.bf16.gmra.mxu3 %v5372_v55 }
 0x26d   : > { %v2336_v30 = vpop.f32.mrf.mxu2 }
 0x26e   : > { %v2337_v56 = vadd.f32 %v2336_v30, %v6547_v49  ;;  %v2388_v31 = vpop.f32.mrf.mxu3 }
 0x26f   : > { %v2728_v21 = vpop.f32.mrf.mxu0 }
 0x270   : > { %v6832_v13 = vadd.f32 %v2777_v16, %v2728_v21  ;;  %v2780_v9 = vpop.f32.mrf.mxu1  ;;  %v6834_v1 = vadd.f32 %v2385_v28, %v2337_v56 }
 0x272   : > { %2823 = vmatmul.bf16.gmra.mxu2 %v7351_v35 }
 0x273   : > { %2975 = vmatmul.bf16.gmra.mxu1 %v7355_v63 }
 0x275   : > { %v2339_v43 = vpop.f32.mrf.mxu2 }
 0x276   : > { %v2340_v15 = vadd.f32 %v2339_v43, %v6574_v39  ;;  %v2390_v61 = vpop.f32.mrf.mxu3 }
 0x277   : > { %v2731_v11 = vpop.f32.mrf.mxu0 }
 0x278   : > { %v6839_v55 = vadd.f32 %v2780_v9, %v2731_v11  ;;  %v2782_v53 = vpop.f32.mrf.mxu1  ;;  %v6841_v49 = vadd.f32 %v2388_v31, %v2340_v15 }
 0x27a   : > { %2926 = vmatmul.bf16.gmra.mxu0 %v5486_v33 }
 0x27b   : > { %2877 = vmatmul.bf16.gmra.mxu3 %v5581_v27 }
 0x27d   : > { %v2341_v40 = vpop.f32.mrf.mxu2 }
 0x27e   : > { %v2342_v19 = vadd.f32 %v2341_v40, %v6603_v50  ;;  %v2393_v35 = vpop.f32.mrf.mxu3  ;;  %v7357_v50 = vshll.u32 %v6714_v38, 16 }
 0x27f   : > { %v2733_v12 = vpop.f32.mrf.mxu0 }
 0x280   : > { %v6846_v5 = vadd.f32 %v2782_v53, %v2733_v12  ;;  %v2785_v8 = vpop.f32.mrf.mxu1  ;;  %v6848_v39 = vadd.f32 %v2390_v61, %v2342_v19  ;;  %v1208_v56 = vrot.slane %v7357_v50, 1 }
 0x282   : > { %2828 = vmatmul.bf16.gmra.mxu2 %v7355_v63  ;;  %v7358_v63 = vshrl.u32 %v6714_v38, 16 }
 0x283   : > { %2980 = vmatmul.bf16.gmra.mxu1 %v7356_v3 }
 0x284   : > { %v1209_v21 = vor.u32 %v1208_v56, %v7358_v63 }
 0x285   : > { %v2344_v28 = vpop.f32.mrf.mxu2 }
 0x286   : > { %v2345_v22 = vadd.f32 %v2344_v28, %v6647_v62  ;;  %v2395_v33 = vpop.f32.mrf.mxu3  ;;  %v1232_v40 = vsel %vm5716_vm10, %v1209_v21, 0 }
 0x287   : > { %v2736_v16 = vpop.f32.mrf.mxu0 }
 0x288   : > { %v6853_v27 = vadd.f32 %v2785_v8, %v2736_v16  ;;  %v2787_v30 = vpop.f32.mrf.mxu1  ;;  %v6857_v31 = vadd.f32 %v2393_v35, %v2345_v22 }
 0x28a   : > { %2931 = vmatmul.bf16.gmra.mxu0 %v7345_v6 }
 0x28b   : > { %2882 = vmatmul.bf16.gmra.mxu3 %v7348_v57 }
 0x28d   : > { %v2346_v9 = vpop.f32.mrf.mxu2 }
 0x28e   : > { %v2347_v62 = vadd.f32 %v2346_v9, %v6671_v24  ;;  %v2398_v43 = vpop.f32.mrf.mxu3 }
 0x28f   : > { %v2738_v15 = vpop.f32.mrf.mxu0 }
 0x290   : > { %v6864_v61 = vadd.f32 %v2787_v30, %v2738_v15  ;;  %v2790_v11 = vpop.f32.mrf.mxu1  ;;  %v6868_v19 = vadd.f32 %v2395_v33, %v2347_v62 }
 0x292   : > { %2833 = vmatmul.bf16.gmra.mxu2 %v7356_v3 }
 0x293   : > { %2985 = vmatmul.bf16.gmra.mxu1 %v1232_v40 }
 0x295   : > { %v2349_v6 = vpop.f32.mrf.mxu2 }
 0x296   : > { %v2350_v57 = vadd.f32 %v2349_v6, %v6694_v44  ;;  %v2400_v35 = vpop.f32.mrf.mxu3 }
 0x297   : > { %v2741_v12 = vpop.f32.mrf.mxu0 }
 0x298   : > { %v6872_v8 = vadd.f32 %v2790_v11, %v2741_v12  ;;  %v2792_v24 = vpop.f32.mrf.mxu1  ;;  %v6874_v28 = vadd.f32 %v2398_v43, %v2350_v57 }
 0x29a   : > { %2936 = vmatmul.bf16.gmra.mxu0 %v6714_v38 }
 0x29b   : > { %2887 = vmatmul.bf16.gmra.mxu3 %v6754_v34 }
 0x29d   : > { %v2351_v22 = vpop.f32.mrf.mxu2 }
 0x29e   : > { %v2352_v33 = vadd.f32 %v2351_v22, %v6717_v20  ;;  %v2403_v16 = vpop.f32.mrf.mxu3 }
 0x29f   : > { %v2743_v3 = vpop.f32.mrf.mxu0 }
 0x2a0   : > { %v6879_v30 = vadd.f32 %v2792_v24, %v2743_v3  ;;  %v2951_v50 = vpop.f32.mrf.mxu1  ;;  %v6881_v44 = vadd.f32 %v2400_v35, %v2352_v33 }
 0x2a2   : > { %2838 = vmatmul.bf16.gmra.mxu2 %v1232_v40 }
 0x2a5   : > { %v2354_v56 = vpop.f32.mrf.mxu2 }
 0x2a6   : > { %v2355_v63 = vadd.f32 %v2354_v56, %v6743_v58  ;;  %v2405_v21 = vpop.f32.mrf.mxu3  ;;  %v548_v58 = vld [vmem:[%s7219_s6] sm:$0x3] }
 0x2a7   : > { %v2902_v38 = vpop.f32.mrf.mxu0  ;;  %v6895_v12 = vperm.slane %v548_v58, 1  ;;  %v6898_v24 = vperm.slane %v548_v58, 0 }
 0x2a8   : > { %v2953_v9 = vpop.f32.mrf.mxu1  ;;  %v6884_v34 = vadd.f32 %v2403_v16, %v2355_v63 }
 0x2ad   : > { %v2356_v62 = vpop.f32.mrf.mxu2 }
 0x2ae   : > { %v2357_v20 = vadd.f32 %v2356_v62, %v6757_v51  ;;  %v2853_v43 = vpop.f32.mrf.mxu3 }
 0x2af   : > { %v2904_v15 = vpop.f32.mrf.mxu0  ;;  %v2903_v11 = vadd.f32 %v2902_v38, %v2853_v43 }
 0x2b0   : > { %v2956_v53 = vpop.f32.mrf.mxu1  ;;  %v6887_v6 = vadd.f32 %v2405_v21, %v2357_v20 }
 0x2b1   : > { %v2952_v40 = vadd.f32 %v2951_v50, %v2903_v11 }
 0x2b3   : > { %v2992_v35 = vadd.f32 %v2952_v40, %v6785_v14 }
 0x2b5   : > { %v2804_v57 = vpop.f32.mrf.mxu2  ;;  %v3029_v56 = vadd.f32 %v6895_v12, %v2992_v35 }
 0x2b6   : > { %v2805_v51 = vadd.f32 %v2804_v57, %v6769_v25  ;;  %v2855_v22 = vpop.f32.mrf.mxu3 }
 0x2b7   : > { %v2907_v33 = vpop.f32.mrf.mxu0  ;;  %v2905_v16 = vadd.f32 %v2904_v15, %v2855_v22 }
 0x2b8   : > { %v2958_v3 = vpop.f32.mrf.mxu1  ;;  %v2991_v50 = vadd.f32 %v2805_v51, %v6462_v29 }
 0x2b9   : > { %v2954_v21 = vadd.f32 %v2953_v9, %v2905_v16 }
 0x2ba   : > { %v3028_v63 = vadd.f32 %v6898_v24, %v2991_v50 }
 0x2bb   : > { %v2994_v38 = vadd.f32 %v2954_v21, %v6792_v54 }
 0x2bc   : > { %v6908_v25 = vpack.c.bf16 %v3029_v56, %v3028_v63 }
 0x2bd   : > { %v2806_v14 = vpop.f32.mrf.mxu2  ;;  %v3031_v11 = vadd.f32 %v6895_v12, %v2994_v38 }
 0x2be   : > { %3076 = vst [vmem:[%s6906_s1] sm:$0xff] %v6908_v25  ;;  %v2807_v29 = vadd.f32 %v2806_v14, %v6776_v41  ;;  %v2858_v62 = vpop.f32.mrf.mxu3  ;;  %v3092_v35 = vunpack.c.l.bf16 %v6908_v25  ;;  %v3093_v51 = vunpack.c.h.bf16 %v6908_v25  ;;  %v7360_v14 = vld [vmem:[#allocation20_spill] sm:$0xff] }
 0x2bf   : > { %v2909_v20 = vpop.f32.mrf.mxu0  ;;  %v2908_v43 = vadd.f32 %v2907_v33, %v2858_v62 }
 0x2c0   : > { %v2961_v9 = vpop.f32.mrf.mxu1  ;;  %v2993_v15 = vadd.f32 %v2807_v29, %v6485_v17 }
 0x2c1   : > { %v2957_v58 = vadd.f32 %v2956_v53, %v2908_v43 }
 0x2c2   : > { %v3030_v40 = vadd.f32 %v6898_v24, %v2993_v15 }
 0x2c3   : > { %v2996_v17 = vadd.f32 %v2957_v58, %v6799_v46 }
 0x2c4   : > { %v6917_v57 = vpack.c.bf16 %v3031_v11, %v3030_v40 }
 0x2c5   : > { %v2809_v54 = vpop.f32.mrf.mxu2  ;;  %v3033_v46 = vadd.f32 %v6895_v12, %v2996_v17 }
 0x2c6   : > { %3077 = vst [vmem:[%s6906_s1 + $0x8] sm:$0xff] %v6917_v57  ;;  %v3094_v41 = vunpack.c.l.bf16 %v6917_v57  ;;  %v3095_v22 = vunpack.c.h.bf16 %v6917_v57  ;;  %v2810_v33 = vadd.f32 %v2809_v54, %v6783_v2  ;;  %v2860_v16 = vpop.f32.mrf.mxu3 }
 0x2c7   : > { %v2912_v53 = vpop.f32.mrf.mxu0  ;;  %v2910_v50 = vadd.f32 %v2909_v20, %v2860_v16 }
 0x2c8   : > { %v2963_v56 = vpop.f32.mrf.mxu1  ;;  %v3124_v63 = vadd.f32 %v3094_v41, %v3092_v35  ;;  %v3145_v21 = vadd.f32 %v3095_v22, %v3093_v51  ;;  %v2995_v38 = vadd.f32 %v2810_v33, %v7360_v14 }
 0x2c9   : > { %v2959_v29 = vadd.f32 %v2958_v3, %v2910_v50  ;;  %v7361_v50 = vld [vmem:[#allocation21_spill] sm:$0xff] }
 0x2ca   : > { %v3032_v2 = vadd.f32 %v6898_v24, %v2995_v38 }
 0x2cb   : > { %v2998_v11 = vadd.f32 %v2959_v29, %v6806_v0 }
 0x2cc   : > { %v6938_v62 = vpack.c.bf16 %v3033_v46, %v3032_v2 }
 0x2cd   : > { %v2811_v20 = vpop.f32.mrf.mxu2  ;;  %v3035_v38 = vadd.f32 %v6895_v12, %v2998_v11 }
 0x2ce   : > { %3078 = vst [vmem:[%s6906_s1 + $0x10] sm:$0xff] %v6938_v62  ;;  %v3096_v43 = vunpack.c.l.bf16 %v6938_v62  ;;  %v7238_v15 = vunpack.c.h.bf16 %v6938_v62  ;;  %v2812_v40 = vadd.f32 %v2811_v20, %v6790_v45  ;;  %v2863_v58 = vpop.f32.mrf.mxu3 }
 0x2cf   : > { %v2914_v54 = vpop.f32.mrf.mxu0  ;;  %v2913_v17 = vadd.f32 %v2912_v53, %v2863_v58 }
 0x2d0   : > { %v2966_v33 = vpop.f32.mrf.mxu1  ;;  %v3125_v3 = vadd.f32 %v3124_v63, %v3096_v43  ;;  %v3146_v16 = vadd.f32 %v3145_v21, %v7238_v15  ;;  %v2997_v14 = vadd.f32 %v2812_v40, %v7361_v50 }
 0x2d1   : > { %v2962_v2 = vadd.f32 %v2961_v9, %v2913_v17  ;;  %v7362_v17 = vld [vmem:[#allocation22_spill] sm:$0xff] }
 0x2d2   : > { %v3034_v46 = vadd.f32 %v6898_v24, %v2997_v14 }
 0x2d3   : > { %v3000_v29 = vadd.f32 %v2962_v2, %v6813_v37 }
 0x2d4   : > { %v6953_v0 = vpack.c.bf16 %v3035_v38, %v3034_v46 }
 0x2d5   : > { %v2814_v45 = vpop.f32.mrf.mxu2  ;;  %v3037_v38 = vadd.f32 %v6895_v12, %v3000_v29 }
 0x2d6   : > { %3079 = vst [vmem:[%s6906_s1 + $0x18] sm:$0xff] %v6953_v0  ;;  %v3098_v53 = vunpack.c.l.bf16 %v6953_v0  ;;  %v7239_v63 = vunpack.c.h.bf16 %v6953_v0  ;;  %v2815_v21 = vadd.f32 %v2814_v45, %v6797_v7  ;;  %v2865_v20 = vpop.f32.mrf.mxu3 }
 0x2d7   : > { %v2917_v40 = vpop.f32.mrf.mxu0  ;;  %v2915_v11 = vadd.f32 %v2914_v54, %v2865_v20 }
 0x2d8   : > { %v3126_v9 = vadd.f32 %v3125_v3, %v3098_v53  ;;  %v3147_v58 = vadd.f32 %v3146_v16, %v7239_v63  ;;  %v2999_v50 = vadd.f32 %v2815_v21, %v7362_v17  ;;  %v2968_v14 = vpop.f32.mrf.mxu1 }
 0x2d9   : > { %v2964_v15 = vadd.f32 %v2963_v56, %v2915_v11  ;;  %v7363_v11 = vld [vmem:[#allocation23_spill] sm:$0xff] }
 0x2da   : > { %v3036_v46 = vadd.f32 %v6898_v24, %v2999_v50 }
 0x2db   : > { %v3002_v16 = vadd.f32 %v2964_v15, %v6820_v10 }
 0x2dc   : > { %v6968_v37 = vpack.c.bf16 %v3037_v38, %v3036_v46 }
 0x2dd   : > { %v2816_v7 = vpop.f32.mrf.mxu2  ;;  %v3039_v50 = vadd.f32 %v6895_v12, %v3002_v16 }
 0x2de   : > { %3080 = vst [vmem:[%s6906_s1 + $0x20] sm:$0xff] %v6968_v37  ;;  %v3100_v54 = vunpack.c.l.bf16 %v6968_v37  ;;  %v7240_v3 = vunpack.c.h.bf16 %v6968_v37  ;;  %v2817_v2 = vadd.f32 %v2816_v7, %v6804_v4  ;;  %v2868_v45 = vpop.f32.mrf.mxu3 }
 0x2df   : > { %v2919_v21 = vpop.f32.mrf.mxu0  ;;  %v2918_v29 = vadd.f32 %v2917_v40, %v2868_v45 }
 0x2e0   : > { %v3127_v56 = vadd.f32 %v3126_v9, %v3100_v54  ;;  %v3148_v20 = vadd.f32 %v3147_v58, %v7240_v3  ;;  %v3001_v17 = vadd.f32 %v2817_v2, %v7363_v11  ;;  %v2971_v63 = vpop.f32.mrf.mxu1 }
 0x2e1   : > { %v2967_v46 = vadd.f32 %v2966_v33, %v2918_v29  ;;  %v7364_v29 = vld [vmem:[#allocation24_spill] sm:$0xff] }
 0x2e2   : > { %v3038_v38 = vadd.f32 %v6898_v24, %v3001_v17 }
 0x2e3   : > { %v3004_v9 = vadd.f32 %v2967_v46, %v6827_v23 }
 0x2e4   : > { %v6983_v10 = vpack.c.bf16 %v3039_v50, %v3038_v38 }
 0x2e5   : > { %v2819_v4 = vpop.f32.mrf.mxu2  ;;  %v3041_v17 = vadd.f32 %v6895_v12, %v3004_v9 }
 0x2e6   : > { %3081 = vst [vmem:[%s6906_s1 + $0x28] sm:$0xff] %v6983_v10  ;;  %v3102_v15 = vunpack.c.l.bf16 %v6983_v10  ;;  %v3103_v40 = vunpack.c.h.bf16 %v6983_v10  ;;  %v2820_v58 = vadd.f32 %v2819_v4, %v6811_v36  ;;  %v2870_v7 = vpop.f32.mrf.mxu3 }
 0x2e7   : > { %v2922_v16 = vpop.f32.mrf.mxu0  ;;  %v2920_v2 = vadd.f32 %v2919_v21, %v2870_v7 }
 0x2e8   : > { %v3128_v33 = vadd.f32 %v3127_v56, %v3102_v15  ;;  %v3149_v45 = vadd.f32 %v3148_v20, %v3103_v40  ;;  %v3003_v11 = vadd.f32 %v2820_v58, %v7364_v29  ;;  %v2973_v36 = vpop.f32.mrf.mxu1 }
 0x2e9   : > { %v2969_v38 = vadd.f32 %v2968_v14, %v2920_v2 }
 0x2ea   : > { %v3040_v50 = vadd.f32 %v6898_v24, %v3003_v11 }
 0x2eb   : > { %v3006_v20 = vadd.f32 %v2969_v38, %v6834_v1 }
 0x2ec   : > { %v6998_v3 = vpack.c.bf16 %v3041_v17, %v3040_v50 }
 0x2ed   : > { %v2821_v23 = vpop.f32.mrf.mxu2  ;;  %v3043_v29 = vadd.f32 %v6895_v12, %v3006_v20 }
 0x2ee   : > { %3082 = vst [vmem:[%s6906_s1 + $0x30] sm:$0xff] %v6998_v3  ;;  %v3104_v21 = vunpack.c.l.bf16 %v6998_v3  ;;  %v3105_v56 = vunpack.c.h.bf16 %v6998_v3  ;;  %v2822_v46 = vadd.f32 %v2821_v23, %v6818_v18  ;;  %v2873_v4 = vpop.f32.mrf.mxu3 }
 0x2ef   : > { %v2924_v9 = vpop.f32.mrf.mxu0  ;;  %v2923_v58 = vadd.f32 %v2922_v16, %v2873_v4  ;;  %v7365_v4 = vld [vmem:[#allocation14_spill] sm:$0xff] }
 0x2f0   : > { %v3129_v14 = vadd.f32 %v3128_v33, %v3104_v21  ;;  %v3150_v7 = vadd.f32 %v3149_v45, %v3105_v56  ;;  %v3005_v2 = vadd.f32 %v2822_v46, %v6664_v32  ;;  %v2976_v20 = vpop.f32.mrf.mxu1 }
 0x2f1   : > { %v2972_v17 = vadd.f32 %v2971_v63, %v2923_v58 }
 0x2f2   : > { %v3042_v11 = vadd.f32 %v6898_v24, %v3005_v2 }
 0x2f3   : > { %v3008_v33 = vadd.f32 %v2972_v17, %v6841_v49 }
 0x2f4   : > { %v7013_v50 = vpack.c.bf16 %v3043_v29, %v3042_v11 }
 0x2f5   : > { %v2824_v1 = vpop.f32.mrf.mxu2  ;;  %v3045_v2 = vadd.f32 %v6895_v12, %v3008_v33 }
 0x2f6   : > { %3083 = vst [vmem:[%s6906_s1 + $0x38] sm:$0xff] %v7013_v50  ;;  %v3106_v18 = vunpack.c.l.bf16 %v7013_v50  ;;  %v7241_v16 = vunpack.c.h.bf16 %v7013_v50  ;;  %v2825_v45 = vadd.f32 %v2824_v1, %v6825_v60  ;;  %v2875_v32 = vpop.f32.mrf.mxu3 }
 0x2f7   : > { %v2927_v38 = vpop.f32.mrf.mxu0  ;;  %v2925_v23 = vadd.f32 %v2924_v9, %v2875_v32 }
 0x2f8   : > { %v3130_v63 = vadd.f32 %v3129_v14, %v3106_v18  ;;  %v3151_v46 = vadd.f32 %v3150_v7, %v7241_v16  ;;  %v3007_v58 = vadd.f32 %v2825_v45, %v7365_v4 }
 0x2f9   : > { %v2974_v11 = vadd.f32 %v2973_v36, %v2925_v23  ;;  %v7366_v23 = vld [vmem:[#allocation15_spill] sm:$0xff] }
 0x2fa   : > { %v3044_v29 = vadd.f32 %v6898_v24, %v3007_v58  ;;  %v2978_v58 = vpop.f32.mrf.mxu1 }
 0x2fb   : > { %v3010_v17 = vadd.f32 %v2974_v11, %v6848_v39 }
 0x2fc   : > { %v7028_v49 = vpack.c.bf16 %v3045_v2, %v3044_v29 }
 0x2fd   : > { %v2826_v60 = vpop.f32.mrf.mxu2  ;;  %v3047_v2 = vadd.f32 %v6895_v12, %v3010_v17 }
 0x2fe   : > { %3084 = vst [vmem:[%s6906_s1 + $0x40] sm:$0xff] %v7028_v49  ;;  %v3108_v9 = vunpack.c.l.bf16 %v7028_v49  ;;  %v3109_v14 = vunpack.c.h.bf16 %v7028_v49  ;;  %v2827_v7 = vadd.f32 %v2826_v60, %v6832_v13  ;;  %v2878_v1 = vpop.f32.mrf.mxu3 }
 0x2ff   : > { %v2929_v45 = vpop.f32.mrf.mxu0  ;;  %v2928_v33 = vadd.f32 %v2927_v38, %v2878_v1 }
 0x300   : > { %v3131_v36 = vadd.f32 %v3130_v63, %v3108_v9  ;;  %v3152_v32 = vadd.f32 %v3151_v46, %v3109_v14  ;;  %v3009_v4 = vadd.f32 %v2827_v7, %v7366_v23 }
 0x301   : > { %v2977_v16 = vadd.f32 %v2976_v20, %v2928_v33 }
 0x302   : > { %v3046_v29 = vadd.f32 %v6898_v24, %v3009_v4 }
 0x303   : > { %v3012_v46 = vadd.f32 %v2977_v16, %v6857_v31 }
 0x304   : > { %v7043_v39 = vpack.c.bf16 %v3047_v2, %v3046_v29  ;;  %v2981_v29 = vpop.f32.mrf.mxu1 }
 0x305   : > { %v2829_v13 = vpop.f32.mrf.mxu2  ;;  %v3049_v23 = vadd.f32 %v6895_v12, %v3012_v46 }
 0x306   : > { %3085 = vst [vmem:[%s6906_s1 + $0x48] sm:$0xff] %v7043_v39  ;;  %v3110_v38 = vunpack.c.l.bf16 %v7043_v39  ;;  %v3111_v63 = vunpack.c.h.bf16 %v7043_v39  ;;  %v2830_v11 = vadd.f32 %v2829_v13, %v6839_v55  ;;  %v2880_v60 = vpop.f32.mrf.mxu3 }
 0x307   : > { %v2932_v7 = vpop.f32.mrf.mxu0  ;;  %v2930_v17 = vadd.f32 %v2929_v45, %v2880_v60 }
 0x308   : > { %v3132_v20 = vadd.f32 %v3131_v36, %v3110_v38  ;;  %v3153_v1 = vadd.f32 %v3152_v32, %v3111_v63  ;;  %v3011_v33 = vadd.f32 %v2830_v11, %v6735_v42 }
 0x309   : > { %v2979_v2 = vadd.f32 %v2978_v58, %v2930_v17 }
 0x30a   : > { %v3048_v4 = vadd.f32 %v6898_v24, %v3011_v33 }
 0x30b   : > { %v3014_v36 = vadd.f32 %v2979_v2, %v6868_v19 }
 0x30c   : > { %v7058_v31 = vpack.c.bf16 %v3049_v23, %v3048_v4 }
 0x30d   : > { %v2831_v55 = vpop.f32.mrf.mxu2  ;;  %v3051_v17 = vadd.f32 %v6895_v12, %v3014_v36 }
 0x30e   : > { %3086 = vst [vmem:[%s6906_s1 + $0x50] sm:$0xff] %v7058_v31  ;;  %v3112_v16 = vunpack.c.l.bf16 %v7058_v31  ;;  %v3113_v45 = vunpack.c.h.bf16 %v7058_v31  ;;  %v2832_v42 = vadd.f32 %v2831_v55, %v6846_v5  ;;  %v2883_v32 = vpop.f32.mrf.mxu3  ;;  %v2983_v5 = vpop.f32.mrf.mxu1 }
 0x30f   : > { %v2933_v13 = vadd.f32 %v2932_v7, %v2883_v32  ;;  %v2934_v60 = vpop.f32.mrf.mxu0 }
 0x310   : > { %v3133_v58 = vadd.f32 %v3132_v20, %v3112_v16  ;;  %v3154_v46 = vadd.f32 %v3153_v1, %v3113_v45  ;;  %v3013_v11 = vadd.f32 %v2832_v42, %v6749_v48 }
 0x311   : > { %v2982_v23 = vadd.f32 %v2981_v29, %v2933_v13 }
 0x312   : > { %v3050_v33 = vadd.f32 %v6898_v24, %v3013_v11 }
 0x313   : > { %v3016_v1 = vadd.f32 %v2982_v23, %v6874_v28 }
 0x314   : > { %v7073_v4 = vpack.c.bf16 %v3051_v17, %v3050_v33 }
 0x315   : > { %v2834_v19 = vpop.f32.mrf.mxu2  ;;  %v3053_v32 = vadd.f32 %v6895_v12, %v3016_v1 }
 0x316   : > { %3087 = vst [vmem:[%s6906_s1 + $0x58] sm:$0xff] %v7073_v4  ;;  %v3114_v7 = vunpack.c.l.bf16 %v7073_v4  ;;  %v3115_v20 = vunpack.c.h.bf16 %v7073_v4  ;;  %v2835_v48 = vadd.f32 %v2834_v19, %v6853_v27  ;;  %v2885_v2 = vpop.f32.mrf.mxu3  ;;  %v2986_v23 = vpop.f32.mrf.mxu1 }
 0x317   : > { %v2935_v55 = vadd.f32 %v2934_v60, %v2885_v2  ;;  %v2937_v17 = vpop.f32.mrf.mxu0 }
 0x318   : > { %v3134_v29 = vadd.f32 %v3133_v58, %v3114_v7  ;;  %v3155_v36 = vadd.f32 %v3154_v46, %v3115_v20  ;;  %v3015_v42 = vadd.f32 %v2835_v48, %v6760_v52 }
 0x319   : > { %v2984_v11 = vadd.f32 %v2983_v5, %v2935_v55 }
 0x31a   : > { %v3052_v13 = vadd.f32 %v6898_v24, %v3015_v42 }
 0x31b   : > { %v3018_v46 = vadd.f32 %v2984_v11, %v6881_v44 }
 0x31c   : > { %v7088_v33 = vpack.c.bf16 %v3053_v32, %v3052_v13 }
 0x31d   : > { %v2836_v28 = vpop.f32.mrf.mxu2  ;;  %v3055_v2 = vadd.f32 %v6895_v12, %v3018_v46 }
 0x31e   : > { %3088 = vst [vmem:[%s6906_s1 + $0x60] sm:$0xff] %v7088_v33  ;;  %v3116_v27 = vunpack.c.l.bf16 %v7088_v33  ;;  %v3117_v58 = vunpack.c.h.bf16 %v7088_v33  ;;  %v2837_v52 = vadd.f32 %v2836_v28, %v6864_v61  ;;  %v2888_v60 = vpop.f32.mrf.mxu3 }
 0x31f   : > { %v2938_v19 = vadd.f32 %v2937_v17, %v2888_v60  ;;  %v2939_v44 = vpop.f32.mrf.mxu0  ;;  %v2988_v60 = vpop.f32.mrf.mxu1 }
 0x320   : > { %v3135_v5 = vadd.f32 %v3134_v29, %v3116_v27  ;;  %v3156_v1 = vadd.f32 %v3155_v36, %v3117_v58  ;;  %v3017_v48 = vadd.f32 %v2837_v52, %v6766_v26 }
 0x321   : > { %v2987_v42 = vadd.f32 %v2986_v23, %v2938_v19 }
 0x322   : > { %v3054_v55 = vadd.f32 %v6898_v24, %v3017_v48 }
 0x323   : > { %v3020_v36 = vadd.f32 %v2987_v42, %v6884_v34 }
 0x324   : > { %v7103_v32 = vpack.c.bf16 %v3055_v2, %v3054_v55 }
 0x325   : > { %v2839_v61 = vpop.f32.mrf.mxu2  ;;  %v3057_v23 = vadd.f32 %v6895_v12, %v3020_v36 }
 0x326   : > { %3089 = vst [vmem:[%s6906_s1 + $0x68] sm:$0xff] %v7103_v32  ;;  %v3118_v13 = vunpack.c.l.bf16 %v7103_v32  ;;  %v3119_v29 = vunpack.c.h.bf16 %v7103_v32  ;;  %v2840_v26 = vadd.f32 %v2839_v61, %v6872_v8  ;;  %v2890_v11 = vpop.f32.mrf.mxu3 }
 0x327   : > { %v2940_v17 = vadd.f32 %v2939_v44, %v2890_v11 }
 0x328   : > { %v3136_v28 = vadd.f32 %v3135_v5, %v3118_v13  ;;  %v3157_v46 = vadd.f32 %v3156_v1, %v3119_v29  ;;  %v3019_v52 = vadd.f32 %v2840_v26, %v6772_v47 }
 0x329   : > { %v2989_v48 = vadd.f32 %v2988_v60, %v2940_v17 }
 0x32a   : > { %v3056_v19 = vadd.f32 %v6898_v24, %v3019_v52 }
 0x32b   : > { %v3022_v42 = vadd.f32 %v2989_v48, %v6887_v6 }
 0x32c   : > { %v3074_v34 = vpack.c.bf16 %v3057_v23, %v3056_v19 }
 0x32d   : > { %v2841_v2 = vpop.f32.mrf.mxu2  ;;  %v3059_v61 = vadd.f32 %v6895_v12, %v3022_v42 }
 0x32e   : > { %3090 = vst [vmem:[%s6906_s1 + $0x70] sm:$0xff] %v3074_v34  ;;  %v3120_v8 = vunpack.c.l.bf16 %v3074_v34  ;;  %v3121_v55 = vunpack.c.h.bf16 %v3074_v34  ;;  %v2842_v5 = vadd.f32 %v2841_v2, %v6879_v30 }
 0x330   : > { %v3137_v44 = vadd.f32 %v3136_v28, %v3120_v8  ;;  %v3158_v1 = vadd.f32 %v3157_v46, %v3121_v55  ;;  %v3021_v47 = vadd.f32 %v2842_v5, %v6780_v59 }
 0x332   : > { %v3058_v36 = vadd.f32 %v6898_v24, %v3021_v47 }
 0x334   : > { %v3075_v26 = vpack.c.bf16 %v3059_v61, %v3058_v36 }
 0x336   : > { %3091 = vst [vmem:[%s6906_s1 + $0x78] sm:$0xff] %v3075_v26  ;;  %v3122_v11 = vunpack.c.l.bf16 %v3075_v26  ;;  %v3123_v17 = vunpack.c.h.bf16 %v3075_v26  ;;  %v7367_v26 = vunpack.c.h.bf16 %v6938_v62 }
 0x338   : > { %v3138_v52 = vadd.f32 %v3137_v44, %v3122_v11  ;;  %v3159_v60 = vadd.f32 %v3158_v1, %v3123_v17 }
 0x33a   : > { %v3139_v23 = vrot.slane %v3138_v52, 4  ;;  %v3160_v19 = vrot.slane %v3159_v60, 4 }
 0x33c   : > { %v3140_v34 = vadd.f32 %v3139_v23, %v3138_v52  ;;  %v3161_v6 = vadd.f32 %v3160_v19, %v3159_v60 }
 0x33e   : > { %v3141_v48 = vrot.slane %v3140_v34, 2  ;;  %v3162_v30 = vrot.slane %v3161_v6, 2 }
 0x340   : > { %v3142_v28 = vadd.f32 %v3141_v48, %v3140_v34  ;;  %v3163_v46 = vadd.f32 %v3162_v30, %v3161_v6 }
 0x342   : > { %v3143_v2 = vrot.slane %v3142_v28, 1  ;;  %v3164_v59 = vrot.slane %v3163_v46, 1 }
 0x344   : > { %v7125_v5 = vadd.f32 %v3143_v2, %v3142_v28  ;;  %v7127_v12 = vadd.f32 %v3164_v59, %v3163_v46 }
 0x346   : > { %v3166_v24 = vmul.f32 0.0078125, %v7125_v5  ;;  %v3167_v42 = vmul.f32 0.0078125, %v7127_v12 }
 0x348   : > { %v3168_v44 = vsub.f32 %v3092_v35, %v3166_v24  ;;  %v3169_v1 = vsub.f32 %v3093_v51, %v3167_v42  ;;  %v3170_v47 = vsub.f32 %v3094_v41, %v3166_v24  ;;  %v3171_v61 = vsub.f32 %v3095_v22, %v3167_v42 }
 0x349   : > { %v3172_v36 = vsub.f32 %v3096_v43, %v3166_v24  ;;  %v3173_v52 = vsub.f32 %v7367_v26, %v3167_v42  ;;  %v3174_v60 = vsub.f32 %v3098_v53, %v3166_v24  ;;  %v7368_v35 = vunpack.c.h.bf16 %v6953_v0 }
 0x34a   : > { %v3176_v25 = vsub.f32 %v3100_v54, %v3166_v24  ;;  %v7369_v51 = vunpack.c.h.bf16 %v6968_v37  ;;  %v3178_v57 = vsub.f32 %v3102_v15, %v3166_v24  ;;  %v3179_v22 = vsub.f32 %v3103_v40, %v3167_v42 }
 0x34b   : > { %v3175_v23 = vsub.f32 %v7368_v35, %v3167_v42  ;;  %v3180_v62 = vsub.f32 %v3104_v21, %v3166_v24  ;;  %v3181_v43 = vsub.f32 %v3105_v56, %v3167_v42  ;;  %v3182_v0 = vsub.f32 %v3106_v18, %v3166_v24 }
 0x34c   : > { %v3177_v41 = vsub.f32 %v7369_v51, %v3167_v42  ;;  %v7370_v53 = vunpack.c.h.bf16 %v7013_v50  ;;  %v3184_v37 = vsub.f32 %v3108_v9, %v3166_v24  ;;  %v3185_v15 = vsub.f32 %v3109_v14, %v3167_v42 }
 0x34d   : > { %v3186_v10 = vsub.f32 %v3110_v38, %v3166_v24  ;;  %v3187_v40 = vsub.f32 %v3111_v63, %v3167_v42  ;;  %v3188_v3 = vsub.f32 %v3112_v16, %v3166_v24  ;;  %v3189_v21 = vsub.f32 %v3113_v45, %v3167_v42 }
 0x34e   : > { %v3183_v54 = vsub.f32 %v7370_v53, %v3167_v42  ;;  %v3190_v56 = vsub.f32 %v3114_v7, %v3166_v24  ;;  %v3191_v50 = vsub.f32 %v3115_v20, %v3167_v42  ;;  %v3192_v18 = vsub.f32 %v3116_v27, %v3166_v24 }
 0x34f   : > { %v3193_v49 = vsub.f32 %v3117_v58, %v3167_v42  ;;  %v3194_v9 = vsub.f32 %v3118_v13, %v3166_v24  ;;  %v3195_v14 = vsub.f32 %v3119_v29, %v3167_v42  ;;  %v3196_v39 = vsub.f32 %v3120_v8, %v3166_v24 }
 0x350   : > { %v3197_v38 = vsub.f32 %v3121_v55, %v3167_v42  ;;  %v3198_v63 = vsub.f32 %v3122_v11, %v3166_v24  ;;  %v3199_v31 = vsub.f32 %v3123_v17, %v3167_v42  ;;  %v3200_v16 = vmul.f32 %v3168_v44, %v3168_v44 }
 0x351   : > { %v3201_v45 = vmul.f32 %v3169_v1, %v3169_v1  ;;  %v3202_v4 = vmul.f32 %v3170_v47, %v3170_v47  ;;  %v3203_v7 = vmul.f32 %v3171_v61, %v3171_v61  ;;  %v3204_v20 = vmul.f32 %v3172_v36, %v3172_v36 }
 0x352   : > { %v3205_v19 = vmul.f32 %v3173_v52, %v3173_v52  ;;  %v3206_v33 = vmul.f32 %v3174_v60, %v3174_v60  ;;  %v3207_v58 = vmul.f32 %v3175_v23, %v3175_v23  ;;  %v3208_v13 = vmul.f32 %v3176_v25, %v3176_v25 }
 0x353   : > { %v3232_v27 = vadd.f32 %v3202_v4, %v3200_v16  ;;  %v3253_v34 = vadd.f32 %v3203_v7, %v3201_v45  ;;  %v3209_v30 = vmul.f32 %v3177_v41, %v3177_v41  ;;  %v3210_v8 = vmul.f32 %v3178_v57, %v3178_v57 }
 0x354   : > { %v3211_v55 = vmul.f32 %v3179_v22, %v3179_v22  ;;  %v3212_v28 = vmul.f32 %v3180_v62, %v3180_v62  ;;  %v3213_v46 = vmul.f32 %v3181_v43, %v3181_v43  ;;  %v3214_v24 = vmul.f32 %v3182_v0, %v3182_v0 }
 0x355   : > { %v3233_v6 = vadd.f32 %v3232_v27, %v3204_v20  ;;  %v3254_v48 = vadd.f32 %v3253_v34, %v3205_v19  ;;  %v3215_v42 = vmul.f32 %v3183_v54, %v3183_v54  ;;  %v3216_v47 = vmul.f32 %v3184_v37, %v3184_v37 }
 0x356   : > { %v3217_v61 = vmul.f32 %v3185_v15, %v3185_v15  ;;  %v3218_v52 = vmul.f32 %v3186_v10, %v3186_v10  ;;  %v3219_v60 = vmul.f32 %v3187_v40, %v3187_v40  ;;  %v3220_v25 = vmul.f32 %v3188_v3, %v3188_v3 }
 0x357   : > { %v3234_v32 = vadd.f32 %v3233_v6, %v3206_v33  ;;  %v3255_v29 = vadd.f32 %v3254_v48, %v3207_v58  ;;  %v3221_v51 = vmul.f32 %v3189_v21, %v3189_v21  ;;  %v3222_v22 = vmul.f32 %v3190_v56, %v3190_v56 }
 0x358   : > { %v3223_v62 = vmul.f32 %v3191_v50, %v3191_v50  ;;  %v3224_v0 = vmul.f32 %v3192_v18, %v3192_v18  ;;  %v3225_v54 = vmul.f32 %v3193_v49, %v3193_v49  ;;  %v3226_v15 = vmul.f32 %v3194_v9, %v3194_v9 }
 0x359   : > { %v3235_v11 = vadd.f32 %v3234_v32, %v3208_v13  ;;  %v3256_v17 = vadd.f32 %v3255_v29, %v3209_v30  ;;  %v3227_v45 = vmul.f32 %v3195_v14, %v3195_v14  ;;  %v3228_v4 = vmul.f32 %v3196_v39, %v3196_v39 }
 0x35a   : > { %v3229_v3 = vmul.f32 %v3197_v38, %v3197_v38  ;;  %v3230_v20 = vmul.f32 %v3198_v63, %v3198_v63  ;;  %v3231_v56 = vmul.f32 %v3199_v31, %v3199_v31 }
 0x35b   : > { %v3236_v2 = vadd.f32 %v3235_v11, %v3210_v8  ;;  %v3257_v59 = vadd.f32 %v3256_v17, %v3211_v55 }
 0x35d   : > { %v3237_v44 = vadd.f32 %v3236_v2, %v3212_v28  ;;  %v3258_v1 = vadd.f32 %v3257_v59, %v3213_v46 }
 0x35f   : > { %v3238_v36 = vadd.f32 %v3237_v44, %v3214_v24  ;;  %v3259_v26 = vadd.f32 %v3258_v1, %v3215_v42 }
 0x361   : > { %v3239_v35 = vadd.f32 %v3238_v36, %v3216_v47  ;;  %v3260_v23 = vadd.f32 %v3259_v26, %v3217_v61 }
 0x363   : > { %v3240_v41 = vadd.f32 %v3239_v35, %v3218_v52  ;;  %v3261_v57 = vadd.f32 %v3260_v23, %v3219_v60 }
 0x365   : > { %v3241_v43 = vadd.f32 %v3240_v41, %v3220_v25  ;;  %v3262_v53 = vadd.f32 %v3261_v57, %v3221_v51 }
 0x367   : > { %v3242_v16 = vadd.f32 %v3241_v43, %v3222_v22  ;;  %v3263_v37 = vadd.f32 %v3262_v53, %v3223_v62 }
 0x369   : > { %v3243_v10 = vadd.f32 %v3242_v16, %v3224_v0  ;;  %v3264_v40 = vadd.f32 %v3263_v37, %v3225_v54 }
 0x36b   : > { %v3244_v21 = vadd.f32 %v3243_v10, %v3226_v15  ;;  %v3265_v7 = vadd.f32 %v3264_v40, %v3227_v45 }
 0x36d   : > { %v3245_v50 = vadd.f32 %v3244_v21, %v3228_v4  ;;  %v3266_v19 = vadd.f32 %v3265_v7, %v3229_v3 }
 0x36f   : > { %v3246_v27 = vadd.f32 %v3245_v50, %v3230_v20  ;;  %v3267_v18 = vadd.f32 %v3266_v19, %v3231_v56 }
 0x371   : > { %v3247_v49 = vrot.slane %v3246_v27, 4  ;;  %v3268_v34 = vrot.slane %v3267_v18, 4 }
 0x373   : > { %v3248_v33 = vadd.f32 %v3247_v49, %v3246_v27  ;;  %v3269_v9 = vadd.f32 %v3268_v34, %v3267_v18 }
 0x375   : > { %v3249_v14 = vrot.slane %v3248_v33, 2  ;;  %v3270_v39 = vrot.slane %v3269_v9, 2 }
 0x377   : > { %v3250_v58 = vadd.f32 %v3249_v14, %v3248_v33  ;;  %v3271_v38 = vadd.f32 %v3270_v39, %v3269_v9 }
 0x379   : > { %v3251_v6 = vrot.slane %v3250_v58, 1  ;;  %v3272_v63 = vrot.slane %v3271_v38, 1 }
 0x37b   : > { %v3252_v31 = vadd.f32 %v3251_v6, %v3250_v58  ;;  %v3273_v48 = vadd.f32 %v3272_v63, %v3271_v38 }
 0x37d   : > { %v3275_v13 = vsel %vm1177_vm3, %v7125_v5, %v3252_v31  ;;  %v3276_v30 = vsel %vm1177_vm3, %v7127_v12, %v3273_v48 }
 0x37e   : > { %v3279_v32 = vrot.slane %v3276_v30, 6 }
 0x380   : > { %v3281_v29 = vsel %vm3280_vm11, %v3275_v13, %v3279_v32 }
 0x381   : > { %3283 = vst [vmem:[%s524_s28] sm:$0xf] %v3281_v29 }
 0x382 PF: > { %s19_s9 = sadd.s32 1, %s4602_s9   ;;  %s7371_s27 = smov %s4594_s29 }
 0x383   : > { %p16_p12 = scmp.ge.s32.totalorder %s19_s9, 6   ;;  %s7372_s28 = smov %s4598_s30 }
 0x384   : > { %s7373_s29 = smov %s7376_s10  ;;  %s7374_s30 = smov %s7380_s11 }
 0x385   :  { %18 = sbr.rel (!%p16_p12) target bundleno = 4 (0x4), region = 104 }

// kernel: vae_residual_block.5
= control target key start
LH: loop header
LB: loop body
LE: loop exit
PB: predicated region body
PF: predicated region fallthrough
CT: control target
= control target key end

     0   :  { %s13222_s0 = inlined_call_operand.vmem [shape: bf16[2,16,16,256], index: 0, kind: input, shape index: {}, may-alias: {0,1,2}]   ;;  %s13223_s1 = inlined_call_operand.vmem [shape: bf16[2,16,16,256], index: 1, kind: input, shape index: {}, may-alias: {0,1,2}]   ;;  %s13224_s2 = inlined_call_operand.vmem [shape: bf16[2,16,16,256], index: 2, kind: input, shape index: {}, may-alias: {0,1,2}]   ;;  %s13225_s3 = inlined_call_operand.vmem [shape: f32[2,1,256], index: 3, kind: input, shape index: {}]   ;;  %s13226_s4 = inlined_call_operand.vmem [shape: f32[2,1,256], index: 4, kind: input, shape index: {}]   ;;  %s13227_s5 = inlined_call_operand.vmem [shape: bf16[3,768,256], index: 5, kind: input, shape index: {}]   ;;  %s13228_s6 = inlined_call_operand.vmem [shape: f32[1,256], index: 6, kind: input, shape index: {}]   ;;  %s13229_s7 = inlined_call_operand.vmem [shape: bf16[2,16,16,128], index: 7, kind: input, shape index: {}]   ;;  %s13230_s8 = inlined_call_operand.vmem [shape: bf16[128,256], index: 8, kind: input, shape index: {}]   ;;  %s13231_s9 = inlined_call_operand.vmem [shape: f32[1,256], index: 9, kind: input, shape index: {}]   ;;  %s13232_s10 = inlined_call_operand.hbm [shape: f32[2,16,16,256], index: 10, kind: output, shape index: {}]  }
   0x1   :  { %13423 = sst [smem:[#allocation74_spill]] %s13225_s3 }
   0x2   :  { %13424 = sst [smem:[#allocation75_spill]] %s13232_s10 }
   0x3   :  { %15 = vsyncpa [#allocation3], 0 }
   0x4   :  { %17 = vsyncpa [#allocation3 + $0x1], 0  ;;  %s8302_s13 = smov 0   ;;  %s8304_s14 = smov 0  }
   0x5   :  { %s8306_s15 = smov 0   ;;  %s8308_s16 = smov 0  }
   0x6   :  { %s8310_s17 = smov 0   ;;  %s8312_s18 = smov 0  }
   0x7   :  { %s8314_s19 = smov 0   ;;  %s8316_s20 = smov 0  }
   0x8 LB: > { %13425 = sst [smem:[#allocation5_spill]] %s8215_s13  ;;  %s6059_s21 = sadd.s32 4294967295, %s8243_s20   ;;  %s8243_s20 = sphi %s8316_s20, %s23_s20   ;;  %s8239_s19 = sphi %s8314_s19, %s13882_s19   ;;  %s8235_s18 = sphi %s8312_s18, %s13881_s18   ;;  %s8231_s17 = sphi %s8310_s17, %s13885_s17   ;;  %s8227_s16 = sphi %s8308_s16, %s13879_s16   ;;  %s8223_s15 = sphi %s8306_s15, %s13878_s15   ;;  %s8219_s14 = sphi %s8304_s14, %s13884_s14   ;;  %s8215_s13 = sphi %s8302_s13, %s13883_s13  }
   0x9   : > { %13426 = sst [smem:[#allocation6_spill]] %s8223_s15  ;;  %s6060_s22 = sadd.s32 4294967294, %s8243_s20  }
   0xa   : > { %13427 = sst [smem:[#allocation7_spill]] %s8235_s18  ;;  %s32_s23 = sadd.s32 1, %s8235_s18 }
   0xb   : > { %13428 = sst [smem:[#allocation8_spill]] %s8239_s19  ;;  %p33_p0 = scmp.ge.s32.totalorder %s32_s23, 2 }
   0xc   : > { %13429 = sst [smem:[#allocation9_spill]] %s8243_s20  ;;  %s35_s24 = sadd.s32 1, %s8239_s19 }
   0xd   : > { %p318_p1 = scmp.ne.s32.totalorder %s8223_s15, %s8219_s14  ;;  %p319_p2 = scmp.eq.s32.totalorder %s6059_s21, 3 }
   0xe   : > { %s13887_s23 = smov (%p33_p0, %s32_s23), 0  ;;  %s13889_s24 = smov (!%p33_p0, %s35_s24), %s8239_s19 }
   0xf   : > { %13430 = sst [smem:[#allocation10_spill]] %s13887_s23  ;;  %s304_s25 = ssub.s32 %s8235_s18, %s13887_s23 }
  0x10   : > { %p8353_p3 = por %p319_p2, %p318_p1  ;;  %p37_p4 = scmp.ge.s32.totalorder %s13889_s24, 2 }
  0x11   : > { %p324_p5 = scmp.ne.s32.totalorder %s8219_s14, %s8215_s13  ;;  %p325_p6 = scmp.eq.s32.totalorder %s6060_s22, 3 }
  0x12   : > { %s13431_s26 = scalar_select %p8353_p3, 1, 0 }
  0x13   : > { %p6069_p7 = scmp.ge.s32.totalorder %s8243_s20, 1  ;;  %s13891_s24 = smov (%p37_p4, %s13889_s24), 0 }
  0x14   : > { %13432 = sst [smem:[#allocation11_spill]] %s13431_s26  ;;  %p8362_p8 = por %p325_p6, %p324_p5 }
  0x15   : > { %13433 = sst [smem:[#allocation12_spill]] %s13891_s24  ;;  %p437_p9 = scmp.lt.s32.totalorder %s8243_s20, 5 }
  0x16   : > { %s13434_s27 = scalar_select %p8362_p8, 1, 0 }
  0x17   : > { %s303_s28 = ssub.s32 %s8239_s19, %s13891_s24  ;;  %s308_s29 = sadd.s32 1, %s8223_s15 }
  0x18   : > { %13435 = sst [smem:[#allocation13_spill]] %s13434_s27  ;;  %s305_s30 = sor.u32 %s304_s25, %s303_s28 }
  0x19   : > { %p438_p10 = pnand %p6069_p7, %p437_p9  ;;  %p306_p11 = scmp.eq.s32.totalorder %s305_s30, 0 }
  0x1b   : > { %s8371_s11 = scalar_select %p306_p11, %s8223_s15, %s308_s29  }
  0x1c   : > { %441 = sbr.rel (%p438_p10) target bundleno = 1577 (0x629), region = 60 }
  0x1d   : > { %13436 = sst [smem:[#allocation14_spill]] %s8371_s11 }
  0x21   : > { %v6292_v0 = vld [vmem:[%s13227_s5 + $0x370] sm:$0xf]  ;;  %v7698_v1 = vld [vmem:[%s13227_s5 + $0x374] sm:$0xf0]  ;;  %v6284_v5 = vld [vmem:[%s13227_s5 + $0x360] sm:$0xf] }
  0x22   : > { %v6356_v2 = vld [vmem:[%s13227_s5 + $0x3f0] sm:$0xf]  ;;  %v6293_v3 = vor.u32 %v7698_v1, %v6292_v0  ;;  %v7714_v4 = vld [vmem:[%s13227_s5 + $0x3f4] sm:$0xf0]  ;;  %v7696_v6 = vld [vmem:[%s13227_s5 + $0x364] sm:$0xf0] }
  0x23   : > { %v6357_v7 = vor.u32 %v7714_v4, %v6356_v2  ;;  %v6348_v8 = vld [vmem:[%s13227_s5 + $0x3e0] sm:$0xf]  ;;  %v7712_v9 = vld [vmem:[%s13227_s5 + $0x3e4] sm:$0xf0]  ;;  %v6285_v10 = vor.u32 %v7696_v6, %v6284_v5  ;;  %v6276_v12 = vld [vmem:[%s13227_s5 + $0x350] sm:$0xf] }
  0x24   : > { %2618 = vmatpush.bf16.msra.mxu0 %v6293_v3  ;;  %7900 = vmatpush.bf16.msra.mxu2 %v6293_v3  ;;  %v6349_v11 = vor.u32 %v7712_v9, %v6348_v8  ;;  %v7694_v13 = vld [vmem:[%s13227_s5 + $0x354] sm:$0xf0]  ;;  %v6340_v14 = vld [vmem:[%s13227_s5 + $0x3d0] sm:$0xf]  ;;  %v6268_v18 = vld [vmem:[%s13227_s5 + $0x340] sm:$0xf] }
  0x25   : > { %7908 = vmatpush.bf16.msra.mxu3 %v6357_v7  ;;  %2667 = vmatpush.bf16.msra.mxu1 %v6357_v7  ;;  %v7710_v15 = vld [vmem:[%s13227_s5 + $0x3d4] sm:$0xf0]  ;;  %v6277_v16 = vor.u32 %v7694_v13, %v6276_v12  ;;  %v7692_v19 = vld [vmem:[%s13227_s5 + $0x344] sm:$0xf0]  ;;  %v6332_v20 = vld [vmem:[%s13227_s5 + $0x3c0] sm:$0xf] }
  0x26   : > { %v6341_v17 = vor.u32 %v7710_v15, %v6340_v14  ;;  %v7708_v21 = vld [vmem:[%s13227_s5 + $0x3c4] sm:$0xf0]  ;;  %s8422_s30 = sshll.u32 %s8227_s16, 3  ;;  %p528_p12 = scmp.lt.s32.totalorder %s8231_s17, 1  ;;  %v6269_v22 = vor.u32 %v7692_v19, %v6268_v18  ;;  %v6260_v24 = vld [vmem:[%s13227_s5 + $0x330] sm:$0xf] }
  0x27   : > { %p544_p13 = scmp.lt.s32.totalorder %s8422_s30, 15  ;;  %v6333_v23 = vor.u32 %v7708_v21, %v6332_v20  ;;  %v7690_v25 = vld [vmem:[%s13227_s5 + $0x334] sm:$0xf0]  ;;  %v6324_v26 = vld [vmem:[%s13227_s5 + $0x3b0] sm:$0xf]  ;;  %s13437_s3 = sld [smem:[#allocation74_spill]] }
  0x28   : > { %2619 = vmatpush.bf16.msra.mxu0 %v6285_v10  ;;  %7901 = vmatpush.bf16.msra.mxu2 %v6285_v10  ;;  %s8433_s18 = scalar_select %p528_p12, %s8231_s17, 1  ;;  %v7706_v27 = vld [vmem:[%s13227_s5 + $0x3b4] sm:$0xf0]  ;;  %v6252_v28 = vld [vmem:[%s13227_s5 + $0x320] sm:$0xf]  ;;  %v6261_v30 = vor.u32 %v7690_v25, %v6260_v24 }
  0x29   : > { %7909 = vmatpush.bf16.msra.mxu3 %v6349_v11  ;;  %2668 = vmatpush.bf16.msra.mxu1 %v6349_v11  ;;  %s8442_s29 = scalar_select %p544_p13, %s8422_s30, 15  ;;  %v7688_v29 = vld [vmem:[%s13227_s5 + $0x324] sm:$0xf0]  ;;  %v6316_v31 = vld [vmem:[%s13227_s5 + $0x3a0] sm:$0xf]  ;;  %v6325_v33 = vor.u32 %v7706_v27, %v6324_v26 }
  0x2a   : > { %s8451_s19 = sshll.u32 %s8433_s18, 6  ;;  %s6092_s24 = sshll.u32 %s8433_s18, 1  ;;  %v7704_v32 = vld [vmem:[%s13227_s5 + $0x3a4] sm:$0xf0]  ;;  %v6244_v34 = vld [vmem:[%s13227_s5 + $0x310] sm:$0xf]  ;;  %v6253_v38 = vor.u32 %v7688_v29, %v6252_v28 }
  0x2b   : > { %s6082_s12 = sshll.u32 %s8442_s29, 2  ;;  %v7686_v35 = vld [vmem:[%s13227_s5 + $0x314] sm:$0xf0]  ;;  %s576_s28 = scalar_lea.vmem %s13226_s4, %s6092_s24  ;;  %v6308_v39 = vld [vmem:[%s13227_s5 + $0x390] sm:$0xf]  ;;  %v6317_v43 = vor.u32 %v7704_v32, %v6316_v31 }
  0x2c   : > { %2620 = vmatpush.bf16.msra.mxu0 %v6277_v16  ;;  %7902 = vmatpush.bf16.msra.mxu2 %v6277_v16  ;;  %s548_s22 = sadd.s32 %s6082_s12, %s8451_s19  ;;  %v611_v37 = vld [vmem:[%s576_s28] sm:$0x3]  ;;  %v7702_v40 = vld [vmem:[%s13227_s5 + $0x394] sm:$0xf0]  ;;  %v6245_v44 = vor.u32 %v7686_v35, %v6244_v34  ;;  %v7684_v3 = vld [vmem:[%s13227_s5 + $0x304] sm:$0xf0] }
  0x2d   : > { %7910 = vmatpush.bf16.msra.mxu3 %v6341_v17  ;;  %2669 = vmatpush.bf16.msra.mxu1 %v6341_v17  ;;  %s572_s21 = scalar_lea.vmem %s13437_s3, %s6092_s24  ;;  %s6084_s10 = sshll.u32 %s548_s22, 2  ;;  %v8491_v47 = vperm.slane %v611_v37, 0  ;;  %v8493_v48 = vperm.slane %v611_v37, 1  ;;  %v6309_v55 = vor.u32 %v7702_v40, %v6308_v39  ;;  %v6236_v2 = vld [vmem:[%s13227_s5 + $0x300] sm:$0xf] }
  0x2e   : > { %v610_v36 = vld [vmem:[%s572_s21] sm:$0x3]  ;;  %s8483_s26 = scalar_lea.vmem %s13223_s1, %s6084_s10  ;;  %v7700_v9 = vld [vmem:[%s13227_s5 + $0x384] sm:$0xf0]  ;;  %v6237_v15 = vor.u32 %v7684_v3, %v6236_v2  ;;  %s10452_s23 = sadd.s32 4294967295, %s8422_s30 }
  0x2f   : > { %v8485_v41 = vperm.slane %v610_v36, 0  ;;  %v8487_v42 = vperm.slane %v610_v36, 1  ;;  %v592_v45 = vld [vmem:[%s8483_s26] sm:$0xff]  ;;  %v593_v46 = vld [vmem:[%s8483_s26 + $0x8] sm:$0xff]  ;;  %13440 = vst [vmem:[#allocation17_spill] sm:$0xff] %v8491_v47  ;;  %v594_v21 = vld [vmem:[%s8483_s26 + $0x10] sm:$0xff] }
  0x30   : > { %2621 = vmatpush.bf16.msra.mxu0 %v6269_v22  ;;  %7903 = vmatpush.bf16.msra.mxu2 %v6269_v22  ;;  %13441 = vst [vmem:[#allocation18_spill] sm:$0xff] %v8493_v48  ;;  %v600_v49 = vld [vmem:[%s8483_s26 + $0x40] sm:$0xff]  ;;  %v823_v50 = vunpack.c.l.bf16 %v592_v45  ;;  %v824_v51 = vunpack.c.h.bf16 %v592_v45  ;;  %v825_v52 = vunpack.c.l.bf16 %v593_v46  ;;  %v826_v53 = vunpack.c.h.bf16 %v593_v46  ;;  %v601_v54 = vld [vmem:[%s8483_s26 + $0x48] sm:$0xff]  ;;  %v595_v22 = vld [vmem:[%s8483_s26 + $0x18] sm:$0xff]  ;;  %p526_p0 = scmp.gt.s32.totalorder %s10452_s23, 0  ;;  %p6073_p1 = scmp.lt.s32.totalorder %s10452_s23, 15 }
  0x31   : > { %7911 = vmatpush.bf16.msra.mxu3 %v6333_v23  ;;  %2670 = vmatpush.bf16.msra.mxu1 %v6333_v23  ;;  %13438 = vst [vmem:[#allocation15_spill] sm:$0xff] %v8485_v41  ;;  %v839_v56 = vunpack.c.l.bf16 %v600_v49  ;;  %v840_v57 = vunpack.c.h.bf16 %v600_v49  ;;  %v841_v58 = vunpack.c.l.bf16 %v601_v54  ;;  %v842_v7 = vunpack.c.h.bf16 %v601_v54  ;;  %v6300_v8 = vld [vmem:[%s13227_s5 + $0x380] sm:$0xf]  ;;  %p715_p2 = scmp.gt.s32.totalorder %s8227_s16, 0  ;;  %p815_p5 = scmp.lt.s32.totalorder %s8227_s16, 1 }
  0x32   : > { %13439 = vst [vmem:[#allocation16_spill] sm:$0xff] %v8487_v42  ;;  %v855_v59 = vmul.f32 %v823_v50, %v8485_v41  ;;  %v856_v60 = vmul.f32 %v824_v51, %v8487_v42  ;;  %v857_v61 = vmul.f32 %v825_v52, %v8485_v41  ;;  %v858_v62 = vmul.f32 %v826_v53, %v8487_v42  ;;  %s13893_s23 = smov (!%p526_p0, %s10452_s23), 0  ;;  %s6096_s22 = sshll.u32 %s8433_s18, 5 }
  0x33   : > { %v871_v63 = vmul.f32 %v839_v56, %v8485_v41  ;;  %v872_v0 = vmul.f32 %v840_v57, %v8487_v42  ;;  %v873_v1 = vmul.f32 %v841_v58, %v8485_v41  ;;  %v6301_v18 = vor.u32 %v7700_v9, %v6300_v8  ;;  %s13895_s23 = smov (!%p6073_p1, %s13893_s23), 15 }
  0x34   : > { %2622 = vmatpush.bf16.msra.mxu0 %v6261_v30  ;;  %7904 = vmatpush.bf16.msra.mxu2 %v6261_v30  ;;  %v8511_v4 = vadd.f32 %v855_v59, %v8491_v47  ;;  %v8514_v5 = vadd.f32 %v856_v60, %v8493_v48  ;;  %v8517_v6 = vadd.f32 %v857_v61, %v8491_v47  ;;  %v827_v23 = vunpack.c.l.bf16 %v594_v21  ;;  %s6078_s13 = sshll.u32 %s13895_s23, 2 }
  0x35   : > { %7912 = vmatpush.bf16.msra.mxu3 %v6325_v33  ;;  %2671 = vmatpush.bf16.msra.mxu1 %v6325_v33  ;;  %v8526_v10 = vadd.f32 %v858_v62, %v8493_v48  ;;  %v8532_v14 = vadd.f32 %v871_v63, %v8491_v47  ;;  %v8536_v17 = vadd.f32 %v872_v0, %v8493_v48  ;;  %v828_v24 = vunpack.c.h.bf16 %v594_v21  ;;  %s534_s10 = sadd.s32 %s8451_s19, %s6078_s13  ;;  %s6095_s13 = sshll.u32 %s8442_s29, 1 }
  0x36   : > { %v6106_v11 = vmul.f32 -1.442695, %v8511_v4  ;;  %v6107_v12 = vmul.f32 -1.442695, %v8514_v5  ;;  %v6108_v13 = vmul.f32 -1.442695, %v8517_v6  ;;  %v874_v19 = vmul.f32 %v842_v7, %v8487_v42 }
  0x37   : > { %v6109_v16 = vmul.f32 -1.442695, %v8526_v10  ;;  %v8540_v20 = vadd.f32 %v873_v1, %v8491_v47  ;;  %v6122_v25 = vmul.f32 -1.442695, %v8532_v14  ;;  %v6123_v26 = vmul.f32 -1.442695, %v8536_v17 }
  0x38   : > { %2623 = vmatpush.bf16.msra.mxu0 %v6253_v38  ;;  %7905 = vmatpush.bf16.msra.mxu2 %v6253_v38  ;;  %7989 = vpow2.f32 %v6106_v11  ;;  %v829_v27 = vunpack.c.l.bf16 %v595_v22  ;;  %v8547_v28 = vadd.f32 %v874_v19, %v8493_v48  ;;  %v830_v30 = vunpack.c.h.bf16 %v595_v22  ;;  %s6080_s24 = sshll.u32 %s534_s10, 2  ;;  %s7899_s10 = sshll.u32 %s8227_s16, 5 }
  0x39   : > { %7913 = vmatpush.bf16.msra.mxu3 %v6317_v43  ;;  %2672 = vmatpush.bf16.msra.mxu1 %v6317_v43  ;;  %7991 = vpow2.f32 %v6107_v12  ;;  %v6124_v29 = vmul.f32 -1.442695, %v8540_v20  ;;  %v859_v31 = vmul.f32 %v827_v23, %v8485_v41  ;;  %v860_v32 = vmul.f32 %v828_v24, %v8487_v42  ;;  %s536_s23 = scalar_lea.vmem %s13222_s0, %s6080_s24  ;;  %s7581_s24 = sshll.u32 %s8231_s17, 6 }
  0x3a   : > { %7993 = vpow2.f32 %v6108_v13  ;;  %v861_v36 = vmul.f32 %v829_v27, %v8485_v41  ;;  %v6125_v39 = vmul.f32 -1.442695, %v8547_v28  ;;  %v862_v40 = vmul.f32 %v830_v30, %v8487_v42  ;;  %s10692_s25 = scalar_select %p715_p2, 1, 0 }
  0x3b   : > { %7995 = vpow2.f32 %v6109_v16  ;;  %v8563_v45 = vadd.f32 %v859_v31, %v8491_v47  ;;  %v8566_v46 = vadd.f32 %v860_v32, %v8493_v48  ;;  %s5881_s12 = sadd.s32 %s7899_s10, %s7581_s24 }
  0x3c   : > { %2624 = vmatpush.bf16.msra.mxu0 %v6245_v44  ;;  %7906 = vmatpush.bf16.msra.mxu2 %v6245_v44  ;;  %7997 = vpow2.f32 %v6122_v25  ;;  %v8577_v54 = vadd.f32 %v861_v36, %v8491_v47  ;;  %v8582_v58 = vadd.f32 %v862_v40, %v8493_v48  ;;  %s717_s11 = scvt.s32.f32 %s10692_s25  ;;  %s553_s25 = sadd.s32 8, %s8422_s30 }
  0x3d   : > { %7914 = vmatpush.bf16.msra.mxu3 %v6309_v55  ;;  %2673 = vmatpush.bf16.msra.mxu1 %v6309_v55  ;;  %7999 = vpow2.f32 %v6123_v26  ;;  %v8588_v60 = vmul.f32 -1.442695, %v8563_v45  ;;  %p11912_p4 = scmp.lt.s32.totalorder %s553_s25, 15  ;;  %s584_s30 = sadd.s32 %s6096_s22, %s6095_s13 }
  0x3e   : > { %v7990_v33 = vpop.eup %7989  ;;  %8001 = vpow2.f32 %v6124_v29  ;;  %s6097_s15 = sshll.u32 %s584_s30, 2  ;;  %s7582_s21 = sshll.u32 %s5881_s12, 3 }
  0x3f   : > { %v7992_v34 = vpop.eup %7991  ;;  %v8552_v35 = vadd.f32 1.0, %v7990_v33  ;;  %s13897_s25 = smov (!%p11912_p4, %s553_s25), 15 }
  0x40   : > { %2625 = vmatpush.bf16.msra.mxu0 %v6237_v15  ;;  %7907 = vmatpush.bf16.msra.mxu2 %v6237_v15  ;;  %v7994_v37 = vpop.eup %7993  ;;  %v8555_v38 = vadd.f32 1.0, %v7992_v34  ;;  %s13899_s25 = smov (!%p11912_p4, %s13897_s25), 15 }
  0x41   : > { %7915 = vmatpush.bf16.msra.mxu3 %v6301_v18  ;;  %2674 = vmatpush.bf16.msra.mxu1 %v6301_v18  ;;  %v7996_v43 = vpop.eup %7995  ;;  %v8559_v44 = vadd.f32 1.0, %v7994_v37  ;;  %8003 = vrcp.f32 %v8552_v35  ;;  %v1056_v50 = vand.u32 2147483647, %v8552_v35  ;;  %v1058_v51 = vand.u32 2147483648, %v8552_v35 }
  0x42   : > { %v8568_v49 = vadd.f32 1.0, %v7996_v43  ;;  %8005 = vrcp.f32 %v8555_v38  ;;  %v1071_v52 = vand.u32 2147483647, %v8555_v38  ;;  %v1073_v53 = vand.u32 2147483648, %v8555_v38  ;;  %v7998_v55 = vpop.eup %7997 }
  0x43   : > { %8007 = vrcp.f32 %v8559_v44  ;;  %v1086_v56 = vand.u32 2147483647, %v8559_v44  ;;  %v1088_v57 = vand.u32 2147483648, %v8559_v44  ;;  %v8000_v59 = vpop.eup %7999  ;;  %vm1052_vm0 = vweird.f32 %v8552_v35 }
  0x44   : > { %8009 = vpow2.f32 %v6125_v39  ;;  %vm1067_vm1 = vweird.f32 %v8555_v38  ;;  %v8002_v61 = vpop.eup %8001  ;;  %vm8590_vm2 = vcmp.eq.f32.partialorder %v1056_v50, 8.507059e+37  ;;  %v1059_v63 = vor.u32 1.1754944e-38, %v1058_v51 }
  0x45   : > { %8011 = vrcp.f32 %v8568_v49  ;;  %v1101_v0 = vand.u32 2147483647, %v8568_v49  ;;  %v1103_v1 = vand.u32 2147483648, %v8568_v49  ;;  %vm8596_vm3 = vcmp.eq.f32.partialorder %v1071_v52, 8.507059e+37 }
  0x46   : > { %v1074_v7 = vor.u32 1.1754944e-38, %v1073_v53  ;;  %vm1082_vm4 = vweird.f32 %v8559_v44  ;;  %v8601_v8 = vadd.f32 1.0, %v7998_v55  ;;  %vm8604_vm5 = vcmp.eq.f32.partialorder %v1086_v56, 8.507059e+37 }
  0x47   : > { %v8004_v2 = vpop.eup %8003  ;;  %v1089_v13 = vor.u32 1.1754944e-38, %v1088_v57  ;;  %vm1097_vm6 = vweird.f32 %v8568_v49  ;;  %v1104_v18 = vor.u32 1.1754944e-38, %v1103_v1  ;;  %v8610_v19 = vadd.f32 1.0, %v8000_v59 }
  0x48   : > { %v8006_v9 = vpop.eup %8005  ;;  %v1048_v11 = vmul.f32 %v8004_v2, %v8552_v35  ;;  %vm1053_vm7 = vweird.f32 %v8004_v2  ;;  %vm8613_vm9 = vcmp.eq.f32.partialorder %v1101_v0, 8.507059e+37  ;;  %8013 = vrcp.f32 %v8601_v8 }
  0x49   : > { %v8008_v15 = vpop.eup %8007  ;;  %v1063_v16 = vmul.f32 %v8006_v9, %v8555_v38  ;;  %vm1068_vm8 = vweird.f32 %v8006_v9  ;;  %v8618_v27 = vadd.f32 1.0, %v8002_v61  ;;  %v1296_v29 = vand.u32 2147483647, %v8601_v8  ;;  %vm8626_vm11 = vmor %vm1052_vm0, %vm1053_vm7 }
  0x4a   : > { %v8010_v21 = vpop.eup %8009  ;;  %v1049_v22 = vsub.f32 1.0, %v1048_v11  ;;  %v1078_v23 = vmul.f32 %v8008_v15, %v8559_v44  ;;  %v1298_v30 = vand.u32 2147483648, %v8601_v8  ;;  %vm1083_vm10 = vweird.f32 %v8008_v15  ;;  %vm8637_vm13 = vmor %vm1067_vm1, %vm1068_vm8 }
  0x4b   : > { %v8012_v25 = vpop.eup %8011  ;;  %v1064_v26 = vsub.f32 1.0, %v1063_v16  ;;  %v8630_v37 = vadd.f32 1.0, %v8010_v21  ;;  %vm1292_vm12 = vweird.f32 %v8601_v8  ;;  %8015 = vrcp.f32 %v8610_v19  ;;  %vm8643_vm15 = vmor %vm1082_vm4, %vm1083_vm10 }
  0x4c   : > { %v1050_v31 = vmul.f32 %v8004_v2, %v1049_v22  ;;  %v1079_v32 = vsub.f32 1.0, %v1078_v23  ;;  %v1093_v33 = vmul.f32 %v8012_v25, %v8568_v49  ;;  %vm1098_vm14 = vweird.f32 %v8012_v25 }
  0x4d   : > { %v1065_v36 = vmul.f32 %v8006_v9, %v1064_v26  ;;  %vm8647_vm0 = vcmp.eq.f32.partialorder %v1296_v29, 8.507059e+37  ;;  %v1299_v53 = vor.u32 1.1754944e-38, %v1298_v30  ;;  %vm1307_vm1 = vweird.f32 %v8610_v19  ;;  %vm8662_vm4 = vmor %vm1097_vm6, %vm1098_vm14 }
  0x4e   : > { %v1051_v39 = vadd.f32 %v8004_v2, %v1050_v31  ;;  %v1080_v35 = vmul.f32 %v8008_v15, %v1079_v32  ;;  %v1094_v43 = vsub.f32 1.0, %v1093_v33  ;;  %8017 = vrcp.f32 %v8618_v27  ;;  %v8014_v38 = vpop.eup %8013  ;;  %v7730_v33 = vld [vmem:[%s13227_s5 + $0x474] sm:$0xf0] }
  0x4f   : > { %v1066_v50 = vadd.f32 %v8006_v9, %v1065_v36  ;;  %v1311_v44 = vand.u32 2147483647, %v8610_v19  ;;  %v1288_v1 = vmul.f32 %v8014_v38, %v8601_v8  ;;  %vm1819_vm6 = vcmask 1040384   ;;  %v6420_v8 = vld [vmem:[%s13227_s5 + $0x470] sm:$0xf] }
  0x50   : > { %v1055_v55 = vsel %vm8626_vm11, %v8004_v2, %v1051_v39  ;;  %v1081_v56 = vadd.f32 %v8008_v15, %v1080_v35  ;;  %v1095_v57 = vmul.f32 %v8012_v25, %v1094_v43  ;;  %v1313_v2 = vand.u32 2147483648, %v8610_v19 }
  0x51   : > { %v1060_v59 = vsel %vm8590_vm2, %v1059_v63, %v1055_v55  ;;  %v1070_v61 = vsel %vm8637_vm13, %v8006_v9, %v1066_v50  ;;  %v8016_v9 = vpop.eup %8015  ;;  %v1289_v22 = vsub.f32 1.0, %v1288_v1  ;;  %vm1293_vm2 = vweird.f32 %v8014_v38 }
  0x52   : > { %v1075_v11 = vsel %vm8596_vm3, %v1074_v7, %v1070_v61  ;;  %v1085_v62 = vsel %vm8643_vm15, %v8008_v15, %v1081_v56  ;;  %v1096_v63 = vadd.f32 %v8012_v25, %v1095_v57  ;;  %v1527_v16 = vmul.f32 %v1060_v59, %v8511_v4  ;;  %vm8686_vm8 = vmor %vm1292_vm12, %vm1293_vm2 }
  0x53   : > { %v1090_v49 = vsel %vm8604_vm5, %v1089_v13, %v1085_v62  ;;  %v1528_v21 = vmul.f32 %v1075_v11, %v8514_v5  ;;  %v1303_v7 = vmul.f32 %v8016_v9, %v8610_v19  ;;  %vm1322_vm3 = vweird.f32 %v8618_v27  ;;  %v7746_v11 = vld [vmem:[%s13227_s5 + $0x4f4] sm:$0xf0]  ;;  %v6412_v62 = vld [vmem:[%s13227_s5 + $0x460] sm:$0xf] }
  0x54   : > { %v1100_v23 = vsel %vm8662_vm4, %v8012_v25, %v1096_v63  ;;  %v1529_v3 = vmul.f32 %v1090_v49, %v8517_v6  ;;  %v8018_v15 = vpop.eup %8017  ;;  %v1290_v12 = vmul.f32 %v8014_v38, %v1289_v22  ;;  %vm1308_vm5 = vweird.f32 %v8016_v9  ;;  %v7728_v63 = vld [vmem:[%s13227_s5 + $0x464] sm:$0xf0]  ;;  %v6476_v22 = vld [vmem:[%s13227_s5 + $0x4e0] sm:$0xf] }
  0x55   : > { %v1105_v4 = vsel %vm8613_vm9, %v1104_v18, %v1100_v23  ;;  %v1561_v26 = vpack.c.bf16 %v1528_v21, %v1527_v16  ;;  %vm1820_vm7 = vsmask.f32 256  ;;  %v1304_v6 = vsub.f32 1.0, %v1303_v7  ;;  %vm8705_vm9 = vmor %vm1307_vm1, %vm1308_vm5  ;;  %v7744_v23 = vld [vmem:[%s13227_s5 + $0x4e4] sm:$0xf0] }
  0x56   : > { %v1530_v5 = vmul.f32 %v1105_v4, %v8526_v10  ;;  %v1318_v25 = vmul.f32 %v8018_v15, %v8618_v27  ;;  %vm1323_vm10 = vweird.f32 %v8018_v15  ;;  %v1291_v24 = vadd.f32 %v8014_v38, %v1290_v12  ;;  %vm8784_vm1 = vmand %vm1819_vm6, %vm1820_vm7 }
  0x57   : > { %v1603_v29 = vunpack.c.l.b16 %v1561_v26  ;;  %v1326_v18 = vand.u32 2147483647, %v8618_v27  ;;  %v1328_v30 = vand.u32 2147483648, %v8618_v27  ;;  %v1305_v10 = vmul.f32 %v8016_v9, %v1304_v6  ;;  %vm8722_vm13 = vmor %vm1322_vm3, %vm1323_vm10  ;;  %v6484_v27 = vld [vmem:[%s13227_s5 + $0x4f0] sm:$0xf] }
  0x58   : > { %v1562_v31 = vpack.c.bf16 %v1530_v5, %v1529_v3  ;;  %v1319_v32 = vsub.f32 1.0, %v1318_v25  ;;  %8019 = vrcp.f32 %v8630_v37  ;;  %v1295_v34 = vsel %vm8686_vm8, %v8014_v38, %v1291_v24  ;;  %v6612_v6 = vld [vmem:[%s13227_s5 + $0x5f0] sm:$0xf]  ;;  %v7778_v25 = vld [vmem:[%s13227_s5 + $0x5f4] sm:$0xf0] }
  0x59   : > { %vm8709_vm11 = vcmp.eq.f32.partialorder %v1311_v44, 8.507059e+37  ;;  %v1314_v40 = vor.u32 1.1754944e-38, %v1313_v2  ;;  %vm8713_vm12 = vcmp.eq.f32.partialorder %v1326_v18, 8.507059e+37  ;;  %v1300_v50 = vsel %vm8647_vm0, %v1299_v53, %v1295_v34  ;;  %v602_v34 = vld [vmem:[%s8483_s26 + $0x50] sm:$0xff] }
  0x5a   : > { %v1605_v43 = vunpack.c.l.b16 %v1562_v31  ;;  %v1306_v51 = vadd.f32 %v8016_v9, %v1305_v10  ;;  %v1320_v38 = vmul.f32 %v8018_v15, %v1319_v32  ;;  %v1329_v55 = vor.u32 1.1754944e-38, %v1328_v30 }
  0x5b   : > { %v1341_v56 = vand.u32 2147483647, %v8630_v37  ;;  %v1343_v57 = vand.u32 2147483648, %v8630_v37  ;;  %v6421_v44 = vor.u32 %v7730_v33, %v6420_v8  ;;  %v1604_v61 = vunpack.c.h.b16 %v1561_v26  ;;  %v7762_v26 = vld [vmem:[%s13227_s5 + $0x574] sm:$0xf0] }
  0x5c   : > { %v8728_v59 = vpack.c.b16 %v1605_v43, %v1603_v29  ;;  %v1310_v52 = vsel %vm8705_vm9, %v8016_v9, %v1306_v51  ;;  %v1321_v53 = vadd.f32 %v8018_v15, %v1320_v38  ;;  %vm1337_vm14 = vweird.f32 %v8630_v37  ;;  %v603_v43 = vld [vmem:[%s8483_s26 + $0x58] sm:$0xff] }
  0x5d   : > { %v1315_v0 = vsel %vm8709_vm11, %v1314_v40, %v1310_v52  ;;  %v1543_v1 = vmul.f32 %v1300_v50, %v8532_v14  ;;  %2716 = vmatpush.bf16.msrb.mxu2 %v6421_v44  ;;  %v1606_v2 = vunpack.c.h.b16 %v1562_v31  ;;  %vm8762_vm15 = vcmp.eq.f32.partialorder %v1341_v56, 8.507059e+37 }
  0x5e   : > { %13470 = vst [vmem:[#allocation19_spill] sm:$0xff] %v8728_v59  ;;  %v8020_v16 = vpop.eup %8019  ;;  %v13259_v9 = vshrl.u32 %v8728_v59, 16  ;;  %v13268_v49 = vshll.u32 %v8728_v59, 16  ;;  %v1325_v14 = vsel %vm8722_vm13, %v8018_v15, %v1321_v53  ;;  %v1544_v21 = vmul.f32 %v1315_v0, %v8536_v17  ;;  %v6548_v17 = vld [vmem:[%s13227_s5 + $0x570] sm:$0xf] }
  0x5f   : > { %v1330_v3 = vsel %vm8713_vm12, %v1329_v55, %v1325_v14  ;;  %v1333_v7 = vmul.f32 %v8020_v16, %v8630_v37  ;;  %v8766_v15 = vpack.c.b16 %v1606_v2, %v1604_v61  ;;  %vm1338_vm0 = vweird.f32 %v8020_v16  ;;  %v8830_v2 = vld [vmem:[%s8483_s26 + $0x20] sm:$0xff] }
  0x60   : > { %v1676_v12 = vrot.slane %v13259_v9, 7  ;;  %v1344_v5 = vor.u32 1.1754944e-38, %v1343_v57  ;;  %v6485_v13 = vor.u32 %v7746_v11, %v6484_v27  ;;  %v13474_v29 = vmov 0  ;;  %vm8806_vm4 = vmor %vm1337_vm14, %vm1338_vm0 }
  0x61   : > { %13473 = vst [vmem:[#allocation20_spill] sm:$0xff] %v8766_v15  ;;  %v13475_v29 = vsel %vm8784_vm1, 4294967295, %v13474_v29  ;;  %v1334_v24 = vsub.f32 1.0, %v1333_v7  ;;  %v13257_v18 = vshrl.u32 %v8766_v15, 16  ;;  %v13258_v30 = vshll.u32 %v8766_v15, 16 }
  0x62   : > { %13476 = vst [vmem:[#allocation21_spill] sm:$0xff] %v13475_v29  ;;  %v6413_v31 = vor.u32 %v7728_v63, %v6412_v62  ;;  %v1679_v10 = vor.u32 %v13268_v49, %v1676_v12  ;;  %v1545_v32 = vmul.f32 %v1330_v3, %v8540_v20  ;;  %v8793_v8 = vpack.c.bf16 %v1544_v21, %v1543_v1  ;;  %v8837_v63 = vld [vmem:[%s8483_s26 + $0x28] sm:$0xff] }
  0x63   : > { %2765 = vmatpush.bf16.msrb.mxu3 %v6485_v13  ;;  %v6477_v33 = vor.u32 %v7744_v23, %v6476_v22  ;;  %v1335_v36 = vmul.f32 %v8020_v16, %v1334_v24  ;;  %v1683_v39 = vrot.slane %v13257_v18, 7  ;;  %v6549_v40 = vor.u32 %v7762_v26, %v6548_v17 }
  0x64   : > { %2717 = vmatpush.bf16.msrb.mxu2 %v6413_v31  ;;  %v6613_v35 = vor.u32 %v7778_v25, %v6612_v6  ;;  %v8801_v50 = vsel %vm8784_vm1, 0, %v1679_v10  ;;  %8021 = vpow2.f32 %v8588_v60  ;;  %v6111_v51 = vmul.f32 -1.442695, %v8566_v46 }
  0x65   : > { %13477 = vst [vmem:[#allocation22_spill] sm:$0xff] %v8801_v50  ;;  %v6112_v38 = vmul.f32 -1.442695, %v8577_v54  ;;  %2626 = vmatmul.bf16.vlgmr.msra.gmra.mxu0 %v8801_v50  ;;  %v1336_v19 = vadd.f32 %v8020_v16, %v1335_v36  ;;  %v1686_v55 = vor.u32 %v13258_v30, %v1683_v39  ;;  %v6113_v56 = vmul.f32 -1.442695, %v8582_v58 }
  0x66   : > { %2863 = vmatpush.bf16.msrb.mxu1 %v6613_v35  ;;  %v843_v37 = vunpack.c.l.bf16 %v602_v34  ;;  %2814 = vmatpush.bf16.msrb.mxu0 %v6549_v40  ;;  %8023 = vpow2.f32 %v6111_v51  ;;  %v844_v60 = vunpack.c.h.bf16 %v602_v34  ;;  %v845_v57 = vunpack.c.l.bf16 %v603_v43 }
  0x67   : > { %2766 = vmatpush.bf16.msrb.mxu3 %v6477_v33  ;;  %v846_v44 = vunpack.c.h.bf16 %v603_v43  ;;  %v1340_v52 = vsel %vm8806_vm4, %v8020_v16, %v1336_v19  ;;  %v8821_v53 = vsel %vm8784_vm1, 0, %v1686_v55  ;;  %8025 = vpow2.f32 %v6112_v38 }
  0x68   : > { %13480 = vst [vmem:[#allocation23_spill] sm:$0xff] %v8821_v53  ;;  %v875_v61 = vmul.f32 %v843_v37, %v8485_v41  ;;  %v1345_v27 = vsel %vm8762_vm15, %v1344_v5, %v1340_v52  ;;  %2675 = vmatmul.bf16.vlgmr.msra.gmra.mxu1 %v8821_v53  ;;  %8027 = vpow2.f32 %v6113_v56  ;;  %v876_v0 = vmul.f32 %v844_v60, %v8487_v42 }
  0x69   : > { %v877_v1 = vmul.f32 %v845_v57, %v8485_v41  ;;  %v1546_v11 = vmul.f32 %v1345_v27, %v8547_v28  ;;  %v1619_v14 = vunpack.c.l.b16 %v8793_v8  ;;  %v878_v21 = vmul.f32 %v846_v44, %v8487_v42 }
  0x6a   : > { %v8834_v62 = vadd.f32 %v875_v61, %v8491_v47  ;;  %v8022_v16 = vpop.eup %8021  ;;  %v8842_v22 = vadd.f32 %v876_v0, %v8493_v48  ;;  %v1620_v7 = vunpack.c.h.b16 %v8793_v8  ;;  %v831_v4 = vunpack.c.l.bf16 %v8830_v2 }
  0x6b   : > { %v8845_v23 = vadd.f32 %v877_v1, %v8491_v47  ;;  %v1570_v3 = vpack.c.bf16 %v1546_v11, %v1545_v32  ;;  %v8848_v28 = vadd.f32 1.0, %v8022_v16  ;;  %v832_v5 = vunpack.c.h.bf16 %v8830_v2 }
  0x6c   : > { %v8024_v17 = vpop.eup %8023  ;;  %v6126_v26 = vmul.f32 -1.442695, %v8834_v62  ;;  %v8853_v12 = vmul.f32 -1.442695, %v8842_v22  ;;  %v833_v13 = vunpack.c.l.bf16 %v8837_v63  ;;  %v8864_v33 = vadd.f32 %v878_v21, %v8493_v48 }
  0x6d   : > { %v8026_v6 = vpop.eup %8025  ;;  %v1621_v25 = vunpack.c.l.b16 %v1570_v3  ;;  %v1622_v24 = vunpack.c.h.b16 %v1570_v3  ;;  %v8857_v31 = vadd.f32 1.0, %v8024_v17  ;;  %8029 = vrcp.f32 %v8848_v28 }
  0x6e   : > { %v8028_v10 = vpop.eup %8027  ;;  %v8860_v32 = vadd.f32 1.0, %v8026_v6  ;;  %v1116_v8 = vand.u32 2147483647, %v8848_v28  ;;  %v6128_v34 = vmul.f32 -1.442695, %v8845_v23  ;;  %v1118_v40 = vand.u32 2147483648, %v8848_v28 }
  0x6f   : > { %v8867_v36 = vpack.c.b16 %v1621_v25, %v1619_v14  ;;  %v8869_v39 = vpack.c.b16 %v1622_v24, %v1620_v7  ;;  %8031 = vrcp.f32 %v8857_v31  ;;  %v8873_v35 = vadd.f32 1.0, %v8028_v10 }
  0x70   : > { %v1131_v43 = vand.u32 2147483647, %v8857_v31  ;;  %v834_v20 = vunpack.c.h.bf16 %v8837_v63  ;;  %v8878_v51 = vmul.f32 %v831_v4, %v8485_v41  ;;  %vm1112_vm2 = vweird.f32 %v8848_v28 }
  0x71   : > { %13481 = vst [vmem:[#allocation24_spill] sm:$0xff] %v8867_v36  ;;  %v13251_v38 = vshrl.u32 %v8867_v36, 16  ;;  %v13252_v19 = vshll.u32 %v8867_v36, 16  ;;  %v13245_v55 = vshrl.u32 %v8869_v39, 16  ;;  %v13246_v56 = vshll.u32 %v8869_v39, 16 }
  0x72   : > { %13482 = vst [vmem:[#allocation25_spill] sm:$0xff] %v8869_v39  ;;  %vm8885_vm3 = vcmp.eq.f32.partialorder %v1116_v8, 8.507059e+37  ;;  %v1133_v60 = vand.u32 2147483648, %v8857_v31  ;;  %8033 = vrcp.f32 %v8860_v32  ;;  %v1119_v61 = vor.u32 1.1754944e-38, %v1118_v40 }
  0x73   : > { %v8030_v57 = vpop.eup %8029  ;;  %v1732_v44 = vrot.slane %v13251_v38, 7  ;;  %v1739_v52 = vrot.slane %v13245_v55, 7  ;;  %v1146_v27 = vand.u32 2147483647, %v8860_v32  ;;  %vm1127_vm5 = vweird.f32 %v8857_v31 }
  0x74   : > { %v1108_v0 = vmul.f32 %v8030_v57, %v8848_v28  ;;  %vm8898_vm6 = vcmp.eq.f32.partialorder %v1131_v43, 8.507059e+37  ;;  %8035 = vrcp.f32 %v8873_v35  ;;  %vm1142_vm7 = vweird.f32 %v8860_v32 }
  0x75   : > { %v8032_v11 = vpop.eup %8031  ;;  %v1735_v16 = vor.u32 %v13252_v19, %v1732_v44  ;;  %v1742_v14 = vor.u32 %v13246_v56, %v1739_v52  ;;  %v1148_v21 = vand.u32 2147483648, %v8860_v32  ;;  %vm1113_vm8 = vweird.f32 %v8030_v57  ;;  %v7740_v56 = vld [vmem:[%s13227_s5 + $0x4c4] sm:$0xf0] }
  0x76   : > { %v1109_v3 = vsub.f32 1.0, %v1108_v0  ;;  %v1123_v7 = vmul.f32 %v8032_v11, %v8857_v31  ;;  %v1134_v4 = vor.u32 1.1754944e-38, %v1133_v60  ;;  %vm1128_vm10 = vweird.f32 %v8032_v11  ;;  %vm8929_vm11 = vmor %vm1112_vm2, %vm1113_vm8 }
  0x77   : > { %v8912_v17 = vsel %vm8784_vm1, 0, %v1735_v16  ;;  %v8916_v6 = vsel %vm8784_vm1, 0, %v1742_v14  ;;  %vm8918_vm9 = vcmp.eq.f32.partialorder %v1146_v27, 8.507059e+37  ;;  %v1161_v24 = vand.u32 2147483647, %v8873_v35  ;;  %vm8940_vm14 = vmor %vm1127_vm5, %vm1128_vm10 }
  0x78   : > { %13487 = vst [vmem:[#allocation26_spill] sm:$0xff] %v8912_v17  ;;  %v8034_v10 = vpop.eup %8033  ;;  %2646 = vmatmul.bf16.vlgmr.msra.gmra.mxu2 %v8912_v17  ;;  %2695 = vmatmul.bf16.vlgmr.msra.gmra.mxu3 %v8916_v6  ;;  %v1110_v8 = vmul.f32 %v8030_v57, %v1109_v3  ;;  %v1124_v40 = vsub.f32 1.0, %v1123_v7  ;;  %8037 = vpow2.f32 %v6126_v26  ;;  %v6129_v43 = vmul.f32 -1.442695, %v8864_v33 }
  0x79   : > { %13488 = vst [vmem:[#allocation27_spill] sm:$0xff] %v8916_v6  ;;  %v1138_v44 = vmul.f32 %v8034_v10, %v8860_v32  ;;  %v1149_v52 = vor.u32 1.1754944e-38, %v1148_v21  ;;  %vm1157_vm12 = vweird.f32 %v8873_v35  ;;  %v1163_v27 = vand.u32 2147483648, %v8873_v35 }
  0x7a   : > { %v8036_v0 = vpop.eup %8035  ;;  %v1111_v16 = vadd.f32 %v8030_v57, %v1110_v8  ;;  %v1125_v14 = vmul.f32 %v8032_v11, %v1124_v40  ;;  %vm1143_vm13 = vweird.f32 %v8034_v10  ;;  %8039 = vpow2.f32 %v8853_v12 }
  0x7b   : > { %v1139_v26 = vsub.f32 1.0, %v1138_v44  ;;  %v1153_v21 = vmul.f32 %v8036_v0, %v8873_v35  ;;  %vm8945_vm15 = vcmp.eq.f32.partialorder %v1161_v24, 8.507059e+37  ;;  %8041 = vpow2.f32 %v6128_v34  ;;  %vm8961_vm4 = vmor %vm1142_vm7, %vm1143_vm13 }
  0x7c   : > { %v1115_v7 = vsel %vm8929_vm11, %v8030_v57, %v1111_v16  ;;  %v1126_v8 = vadd.f32 %v8032_v11, %v1125_v14  ;;  %8043 = vpow2.f32 %v6129_v43  ;;  %v864_v12 = vmul.f32 %v832_v5, %v8487_v42 }
  0x7d   : > { %v1120_v31 = vsel %vm8885_vm3, %v1119_v61, %v1115_v7  ;;  %v1140_v40 = vmul.f32 %v8034_v10, %v1139_v26  ;;  %v1154_v44 = vsub.f32 1.0, %v1153_v21  ;;  %vm1158_vm0 = vweird.f32 %v8036_v0 }
  0x7e   : > { %v8038_v24 = vpop.eup %8037  ;;  %v1130_v55 = vsel %vm8940_vm14, %v8032_v11, %v1126_v8  ;;  %v1531_v2 = vmul.f32 %v1120_v31, %v8563_v45  ;;  %v865_v5 = vmul.f32 %v833_v13, %v8485_v41  ;;  %v866_v37 = vmul.f32 %v834_v20, %v8487_v42  ;;  %vm8978_vm2 = vmor %vm1157_vm12, %vm1158_vm0 }
  0x7f   : > { %v1135_v57 = vsel %vm8898_vm6, %v1134_v4, %v1130_v55  ;;  %v1141_v61 = vadd.f32 %v8034_v10, %v1140_v40  ;;  %v1155_v11 = vmul.f32 %v8036_v0, %v1154_v44  ;;  %v8974_v32 = vadd.f32 1.0, %v8038_v24 }
  0x80   : > { %v8040_v43 = vpop.eup %8039  ;;  %v1164_v60 = vor.u32 1.1754944e-38, %v1163_v27  ;;  %v1532_v13 = vmul.f32 %v1135_v57, %v8566_v46  ;;  %v8985_v63 = vadd.f32 %v8878_v51, %v8491_v47  ;;  %v8988_v20 = vadd.f32 %v864_v12, %v8493_v48 }
  0x81   : > { %v8042_v55 = vpop.eup %8041  ;;  %v1145_v1 = vsel %vm8961_vm4, %v8034_v10, %v1141_v61  ;;  %v1156_v4 = vadd.f32 %v8036_v0, %v1155_v11  ;;  %v8992_v35 = vadd.f32 1.0, %v8040_v43  ;;  %8045 = vrcp.f32 %v8974_v32  ;;  %v6404_v11 = vld [vmem:[%s13227_s5 + $0x450] sm:$0xf]  ;;  %v7726_v43 = vld [vmem:[%s13227_s5 + $0x454] sm:$0xf0] }
  0x82   : > { %v8044_v16 = vpop.eup %8043  ;;  %v1150_v46 = vsel %vm8918_vm9, %v1149_v52, %v1145_v1  ;;  %v8997_v27 = vpack.c.bf16 %v1532_v13, %v1531_v2  ;;  %v8999_v51 = vadd.f32 1.0, %v8042_v55  ;;  %v9002_v14 = vadd.f32 %v865_v5, %v8491_v47 }
  0x83   : > { %v1160_v28 = vsel %vm8978_vm2, %v8036_v0, %v1156_v4  ;;  %v1533_v10 = vmul.f32 %v1150_v46, %v8577_v54  ;;  %v1356_v26 = vand.u32 2147483647, %v8974_v32  ;;  %v9009_v21 = vadd.f32 %v866_v37, %v8493_v48  ;;  %v605_v46 = vld [vmem:[%s8483_s26 + $0x68] sm:$0xff] }
  0x84   : > { %v1165_v25 = vsel %vm8945_vm15, %v1164_v60, %v1160_v28  ;;  %v9013_v52 = vadd.f32 1.0, %v8044_v16  ;;  %v1358_v7 = vand.u32 2147483648, %v8974_v32  ;;  %8047 = vrcp.f32 %v8992_v35 }
  0x85   : > { %v1534_v8 = vmul.f32 %v1165_v25, %v8582_v58  ;;  %vm1352_vm3 = vweird.f32 %v8974_v32  ;;  %v1371_v54 = vand.u32 2147483647, %v8992_v35  ;;  %v9021_v0 = vmul.f32 -1.442695, %v8985_v63 }
  0x86   : > { %v1607_v12 = vunpack.c.l.b16 %v8997_v27  ;;  %vm9024_vm5 = vcmp.eq.f32.partialorder %v1356_v26, 8.507059e+37  ;;  %v1373_v31 = vand.u32 2147483648, %v8992_v35  ;;  %8049 = vrcp.f32 %v8999_v51  ;;  %v7742_v26 = vld [vmem:[%s13227_s5 + $0x4d4] sm:$0xf0] }
  0x87   : > { %v8046_v40 = vpop.eup %8045  ;;  %v1564_v44 = vpack.c.bf16 %v1534_v8, %v1533_v10  ;;  %vm1367_vm6 = vweird.f32 %v8992_v35  ;;  %v1386_v58 = vand.u32 2147483647, %v8999_v51  ;;  %v1388_v24 = vand.u32 2147483648, %v8999_v51  ;;  %v6468_v10 = vld [vmem:[%s13227_s5 + $0x4d0] sm:$0xf] }
  0x88   : > { %v1348_v34 = vmul.f32 %v8046_v40, %v8974_v32  ;;  %v1359_v2 = vor.u32 1.1754944e-38, %v1358_v7  ;;  %vm1382_vm7 = vweird.f32 %v8999_v51  ;;  %8051 = vrcp.f32 %v9013_v52 }
  0x89   : > { %v1609_v5 = vunpack.c.l.b16 %v1564_v44  ;;  %vm1353_vm8 = vweird.f32 %v8046_v40  ;;  %vm9036_vm10 = vcmp.eq.f32.partialorder %v1371_v54, 8.507059e+37  ;;  %v9040_v57 = vor.u32 1.1754944e-38, %v1373_v31 }
  0x8a   : > { %v9042_v61 = vor.u32 1.1754944e-38, %v1388_v24  ;;  %v9050_v45 = vpop.eup %8047  ;;  %v1349_v60 = vsub.f32 1.0, %v1348_v34  ;;  %v1401_v13 = vand.u32 2147483647, %v9013_v52  ;;  %v1403_v55 = vand.u32 2147483648, %v9013_v52  ;;  %vm9080_vm13 = vmor %vm1352_vm3, %vm1353_vm8 }
  0x8b   : > { %v6405_v1 = vor.u32 %v7726_v43, %v6404_v11  ;;  %v9054_v4 = vpack.c.b16 %v1609_v5, %v1607_v12  ;;  %v1363_v16 = vmul.f32 %v9050_v45, %v8992_v35  ;;  %vm9058_vm9 = vcmp.eq.f32.partialorder %v1386_v58, 8.507059e+37 }
  0x8c   : > { %vm1397_vm11 = vweird.f32 %v9013_v52  ;;  %v1608_v28 = vunpack.c.h.b16 %v8997_v27  ;;  %v9070_v25 = vpop.eup %8049  ;;  %v1350_v7 = vmul.f32 %v8046_v40, %v1349_v60  ;;  %vm1368_vm12 = vweird.f32 %v9050_v45 }
  0x8d   : > { %13505 = vst [vmem:[#allocation28_spill] sm:$0xff] %v9054_v4  ;;  %v9073_v8 = vor.u32 1.1754944e-38, %v1403_v55  ;;  %2718 = vmatpush.bf16.msrb.mxu2 %v6405_v1  ;;  %v1610_v54 = vunpack.c.h.b16 %v1564_v44  ;;  %v13255_v12 = vshrl.u32 %v9054_v4, 16  ;;  %v13256_v27 = vshll.u32 %v9054_v4, 16  ;;  %vm9112_vm0 = vmor %vm1367_vm6, %vm1368_vm12 }
  0x8e   : > { %v1364_v58 = vsub.f32 1.0, %v1363_v16  ;;  %v1378_v24 = vmul.f32 %v9070_v25, %v8999_v51  ;;  %v9086_v34 = vpop.eup %8051  ;;  %v1351_v5 = vadd.f32 %v8046_v40, %v1350_v7  ;;  %vm1383_vm14 = vweird.f32 %v9070_v25  ;;  %v6540_v16 = vld [vmem:[%s13227_s5 + $0x560] sm:$0xf] }
  0x8f   : > { %vm9089_vm15 = vcmp.eq.f32.partialorder %v1401_v13, 8.507059e+37  ;;  %v9093_v11 = vpack.c.b16 %v1610_v54, %v1608_v28  ;;  %v6469_v32 = vor.u32 %v7742_v26, %v6468_v10  ;;  %v1690_v43 = vrot.slane %v13255_v12, 7  ;;  %v7760_v13 = vld [vmem:[%s13227_s5 + $0x564] sm:$0xf0]  ;;  %v6604_v54 = vld [vmem:[%s13227_s5 + $0x5e0] sm:$0xf]  ;;  %vm9141_vm2 = vmor %vm1382_vm7, %vm1383_vm14 }
  0x90   : > { %v1365_v60 = vmul.f32 %v9050_v45, %v1364_v58  ;;  %v1379_v55 = vsub.f32 1.0, %v1378_v24  ;;  %v1393_v1 = vmul.f32 %v9086_v34, %v9013_v52  ;;  %v1355_v28 = vsel %vm9080_vm13, %v8046_v40, %v1351_v5  ;;  %v7776_v40 = vld [vmem:[%s13227_s5 + $0x5e4] sm:$0xf0]  ;;  %v6396_v5 = vld [vmem:[%s13227_s5 + $0x440] sm:$0xf] }
  0x91   : > { %13512 = vst [vmem:[#allocation29_spill] sm:$0xff] %v9093_v11  ;;  %vm1398_vm4 = vweird.f32 %v9086_v34  ;;  %v13253_v26 = vshrl.u32 %v9093_v11, 16  ;;  %v13254_v7 = vshll.u32 %v9093_v11, 16  ;;  %2767 = vmatpush.bf16.msrb.mxu3 %v6469_v32  ;;  %v1693_v35 = vor.u32 %v13256_v27, %v1690_v43  ;;  %v7724_v32 = vld [vmem:[%s13227_s5 + $0x444] sm:$0xf0] }
  0x92   : > { %v1360_v31 = vsel %vm9024_vm5, %v1359_v2, %v1355_v28  ;;  %v1366_v58 = vadd.f32 %v9050_v45, %v1365_v60  ;;  %v1380_v24 = vmul.f32 %v9070_v25, %v1379_v55  ;;  %v1394_v3 = vsub.f32 1.0, %v1393_v1  ;;  %v6460_v28 = vld [vmem:[%s13227_s5 + $0x4c0] sm:$0xf]  ;;  %vm9188_vm3 = vmor %vm1397_vm11, %vm1398_vm4 }
  0x93   : > { %v1547_v2 = vmul.f32 %v1360_v31, %v8834_v62  ;;  %v1697_v60 = vrot.slane %v13253_v26, 7  ;;  %v6541_v55 = vor.u32 %v7760_v13, %v6540_v16  ;;  %v9156_v51 = vsel %vm8784_vm1, 0, %v1693_v35  ;;  %v6532_v16 = vld [vmem:[%s13227_s5 + $0x550] sm:$0xf]  ;;  %v7758_v13 = vld [vmem:[%s13227_s5 + $0x554] sm:$0xf0] }
  0x94   : > { %13517 = vst [vmem:[#allocation30_spill] sm:$0xff] %v9156_v51  ;;  %v1370_v62 = vsel %vm9112_vm0, %v9050_v45, %v1366_v58  ;;  %v1381_v1 = vadd.f32 %v9070_v25, %v1380_v24  ;;  %v6605_v31 = vor.u32 %v7776_v40, %v6604_v54  ;;  %2631 = vmatmul.bf16.gmra.mxu0 %v9156_v51  ;;  %v6596_v40 = vld [vmem:[%s13227_s5 + $0x5d0] sm:$0xf]  ;;  %v7774_v58 = vld [vmem:[%s13227_s5 + $0x5d4] sm:$0xf0]  ;;  %8053 = vpow2.f32 %v9021_v0 }
  0x95   : > { %v1375_v35 = vsel %vm9036_vm10, %v9040_v57, %v1370_v62  ;;  %v1395_v45 = vmul.f32 %v9086_v34, %v1394_v3  ;;  %v1700_v10 = vor.u32 %v13254_v7, %v1697_v60  ;;  %v6397_v54 = vor.u32 %v7724_v32, %v6396_v5  ;;  %2815 = vmatpush.bf16.msrb.mxu0 %v6541_v55  ;;  %v604_v32 = vld [vmem:[%s8483_s26 + $0x60] sm:$0xff] }
  0x96   : > { %v1385_v24 = vsel %vm9141_vm2, %v9070_v25, %v1381_v1  ;;  %v1548_v57 = vmul.f32 %v1375_v35, %v8842_v22  ;;  %2864 = vmatpush.bf16.msrb.mxu1 %v6605_v31  ;;  %v6461_v5 = vor.u32 %v7740_v56, %v6460_v28  ;;  %v6533_v3 = vor.u32 %v7758_v13, %v6532_v16  ;;  %v9217_v16 = vld [vmem:[%s8483_s26 + $0x30] sm:$0xff] }
  0x97   : > { %v1390_v25 = vsel %vm9058_vm9, %v9042_v61, %v1385_v24  ;;  %v1396_v43 = vadd.f32 %v9086_v34, %v1395_v45  ;;  %v9201_v52 = vsel %vm8784_vm1, 0, %v1700_v10  ;;  %2719 = vmatpush.bf16.msrb.mxu2 %v6397_v54  ;;  %v6597_v56 = vor.u32 %v7774_v58, %v6596_v40  ;;  %v9221_v54 = vld [vmem:[%s8483_s26 + $0x38] sm:$0xff] }
  0x98   : > { %13520 = vst [vmem:[#allocation31_spill] sm:$0xff] %v9201_v52  ;;  %v1549_v22 = vmul.f32 %v1390_v25, %v8845_v23  ;;  %v1571_v60 = vpack.c.bf16 %v1548_v57, %v1547_v2  ;;  %2680 = vmatmul.bf16.gmra.mxu1 %v9201_v52  ;;  %2768 = vmatpush.bf16.msrb.mxu3 %v6461_v5  ;;  %v6115_v0 = vmul.f32 -1.442695, %v8988_v20  ;;  %v6116_v55 = vmul.f32 -1.442695, %v9002_v14 }
  0x99   : > { %v1400_v61 = vsel %vm9188_vm3, %v9086_v34, %v1396_v43  ;;  %v6117_v28 = vmul.f32 -1.442695, %v9009_v21  ;;  %v847_v62 = vunpack.c.l.bf16 %v604_v32  ;;  %2816 = vmatpush.bf16.msrb.mxu0 %v6533_v3  ;;  %v848_v1 = vunpack.c.h.bf16 %v604_v32 }
  0x9a   : > { %v1405_v23 = vsel %vm9089_vm15, %v9073_v8, %v1400_v61  ;;  %2865 = vmatpush.bf16.msrb.mxu1 %v6597_v56  ;;  %8055 = vpow2.f32 %v6115_v0  ;;  %v849_v31 = vunpack.c.l.bf16 %v605_v46  ;;  %v8054_v34 = vpop.eup %8053  ;;  %v850_v13 = vunpack.c.h.bf16 %v605_v46 }
  0x9b   : > { %v1550_v2 = vmul.f32 %v1405_v23, %v8864_v33  ;;  %8057 = vpow2.f32 %v6116_v55  ;;  %v879_v35 = vmul.f32 %v847_v62, %v8485_v41  ;;  %v1623_v10 = vunpack.c.l.b16 %v1571_v60 }
  0x9c   : > { %8059 = vpow2.f32 %v6117_v28  ;;  %v1624_v44 = vunpack.c.h.b16 %v1571_v60  ;;  %v1023_v8 = vadd.f32 1.0, %v8054_v34  ;;  %v880_v40 = vmul.f32 %v848_v1, %v8487_v42 }
  0x9d   : > { %v1572_v45 = vpack.c.bf16 %v1550_v2, %v1549_v22  ;;  %v881_v33 = vmul.f32 %v849_v31, %v8485_v41  ;;  %v835_v58 = vunpack.c.l.bf16 %v9217_v16  ;;  %v882_v57 = vmul.f32 %v850_v13, %v8487_v42 }
  0x9e   : > { %8061 = vrcp.f32 %v1023_v8  ;;  %vm1172_vm5 = vweird.f32 %v1023_v8  ;;  %v9228_v32 = vadd.f32 %v879_v35, %v8491_v47  ;;  %v836_v25 = vunpack.c.h.bf16 %v9217_v16 }
  0x9f   : > { %v1625_v24 = vunpack.c.l.b16 %v1572_v45  ;;  %v1626_v37 = vunpack.c.h.b16 %v1572_v45  ;;  %v837_v43 = vunpack.c.l.bf16 %v9221_v54  ;;  %v1176_v0 = vand.u32 2147483647, %v1023_v8 }
  0xa0   : > { %v8056_v5 = vpop.eup %8055  ;;  %v1178_v55 = vand.u32 2147483648, %v1023_v8  ;;  %v9241_v28 = vadd.f32 %v880_v40, %v8493_v48  ;;  %v9244_v62 = vadd.f32 %v881_v33, %v8491_v47  ;;  %v9255_v35 = vadd.f32 %v882_v57, %v8493_v48 }
  0xa1   : > { %v8058_v3 = vpop.eup %8057  ;;  %v9232_v22 = vpack.c.b16 %v1625_v24, %v1623_v10  ;;  %v9234_v60 = vpack.c.b16 %v1626_v37, %v1624_v44  ;;  %v9236_v56 = vadd.f32 1.0, %v8056_v5  ;;  %vm9263_vm6 = vcmp.eq.f32.partialorder %v1176_v0, 8.507059e+37 }
  0xa2   : > { %v8060_v46 = vpop.eup %8059  ;;  %v9238_v61 = vadd.f32 1.0, %v8058_v3  ;;  %v1179_v37 = vor.u32 1.1754944e-38, %v1178_v55  ;;  %v6130_v57 = vmul.f32 -1.442695, %v9228_v32  ;;  %v6131_v38 = vmul.f32 -1.442695, %v9241_v28 }
  0xa3   : > { %13521 = vst [vmem:[#allocation32_spill] sm:$0xff] %v9232_v22  ;;  %v13249_v23 = vshrl.u32 %v9232_v22, 16  ;;  %v13250_v2 = vshll.u32 %v9232_v22, 16  ;;  %v13247_v1 = vshrl.u32 %v9234_v60, 16  ;;  %v13248_v31 = vshll.u32 %v9234_v60, 16 }
  0xa4   : > { %13522 = vst [vmem:[#allocation33_spill] sm:$0xff] %v9234_v60  ;;  %v9250_v34 = vadd.f32 1.0, %v8060_v46  ;;  %8063 = vrcp.f32 %v9236_v56  ;;  %v1191_v13 = vand.u32 2147483647, %v9236_v56  ;;  %v8062_v45 = vpop.eup %8061  ;;  %v1193_v40 = vand.u32 2147483648, %v9236_v56 }
  0xa5   : > { %v1746_v10 = vrot.slane %v13249_v23, 7  ;;  %v1753_v44 = vrot.slane %v13247_v1, 7  ;;  %8065 = vrcp.f32 %v9238_v61  ;;  %v1168_v33 = vmul.f32 %v8062_v45, %v1023_v8 }
  0xa6   : > { %vm1187_vm7 = vweird.f32 %v9236_v56  ;;  %v1206_v46 = vand.u32 2147483647, %v9238_v61  ;;  %vm1173_vm8 = vweird.f32 %v8062_v45  ;;  %v1208_v0 = vand.u32 2147483648, %v9238_v61 }
  0xa7   : > { %v1749_v5 = vor.u32 %v13250_v2, %v1746_v10  ;;  %v1756_v3 = vor.u32 %v13248_v31, %v1753_v44  ;;  %v1169_v1 = vsub.f32 1.0, %v1168_v33  ;;  %8067 = vrcp.f32 %v9250_v34  ;;  %vm9295_vm12 = vmor %vm1172_vm5, %vm1173_vm8 }
  0xa8   : > { %vm9284_vm10 = vcmp.eq.f32.partialorder %v1191_v13, 8.507059e+37  ;;  %v1194_v31 = vor.u32 1.1754944e-38, %v1193_v40  ;;  %vm1202_vm9 = vweird.f32 %v9238_v61  ;;  %vm1217_vm11 = vweird.f32 %v9250_v34 }
  0xa9   : > { %v9278_v55 = vsel %vm8784_vm1, 0, %v1749_v5  ;;  %v9282_v10 = vsel %vm8784_vm1, 0, %v1756_v3  ;;  %v1170_v23 = vmul.f32 %v8062_v45, %v1169_v1  ;;  %v1221_v5 = vand.u32 2147483647, %v9250_v34 }
  0xaa   : > { %13525 = vst [vmem:[#allocation34_spill] sm:$0xff] %v9278_v55  ;;  %v8064_v33 = vpop.eup %8063  ;;  %2651 = vmatmul.bf16.gmra.mxu2 %v9278_v55  ;;  %2700 = vmatmul.bf16.gmra.mxu3 %v9282_v10  ;;  %8069 = vpow2.f32 %v6130_v57  ;;  %vm9300_vm13 = vcmp.eq.f32.partialorder %v1206_v46, 8.507059e+37  ;;  %v1223_v1 = vand.u32 2147483648, %v9250_v34  ;;  %v1209_v26 = vor.u32 1.1754944e-38, %v1208_v0 }
  0xab   : > { %13526 = vst [vmem:[#allocation35_spill] sm:$0xff] %v9282_v10  ;;  %v8066_v3 = vpop.eup %8065  ;;  %v1183_v40 = vmul.f32 %v8064_v33, %v9236_v56  ;;  %v1171_v19 = vadd.f32 %v8062_v45, %v1170_v23  ;;  %vm1188_vm14 = vweird.f32 %v8064_v33  ;;  %8071 = vpow2.f32 %v6131_v38 }
  0xac   : > { %v1198_v57 = vmul.f32 %v8066_v3, %v9238_v61  ;;  %v6132_v7 = vmul.f32 -1.442695, %v9244_v62  ;;  %v6133_v12 = vmul.f32 -1.442695, %v9255_v35  ;;  %vm1203_vm15 = vweird.f32 %v8066_v3  ;;  %vm9321_vm4 = vmor %vm1187_vm7, %vm1188_vm14 }
  0xad   : > { %v1184_v8 = vsub.f32 1.0, %v1183_v40  ;;  %v8068_v27 = vpop.eup %8067  ;;  %v1175_v46 = vsel %vm9295_vm12, %v8062_v45, %v1171_v19  ;;  %vm9311_vm0 = vcmp.eq.f32.partialorder %v1221_v5, 8.507059e+37  ;;  %v1224_v40 = vor.u32 1.1754944e-38, %v1223_v1  ;;  %vm9328_vm3 = vmor %vm1202_vm9, %vm1203_vm15 }
  0xae   : > { %v1199_v18 = vsub.f32 1.0, %v1198_v57  ;;  %v1180_v23 = vsel %vm9263_vm6, %v1179_v37, %v1175_v46  ;;  %v1213_v38 = vmul.f32 %v8068_v27, %v9250_v34  ;;  %vm1218_vm2 = vweird.f32 %v8068_v27 }
  0xaf   : > { %v1185_v0 = vmul.f32 %v8064_v33, %v1184_v8  ;;  %8073 = vpow2.f32 %v6132_v7  ;;  %v838_v45 = vunpack.c.h.bf16 %v9221_v54  ;;  %v1535_v57 = vmul.f32 %v1180_v23, %v8985_v63  ;;  %vm9358_vm5 = vmor %vm1217_vm11, %vm1218_vm2 }
  0xb0   : > { %v8070_v9 = vpop.eup %8069  ;;  %v1200_v19 = vmul.f32 %v8066_v3, %v1199_v18  ;;  %v1214_v37 = vsub.f32 1.0, %v1213_v38  ;;  %8075 = vpow2.f32 %v6133_v12  ;;  %v867_v18 = vmul.f32 %v835_v58, %v8485_v41 }
  0xb1   : > { %v1186_v5 = vadd.f32 %v8064_v33, %v1185_v0  ;;  %v9332_v1 = vadd.f32 1.0, %v8070_v9  ;;  %v9341_v7 = vmul.f32 %v836_v25, %v8487_v42  ;;  %v8072_v61 = vpop.eup %8071  ;;  %v9349_v9 = vmul.f32 %v837_v43, %v8485_v41 }
  0xb2   : > { %v1201_v56 = vadd.f32 %v8066_v3, %v1200_v19  ;;  %v1215_v46 = vmul.f32 %v8068_v27, %v1214_v37  ;;  %v9362_v58 = vadd.f32 1.0, %v8072_v61  ;;  %v9369_v44 = vmul.f32 %v838_v45, %v8487_v42 }
  0xb3   : > { %v1190_v8 = vsel %vm9321_vm4, %v8064_v33, %v1186_v5  ;;  %8077 = vrcp.f32 %v9332_v1  ;;  %v1416_v25 = vand.u32 2147483647, %v9332_v1  ;;  %vm1412_vm6 = vweird.f32 %v9332_v1 }
  0xb4   : > { %v1195_v63 = vsel %vm9284_vm10, %v1194_v31, %v1190_v8  ;;  %v1205_v12 = vsel %vm9328_vm3, %v8066_v3, %v1201_v56  ;;  %v1216_v43 = vadd.f32 %v8068_v27, %v1215_v46  ;;  %v1418_v34 = vand.u32 2147483648, %v9332_v1 }
  0xb5   : > { %v1210_v54 = vsel %vm9300_vm13, %v1209_v26, %v1205_v12  ;;  %v1536_v31 = vmul.f32 %v1195_v63, %v8988_v20  ;;  %v8074_v33 = vpop.eup %8073  ;;  %8079 = vrcp.f32 %v9362_v58  ;;  %v9375_v3 = vadd.f32 %v867_v18, %v8491_v47  ;;  %v6388_v18 = vld [vmem:[%s13227_s5 + $0x430] sm:$0xf]  ;;  %v7722_v12 = vld [vmem:[%s13227_s5 + $0x434] sm:$0xf0] }
  0xb6   : > { %v8076_v23 = vpop.eup %8075  ;;  %v1220_v26 = vsel %vm9358_vm5, %v8068_v27, %v1216_v43  ;;  %v1537_v2 = vmul.f32 %v1210_v54, %v9002_v14  ;;  %v9382_v0 = vadd.f32 1.0, %v8074_v33  ;;  %vm9388_vm7 = vcmp.eq.f32.partialorder %v1416_v25, 8.507059e+37 }
  0xb7   : > { %v9380_v20 = vpack.c.bf16 %v1536_v31, %v1535_v57  ;;  %v1225_v38 = vsel %vm9311_vm0, %v1224_v40, %v1220_v26  ;;  %v9386_v13 = vadd.f32 1.0, %v8076_v23  ;;  %v1431_v45 = vand.u32 2147483647, %v9362_v58  ;;  %v6452_v23 = vld [vmem:[%s13227_s5 + $0x4b0] sm:$0xf] }
  0xb8   : > { %v1538_v27 = vmul.f32 %v1225_v38, %v9009_v21  ;;  %vm1427_vm8 = vweird.f32 %v9362_v58  ;;  %v1433_v14 = vand.u32 2147483648, %v9362_v58  ;;  %8081 = vrcp.f32 %v9382_v0  ;;  %v7738_v26 = vld [vmem:[%s13227_s5 + $0x4b4] sm:$0xf0]  ;;  %v606_v31 = vld [vmem:[%s8483_s26 + $0x70] sm:$0xff] }
  0xb9   : > { %v8078_v5 = vpop.eup %8077  ;;  %v1611_v30 = vunpack.c.l.b16 %v9380_v20  ;;  %v1419_v24 = vor.u32 1.1754944e-38, %v1418_v34  ;;  %vm1442_vm10 = vweird.f32 %v9382_v0  ;;  %vm9400_vm9 = vcmp.eq.f32.partialorder %v1431_v45, 8.507059e+37 }
  0xba   : > { %v1408_v40 = vmul.f32 %v8078_v5, %v9332_v1  ;;  %v1566_v37 = vpack.c.bf16 %v1538_v27, %v1537_v2  ;;  %v1446_v21 = vand.u32 2147483647, %v9382_v0  ;;  %v1448_v57 = vand.u32 2147483648, %v9382_v0 }
  0xbb   : > { %8083 = vrcp.f32 %v9386_v13  ;;  %v9410_v61 = vpop.eup %8079  ;;  %vm1413_vm11 = vweird.f32 %v8078_v5  ;;  %v1461_v46 = vand.u32 2147483647, %v9386_v13  ;;  %v1463_v63 = vand.u32 2147483648, %v9386_v13 }
  0xbc   : > { %v1409_v8 = vsub.f32 1.0, %v1408_v40  ;;  %v1613_v16 = vunpack.c.l.b16 %v1566_v37  ;;  %v1423_v25 = vmul.f32 %v9410_v61, %v9362_v58  ;;  %v1434_v54 = vor.u32 1.1754944e-38, %v1433_v14  ;;  %vm9442_vm15 = vmor %vm1412_vm6, %vm1413_vm11  ;;  %v6588_v58 = vld [vmem:[%s13227_s5 + $0x5c0] sm:$0xf] }
  0xbd   : > { %vm1457_vm12 = vweird.f32 %v9386_v13  ;;  %vm1428_vm13 = vweird.f32 %v9410_v61  ;;  %vm9421_vm14 = vcmp.eq.f32.partialorder %v1446_v21, 8.507059e+37  ;;  %v9425_v33 = vor.u32 1.1754944e-38, %v1448_v57 }
  0xbe   : > { %v1410_v43 = vmul.f32 %v8078_v5, %v1409_v8  ;;  %v9427_v34 = vor.u32 1.1754944e-38, %v1463_v63  ;;  %v9435_v2 = vpop.eup %8081  ;;  %v9437_v38 = vpack.c.b16 %v1613_v16, %v1611_v30  ;;  %v1424_v27 = vsub.f32 1.0, %v1423_v25  ;;  %vm9471_vm2 = vmor %vm1427_vm8, %vm1428_vm13 }
  0xbf   : > { %v6389_v14 = vor.u32 %v7722_v12, %v6388_v18  ;;  %v1612_v40 = vunpack.c.h.b16 %v9380_v20  ;;  %v1438_v57 = vmul.f32 %v9435_v2, %v9382_v0  ;;  %vm1443_vm0 = vweird.f32 %v9435_v2  ;;  %v6524_v12 = vld [vmem:[%s13227_s5 + $0x540] sm:$0xf] }
  0xc0   : > { %v1411_v21 = vadd.f32 %v8078_v5, %v1410_v43  ;;  %vm9450_vm4 = vcmp.eq.f32.partialorder %v1461_v46, 8.507059e+37  ;;  %v1614_v8 = vunpack.c.h.b16 %v1566_v37  ;;  %v13260_v63 = vshrl.u32 %v9437_v38, 16  ;;  %v7756_v46 = vld [vmem:[%s13227_s5 + $0x544] sm:$0xf0]  ;;  %vm9508_vm5 = vmor %vm1442_vm10, %vm1443_vm0 }
  0xc1   : > { %v9454_v1 = vpop.eup %8083  ;;  %v13267_v16 = vshll.u32 %v9437_v38, 16  ;;  %v1425_v18 = vmul.f32 %v9410_v61, %v1424_v27  ;;  %2720 = vmatpush.bf16.msrb.mxu2 %v6389_v14  ;;  %v6453_v20 = vor.u32 %v7738_v26, %v6452_v23  ;;  %v1439_v43 = vsub.f32 1.0, %v1438_v57  ;;  %v7772_v14 = vld [vmem:[%s13227_s5 + $0x5c4] sm:$0xf0] }
  0xc2   : > { %v1415_v37 = vsel %vm9442_vm15, %v8078_v5, %v1411_v21  ;;  %v1453_v23 = vmul.f32 %v9454_v1, %v9386_v13  ;;  %vm1458_vm3 = vweird.f32 %v9454_v1  ;;  %v1704_v26 = vrot.slane %v13260_v63, 7 }
  0xc3   : > { %v1420_v5 = vsel %vm9388_vm7, %v1419_v24, %v1415_v37  ;;  %v1426_v45 = vadd.f32 %v9410_v61, %v1425_v18  ;;  %v9483_v27 = vpack.c.b16 %v1614_v8, %v1612_v40  ;;  %2769 = vmatpush.bf16.msrb.mxu3 %v6453_v20  ;;  %v1440_v21 = vmul.f32 %v9435_v2, %v1439_v43  ;;  %v6380_v24 = vld [vmem:[%s13227_s5 + $0x420] sm:$0xf]  ;;  %v7720_v40 = vld [vmem:[%s13227_s5 + $0x424] sm:$0xf0]  ;;  %vm9538_vm6 = vmor %vm1457_vm12, %vm1458_vm3 }
  0xc4   : > { %v1454_v57 = vsub.f32 1.0, %v1453_v23  ;;  %v1551_v63 = vmul.f32 %v1420_v5, %v9228_v32  ;;  %v6525_v19 = vor.u32 %v7756_v46, %v6524_v12  ;;  %v1707_v8 = vor.u32 %v13267_v16, %v1704_v26  ;;  %v6444_v46 = vld [vmem:[%s13227_s5 + $0x4a0] sm:$0xf]  ;;  %v6516_v23 = vld [vmem:[%s13227_s5 + $0x530] sm:$0xf] }
  0xc5   : > { %13553 = vst [vmem:[#allocation36_spill] sm:$0xff] %v9483_v27  ;;  %v1430_v18 = vsel %vm9471_vm2, %v9410_v61, %v1426_v45  ;;  %v13265_v20 = vshrl.u32 %v9483_v27, 16  ;;  %v13266_v12 = vshll.u32 %v9483_v27, 16  ;;  %v7736_v61 = vld [vmem:[%s13227_s5 + $0x4a4] sm:$0xf0]  ;;  %v1441_v0 = vadd.f32 %v9435_v2, %v1440_v21 }
  0xc6   : > { %v1435_v37 = vsel %vm9400_vm9, %v1434_v54, %v1430_v18  ;;  %v1455_v25 = vmul.f32 %v9454_v1, %v1454_v57  ;;  %2817 = vmatpush.bf16.msrb.mxu0 %v6525_v19  ;;  %v6589_v43 = vor.u32 %v7772_v14, %v6588_v58  ;;  %v7754_v26 = vld [vmem:[%s13227_s5 + $0x534] sm:$0xf0]  ;;  %v9532_v5 = vsel %vm8784_vm1, 0, %v1707_v8  ;;  %v6580_v14 = vld [vmem:[%s13227_s5 + $0x5b0] sm:$0xf] }
  0xc7   : > { %13556 = vst [vmem:[#allocation37_spill] sm:$0xff] %v9532_v5  ;;  %v1552_v54 = vmul.f32 %v1435_v37, %v9241_v28  ;;  %v1711_v45 = vrot.slane %v13265_v20, 7  ;;  %v6381_v58 = vor.u32 %v7720_v40, %v6380_v24  ;;  %v7770_v21 = vld [vmem:[%s13227_s5 + $0x5b4] sm:$0xf0]  ;;  %2636 = vmatmul.bf16.gmra.mxu0 %v9532_v5  ;;  %v1445_v13 = vsel %vm9508_vm5, %v9435_v2, %v1441_v0 }
  0xc8   : > { %v1456_v28 = vadd.f32 %v9454_v1, %v1455_v25  ;;  %2866 = vmatpush.bf16.msrb.mxu1 %v6589_v43  ;;  %v6445_v57 = vor.u32 %v7736_v61, %v6444_v46  ;;  %v6118_v19 = vmul.f32 -1.442695, %v9375_v3  ;;  %v1450_v24 = vsel %vm9421_vm14, %v9425_v33, %v1445_v13  ;;  %v607_v37 = vld [vmem:[%s8483_s26 + $0x78] sm:$0xff]  ;;  %s12167_s26 = scalar_select %p815_p5, 1, 0 }
  0xc9   : > { %v1573_v40 = vpack.c.bf16 %v1552_v54, %v1551_v63  ;;  %v1714_v8 = vor.u32 %v13266_v12, %v1711_v45  ;;  %2721 = vmatpush.bf16.msrb.mxu2 %v6381_v58  ;;  %v6517_v18 = vor.u32 %v7754_v26, %v6516_v23  ;;  %v1553_v32 = vmul.f32 %v1450_v24, %v9244_v62 }
  0xca   : > { %v1460_v2 = vsel %vm9538_vm6, %v9454_v1, %v1456_v28  ;;  %2770 = vmatpush.bf16.msrb.mxu3 %v6445_v57  ;;  %v6581_v46 = vor.u32 %v7770_v21, %v6580_v14  ;;  %v9568_v61 = vadd.f32 %v9341_v7, %v8493_v48  ;;  %v9582_v62 = vadd.f32 %v9349_v9, %v8491_v47 }
  0xcb   : > { %v1465_v33 = vsel %vm9450_vm4, %v9427_v34, %v1460_v2  ;;  %v9576_v63 = vsel %vm8784_vm1, 0, %v1714_v8  ;;  %2818 = vmatpush.bf16.msrb.mxu0 %v6517_v18  ;;  %v9586_v7 = vadd.f32 %v9369_v44, %v8493_v48  ;;  %8085 = vpow2.f32 %v6118_v19 }
  0xcc   : > { %13559 = vst [vmem:[#allocation38_spill] sm:$0xff] %v9576_v63  ;;  %v1554_v1 = vmul.f32 %v1465_v33, %v9255_v35  ;;  %2685 = vmatmul.bf16.gmra.mxu1 %v9576_v63  ;;  %v1627_v30 = vunpack.c.l.b16 %v1573_v40  ;;  %v6119_v34 = vmul.f32 -1.442695, %v9568_v61  ;;  %v851_v0 = vunpack.c.l.bf16 %v606_v31 }
  0xcd   : > { %2867 = vmatpush.bf16.msrb.mxu1 %v6581_v46  ;;  %v852_v25 = vunpack.c.h.bf16 %v606_v31  ;;  %v1628_v35 = vunpack.c.h.b16 %v1573_v40  ;;  %v6120_v23 = vmul.f32 -1.442695, %v9582_v62  ;;  %v6121_v26 = vmul.f32 -1.442695, %v9586_v7 }
  0xce   : > { %v1574_v43 = vpack.c.bf16 %v1554_v1, %v1553_v32  ;;  %8087 = vpow2.f32 %v6119_v34  ;;  %v883_v9 = vmul.f32 %v851_v0, %v8485_v41  ;;  %v853_v45 = vunpack.c.l.bf16 %v607_v37 }
  0xcf   : > { %v884_v44 = vmul.f32 %v852_v25, %v8487_v42  ;;  %8089 = vpow2.f32 %v6120_v23  ;;  %v854_v58 = vunpack.c.h.bf16 %v607_v37 }
  0xd0   : > { %v1629_v56 = vunpack.c.l.b16 %v1574_v43  ;;  %v1630_v54 = vunpack.c.h.b16 %v1574_v43  ;;  %8091 = vpow2.f32 %v6121_v26  ;;  %v9595_v14 = vadd.f32 %v883_v9, %v8491_v47 }
  0xd1   : > { %v9598_v21 = vadd.f32 %v884_v44, %v8493_v48  ;;  %v8086_v13 = vpop.eup %8085  ;;  %v885_v31 = vmul.f32 %v853_v45, %v8485_v41  ;;  %v886_v33 = vmul.f32 %v854_v58, %v8487_v42 }
  0xd2   : > { %v9600_v28 = vpack.c.b16 %v1629_v56, %v1627_v30  ;;  %v9602_v57 = vpack.c.b16 %v1630_v54, %v1628_v35  ;;  %v9604_v19 = vadd.f32 1.0, %v8086_v13  ;;  %v6134_v24 = vmul.f32 -1.442695, %v9595_v14 }
  0xd3   : > { %v6135_v40 = vmul.f32 -1.442695, %v9598_v21  ;;  %v9636_v54 = vadd.f32 %v885_v31, %v8491_v47 }
  0xd4   : > { %13560 = vst [vmem:[#allocation39_spill] sm:$0xff] %v9600_v28  ;;  %v13263_v8 = vshrl.u32 %v9600_v28, 16  ;;  %v13264_v18 = vshll.u32 %v9600_v28, 16  ;;  %v13261_v2 = vshrl.u32 %v9602_v57, 16  ;;  %v13262_v32 = vshll.u32 %v9602_v57, 16  ;;  %v8088_v46 = vpop.eup %8087 }
  0xd5   : > { %13561 = vst [vmem:[#allocation40_spill] sm:$0xff] %v9602_v57  ;;  %8093 = vrcp.f32 %v9604_v19  ;;  %v8090_v1 = vpop.eup %8089  ;;  %v9619_v37 = vadd.f32 1.0, %v8088_v46  ;;  %v1236_v43 = vand.u32 2147483647, %v9604_v19  ;;  %v1238_v35 = vand.u32 2147483648, %v9604_v19 }
  0xd6   : > { %v1760_v30 = vrot.slane %v13263_v8, 7  ;;  %v1767_v34 = vrot.slane %v13261_v2, 7  ;;  %8095 = vpow2.f32 %v6134_v24  ;;  %v8092_v0 = vpop.eup %8091  ;;  %v9621_v25 = vadd.f32 1.0, %v8090_v1 }
  0xd7   : > { %8097 = vpow2.f32 %v6135_v40  ;;  %v9629_v9 = vadd.f32 1.0, %v8092_v0  ;;  %v1251_v44 = vand.u32 2147483647, %v9619_v37  ;;  %v1253_v56 = vand.u32 2147483648, %v9619_v37 }
  0xd8   : > { %v1763_v23 = vor.u32 %v13264_v18, %v1760_v30  ;;  %v1770_v26 = vor.u32 %v13262_v32, %v1767_v34  ;;  %8099 = vrcp.f32 %v9619_v37  ;;  %v1266_v13 = vand.u32 2147483647, %v9621_v25 }
  0xd9   : > { %8101 = vrcp.f32 %v9621_v25  ;;  %v9648_v24 = vadd.f32 %v886_v33, %v8493_v48  ;;  %vm1232_vm7 = vweird.f32 %v9604_v19  ;;  %vm9653_vm8 = vcmp.eq.f32.partialorder %v1236_v43, 8.507059e+37 }
  0xda   : > { %v9640_v45 = vsel %vm8784_vm1, 0, %v1763_v23  ;;  %v9644_v58 = vsel %vm8784_vm1, 0, %v1770_v26  ;;  %8103 = vrcp.f32 %v9629_v9  ;;  %v1239_v30 = vor.u32 1.1754944e-38, %v1238_v35 }
  0xdb   : > { %13562 = vst [vmem:[#allocation41_spill] sm:$0xff] %v9640_v45  ;;  %v8094_v40 = vpop.eup %8093  ;;  %2656 = vmatmul.bf16.gmra.mxu2 %v9640_v45  ;;  %2705 = vmatmul.bf16.gmra.mxu3 %v9644_v58  ;;  %vm1247_vm10 = vweird.f32 %v9619_v37  ;;  %vm1262_vm9 = vweird.f32 %v9621_v25  ;;  %vm9661_vm11 = vcmp.eq.f32.partialorder %v1251_v44, 8.507059e+37  ;;  %v1254_v0 = vor.u32 1.1754944e-38, %v1253_v56 }
  0xdc   : > { %13563 = vst [vmem:[#allocation42_spill] sm:$0xff] %v9644_v58  ;;  %v8096_v31 = vpop.eup %8095  ;;  %v1228_v1 = vmul.f32 %v8094_v40, %v9604_v19  ;;  %v1268_v43 = vand.u32 2147483648, %v9621_v25  ;;  %v6136_v23 = vmul.f32 -1.442695, %v9636_v54  ;;  %vm1233_vm12 = vweird.f32 %v8094_v40 }
  0xdd   : > { %v8098_v33 = vpop.eup %8097  ;;  %vm9667_vm13 = vcmp.eq.f32.partialorder %v1266_v13, 8.507059e+37  ;;  %v6137_v35 = vmul.f32 -1.442695, %v9648_v24  ;;  %vm1277_vm14 = vweird.f32 %v9629_v9  ;;  %v1281_v56 = vand.u32 2147483647, %v9629_v9  ;;  %vm9682_vm15 = vmor %vm1232_vm7, %vm1233_vm12 }
  0xde   : > { %v8100_v26 = vpop.eup %8099  ;;  %v1229_v2 = vsub.f32 1.0, %v1228_v1  ;;  %v9675_v18 = vadd.f32 1.0, %v8096_v31  ;;  %8105 = vpow2.f32 %v6136_v23  ;;  %v9678_v1 = vadd.f32 1.0, %v8098_v33 }
  0xdf   : > { %v8102_v8 = vpop.eup %8101  ;;  %v1243_v44 = vmul.f32 %v8100_v26, %v9619_v37  ;;  %vm1248_vm0 = vweird.f32 %v8100_v26  ;;  %v1283_v58 = vand.u32 2147483648, %v9629_v9  ;;  %8107 = vpow2.f32 %v6137_v35 }
  0xe0   : > { %v1230_v20 = vmul.f32 %v8094_v40, %v1229_v2  ;;  %v1258_v12 = vmul.f32 %v8102_v8, %v9621_v25  ;;  %v8104_v13 = vpop.eup %8103  ;;  %vm1263_vm4 = vweird.f32 %v8102_v8  ;;  %8109 = vrcp.f32 %v9675_v18  ;;  %vm9694_vm3 = vmor %vm1247_vm10, %vm1248_vm0 }
  0xe1   : > { %v1244_v49 = vsub.f32 1.0, %v1243_v44  ;;  %v1273_v2 = vmul.f32 %v8104_v13, %v9629_v9  ;;  %vm1278_vm2 = vweird.f32 %v8104_v13  ;;  %v1478_v19 = vand.u32 2147483648, %v9675_v18  ;;  %vm9703_vm5 = vmor %vm1262_vm9, %vm1263_vm4 }
  0xe2   : > { %v1231_v31 = vadd.f32 %v8094_v40, %v1230_v20  ;;  %v1259_v45 = vsub.f32 1.0, %v1258_v12  ;;  %8111 = vrcp.f32 %v9678_v1  ;;  %v1269_v16 = vor.u32 1.1754944e-38, %v1268_v43  ;;  %vm9717_vm7 = vmor %vm1277_vm14, %vm1278_vm2 }
  0xe3   : > { %v1245_v23 = vmul.f32 %v8100_v26, %v1244_v49  ;;  %v1274_v12 = vsub.f32 1.0, %v1273_v2  ;;  %v1476_v37 = vand.u32 2147483647, %v9675_v18  ;;  %vm9708_vm6 = vcmp.eq.f32.partialorder %v1281_v56, 8.507059e+37 }
  0xe4   : > { %v1235_v33 = vsel %vm9682_vm15, %v8094_v40, %v1231_v31  ;;  %v1260_v20 = vmul.f32 %v8102_v8, %v1259_v45  ;;  %v8106_v40 = vpop.eup %8105  ;;  %v1284_v2 = vor.u32 1.1754944e-38, %v1283_v58  ;;  %v9723_v56 = vor.u32 1.1754944e-38, %v1478_v19 }
  0xe5   : > { %v1240_v49 = vsel %vm9653_vm8, %v1239_v30, %v1235_v33  ;;  %v1246_v35 = vadd.f32 %v8100_v26, %v1245_v23  ;;  %v1275_v55 = vmul.f32 %v8104_v13, %v1274_v12  ;;  %v8108_v46 = vpop.eup %8107  ;;  %vm1472_vm8 = vweird.f32 %v9675_v18 }
  0xe6   : > { %v1261_v31 = vadd.f32 %v8102_v8, %v1260_v20  ;;  %v1539_v43 = vmul.f32 %v1240_v49, %v9375_v3  ;;  %v9729_v33 = vadd.f32 1.0, %v8106_v40  ;;  %v9731_v9 = vpop.eup %8109  ;;  %vm9736_vm10 = vcmp.eq.f32.partialorder %v1476_v37, 8.507059e+37  ;;  %v6500_v20 = vld [vmem:[%s13227_s5 + $0x510] sm:$0xf] }
  0xe7   : > { %v1250_v30 = vsel %vm9694_vm3, %v8100_v26, %v1246_v35  ;;  %v1276_v26 = vadd.f32 %v8104_v13, %v1275_v55  ;;  %vm1487_vm9 = vweird.f32 %v9678_v1  ;;  %v1491_v34 = vand.u32 2147483647, %v9678_v1 }
  0xe8   : > { %v1255_v58 = vsel %vm9661_vm11, %v1254_v0, %v1250_v30  ;;  %v1265_v23 = vsel %vm9703_vm5, %v8102_v8, %v1261_v31  ;;  %v9742_v10 = vpop.eup %8111  ;;  %v9747_v0 = vadd.f32 1.0, %v8108_v46  ;;  %v1493_v49 = vand.u32 2147483648, %v9678_v1 }
  0xe9   : > { %v1270_v44 = vsel %vm9667_vm13, %v1269_v16, %v1265_v23  ;;  %v1540_v3 = vmul.f32 %v1255_v58, %v9568_v61  ;;  %v1280_v55 = vsel %vm9717_vm7, %v8104_v13, %v1276_v26  ;;  %v1468_v61 = vmul.f32 %v9731_v9, %v9675_v18  ;;  %v6436_v58 = vld [vmem:[%s13227_s5 + $0x490] sm:$0xf]  ;;  %v7734_v23 = vld [vmem:[%s13227_s5 + $0x494] sm:$0xf0] }
  0xea   : > { %v1541_v8 = vmul.f32 %v1270_v44, %v9582_v62  ;;  %v1285_v32 = vsel %vm9708_vm6, %v1284_v2, %v1280_v55  ;;  %v1483_v12 = vmul.f32 %v9742_v10, %v9678_v1  ;;  %vm1473_vm11 = vweird.f32 %v9731_v9  ;;  %v7718_v2 = vld [vmem:[%s13227_s5 + $0x414] sm:$0xf0] }
  0xeb   : > { %v9753_v19 = vpack.c.bf16 %v1540_v3, %v1539_v43  ;;  %v1542_v35 = vmul.f32 %v1285_v32, %v9586_v7  ;;  %v1469_v13 = vsub.f32 1.0, %v1468_v61  ;;  %8113 = vrcp.f32 %v9729_v33  ;;  %v6372_v7 = vld [vmem:[%s13227_s5 + $0x410] sm:$0xf]  ;;  %vm9778_vm14 = vmor %vm1472_vm8, %vm1473_vm11 }
  0xec   : > { %v1484_v62 = vsub.f32 1.0, %v1483_v12  ;;  %vm1488_vm12 = vweird.f32 %v9742_v10  ;;  %vm9762_vm13 = vcmp.eq.f32.partialorder %v1491_v34, 8.507059e+37  ;;  %v1506_v37 = vand.u32 2147483647, %v9729_v33 }
  0xed   : > { %v1568_v40 = vpack.c.bf16 %v1542_v35, %v1541_v8  ;;  %v1615_v31 = vunpack.c.l.b16 %v9753_v19  ;;  %v1470_v45 = vmul.f32 %v9731_v9, %v1469_v13  ;;  %8115 = vrcp.f32 %v9747_v0  ;;  %vm9796_vm0 = vmor %vm1487_vm9, %vm1488_vm12 }
  0xee   : > { %v1485_v30 = vmul.f32 %v9742_v10, %v1484_v62  ;;  %v1494_v25 = vor.u32 1.1754944e-38, %v1493_v49  ;;  %vm1502_vm15 = vweird.f32 %v9729_v33  ;;  %v1508_v43 = vand.u32 2147483648, %v9729_v33  ;;  %v6508_v62 = vld [vmem:[%s13227_s5 + $0x520] sm:$0xf] }
  0xef   : > { %v1617_v18 = vunpack.c.l.b16 %v1568_v40  ;;  %v1471_v26 = vadd.f32 %v9731_v9, %v1470_v45  ;;  %v1523_v3 = vand.u32 2147483648, %v9747_v0  ;;  %v6373_v34 = vor.u32 %v7718_v2, %v6372_v7  ;;  %v7768_v7 = vld [vmem:[%s13227_s5 + $0x5a4] sm:$0xf0] }
  0xf0   : > { %v1486_v55 = vadd.f32 %v9742_v10, %v1485_v30  ;;  %vm9802_vm4 = vcmp.eq.f32.partialorder %v1506_v37, 8.507059e+37  ;;  %v1521_v61 = vand.u32 2147483647, %v9747_v0  ;;  %v1616_v32 = vunpack.c.h.b16 %v9753_v19  ;;  %v7752_v37 = vld [vmem:[%s13227_s5 + $0x524] sm:$0xf0] }
  0xf1   : > { %v9808_v12 = vpop.eup %8113  ;;  %v9810_v1 = vpack.c.b16 %v1617_v18, %v1615_v31  ;;  %v1475_v49 = vsel %vm9778_vm14, %v9731_v9, %v1471_v26  ;;  %2722 = vmatpush.bf16.msrb.mxu2 %v6373_v34  ;;  %v1618_v35 = vunpack.c.h.b16 %v1568_v40  ;;  %v6437_v13 = vor.u32 %v7734_v23, %v6436_v58  ;;  %v6572_v40 = vld [vmem:[%s13227_s5 + $0x5a0] sm:$0xf]  ;;  %v7716_v58 = vld [vmem:[%s13227_s5 + $0x404] sm:$0xf0]  ;;  %v7750_v26 = vld [vmem:[%s13227_s5 + $0x514] sm:$0xf0] }
  0xf2   : > { %v1490_v19 = vsel %vm9796_vm0, %v9742_v10, %v1486_v55  ;;  %v1498_v31 = vmul.f32 %v9808_v12, %v9729_v33  ;;  %v1509_v45 = vor.u32 1.1754944e-38, %v1508_v43  ;;  %v9826_v9 = vor.u32 1.1754944e-38, %v1523_v3  ;;  %v6364_v43 = vld [vmem:[%s13227_s5 + $0x400] sm:$0xf]  ;;  %v7732_v55 = vld [vmem:[%s13227_s5 + $0x484] sm:$0xf0] }
  0xf3   : > { %13590 = vst [vmem:[#allocation43_spill] sm:$0xff] %v9810_v1  ;;  %v9834_v2 = vpop.eup %8115  ;;  %v1716_v46 = vshrl.u32 %v9810_v1, 16  ;;  %v1719_v10 = vshll.u32 %v9810_v1, 16  ;;  %v1480_v30 = vsel %vm9736_vm10, %v9723_v56, %v1475_v49  ;;  %vm1517_vm2 = vweird.f32 %v9747_v0  ;;  %2771 = vmatpush.bf16.msrb.mxu3 %v6437_v13  ;;  %v6428_v34 = vld [vmem:[%s13227_s5 + $0x480] sm:$0xf] }
  0xf4   : > { %v1495_v23 = vsel %vm9762_vm13, %v1494_v25, %v1490_v19  ;;  %v1499_v18 = vsub.f32 1.0, %v1498_v31  ;;  %vm1503_vm3 = vweird.f32 %v9808_v12  ;;  %v1513_v56 = vmul.f32 %v9834_v2, %v9747_v0  ;;  %v6492_v33 = vld [vmem:[%s13227_s5 + $0x500] sm:$0xf] }
  0xf5   : > { %v1718_v44 = vrot.slane %v1716_v46, 7  ;;  %v9861_v3 = vpack.c.b16 %v1618_v35, %v1616_v32  ;;  %v6509_v16 = vor.u32 %v7752_v37, %v6508_v62  ;;  %v6573_v25 = vor.u32 %v7768_v7, %v6572_v40  ;;  %v6564_v32 = vld [vmem:[%s13227_s5 + $0x590] sm:$0xf]  ;;  %v7766_v35 = vld [vmem:[%s13227_s5 + $0x594] sm:$0xf0]  ;;  %vm9883_vm6 = vmor %vm1502_vm15, %vm1503_vm3 }
  0xf6   : > { %v1500_v49 = vmul.f32 %v9808_v12, %v1499_v18  ;;  %v1514_v13 = vsub.f32 1.0, %v1513_v56  ;;  %vm1518_vm5 = vweird.f32 %v9834_v2  ;;  %v6365_v19 = vor.u32 %v7716_v58, %v6364_v43  ;;  %v7729_v37 = vld [vmem:[%s13227_s5 + $0x474] sm:$0xf] }
  0xf7   : > { %13591 = vst [vmem:[#allocation44_spill] sm:$0xff] %v9861_v3  ;;  %v1721_v62 = vor.u32 %v1719_v10, %v1718_v44  ;;  %v1723_v31 = vshrl.u32 %v9861_v3, 16  ;;  %v1726_v40 = vshll.u32 %v9861_v3, 16  ;;  %2819 = vmatpush.bf16.msrb.mxu0 %v6509_v16  ;;  %2868 = vmatpush.bf16.msrb.mxu1 %v6573_v25  ;;  %v6501_v7 = vor.u32 %v7750_v26, %v6500_v20  ;;  %v7748_v44 = vld [vmem:[%s13227_s5 + $0x504] sm:$0xf0]  ;;  %vm9907_vm7 = vmor %vm1517_vm2, %vm1518_vm5 }
  0xf8   : > { %v1501_v43 = vadd.f32 %v9808_v12, %v1500_v49  ;;  %v1515_v58 = vmul.f32 %v9834_v2, %v1514_v13  ;;  %v1555_v18 = vmul.f32 %v1480_v30, %v9595_v14  ;;  %v1556_v56 = vmul.f32 %v1495_v23, %v9598_v21  ;;  %2723 = vmatpush.bf16.msrb.mxu2 %v6365_v19  ;;  %v6556_v26 = vld [vmem:[%s13227_s5 + $0x580] sm:$0xf]  ;;  %v7764_v16 = vld [vmem:[%s13227_s5 + $0x584] sm:$0xf0] }
  0xf9   : > { %v9901_v20 = vsel %vm8784_vm1, 0, %v1721_v62  ;;  %v1725_v21 = vrot.slane %v1723_v31, 7  ;;  %v6429_v30 = vor.u32 %v7732_v55, %v6428_v34  ;;  %v6565_v23 = vor.u32 %v7766_v35, %v6564_v32  ;;  %v6358_v62 = vld [vmem:[%s13227_s5 + $0x3f8] sm:$0xf0] }
  0xfa   : > { %13594 = vst [vmem:[#allocation45_spill] sm:$0xff] %v9901_v20  ;;  %2641 = vmatmul.bf16.gmra.mxu0 %v9901_v20  ;;  %v1505_v25 = vsel %vm9883_vm6, %v9808_v12, %v1501_v43  ;;  %v1516_v49 = vadd.f32 %v9834_v2, %v1515_v58  ;;  %vm1522_vm8 = vcmp.eq.f32.partialorder %v1521_v61, 8.507059e+37  ;;  %v6493_v13 = vor.u32 %v7748_v44, %v6492_v33  ;;  %v7697_v61 = vld [vmem:[%s13227_s5 + $0x374] sm:$0xf]  ;;  %v6422_v58 = vld [vmem:[%s13227_s5 + $0x478] sm:$0xf0] }
  0xfb   : > { %v1510_v34 = vsel %vm9802_vm4, %v1509_v45, %v1505_v25  ;;  %v1728_v55 = vor.u32 %v1726_v40, %v1725_v21  ;;  %2820 = vmatpush.bf16.msrb.mxu0 %v6501_v7  ;;  %2772 = vmatpush.bf16.msrb.mxu3 %v6429_v30  ;;  %v1575_v32 = vpack.c.bf16 %v1556_v56, %v1555_v18  ;;  %v6294_v45 = vld [vmem:[%s13227_s5 + $0x378] sm:$0xf0]  ;;  %v13598_v7 = vshll.u32 %v8728_v59, 16  ;;  %v7745_v18 = vld [vmem:[%s13227_s5 + $0x4f4] sm:$0xf] }
  0xfc   : > { %v1520_v19 = vsel %vm9907_vm7, %v9834_v2, %v1516_v49  ;;  %v1557_v12 = vmul.f32 %v1510_v34, %v9636_v54  ;;  %2869 = vmatpush.bf16.msrb.mxu1 %v6565_v23  ;;  %v6557_v35 = vor.u32 %v7764_v16, %v6556_v26  ;;  %v6297_v54 = vor.u32 %v7697_v61, %v6294_v45  ;;  %v6486_v21 = vld [vmem:[%s13227_s5 + $0x4f8] sm:$0xf0] }
  0xfd   : > { %v1525_v0 = vsel %vm1522_vm8, %v9826_v9, %v1520_v19  ;;  %v9937_v8 = vsel %vm8784_vm1, 0, %v1728_v55  ;;  %v7713_v9 = vld [vmem:[%s13227_s5 + $0x3f4] sm:$0xf]  ;;  %v1846_v43 = vrot.slane %v13598_v7, 1  ;;  %v1631_v33 = vunpack.c.l.b16 %v1575_v32 }
  0xfe   : > { %13597 = vst [vmem:[#allocation46_spill] sm:$0xff] %v9937_v8  ;;  %v1558_v2 = vmul.f32 %v1525_v0, %v9648_v24  ;;  %2690 = vmatmul.bf16.gmra.mxu1 %v9937_v8  ;;  %v6361_v24 = vor.u32 %v7713_v9, %v6358_v62  ;;  %v1632_v44 = vunpack.c.h.b16 %v1575_v32  ;;  %2912 = vmatpush.bf16.msra.mxu2 %v6297_v54  ;;  %vm1902_vm10 = vcmask 1047552  }
  0xff   : > { %2821 = vmatpush.bf16.msrb.mxu0 %v6493_v13  ;;  %v6425_v14 = vor.u32 %v7729_v37, %v6422_v58  ;;  %vm1903_vm9 = vsmask.f32 7424  ;;  %v6489_v30 = vor.u32 %v7745_v18, %v6486_v21  ;;  %v13599_v16 = vshrl.u32 %v8728_v59, 16  ;;  %v7695_v58 = vld [vmem:[%s13227_s5 + $0x364] sm:$0xf] }
 0x100   : > { %v1576_v56 = vpack.c.bf16 %v1558_v2, %v1557_v12  ;;  %2870 = vmatpush.bf16.msrb.mxu1 %v6557_v35  ;;  %2961 = vmatpush.bf16.msra.mxu3 %v6361_v24  ;;  %v13600_v49 = vshll.u32 %v8766_v15, 16  ;;  %vm9975_vm11 = vmand %vm1902_vm10, %vm1903_vm9  ;;  %v13603_v19 = vmov 0  ;;  %v13607_v45 = vshrl.u32 %v8766_v15, 16  ;;  %v6286_v18 = vld [vmem:[%s13227_s5 + $0x368] sm:$0xf0] }
 0x101   : > { %v1847_v25 = vor.u32 %v1846_v43, %v13599_v16  ;;  %v13604_v19 = vsel %vm9975_vm11, 4294967295, %v13603_v19  ;;  %v6350_v21 = vld [vmem:[%s13227_s5 + $0x3e8] sm:$0xf0]  ;;  %v7743_v16 = vld [vmem:[%s13227_s5 + $0x4e4] sm:$0xf] }
 0x102   : > { %v1633_v23 = vunpack.c.l.b16 %v1576_v56  ;;  %v1634_v26 = vunpack.c.h.b16 %v1576_v56  ;;  %v1848_v34 = vrot.slane %v13600_v49, 1  ;;  %13605 = vst [vmem:[#allocation49_spill] sm:$0xff] %v13604_v19  ;;  %v7711_v56 = vld [vmem:[%s13227_s5 + $0x3e4] sm:$0xf] }
 0x103   : > { %3010 = vmatpush.bf16.msra.mxu0 %v6425_v14  ;;  %v9985_v61 = vsel %vm9975_vm11, %v1847_v25, 0  ;;  %v6289_v14 = vor.u32 %v7695_v58, %v6286_v18  ;;  %v6478_v25 = vld [vmem:[%s13227_s5 + $0x4e8] sm:$0xf0] }
 0x104   : > { %3059 = vmatpush.bf16.msra.mxu1 %v6489_v30  ;;  %v9971_v55 = vpack.c.b16 %v1633_v23, %v1631_v33  ;;  %v9973_v13 = vpack.c.b16 %v1634_v26, %v1632_v44  ;;  %13606 = vst [vmem:[#allocation50_spill] sm:$0xff] %v9985_v61  ;;  %v1849_v2 = vor.u32 %v1848_v34, %v13607_v45  ;;  %v13611_v33 = vshll.u32 %v9054_v4, 16  ;;  %v7727_v30 = vld [vmem:[%s13227_s5 + $0x464] sm:$0xf]  ;;  %v6414_v26 = vld [vmem:[%s13227_s5 + $0x468] sm:$0xf0] }
 0x105   : > { %v6353_v23 = vor.u32 %v7711_v56, %v6350_v21  ;;  %2913 = vmatpush.bf16.msra.mxu2 %v6289_v14  ;;  %v6417_v49 = vor.u32 %v7727_v30, %v6414_v26  ;;  %v6481_v34 = vor.u32 %v7743_v16, %v6478_v25  ;;  %v13612_v45 = vshrl.u32 %v9054_v4, 16  ;;  %v7693_v56 = vld [vmem:[%s13227_s5 + $0x354] sm:$0xf]  ;;  %v6406_v25 = vld [vmem:[%s13227_s5 + $0x458] sm:$0xf0] }
 0x106   : > { %13601 = vst [vmem:[#allocation47_spill] sm:$0xff] %v9971_v55  ;;  %v13279_v12 = vshrl.u32 %v9971_v55, 16  ;;  %v13280_v32 = vshll.u32 %v9971_v55, 16  ;;  %v13277_v35 = vshrl.u32 %v9973_v13, 16  ;;  %v13278_v0 = vshll.u32 %v9973_v13, 16 }
 0x107   : > { %13602 = vst [vmem:[#allocation48_spill] sm:$0xff] %v9973_v13  ;;  %v10000_v7 = vsel %vm9975_vm11, %v1849_v2, 0  ;;  %v1850_v44 = vrot.slane %v13611_v33, 1  ;;  %2962 = vmatpush.bf16.msra.mxu3 %v6353_v23  ;;  %3011 = vmatpush.bf16.msra.mxu0 %v6417_v49  ;;  %v6278_v33 = vld [vmem:[%s13227_s5 + $0x358] sm:$0xf0]  ;;  %v13617_v14 = vshll.u32 %v9437_v38, 16 }
 0x108   : > { %v1774_v54 = vrot.slane %v13279_v12, 7  ;;  %v1781_v9 = vrot.slane %v13277_v35, 7  ;;  %13608 = vst [vmem:[#allocation51_spill] sm:$0xff] %v10000_v7  ;;  %3060 = vmatpush.bf16.msra.mxu1 %v6481_v34  ;;  %v6281_v30 = vor.u32 %v7693_v56, %v6278_v33  ;;  %v6342_v23 = vld [vmem:[%s13227_s5 + $0x3d8] sm:$0xf0]  ;;  %v13621_v33 = vshrl.u32 %v9483_v27, 16 }
 0x109   : > { %v1851_v2 = vor.u32 %v1850_v44, %v13612_v45  ;;  %v7709_v44 = vld [vmem:[%s13227_s5 + $0x3d4] sm:$0xf]  ;;  %v1854_v21 = vrot.slane %v13617_v14, 1  ;;  %v6470_v34 = vld [vmem:[%s13227_s5 + $0x4d8] sm:$0xf0] }
 0x10a   : > { %v1777_v62 = vor.u32 %v13280_v32, %v1774_v54  ;;  %v1784_v37 = vor.u32 %v13278_v0, %v1781_v9  ;;  %2822 = vmatmul.bf16.vlgmr.msrb.gmra.mxu0 %v9985_v61  ;;  %v13613_v54 = vshll.u32 %v9093_v11, 16  ;;  %v7725_v26 = vld [vmem:[%s13227_s5 + $0x454] sm:$0xf]  ;;  %v6345_v16 = vor.u32 %v7709_v44, %v6342_v23  ;;  %2914 = vmatpush.bf16.msra.mxu2 %v6281_v30  ;;  %v6270_v30 = vld [vmem:[%s13227_s5 + $0x348] sm:$0xf0] }
 0x10b   : > { %v7741_v49 = vld [vmem:[%s13227_s5 + $0x4d4] sm:$0xf]  ;;  %v6409_v45 = vor.u32 %v7725_v26, %v6406_v25  ;;  %v7707_v23 = vld [vmem:[%s13227_s5 + $0x3c4] sm:$0xf]  ;;  %v2627_v26 = vpop.f32.mrf.mxu0  ;;  %v1858_v25 = vrot.slane %v1719_v10, 1 }
 0x10c   : > { %v10004_v43 = vsel %vm8784_vm1, 0, %v1777_v62  ;;  %v10008_v24 = vsel %vm8784_vm1, 0, %v1784_v37  ;;  %v1852_v9 = vrot.slane %v13613_v54, 1  ;;  %v10045_v62 = vsel %vm9975_vm11, %v1851_v2, 0  ;;  %2963 = vmatpush.bf16.msra.mxu3 %v6345_v16  ;;  %v2676_v16 = vpop.f32.mrf.mxu1  ;;  %v7739_v10 = vld [vmem:[%s13227_s5 + $0x4c4] sm:$0xf] }
 0x10d   : > { %13609 = vst [vmem:[#allocation52_spill] sm:$0xff] %v10004_v43  ;;  %2661 = vmatmul.bf16.gmra.mxu2 %v10004_v43  ;;  %2710 = vmatmul.bf16.gmra.mxu3 %v10008_v24  ;;  %v13615_v37 = vshrl.u32 %v9093_v11, 16  ;;  %v6473_v2 = vor.u32 %v7741_v49, %v6470_v34  ;;  %v13618_v54 = vshrl.u32 %v9437_v38, 16  ;;  %v6334_v34 = vld [vmem:[%s13227_s5 + $0x3c8] sm:$0xf0] }
 0x10e   : > { %13610 = vst [vmem:[#allocation53_spill] sm:$0xff] %v10008_v24  ;;  %2871 = vmatmul.bf16.vlgmr.msrb.gmra.mxu1 %v10000_v7  ;;  %3012 = vmatpush.bf16.msra.mxu0 %v6409_v45  ;;  %v7723_v45 = vld [vmem:[%s13227_s5 + $0x444] sm:$0xf]  ;;  %v13642_v7 = vshrl.u32 %v9602_v57, 16 }
 0x10f   : > { %13614 = vst [vmem:[#allocation54_spill] sm:$0xff] %v10045_v62  ;;  %v1853_v58 = vor.u32 %v1852_v9, %v13615_v37  ;;  %3061 = vmatpush.bf16.msra.mxu1 %v6473_v2  ;;  %v1855_v9 = vor.u32 %v1854_v21, %v13618_v54  ;;  %v13619_v37 = vshll.u32 %v9483_v27, 16  ;;  %v7691_v21 = vld [vmem:[%s13227_s5 + $0x344] sm:$0xf]  ;;  %v10118_v2 = vadd.f32 %v2676_v16, %v2627_v26  ;;  %v2647_v16 = vpop.f32.mrf.mxu2 }
 0x110   : > { %v6273_v49 = vor.u32 %v7691_v21, %v6270_v30  ;;  %v6337_v54 = vor.u32 %v7707_v23, %v6334_v34  ;;  %v1860_v21 = vrot.slane %v1726_v40, 1  ;;  %v6262_v40 = vld [vmem:[%s13227_s5 + $0x338] sm:$0xf0]  ;;  %v7719_v32 = vld [vmem:[%s13227_s5 + $0x424] sm:$0xf] }
 0x111   : > { %v10052_v18 = vsel %vm9975_vm11, %v1853_v58, 0  ;;  %v1856_v58 = vrot.slane %v13619_v37, 1  ;;  %v10089_v56 = vsel %vm9975_vm11, %v1855_v9, 0  ;;  %v6398_v9 = vld [vmem:[%s13227_s5 + $0x448] sm:$0xf0] }
 0x112   : > { %13616 = vst [vmem:[#allocation55_spill] sm:$0xff] %v10052_v18  ;;  %v6462_v37 = vld [vmem:[%s13227_s5 + $0x4c8] sm:$0xf0]  ;;  %2915 = vmatpush.bf16.msra.mxu2 %v6273_v49  ;;  %2964 = vmatpush.bf16.msra.mxu3 %v6337_v54  ;;  %v1861_v23 = vor.u32 %v1860_v21, %v1723_v31  ;;  %v7705_v31 = vld [vmem:[%s13227_s5 + $0x3b4] sm:$0xf]  ;;  %v13625_v49 = vshll.u32 %v8867_v36, 16 }
 0x113   : > { %13620 = vst [vmem:[#allocation56_spill] sm:$0xff] %v10089_v56  ;;  %v1857_v44 = vor.u32 %v1856_v58, %v13621_v33  ;;  %v6401_v58 = vor.u32 %v7723_v45, %v6398_v9  ;;  %v6465_v33 = vor.u32 %v7739_v10, %v6462_v37  ;;  %v6326_v54 = vld [vmem:[%s13227_s5 + $0x3b8] sm:$0xf0]  ;;  %v10163_v10 = vpop.f32.mrf.mxu0  ;;  %v7737_v21 = vld [vmem:[%s13227_s5 + $0x4b4] sm:$0xf] }
 0x114   : > { %v10142_v26 = vsel %vm9975_vm11, %v1861_v23, 0  ;;  %v1862_v34 = vrot.slane %v13625_v49, 1  ;;  %v10165_v37 = vpop.f32.mrf.mxu1  ;;  %v6454_v23 = vld [vmem:[%s13227_s5 + $0x4b8] sm:$0xf0] }
 0x115   : > { %v10096_v14 = vsel %vm9975_vm11, %v1857_v44, 0  ;;  %3013 = vmatpush.bf16.msra.mxu0 %v6401_v58  ;;  %3062 = vmatpush.bf16.msra.mxu1 %v6465_v33  ;;  %v1859_v44 = vor.u32 %v1858_v25, %v1716_v46  ;;  %13624 = vst [vmem:[#allocation59_spill] sm:$0xff] %v10142_v26  ;;  %v7689_v46 = vld [vmem:[%s13227_s5 + $0x334] sm:$0xf]  ;;  %v2696_v25 = vpop.f32.mrf.mxu3  ;;  %v6329_v33 = vor.u32 %v7705_v31, %v6326_v54  ;;  %v13626_v31 = vshrl.u32 %v8867_v36, 16 }
 0x116   : > { %13622 = vst [vmem:[#allocation57_spill] sm:$0xff] %v10096_v14  ;;  %v6265_v45 = vor.u32 %v7689_v46, %v6262_v40  ;;  %v10161_v9 = vadd.f32 %v2696_v25, %v2647_v16  ;;  %v7721_v58 = vld [vmem:[%s13227_s5 + $0x434] sm:$0xf]  ;;  %v6457_v40 = vor.u32 %v7737_v21, %v6454_v23  ;;  %v13627_v25 = vshll.u32 %v8869_v39, 16  ;;  %v7687_v21 = vld [vmem:[%s13227_s5 + $0x324] sm:$0xf] }
 0x117   : > { %v10135_v30 = vsel %vm9975_vm11, %v1859_v44, 0  ;;  %v6390_v44 = vld [vmem:[%s13227_s5 + $0x438] sm:$0xf0]  ;;  %2965 = vmatpush.bf16.msra.mxu3 %v6329_v33  ;;  %v1863_v16 = vor.u32 %v1862_v34, %v13626_v31  ;;  %v10183_v54 = vpop.f32.mrf.mxu2  ;;  %v6254_v23 = vld [vmem:[%s13227_s5 + $0x328] sm:$0xf0] }
 0x118   : > { %13623 = vst [vmem:[#allocation58_spill] sm:$0xff] %v10135_v30  ;;  %2916 = vmatpush.bf16.msra.mxu2 %v6265_v45  ;;  %v6393_v46 = vor.u32 %v7721_v58, %v6390_v44  ;;  %v1864_v49 = vrot.slane %v13627_v25, 1  ;;  %v13629_v58 = vshrl.u32 %v8869_v39, 16  ;;  %v6318_v25 = vld [vmem:[%s13227_s5 + $0x3a8] sm:$0xf0] }
 0x119   : > { %3063 = vmatpush.bf16.msra.mxu1 %v6457_v40  ;;  %v10189_v45 = vsel %vm9975_vm11, %v1863_v16, 0  ;;  %v13631_v40 = vshll.u32 %v9232_v22, 16  ;;  %v6257_v16 = vor.u32 %v7687_v21, %v6254_v23  ;;  %v7735_v21 = vld [vmem:[%s13227_s5 + $0x4a4] sm:$0xf]  ;;  %v6446_v23 = vld [vmem:[%s13227_s5 + $0x4a8] sm:$0xf0] }
 0x11a   : > { %2827 = vmatmul.bf16.gmra.mxu0 %v10045_v62  ;;  %13628 = vst [vmem:[#allocation60_spill] sm:$0xff] %v10189_v45  ;;  %v1865_v33 = vor.u32 %v1864_v49, %v13629_v58 }
 0x11b   : > { %3014 = vmatpush.bf16.msra.mxu0 %v6393_v46  ;;  %v2632_v0 = vpop.f32.mrf.mxu0  ;;  %v1866_v31 = vrot.slane %v13631_v40, 1  ;;  %v6382_v40 = vld [vmem:[%s13227_s5 + $0x428] sm:$0xf0] }
 0x11c   : > { %v2681_v12 = vpop.f32.mrf.mxu1  ;;  %v10198_v34 = vsel %vm9975_vm11, %v1865_v33, 0  ;;  %2917 = vmatpush.bf16.msra.mxu2 %v6257_v16 }
 0x11d   : > { %2724 = vmatmul.bf16.vlgmr.msrb.gmra.mxu2 %v8728_v59  ;;  %2773 = vmatmul.bf16.vlgmr.msrb.gmra.mxu3 %v8766_v15  ;;  %v10185_v35 = vpop.f32.mrf.mxu3  ;;  %v10193_v44 = vadd.f32 %v2681_v12, %v2632_v0  ;;  %13630 = vst [vmem:[#allocation61_spill] sm:$0xff] %v10198_v34  ;;  %v7703_v12 = vld [vmem:[%s13227_s5 + $0x3a4] sm:$0xf] }
 0x11e   : > { %2876 = vmatmul.bf16.gmra.mxu1 %v10052_v18 }
 0x123   : > { %v10219_v58 = vpop.f32.mrf.mxu0 }
 0x124   : > { %v10221_v33 = vpop.f32.mrf.mxu1 }
 0x12a   : > { %2832 = vmatmul.bf16.gmra.mxu0 %v10089_v56 }
 0x12d   : > { %2729 = vmatmul.bf16.gmra.mxu2 %v9054_v4  ;;  %2778 = vmatmul.bf16.gmra.mxu3 %v9093_v11  ;;  %v2652_v0 = vpop.f32.mrf.mxu2  ;;  %v2701_v46 = vpop.f32.mrf.mxu3 }
 0x12e   : > { %2881 = vmatmul.bf16.gmra.mxu1 %v10096_v14  ;;  %v10217_v49 = vadd.f32 %v2701_v46, %v2652_v0  ;;  %v6385_v0 = vor.u32 %v7719_v32, %v6382_v40  ;;  %v6449_v46 = vor.u32 %v7735_v21, %v6446_v23  ;;  %v13635_v32 = vshrl.u32 %v9234_v60, 16 }
 0x12f   : > { %v13637_v23 = vshll.u32 %v9600_v28, 16 }
 0x130   : > { %3015 = vmatpush.bf16.msra.mxu0 %v6385_v0  ;;  %3064 = vmatpush.bf16.msra.mxu1 %v6449_v46 }
 0x131   : > { %v1870_v0 = vrot.slane %v13637_v23, 1  ;;  %v7733_v23 = vld [vmem:[%s13227_s5 + $0x494] sm:$0xf] }
 0x135   : > { %v10241_v14 = vpop.f32.mrf.mxu3 }
 0x13a   : > { %2837 = vmatmul.bf16.gmra.mxu0 %v10135_v30  ;;  %v10239_v30 = vpop.f32.mrf.mxu2 }
 0x13d   : > { %2734 = vmatmul.bf16.gmra.mxu2 %v9437_v38  ;;  %2783 = vmatmul.bf16.gmra.mxu3 %v9483_v27 }
 0x13e   : > { %2886 = vmatmul.bf16.gmra.mxu1 %v10142_v26 }
 0x144   : > { %v2637_v56 = vpop.f32.mrf.mxu0 }
 0x149   : > { %v2686_v18 = vpop.f32.mrf.mxu1 }
 0x14a   : > { %2842 = vmatmul.bf16.gmra.mxu0 %v10189_v45  ;;  %v6321_v45 = vor.u32 %v7703_v12, %v6318_v25  ;;  %v13632_v12 = vshrl.u32 %v9232_v22, 16  ;;  %v10249_v40 = vadd.f32 %v2686_v18, %v2637_v56  ;;  %v7701_v18 = vld [vmem:[%s13227_s5 + $0x394] sm:$0xf] }
 0x14c   : > { %2966 = vmatpush.bf16.msra.mxu3 %v6321_v45  ;;  %v1867_v25 = vor.u32 %v1866_v31, %v13632_v12  ;;  %v7685_v31 = vld [vmem:[%s13227_s5 + $0x314] sm:$0xf]  ;;  %v6310_v12 = vld [vmem:[%s13227_s5 + $0x398] sm:$0xf0] }
 0x14d   : > { %2739 = vmatmul.bf16.gmra.mxu2 %v9810_v1  ;;  %2788 = vmatmul.bf16.gmra.mxu3 %v9861_v3 }
 0x14e   : > { %2891 = vmatmul.bf16.gmra.mxu1 %v10198_v34  ;;  %v13633_v34 = vshll.u32 %v9234_v60, 16  ;;  %v10245_v16 = vsel %vm9975_vm11, %v1867_v25, 0 }
 0x14f   : > { %13634 = vst [vmem:[#allocation62_spill] sm:$0xff] %v10245_v16 }
 0x150   : > { %v1868_v26 = vrot.slane %v13633_v34, 1 }
 0x152   : > { %v1869_v45 = vor.u32 %v1868_v26, %v13635_v32  ;;  %v6246_v26 = vld [vmem:[%s13227_s5 + $0x318] sm:$0xf0]  ;;  %v7717_v32 = vld [vmem:[%s13227_s5 + $0x414] sm:$0xf] }
 0x153   : > { %v6249_v46 = vor.u32 %v7685_v31, %v6246_v26  ;;  %v6438_v31 = vld [vmem:[%s13227_s5 + $0x498] sm:$0xf0] }
 0x154   : > { %v10254_v34 = vsel %vm9975_vm11, %v1869_v45, 0  ;;  %v6313_v45 = vor.u32 %v7701_v18, %v6310_v12  ;;  %v13639_v18 = vshrl.u32 %v9600_v28, 16  ;;  %v13640_v12 = vshll.u32 %v9602_v57, 16 }
 0x155   : > { %13636 = vst [vmem:[#allocation63_spill] sm:$0xff] %v10254_v34  ;;  %2918 = vmatpush.bf16.msra.mxu2 %v6249_v46  ;;  %v7683_v46 = vld [vmem:[%s13227_s5 + $0x304] sm:$0xf] }
 0x156   : > { %2967 = vmatpush.bf16.msra.mxu3 %v6313_v45  ;;  %v13644_v45 = vshll.u32 %v9971_v55, 16 }
 0x15a   : > { %2847 = vmatmul.bf16.gmra.mxu0 %v10245_v16  ;;  %v6374_v16 = vld [vmem:[%s13227_s5 + $0x418] sm:$0xf0] }
 0x15b   : > { %v6377_v26 = vor.u32 %v7717_v32, %v6374_v16  ;;  %v6302_v32 = vld [vmem:[%s13227_s5 + $0x388] sm:$0xf0] }
 0x15d   : > { %2744 = vmatmul.bf16.gmra.mxu2 %v8867_v36  ;;  %2793 = vmatmul.bf16.gmra.mxu3 %v8869_v39 }
 0x15e   : > { %v2657_v56 = vpop.f32.mrf.mxu2  ;;  %v2706_v21 = vpop.f32.mrf.mxu3  ;;  %2896 = vmatmul.bf16.gmra.mxu1 %v10254_v34  ;;  %3016 = vmatpush.bf16.msra.mxu0 %v6377_v26  ;;  %v1872_v34 = vrot.slane %v13640_v12, 1 }
 0x15f   : > { %v10273_v25 = vadd.f32 %v2706_v21, %v2657_v56  ;;  %v6441_v56 = vor.u32 %v7733_v23, %v6438_v31  ;;  %v1871_v21 = vor.u32 %v1870_v0, %v13639_v18  ;;  %v10304_v0 = vpop.f32.mrf.mxu0  ;;  %v1874_v23 = vrot.slane %v13644_v45, 1  ;;  %v10321_v26 = vpop.f32.mrf.mxu1  ;;  %v7731_v45 = vld [vmem:[%s13227_s5 + $0x484] sm:$0xf] }
 0x160   : > { %v1873_v61 = vor.u32 %v1872_v34, %v13642_v7  ;;  %v6238_v7 = vld [vmem:[%s13227_s5 + $0x308] sm:$0xf0]  ;;  %v7699_v34 = vld [vmem:[%s13227_s5 + $0x384] sm:$0xf] }
 0x161   : > { %13638 = vst [vmem:[#allocation64_spill] sm:$0xff] %v10273_v25  ;;  %3065 = vmatpush.bf16.msra.mxu1 %v6441_v56  ;;  %v10293_v62 = vsel %vm9975_vm11, %v1871_v21, 0  ;;  %v6305_v31 = vor.u32 %v7699_v34, %v6302_v32  ;;  %v13645_v56 = vshrl.u32 %v9971_v55, 16  ;;  %v13646_v21 = vshll.u32 %v9973_v13, 16  ;;  %v7715_v34 = vld [vmem:[%s13227_s5 + $0x404] sm:$0xf] }
 0x162   : > { %13641 = vst [vmem:[#allocation65_spill] sm:$0xff] %v10293_v62  ;;  %v10300_v16 = vsel %vm9975_vm11, %v1873_v61, 0  ;;  %v6241_v61 = vor.u32 %v7683_v46, %v6238_v7  ;;  %v13648_v7 = vshrl.u32 %v9973_v13, 16 }
 0x163   : > { %13643 = vst [vmem:[#allocation66_spill] sm:$0xff] %v10300_v16  ;;  %2968 = vmatpush.bf16.msra.mxu3 %v6305_v31  ;;  %v1875_v18 = vor.u32 %v1874_v23, %v13645_v56  ;;  %v1876_v12 = vrot.slane %v13646_v21, 1  ;;  %v6430_v23 = vld [vmem:[%s13227_s5 + $0x488] sm:$0xf0] }
 0x164   : > { %2919 = vmatpush.bf16.msra.mxu2 %v6241_v61  ;;  %v6366_v61 = vld [vmem:[%s13227_s5 + $0x408] sm:$0xf0]  ;;  %v6433_v31 = vor.u32 %v7731_v45, %v6430_v23 }
 0x165   : > { %v10329_v46 = vsel %vm9975_vm11, %v1875_v18, 0  ;;  %v6369_v32 = vor.u32 %v7715_v34, %v6366_v61  ;;  %v6614_v34 = vld [vmem:[%s13227_s5 + $0x5f8] sm:$0xf0] }
 0x166   : > { %13647 = vst [vmem:[#allocation67_spill] sm:$0xff] %v10329_v46  ;;  %3066 = vmatpush.bf16.msra.mxu1 %v6433_v31  ;;  %v10369_v31 = vpop.f32.mrf.mxu2 }
 0x167   : > { %3017 = vmatpush.bf16.msra.mxu0 %v6369_v32  ;;  %13650 = vst [vmem:[#allocation69_spill] sm:$0xff] %v10369_v31 }
 0x16a   : > { %2852 = vmatmul.bf16.gmra.mxu0 %v10293_v62  ;;  %v1877_v62 = vor.u32 %v1876_v12, %v13648_v7  ;;  %v7761_v12 = vld [vmem:[%s13227_s5 + $0x574] sm:$0xf]  ;;  %v6550_v7 = vld [vmem:[%s13227_s5 + $0x578] sm:$0xf0] }
 0x16c   : > { %v10348_v18 = vsel %vm9975_vm11, %v1877_v62, 0  ;;  %v7777_v62 = vld [vmem:[%s13227_s5 + $0x5f4] sm:$0xf] }
 0x16d   : > { %2749 = vmatmul.bf16.gmra.mxu2 %v9232_v22  ;;  %2798 = vmatmul.bf16.gmra.mxu3 %v9234_v60  ;;  %13649 = vst [vmem:[#allocation68_spill] sm:$0xff] %v10348_v18  ;;  %v6617_v32 = vor.u32 %v7777_v62, %v6614_v34  ;;  %v6740_v62 = vld [vmem:[%s13227_s5 + $0xf0] sm:$0xf]  ;;  %v7618_v34 = vld [vmem:[%s13227_s5 + $0xf4] sm:$0xf0] }
 0x16e   : > { %2901 = vmatmul.bf16.gmra.mxu1 %v10300_v16 }
 0x16f   : > { %3157 = vmatpush.bf16.msrb.mxu3 %v6617_v32  ;;  %v6542_v32 = vld [vmem:[%s13227_s5 + $0x568] sm:$0xf0] }
 0x177   : > { %v2642_v16 = vpop.f32.mrf.mxu0 }
 0x17a   : > { %2857 = vmatmul.bf16.gmra.mxu0 %v10329_v46 }
 0x17b   : > { %v2691_v56 = vpop.f32.mrf.mxu1 }
 0x17c   : > { %v10350_v21 = vadd.f32 %v2691_v56, %v2642_v16  ;;  %v6553_v16 = vor.u32 %v7761_v12, %v6550_v7  ;;  %v10371_v56 = vpop.f32.mrf.mxu3  ;;  %v6676_v12 = vld [vmem:[%s13227_s5 + $0x70] sm:$0xf]  ;;  %v7602_v7 = vld [vmem:[%s13227_s5 + $0x74] sm:$0xf0] }
 0x17d   : > { %2754 = vmatmul.bf16.gmra.mxu2 %v9600_v28  ;;  %2803 = vmatmul.bf16.gmra.mxu3 %v9602_v57  ;;  %13651 = vst [vmem:[#allocation70_spill] sm:$0xff] %v10371_v56 }
 0x17e   : > { %2906 = vmatmul.bf16.gmra.mxu1 %v10348_v18  ;;  %3108 = vmatpush.bf16.msrb.mxu2 %v6553_v16  ;;  %v6677_v16 = vor.u32 %v7602_v7, %v6676_v12  ;;  %v6606_v12 = vld [vmem:[%s13227_s5 + $0x5e8] sm:$0xf0] }
 0x17f   : > { %v2644_v61 = vpop.f32.mrf.mxu0 }
 0x180   : > { %3686 = vmatpush.bf16.msrb.mxu0 %v6677_v16  ;;  %v7757_v16 = vld [vmem:[%s13227_s5 + $0x554] sm:$0xf] }
 0x183   : > { %v2693_v45 = vpop.f32.mrf.mxu1 }
 0x184   : > { %v10367_v23 = vadd.f32 %v2693_v45, %v2644_v61  ;;  %v7759_v61 = vld [vmem:[%s13227_s5 + $0x564] sm:$0xf] }
 0x185   : > { %v6545_v19 = vor.u32 %v7759_v61, %v6542_v32 }
 0x187   : > { %v2823_v46 = vpop.f32.mrf.mxu0  ;;  %3109 = vmatpush.bf16.msrb.mxu2 %v6545_v19  ;;  %v6732_v19 = vld [vmem:[%s13227_s5 + $0xe0] sm:$0xf] }
 0x18a   : > { %3018 = vmatmul.bf16.vlgmr.msra.gmra.mxu0 %v8728_v59  ;;  %v6741_v59 = vor.u32 %v7618_v34, %v6740_v62 }
 0x18b   : > { %v2872_v18 = vpop.f32.mrf.mxu1 }
 0x18c   : > { %3735 = vmatpush.bf16.msrb.mxu1 %v6741_v59  ;;  %v6668_v59 = vld [vmem:[%s13227_s5 + $0x60] sm:$0xf] }
 0x18d   : > { %2759 = vmatmul.bf16.gmra.mxu2 %v9971_v55  ;;  %2808 = vmatmul.bf16.gmra.mxu3 %v9973_v13 }
 0x18e   : > { %3067 = vmatmul.bf16.vlgmr.msra.gmra.mxu1 %v8766_v15  ;;  %v7775_v15 = vld [vmem:[%s13227_s5 + $0x5e4] sm:$0xf] }
 0x18f   : > { %v2825_v45 = vpop.f32.mrf.mxu0  ;;  %v6609_v43 = vor.u32 %v7775_v15, %v6606_v12  ;;  %v7600_v15 = vld [vmem:[%s13227_s5 + $0x64] sm:$0xf0]  ;;  %v6534_v12 = vld [vmem:[%s13227_s5 + $0x558] sm:$0xf0] }
 0x190   : > { %v2662_v7 = vpop.f32.mrf.mxu2  ;;  %v2711_v24 = vpop.f32.mrf.mxu3 }
 0x191   : > { %v10401_v29 = vadd.f32 %v2711_v24, %v2662_v7  ;;  %3158 = vmatpush.bf16.msrb.mxu3 %v6609_v43  ;;  %v6669_v43 = vor.u32 %v7600_v15, %v6668_v59  ;;  %v7616_v24 = vld [vmem:[%s13227_s5 + $0xe4] sm:$0xf0]  ;;  %v7773_v59 = vld [vmem:[%s13227_s5 + $0x5d4] sm:$0xf]  ;;  %v6598_v15 = vld [vmem:[%s13227_s5 + $0x5d8] sm:$0xf0] }
 0x193   : > { %13652 = vst [vmem:[#allocation71_spill] sm:$0xff] %v10401_v29  ;;  %v2874_v56 = vpop.f32.mrf.mxu1  ;;  %3687 = vmatpush.bf16.msrb.mxu0 %v6669_v43 }
 0x197   : > { %v10403_v62 = vpop.f32.mrf.mxu0 }
 0x198   : > { %v2664_v34 = vpop.f32.mrf.mxu2  ;;  %v2713_v61 = vpop.f32.mrf.mxu3 }
 0x199   : > { %v10405_v32 = vadd.f32 %v2713_v61, %v2664_v34  ;;  %v6733_v34 = vor.u32 %v7616_v24, %v6732_v19  ;;  %v6537_v61 = vor.u32 %v7757_v16, %v6534_v12  ;;  %v2679_v12 = vadd.f32 %v10165_v37, %v10163_v10  ;;  %v6724_v10 = vld [vmem:[%s13227_s5 + $0xd0] sm:$0xf] }
 0x19a   : > { %3023 = vmatmul.bf16.gmra.mxu0 %v9054_v4 }
 0x19b   : > { %13653 = vst [vmem:[#allocation72_spill] sm:$0xff] %v10405_v32  ;;  %v10408_v31 = vpop.f32.mrf.mxu1  ;;  %3736 = vmatpush.bf16.msrb.mxu1 %v6733_v34  ;;  %3110 = vmatpush.bf16.msrb.mxu2 %v6537_v61 }
 0x19d   : > { %2920 = vmatmul.bf16.vlgmr.msra.gmra.mxu2 %v8801_v50  ;;  %2969 = vmatmul.bf16.vlgmr.msra.gmra.mxu3 %v8821_v53  ;;  %v6601_v53 = vor.u32 %v7773_v59, %v6598_v15  ;;  %v7771_v15 = vld [vmem:[%s13227_s5 + $0x5c4] sm:$0xf] }
 0x19e   : > { %3072 = vmatmul.bf16.gmra.mxu1 %v9093_v11 }
 0x19f   : > { %v10431_v7 = vpop.f32.mrf.mxu0  ;;  %3159 = vmatpush.bf16.msrb.mxu3 %v6601_v53  ;;  %v6660_v53 = vld [vmem:[%s13227_s5 + $0x50] sm:$0xf] }
 0x1a0   : > { %v2725_v11 = vpop.f32.mrf.mxu2  ;;  %v2774_v4 = vpop.f32.mrf.mxu3 }
 0x1a1   : > { %v2726_v50 = vadd.f32 %v2725_v11, %v10118_v2 }
 0x1a3   : > { %v2775_v19 = vadd.f32 %v2774_v4, %v2726_v50  ;;  %v10440_v24 = vpop.f32.mrf.mxu1  ;;  %v7598_v4 = vld [vmem:[%s13227_s5 + $0x54] sm:$0xf0] }
 0x1a4   : > { %v6661_v37 = vor.u32 %v7598_v4, %v6660_v53 }
 0x1a5   : > { %v2824_v16 = vadd.f32 %v2823_v46, %v2775_v19  ;;  %v7755_v46 = vld [vmem:[%s13227_s5 + $0x544] sm:$0xf]  ;;  %v6590_v19 = vld [vmem:[%s13227_s5 + $0x5c8] sm:$0xf0] }
 0x1a6   : > { %3688 = vmatpush.bf16.msrb.mxu0 %v6661_v37 }
 0x1a7   : > { %v10444_v32 = vpop.f32.mrf.mxu0  ;;  %v10446_v29 = vadd.f32 %v2872_v18, %v2824_v16  ;;  %v6526_v18 = vld [vmem:[%s13227_s5 + $0x548] sm:$0xf0] }
 0x1a8   : > { %v2727_v25 = vpop.f32.mrf.mxu2  ;;  %v2776_v43 = vpop.f32.mrf.mxu3  ;;  %v6529_v61 = vor.u32 %v7755_v46, %v6526_v18 }
 0x1a9   : > { %v2728_v59 = vadd.f32 %v2727_v25, %v2679_v12  ;;  %v7614_v25 = vld [vmem:[%s13227_s5 + $0xd4] sm:$0xf0] }
 0x1aa   : > { %3028 = vmatmul.bf16.gmra.mxu0 %v9437_v38  ;;  %v6725_v34 = vor.u32 %v7614_v25, %v6724_v10  ;;  %3111 = vmatpush.bf16.msrb.mxu2 %v6529_v61  ;;  %v7612_v61 = vld [vmem:[%s13227_s5 + $0xc4] sm:$0xf0] }
 0x1ab   : > { %v2777_v11 = vadd.f32 %v2776_v43, %v2728_v59  ;;  %v10449_v2 = vpop.f32.mrf.mxu1  ;;  %v6593_v59 = vor.u32 %v7771_v15, %v6590_v19  ;;  %v7753_v15 = vld [vmem:[%s13227_s5 + $0x534] sm:$0xf]  ;;  %v6518_v19 = vld [vmem:[%s13227_s5 + $0x538] sm:$0xf0] }
 0x1ac   : > { %3737 = vmatpush.bf16.msrb.mxu1 %v6725_v34 }
 0x1ad   : > { %v2826_v50 = vadd.f32 %v2825_v45, %v2777_v11  ;;  %2925 = vmatmul.bf16.gmra.mxu2 %v9156_v51  ;;  %2974 = vmatmul.bf16.gmra.mxu3 %v9201_v52 }
 0x1ae   : > { %3077 = vmatmul.bf16.gmra.mxu1 %v9483_v27  ;;  %3160 = vmatpush.bf16.msrb.mxu3 %v6593_v59  ;;  %v6521_v59 = vor.u32 %v7753_v15, %v6518_v19  ;;  %v590_v15 = vld [vmem:[%s536_s23] sm:$0xff]  ;;  %v591_v19 = vld [vmem:[%s536_s23 + $0x8] sm:$0xff]  ;;  %s13872_s23 = sld [smem:[#allocation75_spill]] }
 0x1af   : > { %v10475_v45 = vpop.f32.mrf.mxu0  ;;  %v10483_v16 = vadd.f32 %v2874_v56, %v2826_v50  ;;  %v2684_v56 = vadd.f32 %v10221_v33, %v10219_v58  ;;  %v6652_v58 = vld [vmem:[%s13227_s5 + $0x40] sm:$0xf]  ;;  %v7596_v33 = vld [vmem:[%s13227_s5 + $0x44] sm:$0xf0] }
 0x1b0   : > { %v2730_v12 = vpop.f32.mrf.mxu2  ;;  %v2779_v43 = vpop.f32.mrf.mxu3  ;;  %3112 = vmatpush.bf16.msrb.mxu2 %v6521_v59  ;;  %v615_v59 = vunpack.c.l.bf16 %v591_v19 }
 0x1b1   : > { %v2731_v11 = vadd.f32 %v2730_v12, %v10193_v44 }
 0x1b3   : > { %v2780_v53 = vadd.f32 %v2779_v43, %v2731_v11  ;;  %v10487_v4 = vpop.f32.mrf.mxu1  ;;  %v7769_v11 = vld [vmem:[%s13227_s5 + $0x5b4] sm:$0xf] }
 0x1b4   : > { %s5883_s22 = scalar_lea.hbm %s13872_s23, %s7582_s21 }
 0x1b5   : > { %v2829_v10 = vadd.f32 %v10403_v62, %v2780_v53  ;;  %v6582_v53 = vld [vmem:[%s13227_s5 + $0x5b8] sm:$0xf0] }
 0x1b7   : > { %v10494_v50 = vpop.f32.mrf.mxu0  ;;  %v10497_v37 = vadd.f32 %v10408_v31, %v2829_v10  ;;  %v6716_v31 = vld [vmem:[%s13227_s5 + $0xc0] sm:$0xf] }
 0x1b8   : > { %v2732_v25 = vpop.f32.mrf.mxu2  ;;  %v2781_v44 = vpop.f32.mrf.mxu3  ;;  %v6717_v43 = vor.u32 %v7612_v61, %v6716_v31 }
 0x1b9   : > { %v2733_v46 = vadd.f32 %v2732_v25, %v2684_v56 }
 0x1ba   : > { %3033 = vmatmul.bf16.gmra.mxu0 %v9810_v1  ;;  %3738 = vmatpush.bf16.msrb.mxu1 %v6717_v43  ;;  %v614_v43 = vunpack.c.h.bf16 %v590_v15 }
 0x1bb   : > { %v2782_v18 = vadd.f32 %v2781_v44, %v2733_v46  ;;  %v10500_v34 = vpop.f32.mrf.mxu1  ;;  %v6585_v44 = vor.u32 %v7769_v11, %v6582_v53  ;;  %v616_v11 = vunpack.c.h.bf16 %v591_v19 }
 0x1bd   : > { %v2831_v62 = vadd.f32 %v10431_v7, %v2782_v18  ;;  %2930 = vmatmul.bf16.gmra.mxu2 %v9532_v5  ;;  %2979 = vmatmul.bf16.gmra.mxu3 %v9576_v63  ;;  %v6653_v7 = vor.u32 %v7596_v33, %v6652_v58 }
 0x1be   : > { %3082 = vmatmul.bf16.gmra.mxu1 %v9861_v3  ;;  %3161 = vmatpush.bf16.msrb.mxu3 %v6585_v44 }
 0x1bf   : > { %v10524_v12 = vpop.f32.mrf.mxu0  ;;  %v10533_v10 = vadd.f32 %v10440_v24, %v2831_v62  ;;  %3689 = vmatpush.bf16.msrb.mxu0 %v6653_v7  ;;  %v2689_v24 = vadd.f32 %v10321_v26, %v10304_v0  ;;  %v623_v26 = vmul.f32 %v8487_v42, %v614_v43 }
 0x1c0   : > { %v2735_v56 = vpop.f32.mrf.mxu2  ;;  %v2784_v25 = vpop.f32.mrf.mxu3 }
 0x1c1   : > { %v2736_v46 = vadd.f32 %v2735_v56, %v10249_v40 }
 0x1c3   : > { %v2785_v18 = vadd.f32 %v2784_v25, %v2736_v46  ;;  %v10537_v58 = vpop.f32.mrf.mxu1  ;;  %v625_v25 = vmul.f32 %v8487_v42, %v616_v11  ;;  %v6644_v46 = vld [vmem:[%s13227_s5 + $0x30] sm:$0xf]  ;;  %v7767_v11 = vld [vmem:[%s13227_s5 + $0x5a4] sm:$0xf] }
 0x1c5   : > { %v2834_v33 = vadd.f32 %v10444_v32, %v2785_v18  ;;  %v613_v32 = vunpack.c.l.bf16 %v590_v15  ;;  %v7594_v18 = vld [vmem:[%s13227_s5 + $0x34] sm:$0xf0]  ;;  %v10583_v15 = vadd.f32 %v8493_v48, %v623_v26 }
 0x1c7   : > { %v10545_v62 = vpop.f32.mrf.mxu0  ;;  %v10548_v40 = vadd.f32 %v10449_v2, %v2834_v33  ;;  %v622_v0 = vmul.f32 %v8485_v41, %v613_v32  ;;  %v624_v2 = vmul.f32 %v8485_v41, %v615_v59  ;;  %v6708_v33 = vld [vmem:[%s13227_s5 + $0xb0] sm:$0xf] }
 0x1c8   : > { %v2737_v31 = vpop.f32.mrf.mxu2  ;;  %v2786_v7 = vpop.f32.mrf.mxu3 }
 0x1c9   : > { %v2738_v61 = vadd.f32 %v2737_v31, %v2689_v24  ;;  %v6645_v24 = vor.u32 %v7594_v18, %v6644_v46  ;;  %v7751_v31 = vld [vmem:[%s13227_s5 + $0x524] sm:$0xf]  ;;  %v10586_v19 = vadd.f32 %v8491_v47, %v624_v2 }
 0x1ca   : > { %3038 = vmatmul.bf16.gmra.mxu0 %v8867_v36 }
 0x1cb   : > { %v2787_v53 = vadd.f32 %v2786_v7, %v2738_v61  ;;  %v10551_v56 = vpop.f32.mrf.mxu1  ;;  %v6510_v7 = vld [vmem:[%s13227_s5 + $0x528] sm:$0xf0]  ;;  %v10580_v61 = vadd.f32 %v8491_v47, %v622_v0  ;;  %v10597_v0 = vadd.f32 %v8493_v48, %v625_v25  ;;  %3690 = vmatpush.bf16.msrb.mxu0 %v6645_v24 }
 0x1cc   : > { %v6513_v59 = vor.u32 %v7751_v31, %v6510_v7  ;;  %v6100_v31 = vmul.f32 -1.442695, %v10586_v19 }
 0x1cd   : > { %v2836_v44 = vadd.f32 %v10475_v45, %v2787_v53  ;;  %2935 = vmatmul.bf16.gmra.mxu2 %v9901_v20  ;;  %2984 = vmatmul.bf16.gmra.mxu3 %v9937_v8  ;;  %v7610_v45 = vld [vmem:[%s13227_s5 + $0xb4] sm:$0xf0]  ;;  %v6574_v53 = vld [vmem:[%s13227_s5 + $0x5a8] sm:$0xf0]  ;;  %v6101_v25 = vmul.f32 -1.442695, %v10597_v0 }
 0x1ce   : > { %3087 = vmatmul.bf16.gmra.mxu1 %v8869_v39  ;;  %v6709_v43 = vor.u32 %v7610_v45, %v6708_v33  ;;  %v6577_v18 = vor.u32 %v7767_v11, %v6574_v53  ;;  %v6098_v33 = vmul.f32 -1.442695, %v10580_v61  ;;  %v6099_v45 = vmul.f32 -1.442695, %v10583_v15  ;;  %3113 = vmatpush.bf16.msrb.mxu2 %v6513_v59 }
 0x1cf   : > { %v10588_v32 = vpop.f32.mrf.mxu0  ;;  %v10600_v26 = vadd.f32 %v10487_v4, %v2836_v44 }
 0x1d0   : > { %v2740_v2 = vpop.f32.mrf.mxu2  ;;  %v2789_v46 = vpop.f32.mrf.mxu3  ;;  %3739 = vmatpush.bf16.msrb.mxu1 %v6709_v43  ;;  %3162 = vmatpush.bf16.msrb.mxu3 %v6577_v18  ;;  %8117 = vpow2.f32 %v6098_v33 }
 0x1d1   : > { %v2741_v7 = vadd.f32 %v2740_v2, %v10350_v21  ;;  %8119 = vpow2.f32 %v6099_v45 }
 0x1d2   : > { %8121 = vpow2.f32 %v6100_v31 }
 0x1d3   : > { %v2790_v4 = vadd.f32 %v2789_v46, %v2741_v7  ;;  %v10607_v44 = vpop.f32.mrf.mxu1  ;;  %8123 = vpow2.f32 %v6101_v25 }
 0x1d5   : > { %v2839_v24 = vadd.f32 %v10494_v50, %v2790_v4  ;;  %v6636_v4 = vld [vmem:[%s13227_s5 + $0x20] sm:$0xf] }
 0x1d6   : > { %v8118_v21 = vpop.eup %8117 }
 0x1d7   : > { %v10610_v11 = vpop.f32.mrf.mxu0  ;;  %v10613_v53 = vadd.f32 %v10500_v34, %v2839_v24  ;;  %v8120_v2 = vpop.eup %8119  ;;  %v10616_v33 = vadd.f32 1.0, %v8118_v21  ;;  %v7592_v24 = vld [vmem:[%s13227_s5 + $0x24] sm:$0xf0]  ;;  %v6700_v21 = vld [vmem:[%s13227_s5 + $0xa0] sm:$0xf] }
 0x1d8   : > { %v2742_v43 = vpop.f32.mrf.mxu2  ;;  %v2791_v59 = vpop.f32.mrf.mxu3  ;;  %v10619_v45 = vadd.f32 1.0, %v8120_v2  ;;  %v6502_v2 = vld [vmem:[%s13227_s5 + $0x518] sm:$0xf0] }
 0x1d9   : > { %v2743_v18 = vadd.f32 %v2742_v43, %v10367_v23  ;;  %v8122_v46 = vpop.eup %8121  ;;  %8125 = vrcp.f32 %v10616_v33  ;;  %v7608_v43 = vld [vmem:[%s13227_s5 + $0xa4] sm:$0xf0]  ;;  %vm656_vm12 = vweird.f32 %v10616_v33 }
 0x1da   : > { %3043 = vmatmul.bf16.gmra.mxu0 %v9232_v22  ;;  %v8124_v50 = vpop.eup %8123  ;;  %v10623_v25 = vadd.f32 1.0, %v8122_v46  ;;  %8127 = vrcp.f32 %v10619_v45  ;;  %v6701_v46 = vor.u32 %v7608_v43, %v6700_v21  ;;  %v677_v39 = vand.u32 2147483648, %v10619_v45 }
 0x1db   : > { %v2792_v31 = vadd.f32 %v2791_v59, %v2743_v18  ;;  %v10621_v7 = vpop.f32.mrf.mxu1  ;;  %v10626_v34 = vadd.f32 1.0, %v8124_v50  ;;  %v7749_v59 = vld [vmem:[%s13227_s5 + $0x514] sm:$0xf]  ;;  %vm671_vm15 = vweird.f32 %v10619_v45  ;;  %v675_v3 = vand.u32 2147483647, %v10619_v45 }
 0x1dc   : > { %8129 = vrcp.f32 %v10623_v25  ;;  %v6505_v50 = vor.u32 %v7749_v59, %v6502_v2  ;;  %3740 = vmatpush.bf16.msrb.mxu1 %v6701_v46  ;;  %v2699_v46 = vadd.f32 %v10185_v35, %v10183_v54  ;;  %vm686_vm5 = vweird.f32 %v10623_v25 }
 0x1dd   : > { %v2841_v23 = vadd.f32 %v10524_v12, %v2792_v31  ;;  %2940 = vmatmul.bf16.gmra.mxu2 %v8912_v17  ;;  %2989 = vmatmul.bf16.gmra.mxu3 %v8916_v6  ;;  %v6637_v12 = vor.u32 %v7592_v24, %v6636_v4  ;;  %8131 = vrcp.f32 %v10626_v34  ;;  %v7765_v31 = vld [vmem:[%s13227_s5 + $0x594] sm:$0xf]  ;;  %v6566_v4 = vld [vmem:[%s13227_s5 + $0x598] sm:$0xf0]  ;;  %vm676_vm3 = vcmp.eq.f32.partialorder %v675_v3, 8.507059e+37 }
 0x1de   : > { %3092 = vmatmul.bf16.gmra.mxu1 %v9234_v60  ;;  %v6569_v42 = vor.u32 %v7765_v31, %v6566_v4  ;;  %3114 = vmatpush.bf16.msrb.mxu2 %v6505_v50  ;;  %v6692_v3 = vld [vmem:[%s13227_s5 + $0x90] sm:$0xf]  ;;  %vm701_vm7 = vweird.f32 %v10626_v34 }
 0x1df   : > { %v10653_v18 = vpop.f32.mrf.mxu0  ;;  %v10662_v24 = vadd.f32 %v10537_v58, %v2841_v23  ;;  %3691 = vmatpush.bf16.msrb.mxu0 %v6637_v12  ;;  %v8126_v41 = vpop.eup %8125 }
 0x1e0   : > { %v2745_v48 = vpop.f32.mrf.mxu2  ;;  %v2794_v47 = vpop.f32.mrf.mxu3  ;;  %3163 = vmatpush.bf16.msrb.mxu3 %v6569_v42  ;;  %v652_v59 = vmul.f32 %v8126_v41, %v10616_v33  ;;  %vm657_vm13 = vweird.f32 %v8126_v41 }
 0x1e1   : > { %v2746_v21 = vadd.f32 %v2745_v48, %v10161_v9  ;;  %v8128_v43 = vpop.eup %8127  ;;  %vm658_vm14 = vmor %vm656_vm12, %vm657_vm13 }
 0x1e2   : > { %v10666_v2 = vpop.eup %8129  ;;  %v667_v58 = vmul.f32 %v8128_v43, %v10619_v45  ;;  %v653_v12 = vsub.f32 1.0, %v652_v59  ;;  %vm672_vm4 = vweird.f32 %v8128_v43  ;;  %v13655_v45 = vld [vmem:[#allocation35_spill] sm:$0xff] }
 0x1e3   : > { %v2795_v60 = vadd.f32 %v2794_v47, %v2746_v21  ;;  %v10668_v22 = vpop.f32.mrf.mxu1  ;;  %v10672_v23 = vpop.eup %8131  ;;  %v682_v48 = vmul.f32 %v10666_v2, %v10623_v25  ;;  %v662_v21 = vand.u32 2147483648, %v10616_v33  ;;  %vm673_vm2 = vmor %vm671_vm15, %vm672_vm4  ;;  %vm687_vm6 = vweird.f32 %v10666_v2 }
 0x1e4   : > { %v668_v42 = vsub.f32 1.0, %v667_v58  ;;  %v654_v47 = vmul.f32 %v8126_v41, %v653_v12  ;;  %v10683_v31 = vmul.f32 %v10672_v23, %v10626_v34  ;;  %v660_v58 = vand.u32 2147483647, %v10616_v33  ;;  %vm10744_vm10 = vmor %vm686_vm5, %vm687_vm6 }
 0x1e5   : > { %v10677_v9 = vadd.f32 %v10545_v62, %v2795_v60  ;;  %v683_v50 = vsub.f32 1.0, %v682_v48  ;;  %v692_v60 = vand.u32 2147483648, %v10623_v25  ;;  %v663_v48 = vor.u32 1.1754944e-38, %v662_v21 }
 0x1e6   : > { %v669_v59 = vmul.f32 %v8128_v43, %v668_v42  ;;  %v655_v54 = vadd.f32 %v8126_v41, %v654_v47  ;;  %vm661_vm0 = vcmp.eq.f32.partialorder %v660_v58, 8.507059e+37  ;;  %v678_v33 = vor.u32 1.1754944e-38, %v677_v39  ;;  %v7590_v39 = vld [vmem:[%s13227_s5 + $0x14] sm:$0xf0] }
 0x1e7   : > { %v10685_v4 = vpop.f32.mrf.mxu0  ;;  %vm702_vm8 = vweird.f32 %v10672_v23 }
 0x1e8   : > { %v2747_v62 = vpop.f32.mrf.mxu2  ;;  %v2796_v35 = vpop.f32.mrf.mxu3  ;;  %v670_v42 = vadd.f32 %v8128_v43, %v669_v59  ;;  %v659_v36 = vsel %vm658_vm14, %v8126_v41, %v655_v54  ;;  %v13654_v59 = vld [vmem:[#allocation34_spill] sm:$0xff]  ;;  %v6494_v54 = vld [vmem:[%s13227_s5 + $0x508] sm:$0xf0]  ;;  %vm703_vm12 = vmor %vm701_vm7, %vm702_vm8 }
 0x1e9   : > { %v2748_v12 = vadd.f32 %v2747_v62, %v2699_v46  ;;  %v664_v27 = vsel %vm661_vm0, %v663_v48, %v659_v36  ;;  %v684_v46 = vmul.f32 %v10666_v2, %v683_v50  ;;  %v6628_v36 = vld [vmem:[%s13227_s5 + $0x10] sm:$0xf]  ;;  %v7606_v62 = vld [vmem:[%s13227_s5 + $0x94] sm:$0xf0] }
 0x1ea   : > { %3048 = vmatmul.bf16.gmra.mxu0 %v9600_v28  ;;  %v674_v21 = vsel %vm673_vm2, %v8128_v43, %v670_v42  ;;  %v711_v58 = vmul.f32 %v664_v27, %v10580_v61  ;;  %v6693_v42 = vor.u32 %v7606_v62, %v6692_v3  ;;  %v690_v61 = vand.u32 2147483647, %v10623_v25 }
 0x1eb   : > { %v2797_v47 = vadd.f32 %v2796_v35, %v2748_v12  ;;  %v10699_v1 = vpop.f32.mrf.mxu1  ;;  %v679_v43 = vsel %vm676_vm3, %v678_v33, %v674_v21  ;;  %v685_v50 = vadd.f32 %v10666_v2, %v684_v46  ;;  %v7747_v35 = vld [vmem:[%s13227_s5 + $0x504] sm:$0xf]  ;;  %v6558_v46 = vld [vmem:[%s13227_s5 + $0x588] sm:$0xf0]  ;;  %v698_v62 = vsub.f32 1.0, %v10683_v31 }
 0x1ec   : > { %v712_v12 = vmul.f32 %v679_v43, %v10583_v15  ;;  %v7763_v33 = vld [vmem:[%s13227_s5 + $0x584] sm:$0xf]  ;;  %v718_v15 = vstv %s717_s11  ;;  %v693_v43 = vor.u32 1.1754944e-38, %v692_v60  ;;  %3741 = vmatpush.bf16.msrb.mxu1 %v6693_v42  ;;  %vm691_vm9 = vcmp.eq.f32.partialorder %v690_v61, 8.507059e+37  ;;  %s6089_s11 = sshll.u32 %s13899_s25, 2 }
 0x1ed   : > { %v2846_v41 = vadd.f32 %v10588_v32, %v2797_v47  ;;  %2945 = vmatmul.bf16.gmra.mxu2 %v13654_v59  ;;  %2994 = vmatmul.bf16.gmra.mxu3 %v13655_v45  ;;  %v6629_v32 = vor.u32 %v7590_v39, %v6628_v36  ;;  %v6497_v47 = vor.u32 %v7747_v35, %v6494_v54  ;;  %v705_v54 = vand.u32 2147483647, %v10626_v34  ;;  %s562_s27 = sadd.s32 %s6089_s11, %s8451_s19  ;;  %s12944_s11 = scalar_lea.vmem %s13229_s7, %s6097_s15 }
 0x1ee   : > { %3097 = vmatmul.bf16.gmra.mxu1 %v9602_v57  ;;  %v6561_v39 = vor.u32 %v7763_v33, %v6558_v46  ;;  %v689_v3 = vsel %vm10744_vm10, %v10666_v2, %v685_v50  ;;  %v707_v25 = vand.u32 2147483648, %v10626_v34  ;;  %v719_v33 = vmul.f32 %v718_v15, %v711_v58  ;;  %s6091_s28 = sshll.u32 %s562_s27, 2  ;;  %s5886_s15 = sshll.u32 %s5883_s22, 4  ;;  %s5887_s15 = int_to_ptr.hbm [resolvable:$true] %s5886_s15 }
 0x1ef   : > { %v10732_v48 = vpop.f32.mrf.mxu0  ;;  %3692 = vmatpush.bf16.msrb.mxu0 %v6629_v32  ;;  %3115 = vmatpush.bf16.msrb.mxu2 %v6497_v47  ;;  %v694_v57 = vsel %vm691_vm9, %v693_v43, %v689_v3  ;;  %v699_v32 = vmul.f32 %v10672_v23, %v698_v62  ;;  %vm706_vm13 = vcmp.eq.f32.partialorder %v705_v54, 8.507059e+37  ;;  %v720_v2 = vmul.f32 %v718_v15, %v712_v12  ;;  %s564_s20 = scalar_lea.vmem %s13224_s2, %s6091_s28  ;;  %s8163_s29 = sshra.s32 %s5887_s15, 4  ;;  %s8164_s29 = int_to_ptr.hbm [resolvable:$true] %s8163_s29 }
 0x1f0   : > { %v2750_v21 = vpop.f32.mrf.mxu2  ;;  %v2799_v36 = vpop.f32.mrf.mxu3  ;;  %3164 = vmatpush.bf16.msrb.mxu3 %v6561_v39  ;;  %v713_v60 = vmul.f32 %v694_v57, %v10586_v19  ;;  %v10767_v50 = vadd.f32 %v10551_v56, %v10677_v9  ;;  %v10770_v58 = vadd.f32 %v10607_v44, %v2846_v41  ;;  %v2704_v34 = vadd.f32 %v10241_v14, %v10239_v30  ;;  %v6620_v57 = vld [vmem:[%s13227_s5] sm:$0xf]  ;;  %v7588_v56 = vld [vmem:[%s13227_s5 + $0x4] sm:$0xf0]  ;;  %p8170_p10 = scmp.lt.s32.totalorder %s8164_s29, %s13872_s23 }
 0x1f1   : > { %v2751_v35 = vadd.f32 %v2750_v21, %v10217_v49  ;;  %v708_v49 = vor.u32 1.1754944e-38, %v707_v25  ;;  %v700_v31 = vadd.f32 %v10672_v23, %v699_v32  ;;  %v1559_v30 = vpack.c.bf16 %v720_v2, %v719_v33  ;;  %v6684_v21 = vld [vmem:[%s13227_s5 + $0x80] sm:$0xf]  ;;  %v13658_v25 = vld [vmem:[#allocation41_spill] sm:$0xff]  ;;  %v13659_v32 = vld [vmem:[#allocation42_spill] sm:$0xff] }
 0x1f2   : > { %v721_v14 = vmul.f32 %v718_v15, %v713_v60  ;;  %v6804_v33 = vld [vmem:[%s13227_s5 + $0x170] sm:$0xf] }
 0x1f3   : > { %v2800_v46 = vadd.f32 %v2799_v36, %v2751_v35  ;;  %v10757_v27 = vpop.f32.mrf.mxu1  ;;  %v704_v47 = vsel %vm703_vm12, %v10672_v23, %v700_v31  ;;  %v6621_v23 = vor.u32 %v7588_v56, %v6620_v57  ;;  %v7604_v36 = vld [vmem:[%s13227_s5 + $0x84] sm:$0xf0]  ;;  %v1599_v62 = vunpack.c.l.b16 %v1559_v30  ;;  %v7650_v31 = vld [vmem:[%s13227_s5 + $0x1f4] sm:$0xf0] }
 0x1f4   : > { %v709_v19 = vsel %vm706_vm13, %v708_v49, %v704_v47  ;;  %v1600_v35 = vunpack.c.h.b16 %v1559_v30 }
 0x1f5   : > { %v2849_v42 = vadd.f32 %v10610_v11, %v2800_v46  ;;  %v714_v41 = vmul.f32 %v709_v19, %v10597_v0  ;;  %3693 = vmatpush.bf16.msrb.mxu0 %v6621_v23  ;;  %v6868_v46 = vld [vmem:[%s13227_s5 + $0x1f0] sm:$0xf] }
 0x1f7   : > { %v10776_v61 = vpop.f32.mrf.mxu0  ;;  %v10785_v44 = vadd.f32 %v10621_v7, %v2849_v42  ;;  %v6685_v7 = vor.u32 %v7604_v36, %v6684_v21  ;;  %v722_v39 = vmul.f32 %v718_v15, %v714_v41  ;;  %v7634_v15 = vld [vmem:[%s13227_s5 + $0x174] sm:$0xf0]  ;;  %v6869_v42 = vor.u32 %v7650_v31, %v6868_v46 }
 0x1f8   : > { %v2752_v11 = vpop.f32.mrf.mxu2  ;;  %v2801_v9 = vpop.f32.mrf.mxu3 }
 0x1f9   : > { %v2753_v12 = vadd.f32 %v2752_v11, %v2704_v34  ;;  %3742 = vmatpush.bf16.msrb.mxu1 %v6685_v7  ;;  %v1560_v0 = vpack.c.bf16 %v722_v39, %v721_v14  ;;  %v13660_v11 = vld [vmem:[#allocation64_spill] sm:$0xff]  ;;  %3833 = vmatpush.bf16.msra.mxu3 %v6869_v42 }
 0x1fa   : > { %3053 = vmatmul.bf16.gmra.mxu0 %v9971_v55 }
 0x1fb   : > { %v2802_v3 = vadd.f32 %v2801_v9, %v2753_v12  ;;  %v10795_v43 = vpop.f32.mrf.mxu1  ;;  %v1601_v49 = vunpack.c.l.b16 %v1560_v0  ;;  %v1602_v2 = vunpack.c.h.b16 %v1560_v0  ;;  %v13661_v0 = vld [vmem:[#allocation69_spill] sm:$0xff] }
 0x1fd   : > { %v2851_v54 = vadd.f32 %v10653_v18, %v2802_v3  ;;  %2950 = vmatmul.bf16.gmra.mxu2 %v13658_v25  ;;  %2999 = vmatmul.bf16.gmra.mxu3 %v13659_v32  ;;  %v6805_v18 = vor.u32 %v7634_v15, %v6804_v33  ;;  %v10818_v56 = vpack.c.b16 %v1601_v49, %v1599_v62  ;;  %v13662_v62 = vld [vmem:[#allocation70_spill] sm:$0xff] }
 0x1fe   : > { %3102 = vmatmul.bf16.gmra.mxu1 %v9973_v13  ;;  %v10820_v19 = vpack.c.b16 %v1602_v2, %v1600_v35  ;;  %v2709_v35 = vadd.f32 %v13662_v62, %v13661_v0  ;;  %v6860_v0 = vld [vmem:[%s13227_s5 + $0x1e0] sm:$0xf]  ;;  %v7648_v62 = vld [vmem:[%s13227_s5 + $0x1e4] sm:$0xf0] }
 0x1ff   : > { %v10813_v60 = vpop.f32.mrf.mxu0  ;;  %v10816_v47 = vadd.f32 %v10668_v22, %v2851_v54  ;;  %3784 = vmatpush.bf16.msra.mxu2 %v6805_v18  ;;  %v13358_v23 = vshrl.u32 %v10818_v56, 16  ;;  %v13360_v41 = vshll.u32 %v10818_v56, 16 }
 0x200   : > { %v2755_v34 = vpop.f32.mrf.mxu2  ;;  %v2804_v57 = vpop.f32.mrf.mxu3  ;;  %v13357_v14 = vshrl.u32 %v10820_v19, 16  ;;  %v13359_v30 = vshll.u32 %v10820_v19, 16 }
 0x201   : > { %v2756_v9 = vadd.f32 %v2755_v34, %v13660_v11  ;;  %v1662_v21 = vrot.slane %v13358_v23, 7  ;;  %v7666_v34 = vld [vmem:[%s13227_s5 + $0x274] sm:$0xf0] }
 0x202   : > { %v1669_v36 = vrot.slane %v13357_v14, 7 }
 0x203   : > { %v2805_v22 = vadd.f32 %v2804_v57, %v2756_v9  ;;  %v10827_v12 = vpop.f32.mrf.mxu1  ;;  %v1665_v39 = vor.u32 %v13360_v41, %v1662_v21  ;;  %v6996_v57 = vld [vmem:[%s13227_s5 + $0x2f0] sm:$0xf]  ;;  %v7682_v9 = vld [vmem:[%s13227_s5 + $0x2f4] sm:$0xf0]  ;;  %v13666_v21 = vld [vmem:[#allocation52_spill] sm:$0xff] }
 0x204   : > { %v1672_v3 = vor.u32 %v13359_v30, %v1669_v36  ;;  %v13667_v36 = vld [vmem:[#allocation53_spill] sm:$0xff] }
 0x205   : > { %v2854_v7 = vadd.f32 %v10685_v4, %v2805_v22  ;;  %v10847_v18 = vsel %vm8784_vm1, 0, %v1665_v39  ;;  %v6796_v39 = vld [vmem:[%s13227_s5 + $0x160] sm:$0xf] }
 0x206   : > { %13664 = vst [vmem:[#allocation64_spill] sm:$0xff] %v10847_v18  ;;  %v10852_v2 = vsel %vm8784_vm1, 0, %v1672_v3  ;;  %v7632_v3 = vld [vmem:[%s13227_s5 + $0x164] sm:$0xf0] }
 0x207   : > { %v10840_v54 = vpop.f32.mrf.mxu0  ;;  %v10843_v33 = vadd.f32 %v10699_v1, %v2854_v7  ;;  %13665 = vst [vmem:[#allocation69_spill] sm:$0xff] %v10852_v2  ;;  %v6932_v1 = vld [vmem:[%s13227_s5 + $0x270] sm:$0xf]  ;;  %v6997_v7 = vor.u32 %v7682_v9, %v6996_v57 }
 0x208   : > { %v2757_v15 = vpop.f32.mrf.mxu2  ;;  %v2806_v46 = vpop.f32.mrf.mxu3  ;;  %v6933_v11 = vor.u32 %v7666_v34, %v6932_v1  ;;  %v13668_v1 = vld [vmem:[#allocation71_spill] sm:$0xff] }
 0x209   : > { %v2758_v4 = vadd.f32 %v2757_v15, %v2709_v35  ;;  %3931 = vmatpush.bf16.msra.mxu1 %v6997_v7  ;;  %v6861_v15 = vor.u32 %v7648_v62, %v6860_v0  ;;  %v13669_v62 = vld [vmem:[#allocation72_spill] sm:$0xff] }
 0x20a   : > { %3694 = vmatmul.bf16.vlgmr.msrb.gmra.mxu0 %v10847_v18 }
 0x20b   : > { %v2807_v31 = vadd.f32 %v2806_v46, %v2758_v4  ;;  %v10854_v42 = vpop.f32.mrf.mxu1  ;;  %3882 = vmatpush.bf16.msra.mxu0 %v6933_v11  ;;  %3834 = vmatpush.bf16.msra.mxu3 %v6861_v15  ;;  %v6924_v15 = vld [vmem:[%s13227_s5 + $0x260] sm:$0xf] }
 0x20d   : > { %v2856_v22 = vadd.f32 %v10732_v48, %v2807_v31  ;;  %2955 = vmatmul.bf16.gmra.mxu2 %v13666_v21  ;;  %3004 = vmatmul.bf16.gmra.mxu3 %v13667_v36  ;;  %v6797_v48 = vor.u32 %v7632_v3, %v6796_v39 }
 0x20e   : > { %3743 = vmatmul.bf16.vlgmr.msrb.gmra.mxu1 %v10852_v2 }
 0x20f   : > { %v3021_v35 = vpop.f32.mrf.mxu0  ;;  %v10885_v46 = vadd.f32 %v10757_v27, %v2856_v22  ;;  %3785 = vmatpush.bf16.msra.mxu2 %v6797_v48  ;;  %v13670_v22 = vld [vmem:[#allocation22_spill] sm:$0xff] }
 0x210   : > { %v2760_v4 = vpop.f32.mrf.mxu2  ;;  %v2809_v31 = vpop.f32.mrf.mxu3 }
 0x211   : > { %v2761_v34 = vadd.f32 %v2760_v4, %v13668_v1 }
 0x213   : > { %v2810_v57 = vadd.f32 %v2809_v31, %v2761_v34  ;;  %v3070_v9 = vpop.f32.mrf.mxu1  ;;  %v7680_v31 = vld [vmem:[%s13227_s5 + $0x2e4] sm:$0xf0]  ;;  %v13671_v34 = vld [vmem:[#allocation50_spill] sm:$0xff] }
 0x215   : > { %v2859_v11 = vadd.f32 %v10776_v61, %v2810_v57  ;;  %v7664_v61 = vld [vmem:[%s13227_s5 + $0x264] sm:$0xf0]  ;;  %v13672_v57 = vld [vmem:[#allocation51_spill] sm:$0xff] }
 0x216   : > { %v6925_v4 = vor.u32 %v7664_v61, %v6924_v15 }
 0x217   : > { %v10889_v39 = vpop.f32.mrf.mxu0  ;;  %v10892_v3 = vadd.f32 %v10795_v43, %v2859_v11  ;;  %v6988_v43 = vld [vmem:[%s13227_s5 + $0x2e0] sm:$0xf] }
 0x218   : > { %v2762_v7 = vpop.f32.mrf.mxu2  ;;  %v2811_v0 = vpop.f32.mrf.mxu3  ;;  %v6989_v11 = vor.u32 %v7680_v31, %v6988_v43  ;;  %3883 = vmatpush.bf16.msra.mxu0 %v6925_v4 }
 0x219   : > { %v2763_v27 = vadd.f32 %v2762_v7, %v13669_v62  ;;  %v6788_v7 = vld [vmem:[%s13227_s5 + $0x150] sm:$0xf] }
 0x21a   : > { %3699 = vmatmul.bf16.gmra.mxu0 %v13670_v22  ;;  %v6852_v62 = vld [vmem:[%s13227_s5 + $0x1d0] sm:$0xf]  ;;  %3932 = vmatpush.bf16.msra.mxu1 %v6989_v11 }
 0x21b   : > { %v2812_v14 = vadd.f32 %v2811_v0, %v2763_v27  ;;  %v3073_v48 = vpop.f32.mrf.mxu1  ;;  %v7630_v0 = vld [vmem:[%s13227_s5 + $0x154] sm:$0xf0]  ;;  %v13673_v27 = vld [vmem:[#allocation23_spill] sm:$0xff] }
 0x21d   : > { %v2861_v1 = vadd.f32 %v10813_v60, %v2812_v14  ;;  %3116 = vmatmul.bf16.vlgmr.msrb.gmra.mxu2 %v13671_v34  ;;  %3165 = vmatmul.bf16.vlgmr.msrb.gmra.mxu3 %v13672_v57  ;;  %v6789_v60 = vor.u32 %v7630_v0, %v6788_v7  ;;  %v7646_v14 = vld [vmem:[%s13227_s5 + $0x1d4] sm:$0xf0] }
 0x21e   : > { %3748 = vmatmul.bf16.gmra.mxu1 %v13673_v27  ;;  %v6853_v61 = vor.u32 %v7646_v14, %v6852_v62  ;;  %v7628_v14 = vld [vmem:[%s13227_s5 + $0x144] sm:$0xf0] }
 0x21f   : > { %v3026_v15 = vpop.f32.mrf.mxu0  ;;  %v10925_v43 = vadd.f32 %v10827_v12, %v2861_v1  ;;  %3786 = vmatpush.bf16.msra.mxu2 %v6789_v60  ;;  %v6780_v60 = vld [vmem:[%s13227_s5 + $0x140] sm:$0xf] }
 0x220   : > { %v2921_v31 = vpop.f32.mrf.mxu2  ;;  %v2970_v23 = vpop.f32.mrf.mxu3  ;;  %3835 = vmatpush.bf16.msra.mxu3 %v6853_v61  ;;  %v6844_v61 = vld [vmem:[%s13227_s5 + $0x1c0] sm:$0xf] }
 0x221   : > { %13674 = vst [vmem:[#allocation70_spill] sm:$0xff] %v10925_v43  ;;  %v2971_v30 = vadd.f32 %v2970_v23, %v2921_v31  ;;  %v6916_v23 = vld [vmem:[%s13227_s5 + $0x250] sm:$0xf] }
 0x223   : > { %v3020_v41 = vadd.f32 %v10840_v54, %v2971_v30  ;;  %v3075_v13 = vpop.f32.mrf.mxu1  ;;  %v7662_v30 = vld [vmem:[%s13227_s5 + $0x254] sm:$0xf0] }
 0x224   : > { %v6917_v54 = vor.u32 %v7662_v30, %v6916_v23 }
 0x225   : > { %v10929_v4 = vadd.f32 %v10854_v42, %v3020_v41  ;;  %v6980_v41 = vld [vmem:[%s13227_s5 + $0x2d0] sm:$0xf]  ;;  %v13675_v42 = vld [vmem:[#allocation54_spill] sm:$0xff] }
 0x226   : > { %3884 = vmatpush.bf16.msra.mxu0 %v6917_v54 }
 0x227   : > { %v10931_v7 = vpop.f32.mrf.mxu0 }
 0x228   : > { %v2923_v0 = vpop.f32.mrf.mxu2  ;;  %v2972_v55 = vpop.f32.mrf.mxu3 }
 0x229   : > { %v2973_v11 = vadd.f32 %v2972_v55, %v2923_v0  ;;  %v7678_v55 = vld [vmem:[%s13227_s5 + $0x2d4] sm:$0xf0]  ;;  %v6781_v0 = vor.u32 %v7628_v14, %v6780_v60 }
 0x22a   : > { %3704 = vmatmul.bf16.gmra.mxu0 %v9156_v51  ;;  %v6981_v62 = vor.u32 %v7678_v55, %v6980_v41 }
 0x22b   : > { %v3022_v12 = vadd.f32 %v3021_v35, %v2973_v11  ;;  %v3078_v1 = vpop.f32.mrf.mxu1  ;;  %v13676_v35 = vld [vmem:[#allocation55_spill] sm:$0xff]  ;;  %v7644_v11 = vld [vmem:[%s13227_s5 + $0x1c4] sm:$0xf0]  ;;  %3787 = vmatpush.bf16.msra.mxu2 %v6781_v0 }
 0x22c   : > { %3933 = vmatpush.bf16.msra.mxu1 %v6981_v62  ;;  %v6845_v30 = vor.u32 %v7644_v11, %v6844_v61  ;;  %v6908_v61 = vld [vmem:[%s13227_s5 + $0x240] sm:$0xf]  ;;  %v13677_v0 = vld [vmem:[#allocation56_spill] sm:$0xff] }
 0x22d   : > { %3121 = vmatmul.bf16.gmra.mxu2 %v13675_v42  ;;  %3170 = vmatmul.bf16.gmra.mxu3 %v13676_v35  ;;  %v10957_v31 = vadd.f32 %v3070_v9, %v3022_v12 }
 0x22e   : > { %3753 = vmatmul.bf16.gmra.mxu1 %v9201_v52  ;;  %3836 = vmatpush.bf16.msra.mxu3 %v6845_v30  ;;  %v6772_v30 = vld [vmem:[%s13227_s5 + $0x130] sm:$0xf] }
 0x22f   : > { %v3031_v23 = vpop.f32.mrf.mxu0 }
 0x230   : > { %v2926_v41 = vpop.f32.mrf.mxu2  ;;  %v2975_v55 = vpop.f32.mrf.mxu3 }
 0x231   : > { %v2976_v49 = vadd.f32 %v2975_v55, %v2926_v41  ;;  %v7626_v41 = vld [vmem:[%s13227_s5 + $0x134] sm:$0xf0]  ;;  %v6836_v55 = vld [vmem:[%s13227_s5 + $0x1b0] sm:$0xf] }
 0x233   : > { %v3025_v36 = vadd.f32 %v10889_v39, %v2976_v49  ;;  %v3080_v9 = vpop.f32.mrf.mxu1  ;;  %v7660_v49 = vld [vmem:[%s13227_s5 + $0x244] sm:$0xf0] }
 0x234   : > { %v6909_v39 = vor.u32 %v7660_v49, %v6908_v61 }
 0x235   : > { %v10964_v12 = vadd.f32 %v3073_v48, %v3025_v36  ;;  %v6972_v36 = vld [vmem:[%s13227_s5 + $0x2c0] sm:$0xf]  ;;  %v7676_v48 = vld [vmem:[%s13227_s5 + $0x2c4] sm:$0xf0] }
 0x236   : > { %v6973_v11 = vor.u32 %v7676_v48, %v6972_v36  ;;  %3885 = vmatpush.bf16.msra.mxu0 %v6909_v39 }
 0x237   : > { %v10966_v21 = vpop.f32.mrf.mxu0 }
 0x238   : > { %v2928_v54 = vpop.f32.mrf.mxu2  ;;  %v2977_v60 = vpop.f32.mrf.mxu3  ;;  %3934 = vmatpush.bf16.msra.mxu1 %v6973_v11 }
 0x239   : > { %v2978_v14 = vadd.f32 %v2977_v60, %v2928_v54  ;;  %v6773_v60 = vor.u32 %v7626_v41, %v6772_v30 }
 0x23a   : > { %3709 = vmatmul.bf16.gmra.mxu0 %v9532_v5 }
 0x23b   : > { %v3027_v52 = vadd.f32 %v3026_v15, %v2978_v14  ;;  %v3083_v62 = vpop.f32.mrf.mxu1  ;;  %v13678_v15 = vld [vmem:[#allocation57_spill] sm:$0xff]  ;;  %v7642_v14 = vld [vmem:[%s13227_s5 + $0x1b4] sm:$0xf0]  ;;  %3788 = vmatpush.bf16.msra.mxu2 %v6773_v60 }
 0x23c   : > { %v6837_v49 = vor.u32 %v7642_v14, %v6836_v55  ;;  %v6900_v55 = vld [vmem:[%s13227_s5 + $0x230] sm:$0xf]  ;;  %v13679_v60 = vld [vmem:[#allocation58_spill] sm:$0xff] }
 0x23d   : > { %3126 = vmatmul.bf16.gmra.mxu2 %v13677_v0  ;;  %3175 = vmatmul.bf16.gmra.mxu3 %v13678_v15  ;;  %v10992_v54 = vadd.f32 %v3075_v13, %v3027_v52 }
 0x23e   : > { %3758 = vmatmul.bf16.gmra.mxu1 %v9576_v63  ;;  %3837 = vmatpush.bf16.msra.mxu3 %v6837_v49  ;;  %v6764_v49 = vld [vmem:[%s13227_s5 + $0x120] sm:$0xf] }
 0x23f   : > { %v3036_v61 = vpop.f32.mrf.mxu0 }
 0x240   : > { %v2931_v36 = vpop.f32.mrf.mxu2  ;;  %v2980_v48 = vpop.f32.mrf.mxu3 }
 0x241   : > { %v2981_v5 = vadd.f32 %v2980_v48, %v2931_v36  ;;  %v7624_v36 = vld [vmem:[%s13227_s5 + $0x124] sm:$0xf0]  ;;  %v6828_v48 = vld [vmem:[%s13227_s5 + $0x1a0] sm:$0xf] }
 0x243   : > { %v3030_v51 = vadd.f32 %v10931_v7, %v2981_v5  ;;  %v3085_v52 = vpop.f32.mrf.mxu1  ;;  %v7658_v5 = vld [vmem:[%s13227_s5 + $0x234] sm:$0xf0] }
 0x244   : > { %v6901_v7 = vor.u32 %v7658_v5, %v6900_v55 }
 0x245   : > { %v10999_v13 = vadd.f32 %v3078_v1, %v3030_v51  ;;  %v6964_v51 = vld [vmem:[%s13227_s5 + $0x2b0] sm:$0xf]  ;;  %v7674_v1 = vld [vmem:[%s13227_s5 + $0x2b4] sm:$0xf0] }
 0x246   : > { %v6965_v14 = vor.u32 %v7674_v1, %v6964_v51  ;;  %3886 = vmatpush.bf16.msra.mxu0 %v6901_v7 }
 0x247   : > { %v11001_v63 = vpop.f32.mrf.mxu0 }
 0x248   : > { %v2933_v39 = vpop.f32.mrf.mxu2  ;;  %v2982_v30 = vpop.f32.mrf.mxu3  ;;  %3935 = vmatpush.bf16.msra.mxu1 %v6965_v14 }
 0x249   : > { %v2983_v41 = vadd.f32 %v2982_v30, %v2933_v39  ;;  %v6765_v30 = vor.u32 %v7624_v36, %v6764_v49 }
 0x24a   : > { %3714 = vmatmul.bf16.gmra.mxu0 %v9901_v20 }
 0x24b   : > { %v3032_v27 = vadd.f32 %v3031_v23, %v2983_v41  ;;  %v3088_v11 = vpop.f32.mrf.mxu1  ;;  %v13680_v23 = vld [vmem:[#allocation59_spill] sm:$0xff]  ;;  %v7640_v41 = vld [vmem:[%s13227_s5 + $0x1a4] sm:$0xf0]  ;;  %3789 = vmatpush.bf16.msra.mxu2 %v6765_v30 }
 0x24c   : > { %v6829_v5 = vor.u32 %v7640_v41, %v6828_v48  ;;  %v6892_v48 = vld [vmem:[%s13227_s5 + $0x220] sm:$0xf]  ;;  %v13681_v30 = vld [vmem:[#allocation60_spill] sm:$0xff] }
 0x24d   : > { %3131 = vmatmul.bf16.gmra.mxu2 %v13679_v60  ;;  %3180 = vmatmul.bf16.gmra.mxu3 %v13680_v23  ;;  %v11027_v39 = vadd.f32 %v3080_v9, %v3032_v27 }
 0x24e   : > { %3763 = vmatmul.bf16.gmra.mxu1 %v9937_v8  ;;  %3838 = vmatpush.bf16.msra.mxu3 %v6829_v5  ;;  %v6756_v5 = vld [vmem:[%s13227_s5 + $0x110] sm:$0xf] }
 0x24f   : > { %v3041_v55 = vpop.f32.mrf.mxu0 }
 0x250   : > { %v2936_v51 = vpop.f32.mrf.mxu2  ;;  %v2985_v1 = vpop.f32.mrf.mxu3 }
 0x251   : > { %v2986_v20 = vadd.f32 %v2985_v1, %v2936_v51  ;;  %v7622_v51 = vld [vmem:[%s13227_s5 + $0x114] sm:$0xf0]  ;;  %v6820_v1 = vld [vmem:[%s13227_s5 + $0x190] sm:$0xf] }
 0x253   : > { %v3035_v22 = vadd.f32 %v10966_v21, %v2986_v20  ;;  %v3090_v27 = vpop.f32.mrf.mxu1  ;;  %v7656_v20 = vld [vmem:[%s13227_s5 + $0x224] sm:$0xf0]  ;;  %v6956_v21 = vld [vmem:[%s13227_s5 + $0x2a0] sm:$0xf] }
 0x255   : > { %v11034_v9 = vadd.f32 %v3083_v62, %v3035_v22  ;;  %v6893_v22 = vor.u32 %v7656_v20, %v6892_v48  ;;  %v7672_v62 = vld [vmem:[%s13227_s5 + $0x2a4] sm:$0xf0] }
 0x256   : > { %v6957_v41 = vor.u32 %v7672_v62, %v6956_v21 }
 0x257   : > { %v11036_v8 = vpop.f32.mrf.mxu0  ;;  %3887 = vmatpush.bf16.msra.mxu0 %v6893_v22 }
 0x258   : > { %v2938_v7 = vpop.f32.mrf.mxu2  ;;  %v2987_v49 = vpop.f32.mrf.mxu3  ;;  %3936 = vmatpush.bf16.msra.mxu1 %v6957_v41 }
 0x259   : > { %v2988_v36 = vadd.f32 %v2987_v49, %v2938_v7  ;;  %v6757_v49 = vor.u32 %v7622_v51, %v6756_v5 }
 0x25a   : > { %3719 = vmatmul.bf16.gmra.mxu0 %v8912_v17 }
 0x25b   : > { %v3037_v2 = vadd.f32 %v3036_v61, %v2988_v36  ;;  %v3093_v14 = vpop.f32.mrf.mxu1  ;;  %v13682_v61 = vld [vmem:[#allocation61_spill] sm:$0xff]  ;;  %v7638_v36 = vld [vmem:[%s13227_s5 + $0x194] sm:$0xf0]  ;;  %3790 = vmatpush.bf16.msra.mxu2 %v6757_v49  ;;  %v13684_v49 = vld [vmem:[#allocation63_spill] sm:$0xff] }
 0x25c   : > { %v6821_v20 = vor.u32 %v7638_v36, %v6820_v1  ;;  %v6884_v1 = vld [vmem:[%s13227_s5 + $0x210] sm:$0xf] }
 0x25d   : > { %3136 = vmatmul.bf16.gmra.mxu2 %v13681_v30  ;;  %3185 = vmatmul.bf16.gmra.mxu3 %v13682_v61  ;;  %v11062_v7 = vadd.f32 %v3085_v52, %v3037_v2 }
 0x25e   : > { %3768 = vmatmul.bf16.gmra.mxu1 %v8916_v6  ;;  %3839 = vmatpush.bf16.msra.mxu3 %v6821_v20  ;;  %v6748_v20 = vld [vmem:[%s13227_s5 + $0x100] sm:$0xf] }
 0x25f   : > { %v3046_v48 = vpop.f32.mrf.mxu0 }
 0x260   : > { %v2941_v21 = vpop.f32.mrf.mxu2  ;;  %v2990_v62 = vpop.f32.mrf.mxu3 }
 0x261   : > { %v2991_v17 = vadd.f32 %v2990_v62, %v2941_v21  ;;  %v7620_v21 = vld [vmem:[%s13227_s5 + $0x104] sm:$0xf0]  ;;  %v6812_v62 = vld [vmem:[%s13227_s5 + $0x180] sm:$0xf] }
 0x263   : > { %v3040_v18 = vadd.f32 %v11001_v63, %v2991_v17  ;;  %v3095_v2 = vpop.f32.mrf.mxu1  ;;  %v7654_v17 = vld [vmem:[%s13227_s5 + $0x214] sm:$0xf0]  ;;  %v6948_v63 = vld [vmem:[%s13227_s5 + $0x290] sm:$0xf] }
 0x265   : > { %v11069_v52 = vadd.f32 %v3088_v11, %v3040_v18  ;;  %v6885_v18 = vor.u32 %v7654_v17, %v6884_v1  ;;  %v7670_v11 = vld [vmem:[%s13227_s5 + $0x294] sm:$0xf0] }
 0x266   : > { %v6949_v36 = vor.u32 %v7670_v11, %v6948_v63 }
 0x267   : > { %v11071_v6 = vpop.f32.mrf.mxu0  ;;  %3888 = vmatpush.bf16.msra.mxu0 %v6885_v18  ;;  %v6876_v18 = vld [vmem:[%s13227_s5 + $0x200] sm:$0xf] }
 0x268   : > { %v2943_v22 = vpop.f32.mrf.mxu2  ;;  %v2992_v5 = vpop.f32.mrf.mxu3  ;;  %3937 = vmatpush.bf16.msra.mxu1 %v6949_v36  ;;  %v7652_v36 = vld [vmem:[%s13227_s5 + $0x204] sm:$0xf0] }
 0x269   : > { %v2993_v51 = vadd.f32 %v2992_v5, %v2943_v22  ;;  %v6749_v5 = vor.u32 %v7620_v21, %v6748_v20 }
 0x26a   : > { %3724 = vmatmul.bf16.gmra.mxu0 %v13654_v59 }
 0x26b   : > { %v3042_v28 = vadd.f32 %v3041_v55, %v2993_v51  ;;  %v11074_v41 = vpop.f32.mrf.mxu1  ;;  %v13683_v55 = vld [vmem:[#allocation62_spill] sm:$0xff]  ;;  %v7636_v51 = vld [vmem:[%s13227_s5 + $0x184] sm:$0xf0]  ;;  %3791 = vmatpush.bf16.msra.mxu2 %v6749_v5 }
 0x26c   : > { %v6813_v17 = vor.u32 %v7636_v51, %v6812_v62  ;;  %v6877_v62 = vor.u32 %v7652_v36, %v6876_v18  ;;  %v7617_v18 = vld [vmem:[%s13227_s5 + $0xf4] sm:$0xf] }
 0x26d   : > { %3141 = vmatmul.bf16.gmra.mxu2 %v13683_v55  ;;  %3190 = vmatmul.bf16.gmra.mxu3 %v13684_v49  ;;  %v11099_v22 = vadd.f32 %v3090_v27, %v3042_v28 }
 0x26e   : > { %3773 = vmatmul.bf16.gmra.mxu1 %v13655_v45  ;;  %3840 = vmatpush.bf16.msra.mxu3 %v6813_v17  ;;  %v13685_v17 = vld [vmem:[#allocation65_spill] sm:$0xff] }
 0x26f   : > { %v3051_v1 = vpop.f32.mrf.mxu0  ;;  %3889 = vmatpush.bf16.msra.mxu0 %v6877_v62 }
 0x270   : > { %v2946_v63 = vpop.f32.mrf.mxu2  ;;  %v2995_v11 = vpop.f32.mrf.mxu3 }
 0x271   : > { %v2996_v59 = vadd.f32 %v2995_v11, %v2946_v63  ;;  %v13686_v63 = vld [vmem:[#allocation66_spill] sm:$0xff] }
 0x272   : > { %v6678_v11 = vld [vmem:[%s13227_s5 + $0x78] sm:$0xf0] }
 0x273   : > { %v3045_v43 = vadd.f32 %v11036_v8, %v2996_v59  ;;  %v3100_v28 = vpop.f32.mrf.mxu1 }
 0x275   : > { %v11106_v27 = vadd.f32 %v3093_v14, %v3045_v43  ;;  %v6940_v43 = vld [vmem:[%s13227_s5 + $0x280] sm:$0xf]  ;;  %v7668_v14 = vld [vmem:[%s13227_s5 + $0x284] sm:$0xf0] }
 0x276   : > { %v6941_v51 = vor.u32 %v7668_v14, %v6940_v43 }
 0x277   : > { %v11108_v45 = vpop.f32.mrf.mxu0 }
 0x278   : > { %v2948_v20 = vpop.f32.mrf.mxu2  ;;  %v2997_v21 = vpop.f32.mrf.mxu3  ;;  %3938 = vmatpush.bf16.msra.mxu1 %v6941_v51 }
 0x279   : > { %v2998_v5 = vadd.f32 %v2997_v21, %v2948_v20  ;;  %v6742_v21 = vld [vmem:[%s13227_s5 + $0xf8] sm:$0xf0] }
 0x27a   : > { %3729 = vmatmul.bf16.gmra.mxu0 %v13658_v25  ;;  %v6745_v14 = vor.u32 %v7617_v18, %v6742_v21  ;;  %v13691_v18 = vshrl.u32 %v10820_v19, 16 }
 0x27b   : > { %v3047_v8 = vadd.f32 %v3046_v48, %v2998_v5  ;;  %v11117_v59 = vpop.f32.mrf.mxu1  ;;  %v7601_v48 = vld [vmem:[%s13227_s5 + $0x74] sm:$0xf]  ;;  %v13688_v5 = vshll.u32 %v10818_v56, 16 }
 0x27c   : > { %v6681_v20 = vor.u32 %v7601_v48, %v6678_v11  ;;  %4029 = vmatpush.bf16.msrb.mxu3 %v6745_v14 }
 0x27d   : > { %3146 = vmatmul.bf16.gmra.mxu2 %v13685_v17  ;;  %3195 = vmatmul.bf16.gmra.mxu3 %v13686_v63  ;;  %v11136_v36 = vadd.f32 %v3095_v2, %v3047_v8  ;;  %v1842_v43 = vrot.slane %v13688_v5, 1  ;;  %v13689_v2 = vshll.u32 %v10820_v19, 16 }
 0x27e   : > { %3778 = vmatmul.bf16.gmra.mxu1 %v13659_v32  ;;  %3980 = vmatpush.bf16.msrb.mxu2 %v6681_v20  ;;  %v13690_v32 = vshrl.u32 %v10818_v56, 16 }
 0x27f   : > { %13687 = vst [vmem:[#allocation71_spill] sm:$0xff] %v11136_v36  ;;  %v3056_v62 = vpop.f32.mrf.mxu0  ;;  %v1844_v8 = vrot.slane %v13689_v2, 1  ;;  %v7633_v2 = vld [vmem:[%s13227_s5 + $0x174] sm:$0xf] }
 0x280   : > { %v2951_v25 = vpop.f32.mrf.mxu2  ;;  %v3000_v63 = vpop.f32.mrf.mxu3  ;;  %v1843_v36 = vor.u32 %v1842_v43, %v13690_v32 }
 0x281   : > { %v3001_v17 = vadd.f32 %v3000_v63, %v2951_v25  ;;  %v1845_v21 = vor.u32 %v1844_v8, %v13691_v18  ;;  %v13695_v18 = vld [vmem:[#allocation67_spill] sm:$0xff] }
 0x282   : > { %v11158_v25 = vsel %vm9975_vm11, %v1843_v36, 0  ;;  %v6806_v36 = vld [vmem:[%s13227_s5 + $0x178] sm:$0xf0] }
 0x283   : > { %v3050_v48 = vadd.f32 %v11071_v6, %v3001_v17  ;;  %v11147_v11 = vpop.f32.mrf.mxu1  ;;  %13693 = vst [vmem:[#allocation72_spill] sm:$0xff] %v11158_v25  ;;  %v11164_v32 = vsel %vm9975_vm11, %v1845_v21, 0  ;;  %v13696_v21 = vld [vmem:[#allocation68_spill] sm:$0xff] }
 0x284   : > { %13694 = vst [vmem:[#allocation50_spill] sm:$0xff] %v11164_v32 }
 0x285   : > { %v11152_v51 = vadd.f32 %v11074_v41, %v3050_v48  ;;  %v6809_v48 = vor.u32 %v7633_v2, %v6806_v36  ;;  %v6734_v2 = vld [vmem:[%s13227_s5 + $0xe8] sm:$0xf0] }
 0x287   : > { %v3695_v5 = vpop.f32.mrf.mxu0  ;;  %4078 = vmatpush.bf16.msrb.mxu0 %v6809_v48 }
 0x288   : > { %v2953_v63 = vpop.f32.mrf.mxu2  ;;  %v3002_v14 = vpop.f32.mrf.mxu3  ;;  %v3696_v6 = vadd.f32 %v3695_v5, %v10446_v29  ;;  %v7649_v29 = vld [vmem:[%s13227_s5 + $0x1f4] sm:$0xf] }
 0x289   : > { %v3003_v17 = vadd.f32 %v3002_v14, %v2953_v63  ;;  %v7599_v63 = vld [vmem:[%s13227_s5 + $0x64] sm:$0xf]  ;;  %v6670_v14 = vld [vmem:[%s13227_s5 + $0x68] sm:$0xf0] }
 0x28a   : > { %3890 = vmatmul.bf16.vlgmr.msra.gmra.mxu0 %v11158_v25 }
 0x28b   : > { %v3052_v41 = vadd.f32 %v3051_v1, %v3003_v17  ;;  %v3744_v43 = vpop.f32.mrf.mxu1  ;;  %v6870_v1 = vld [vmem:[%s13227_s5 + $0x1f8] sm:$0xf0] }
 0x28c   : > { %v11175_v8 = vadd.f32 %v3744_v43, %v3696_v6  ;;  %v6873_v5 = vor.u32 %v7649_v29, %v6870_v1  ;;  %v7615_v6 = vld [vmem:[%s13227_s5 + $0xe4] sm:$0xf]  ;;  %v6673_v43 = vor.u32 %v7599_v63, %v6670_v14 }
 0x28d   : > { %3151 = vmatmul.bf16.gmra.mxu2 %v13695_v18  ;;  %3200 = vmatmul.bf16.gmra.mxu3 %v13696_v21  ;;  %v11191_v17 = vadd.f32 %v3100_v28, %v3052_v41  ;;  %v6737_v29 = vor.u32 %v7615_v6, %v6734_v2  ;;  %v6662_v2 = vld [vmem:[%s13227_s5 + $0x58] sm:$0xf0] }
 0x28e   : > { %3939 = vmatmul.bf16.vlgmr.msra.gmra.mxu1 %v11164_v32  ;;  %3981 = vmatpush.bf16.msrb.mxu2 %v6673_v43 }
 0x28f   : > { %v3697_v36 = vpop.f32.mrf.mxu0  ;;  %4127 = vmatpush.bf16.msrb.mxu1 %v6873_v5  ;;  %4030 = vmatpush.bf16.msrb.mxu3 %v6737_v29 }
 0x290   : > { %v2956_v1 = vpop.f32.mrf.mxu2  ;;  %v3005_v20 = vpop.f32.mrf.mxu3  ;;  %v3698_v21 = vadd.f32 %v3697_v36, %v10483_v16  ;;  %v7613_v36 = vld [vmem:[%s13227_s5 + $0xd4] sm:$0xf] }
 0x291   : > { %v3006_v18 = vadd.f32 %v3005_v20, %v2956_v1  ;;  %v6798_v20 = vld [vmem:[%s13227_s5 + $0x168] sm:$0xf0] }
 0x293   : > { %v3055_v28 = vadd.f32 %v11108_v45, %v3006_v18  ;;  %v3746_v41 = vpop.f32.mrf.mxu1  ;;  %v7631_v45 = vld [vmem:[%s13227_s5 + $0x164] sm:$0xf] }
 0x294   : > { %v11199_v32 = vadd.f32 %v3746_v41, %v3698_v21  ;;  %v7597_v21 = vld [vmem:[%s13227_s5 + $0x54] sm:$0xf] }
 0x295   : > { %v11202_v48 = vadd.f32 %v11117_v59, %v3055_v28  ;;  %v7647_v59 = vld [vmem:[%s13227_s5 + $0x1e4] sm:$0xf]  ;;  %v6665_v1 = vor.u32 %v7597_v21, %v6662_v2  ;;  %v6726_v28 = vld [vmem:[%s13227_s5 + $0xd8] sm:$0xf0] }
 0x296   : > { %v6790_v2 = vld [vmem:[%s13227_s5 + $0x158] sm:$0xf0] }
 0x297   : > { %v3700_v63 = vpop.f32.mrf.mxu0  ;;  %3982 = vmatpush.bf16.msrb.mxu2 %v6665_v1  ;;  %v6854_v1 = vld [vmem:[%s13227_s5 + $0x1d8] sm:$0xf0] }
 0x298   : > { %v2958_v14 = vpop.f32.mrf.mxu2  ;;  %v3007_v25 = vpop.f32.mrf.mxu3  ;;  %v3701_v5 = vadd.f32 %v3700_v63, %v10497_v37  ;;  %v6801_v37 = vor.u32 %v7631_v45, %v6798_v20  ;;  %v6729_v63 = vor.u32 %v7613_v36, %v6726_v28  ;;  %v7645_v36 = vld [vmem:[%s13227_s5 + $0x1d4] sm:$0xf]  ;;  %v13697_v28 = vld [vmem:[#allocation19_spill] sm:$0xff] }
 0x299   : > { %v3008_v6 = vadd.f32 %v3007_v25, %v2958_v14 }
 0x29a   : > { %3895 = vmatmul.bf16.gmra.mxu0 %v13671_v34  ;;  %4031 = vmatpush.bf16.msrb.mxu3 %v6729_v63  ;;  %v6857_v63 = vor.u32 %v7645_v36, %v6854_v1 }
 0x29b   : > { %v3057_v16 = vadd.f32 %v3056_v62, %v3008_v6  ;;  %v3749_v43 = vpop.f32.mrf.mxu1  ;;  %v6862_v62 = vld [vmem:[%s13227_s5 + $0x1e8] sm:$0xf0]  ;;  %4079 = vmatpush.bf16.msrb.mxu0 %v6801_v37 }
 0x29c   : > { %v11215_v18 = vadd.f32 %v3749_v43, %v3701_v5  ;;  %v6865_v25 = vor.u32 %v7647_v59, %v6862_v62 }
 0x29d   : > { %3792 = vmatmul.bf16.vlgmr.msra.gmra.mxu2 %v10818_v56  ;;  %3841 = vmatmul.bf16.vlgmr.msra.gmra.mxu3 %v10820_v19  ;;  %v11232_v29 = vadd.f32 %v11147_v11, %v3057_v16 }
 0x29e   : > { %3944 = vmatmul.bf16.gmra.mxu1 %v13672_v57 }
 0x29f   : > { %v3702_v41 = vpop.f32.mrf.mxu0  ;;  %4128 = vmatpush.bf16.msrb.mxu1 %v6865_v25 }
 0x2a0   : > { %v3117_v14 = vpop.f32.mrf.mxu2  ;;  %v3166_v5 = vpop.f32.mrf.mxu3  ;;  %v3703_v6 = vadd.f32 %v3702_v41, %v10533_v10  ;;  %v13698_v41 = vld [vmem:[#allocation20_spill] sm:$0xff] }
 0x2a1   : > { %v3118_v43 = vadd.f32 %v3117_v14, %v10929_v4  ;;  %v7629_v4 = vld [vmem:[%s13227_s5 + $0x154] sm:$0xf]  ;;  %v7595_v14 = vld [vmem:[%s13227_s5 + $0x44] sm:$0xf] }
 0x2a3   : > { %v11240_v11 = vadd.f32 %v3166_v5, %v3118_v43  ;;  %v3751_v16 = vpop.f32.mrf.mxu1  ;;  %v6654_v5 = vld [vmem:[%s13227_s5 + $0x48] sm:$0xf0]  ;;  %4129 = vmatpush.bf16.msrb.mxu1 %v6857_v63 }
 0x2a4   : > { %v11242_v45 = vadd.f32 %v3751_v16, %v3703_v6  ;;  %v7611_v6 = vld [vmem:[%s13227_s5 + $0xc4] sm:$0xf]  ;;  %v6657_v43 = vor.u32 %v7595_v14, %v6654_v5  ;;  %v6718_v16 = vld [vmem:[%s13227_s5 + $0xc8] sm:$0xf0] }
 0x2a6   : > { %3983 = vmatpush.bf16.msrb.mxu2 %v6657_v43  ;;  %v6782_v43 = vld [vmem:[%s13227_s5 + $0x148] sm:$0xf0] }
 0x2a7   : > { %v3705_v20 = vpop.f32.mrf.mxu0 }
 0x2a8   : > { %v3119_v59 = vpop.f32.mrf.mxu2  ;;  %v3168_v37 = vpop.f32.mrf.mxu3  ;;  %v3706_v62 = vadd.f32 %v3705_v20, %v10548_v40 }
 0x2a9   : > { %v3120_v25 = vadd.f32 %v3119_v59, %v10957_v31  ;;  %v6793_v31 = vor.u32 %v7629_v4, %v6790_v2  ;;  %v6721_v59 = vor.u32 %v7611_v6, %v6718_v16  ;;  %v7643_v16 = vld [vmem:[%s13227_s5 + $0x1c4] sm:$0xf] }
 0x2aa   : > { %3900 = vmatmul.bf16.gmra.mxu0 %v13675_v42 }
 0x2ab   : > { %v11247_v21 = vadd.f32 %v3168_v37, %v3120_v25  ;;  %v3754_v10 = vpop.f32.mrf.mxu1  ;;  %4080 = vmatpush.bf16.msrb.mxu0 %v6793_v31  ;;  %4032 = vmatpush.bf16.msrb.mxu3 %v6721_v59  ;;  %v13699_v59 = vld [vmem:[#allocation28_spill] sm:$0xff] }
 0x2ac   : > { %v11258_v40 = vadd.f32 %v3754_v10, %v3706_v62 }
 0x2ad   : > { %3797 = vmatmul.bf16.gmra.mxu2 %v13697_v28  ;;  %3846 = vmatmul.bf16.gmra.mxu3 %v13698_v41 }
 0x2ae   : > { %3949 = vmatmul.bf16.gmra.mxu1 %v13676_v35 }
 0x2af   : > { %v3707_v20 = vpop.f32.mrf.mxu0 }
 0x2b0   : > { %v3122_v37 = vpop.f32.mrf.mxu2  ;;  %v3171_v62 = vpop.f32.mrf.mxu3  ;;  %v3708_v25 = vadd.f32 %v3707_v20, %v10600_v26  ;;  %v6846_v20 = vld [vmem:[%s13227_s5 + $0x1c8] sm:$0xf0] }
 0x2b1   : > { %v3123_v10 = vadd.f32 %v3122_v37, %v10964_v12  ;;  %v7627_v12 = vld [vmem:[%s13227_s5 + $0x144] sm:$0xf]  ;;  %v13700_v37 = vld [vmem:[#allocation29_spill] sm:$0xff] }
 0x2b3   : > { %v11280_v4 = vadd.f32 %v3171_v62, %v3123_v10  ;;  %v3756_v2 = vpop.f32.mrf.mxu1  ;;  %v6849_v62 = vor.u32 %v7643_v16, %v6846_v20  ;;  %v6646_v10 = vld [vmem:[%s13227_s5 + $0x38] sm:$0xf0] }
 0x2b4   : > { %v11282_v36 = vadd.f32 %v3756_v2, %v3708_v25  ;;  %v7593_v25 = vld [vmem:[%s13227_s5 + $0x34] sm:$0xf] }
 0x2b5   : > { %v7609_v2 = vld [vmem:[%s13227_s5 + $0xb4] sm:$0xf]  ;;  %4130 = vmatpush.bf16.msrb.mxu1 %v6849_v62 }
 0x2b7   : > { %v3710_v31 = vpop.f32.mrf.mxu0 }
 0x2b8   : > { %v3124_v1 = vpop.f32.mrf.mxu2  ;;  %v3173_v14 = vpop.f32.mrf.mxu3  ;;  %v3711_v5 = vadd.f32 %v3710_v31, %v10613_v53  ;;  %v6649_v31 = vor.u32 %v7593_v25, %v6646_v10 }
 0x2b9   : > { %v3125_v63 = vadd.f32 %v3124_v1, %v10992_v54  ;;  %v6785_v54 = vor.u32 %v7627_v12, %v6782_v43  ;;  %v6710_v1 = vld [vmem:[%s13227_s5 + $0xb8] sm:$0xf0] }
 0x2ba   : > { %3905 = vmatmul.bf16.gmra.mxu0 %v13677_v0  ;;  %3984 = vmatpush.bf16.msrb.mxu2 %v6649_v31  ;;  %v6774_v31 = vld [vmem:[%s13227_s5 + $0x138] sm:$0xf0] }
 0x2bb   : > { %v11287_v6 = vadd.f32 %v3173_v14, %v3125_v63  ;;  %v3759_v26 = vpop.f32.mrf.mxu1  ;;  %4081 = vmatpush.bf16.msrb.mxu0 %v6785_v54 }
 0x2bc   : > { %v11298_v53 = vadd.f32 %v3759_v26, %v3711_v5  ;;  %v6713_v5 = vor.u32 %v7609_v2, %v6710_v1  ;;  %v7641_v1 = vld [vmem:[%s13227_s5 + $0x1b4] sm:$0xf] }
 0x2bd   : > { %3802 = vmatmul.bf16.gmra.mxu2 %v13699_v59  ;;  %3851 = vmatmul.bf16.gmra.mxu3 %v13700_v37 }
 0x2be   : > { %3954 = vmatmul.bf16.gmra.mxu1 %v13678_v15  ;;  %4033 = vmatpush.bf16.msrb.mxu3 %v6713_v5 }
 0x2bf   : > { %v3712_v14 = vpop.f32.mrf.mxu0 }
 0x2c0   : > { %v3127_v63 = vpop.f32.mrf.mxu2  ;;  %v3176_v26 = vpop.f32.mrf.mxu3  ;;  %v3713_v12 = vadd.f32 %v3712_v14, %v10662_v24  ;;  %v13701_v14 = vld [vmem:[#allocation36_spill] sm:$0xff] }
 0x2c1   : > { %v3128_v43 = vadd.f32 %v3127_v63, %v10999_v13  ;;  %v7625_v13 = vld [vmem:[%s13227_s5 + $0x134] sm:$0xf]  ;;  %v7591_v63 = vld [vmem:[%s13227_s5 + $0x24] sm:$0xf] }
 0x2c3   : > { %v11320_v16 = vadd.f32 %v3176_v26, %v3128_v43  ;;  %v3761_v20 = vpop.f32.mrf.mxu1  ;;  %v6638_v26 = vld [vmem:[%s13227_s5 + $0x28] sm:$0xf0] }
 0x2c4   : > { %v11322_v54 = vadd.f32 %v3761_v20, %v3713_v12  ;;  %v6641_v12 = vor.u32 %v7591_v63, %v6638_v26  ;;  %v6702_v43 = vld [vmem:[%s13227_s5 + $0xa8] sm:$0xf0] }
 0x2c6   : > { %3985 = vmatpush.bf16.msrb.mxu2 %v6641_v12  ;;  %v6766_v12 = vld [vmem:[%s13227_s5 + $0x128] sm:$0xf0] }
 0x2c7   : > { %v3715_v25 = vpop.f32.mrf.mxu0 }
 0x2c8   : > { %v3129_v10 = vpop.f32.mrf.mxu2  ;;  %v3178_v15 = vpop.f32.mrf.mxu3  ;;  %v3716_v0 = vadd.f32 %v3715_v25, %v10767_v50 }
 0x2c9   : > { %v3130_v62 = vadd.f32 %v3129_v10, %v11027_v39  ;;  %v6777_v39 = vor.u32 %v7625_v13, %v6774_v31 }
 0x2ca   : > { %3910 = vmatmul.bf16.gmra.mxu0 %v13679_v60 }
 0x2cb   : > { %v11327_v2 = vadd.f32 %v3178_v15, %v3130_v62  ;;  %v3764_v24 = vpop.f32.mrf.mxu1  ;;  %v6838_v15 = vld [vmem:[%s13227_s5 + $0x1b8] sm:$0xf0]  ;;  %4082 = vmatpush.bf16.msrb.mxu0 %v6777_v39 }
 0x2cc   : > { %v11338_v50 = vadd.f32 %v3764_v24, %v3716_v0  ;;  %v6841_v5 = vor.u32 %v7641_v1, %v6838_v15  ;;  %v7607_v0 = vld [vmem:[%s13227_s5 + $0xa4] sm:$0xf] }
 0x2cd   : > { %3807 = vmatmul.bf16.gmra.mxu2 %v9437_v38  ;;  %3856 = vmatmul.bf16.gmra.mxu3 %v13701_v14  ;;  %v6705_v25 = vor.u32 %v7607_v0, %v6702_v43  ;;  %v7639_v43 = vld [vmem:[%s13227_s5 + $0x1a4] sm:$0xf] }
 0x2ce   : > { %3959 = vmatmul.bf16.gmra.mxu1 %v13680_v23 }
 0x2cf   : > { %v3717_v20 = vpop.f32.mrf.mxu0  ;;  %4131 = vmatpush.bf16.msrb.mxu1 %v6841_v5  ;;  %4034 = vmatpush.bf16.msrb.mxu3 %v6705_v25  ;;  %v13702_v25 = vld [vmem:[#allocation43_spill] sm:$0xff] }
 0x2d0   : > { %v3132_v10 = vpop.f32.mrf.mxu2  ;;  %v3181_v62 = vpop.f32.mrf.mxu3  ;;  %v3718_v24 = vadd.f32 %v3717_v20, %v10770_v58  ;;  %v6830_v20 = vld [vmem:[%s13227_s5 + $0x1a8] sm:$0xf0] }
 0x2d1   : > { %v3133_v13 = vadd.f32 %v3132_v10, %v11034_v9  ;;  %v7623_v9 = vld [vmem:[%s13227_s5 + $0x124] sm:$0xf]  ;;  %v13703_v10 = vld [vmem:[#allocation44_spill] sm:$0xff] }
 0x2d3   : > { %v11360_v31 = vadd.f32 %v3181_v62, %v3133_v13  ;;  %v3766_v1 = vpop.f32.mrf.mxu1  ;;  %v6833_v62 = vor.u32 %v7639_v43, %v6830_v20  ;;  %v6630_v13 = vld [vmem:[%s13227_s5 + $0x18] sm:$0xf0] }
 0x2d4   : > { %v11362_v39 = vadd.f32 %v3766_v1, %v3718_v24  ;;  %v7589_v24 = vld [vmem:[%s13227_s5 + $0x14] sm:$0xf] }
 0x2d5   : > { %v6633_v1 = vor.u32 %v7589_v24, %v6630_v13  ;;  %4132 = vmatpush.bf16.msrb.mxu1 %v6833_v62 }
 0x2d7   : > { %v3720_v15 = vpop.f32.mrf.mxu0  ;;  %3986 = vmatpush.bf16.msrb.mxu2 %v6633_v1  ;;  %v6758_v1 = vld [vmem:[%s13227_s5 + $0x118] sm:$0xf0] }
 0x2d8   : > { %v3134_v63 = vpop.f32.mrf.mxu2  ;;  %v3183_v26 = vpop.f32.mrf.mxu3  ;;  %v3721_v23 = vadd.f32 %v3720_v15, %v10785_v44  ;;  %v6694_v15 = vld [vmem:[%s13227_s5 + $0x98] sm:$0xf0] }
 0x2d9   : > { %v3135_v5 = vadd.f32 %v3134_v63, %v11062_v7  ;;  %v6769_v7 = vor.u32 %v7623_v9, %v6766_v12 }
 0x2da   : > { %3915 = vmatmul.bf16.gmra.mxu0 %v13681_v30 }
 0x2db   : > { %v11367_v0 = vadd.f32 %v3183_v26, %v3135_v5  ;;  %v3769_v58 = vpop.f32.mrf.mxu1  ;;  %4083 = vmatpush.bf16.msrb.mxu0 %v6769_v7 }
 0x2dc   : > { %v11378_v44 = vadd.f32 %v3769_v58, %v3721_v23  ;;  %v7605_v23 = vld [vmem:[%s13227_s5 + $0x94] sm:$0xf] }
 0x2dd   : > { %3812 = vmatmul.bf16.gmra.mxu2 %v13702_v25  ;;  %3861 = vmatmul.bf16.gmra.mxu3 %v13703_v10  ;;  %v6697_v26 = vor.u32 %v7605_v23, %v6694_v15  ;;  %v7637_v15 = vld [vmem:[%s13227_s5 + $0x194] sm:$0xf] }
 0x2de   : > { %3964 = vmatmul.bf16.gmra.mxu1 %v13682_v61 }
 0x2df   : > { %v3722_v63 = vpop.f32.mrf.mxu0  ;;  %4035 = vmatpush.bf16.msrb.mxu3 %v6697_v26  ;;  %v13707_v26 = vld [vmem:[#allocation25_spill] sm:$0xff] }
 0x2e0   : > { %v3137_v5 = vpop.f32.mrf.mxu2  ;;  %v3186_v58 = vpop.f32.mrf.mxu3  ;;  %v3723_v9 = vadd.f32 %v3722_v63, %v10816_v47  ;;  %v13706_v63 = vld [vmem:[#allocation24_spill] sm:$0xff] }
 0x2e1   : > { %v3138_v12 = vadd.f32 %v3137_v5, %v11069_v52  ;;  %v7621_v52 = vld [vmem:[%s13227_s5 + $0x114] sm:$0xf] }
 0x2e3   : > { %v11400_v43 = vadd.f32 %v3186_v58, %v3138_v12  ;;  %v3771_v20 = vpop.f32.mrf.mxu1  ;;  %v7587_v58 = vld [vmem:[%s13227_s5 + $0x4] sm:$0xf] }
 0x2e4   : > { %v11402_v7 = vadd.f32 %v3771_v20, %v3723_v9  ;;  %v6622_v9 = vld [vmem:[%s13227_s5 + $0x8] sm:$0xf0] }
 0x2e5   : > { %13704 = vst [vmem:[#allocation51_spill] sm:$0xff] %v11400_v43  ;;  %v6625_v12 = vor.u32 %v7587_v58, %v6622_v9  ;;  %v6686_v20 = vld [vmem:[%s13227_s5 + $0x88] sm:$0xf0] }
 0x2e7   : > { %v3725_v24 = vpop.f32.mrf.mxu0  ;;  %3987 = vmatpush.bf16.msrb.mxu2 %v6625_v12  ;;  %v6750_v12 = vld [vmem:[%s13227_s5 + $0x108] sm:$0xf0] }
 0x2e8   : > { %v3139_v13 = vpop.f32.mrf.mxu2  ;;  %v3188_v61 = vpop.f32.mrf.mxu3  ;;  %v3726_v30 = vadd.f32 %v3725_v24, %v10843_v33 }
 0x2e9   : > { %v3140_v62 = vadd.f32 %v3139_v13, %v11099_v22  ;;  %v6761_v22 = vor.u32 %v7621_v52, %v6758_v1 }
 0x2ea   : > { %3920 = vmatmul.bf16.gmra.mxu0 %v13683_v55 }
 0x2eb   : > { %v11407_v23 = vadd.f32 %v3188_v61, %v3140_v62  ;;  %v3774_v47 = vpop.f32.mrf.mxu1  ;;  %v6822_v61 = vld [vmem:[%s13227_s5 + $0x198] sm:$0xf0]  ;;  %4084 = vmatpush.bf16.msrb.mxu0 %v6761_v22 }
 0x2ec   : > { %v11418_v33 = vadd.f32 %v3774_v47, %v3726_v30  ;;  %v6825_v5 = vor.u32 %v7637_v15, %v6822_v61  ;;  %v7603_v30 = vld [vmem:[%s13227_s5 + $0x84] sm:$0xf] }
 0x2ed   : > { %13705 = vst [vmem:[#allocation54_spill] sm:$0xff] %v11407_v23  ;;  %3817 = vmatmul.bf16.gmra.mxu2 %v13706_v63  ;;  %3866 = vmatmul.bf16.gmra.mxu3 %v13707_v26  ;;  %v6689_v13 = vor.u32 %v7603_v30, %v6686_v20  ;;  %v13710_v20 = vld [vmem:[#allocation65_spill] sm:$0xff] }
 0x2ee   : > { %3969 = vmatmul.bf16.gmra.mxu1 %v13684_v49 }
 0x2ef   : > { %v3727_v24 = vpop.f32.mrf.mxu0  ;;  %4133 = vmatpush.bf16.msrb.mxu1 %v6825_v5  ;;  %4036 = vmatpush.bf16.msrb.mxu3 %v6689_v13  ;;  %v13709_v5 = vld [vmem:[#allocation71_spill] sm:$0xff] }
 0x2f0   : > { %v3142_v62 = vpop.f32.mrf.mxu2  ;;  %v3191_v47 = vpop.f32.mrf.mxu3  ;;  %v3728_v52 = vadd.f32 %v3727_v24, %v10885_v46  ;;  %v7635_v24 = vld [vmem:[%s13227_s5 + $0x184] sm:$0xf] }
 0x2f1   : > { %v3143_v1 = vadd.f32 %v3142_v62, %v11106_v27  ;;  %v7619_v27 = vld [vmem:[%s13227_s5 + $0x104] sm:$0xf]  ;;  %v13712_v62 = vld [vmem:[#allocation32_spill] sm:$0xff] }
 0x2f2   : > { %v6753_v13 = vor.u32 %v7619_v27, %v6750_v12 }
 0x2f3   : > { %v11440_v15 = vadd.f32 %v3191_v47, %v3143_v1  ;;  %v3776_v61 = vpop.f32.mrf.mxu1  ;;  %v13713_v47 = vld [vmem:[#allocation33_spill] sm:$0xff] }
 0x2f4   : > { %v11442_v22 = vadd.f32 %v3776_v61, %v3728_v52  ;;  %v7665_v1 = vld [vmem:[%s13227_s5 + $0x274] sm:$0xf]  ;;  %v6934_v61 = vld [vmem:[%s13227_s5 + $0x278] sm:$0xf0]  ;;  %4085 = vmatpush.bf16.msrb.mxu0 %v6753_v13 }
 0x2f5   : > { %13708 = vst [vmem:[#allocation55_spill] sm:$0xff] %v11440_v15 }
 0x2f7   : > { %v3730_v58 = vpop.f32.mrf.mxu0 }
 0x2f8   : > { %v3144_v9 = vpop.f32.mrf.mxu2  ;;  %v3193_v49 = vpop.f32.mrf.mxu3  ;;  %v3731_v55 = vadd.f32 %v3730_v58, %v10892_v3  ;;  %v13714_v58 = vld [vmem:[#allocation66_spill] sm:$0xff] }
 0x2f9   : > { %v3145_v30 = vadd.f32 %v3144_v9, %v13709_v5  ;;  %v6937_v9 = vor.u32 %v7665_v1, %v6934_v61  ;;  %v6998_v5 = vld [vmem:[%s13227_s5 + $0x2f8] sm:$0xf0] }
 0x2fa   : > { %3925 = vmatmul.bf16.gmra.mxu0 %v13710_v20 }
 0x2fb   : > { %v11447_v23 = vadd.f32 %v3193_v49, %v3145_v30  ;;  %v3779_v46 = vpop.f32.mrf.mxu1  ;;  %v6814_v49 = vld [vmem:[%s13227_s5 + $0x188] sm:$0xf0]  ;;  %4176 = vmatpush.bf16.msra.mxu2 %v6937_v9  ;;  %v13718_v9 = vld [vmem:[#allocation39_spill] sm:$0xff] }
 0x2fc   : > { %v11458_v3 = vadd.f32 %v3779_v46, %v3731_v55  ;;  %v6817_v52 = vor.u32 %v7635_v24, %v6814_v49  ;;  %v7681_v55 = vld [vmem:[%s13227_s5 + $0x2f4] sm:$0xf]  ;;  %v13715_v24 = vld [vmem:[#allocation70_spill] sm:$0xff] }
 0x2fd   : > { %13711 = vst [vmem:[#allocation58_spill] sm:$0xff] %v11447_v23  ;;  %3822 = vmatmul.bf16.gmra.mxu2 %v13712_v62  ;;  %3871 = vmatmul.bf16.gmra.mxu3 %v13713_v47  ;;  %v7001_v46 = vor.u32 %v7681_v55, %v6998_v5 }
 0x2fe   : > { %3974 = vmatmul.bf16.gmra.mxu1 %v13714_v58 }
 0x2ff   : > { %v3732_v30 = vpop.f32.mrf.mxu0  ;;  %4134 = vmatpush.bf16.msrb.mxu1 %v6817_v52  ;;  %4225 = vmatpush.bf16.msra.mxu3 %v7001_v46 }
 0x300   : > { %v3147_v27 = vpop.f32.mrf.mxu2  ;;  %v3196_v12 = vpop.f32.mrf.mxu3  ;;  %v3733_v49 = vadd.f32 %v3732_v30, %v13715_v24 }
 0x301   : > { %v3148_v20 = vadd.f32 %v3147_v27, %v11152_v51  ;;  %v13719_v51 = vld [vmem:[#allocation40_spill] sm:$0xff]  ;;  %v7663_v27 = vld [vmem:[%s13227_s5 + $0x264] sm:$0xf] }
 0x303   : > { %v11480_v23 = vadd.f32 %v3196_v12, %v3148_v20  ;;  %v3781_v58 = vpop.f32.mrf.mxu1  ;;  %v6926_v12 = vld [vmem:[%s13227_s5 + $0x268] sm:$0xf0] }
 0x304   : > { %v11482_v13 = vadd.f32 %v3781_v58, %v3733_v49  ;;  %v7156_v58 = vld [vmem:[%s13227_s5 + $0x670] sm:$0xf] }
 0x305   : > { %13716 = vst [vmem:[#allocation19_spill] sm:$0xff] %v11480_v23 }
 0x307   : > { %v11484_v1 = vpop.f32.mrf.mxu0 }
 0x308   : > { %v3149_v61 = vpop.f32.mrf.mxu2  ;;  %v3198_v15 = vpop.f32.mrf.mxu3 }
 0x309   : > { %v3150_v52 = vadd.f32 %v3149_v61, %v11191_v17  ;;  %v7794_v17 = vld [vmem:[%s13227_s5 + $0x674] sm:$0xf0]  ;;  %v6929_v61 = vor.u32 %v7663_v27, %v6926_v12 }
 0x30a   : > { %4086 = vmatmul.bf16.vlgmr.msrb.gmra.mxu0 %v10818_v56  ;;  %v7220_v56 = vld [vmem:[%s13227_s5 + $0x6f0] sm:$0xf]  ;;  %v7157_v46 = vor.u32 %v7794_v17, %v7156_v58  ;;  %v6990_v58 = vld [vmem:[%s13227_s5 + $0x2e8] sm:$0xf0] }
 0x30b   : > { %v11488_v55 = vadd.f32 %v3198_v15, %v3150_v52  ;;  %v3940_v5 = vpop.f32.mrf.mxu1  ;;  %v7679_v52 = vld [vmem:[%s13227_s5 + $0x2e4] sm:$0xf]  ;;  %4177 = vmatpush.bf16.msra.mxu2 %v6929_v61 }
 0x30c   : > { %4851 = vmatpush.bf16.msra.mxu0 %v7157_v46  ;;  %v6993_v17 = vor.u32 %v7679_v52, %v6990_v58  ;;  %v13722_v46 = vld [vmem:[#allocation64_spill] sm:$0xff]  ;;  %v7661_v58 = vld [vmem:[%s13227_s5 + $0x254] sm:$0xf] }
 0x30d   : > { %13717 = vst [vmem:[#allocation20_spill] sm:$0xff] %v11488_v55  ;;  %3827 = vmatmul.bf16.gmra.mxu2 %v13718_v9  ;;  %3876 = vmatmul.bf16.gmra.mxu3 %v13719_v51 }
 0x30e   : > { %4135 = vmatmul.bf16.vlgmr.msrb.gmra.mxu1 %v10820_v19  ;;  %v7810_v19 = vld [vmem:[%s13227_s5 + $0x6f4] sm:$0xf0]  ;;  %4226 = vmatpush.bf16.msra.mxu3 %v6993_v17  ;;  %v6918_v17 = vld [vmem:[%s13227_s5 + $0x258] sm:$0xf0] }
 0x30f   : > { %v11493_v20 = vpop.f32.mrf.mxu0  ;;  %v7221_v49 = vor.u32 %v7810_v19, %v7220_v56 }
 0x310   : > { %v3152_v15 = vpop.f32.mrf.mxu2  ;;  %v3201_v30 = vpop.f32.mrf.mxu3 }
 0x311   : > { %v3153_v24 = vadd.f32 %v3152_v15, %v11202_v48  ;;  %4900 = vmatpush.bf16.msra.mxu1 %v7221_v49 }
 0x313   : > { %v11520_v55 = vadd.f32 %v3201_v30, %v3153_v24  ;;  %v3942_v23 = vpop.f32.mrf.mxu1  ;;  %v13723_v30 = vld [vmem:[#allocation69_spill] sm:$0xff]  ;;  %v7148_v24 = vld [vmem:[%s13227_s5 + $0x660] sm:$0xf] }
 0x315   : > { %13720 = vst [vmem:[#allocation28_spill] sm:$0xff] %v11520_v55 }
 0x317   : > { %v11522_v43 = vpop.f32.mrf.mxu0 }
 0x318   : > { %v3154_v48 = vpop.f32.mrf.mxu2  ;;  %v3203_v56 = vpop.f32.mrf.mxu3 }
 0x319   : > { %v3155_v15 = vadd.f32 %v3154_v48, %v11232_v29  ;;  %v7792_v29 = vld [vmem:[%s13227_s5 + $0x664] sm:$0xf0] }
 0x31a   : > { %4091 = vmatmul.bf16.gmra.mxu0 %v13697_v28  ;;  %v7212_v28 = vld [vmem:[%s13227_s5 + $0x6e0] sm:$0xf]  ;;  %v7149_v52 = vor.u32 %v7792_v29, %v7148_v24 }
 0x31b   : > { %v11526_v19 = vadd.f32 %v3203_v56, %v3155_v15  ;;  %v11528_v27 = vpop.f32.mrf.mxu1  ;;  %v6921_v15 = vor.u32 %v7661_v58, %v6918_v17 }
 0x31c   : > { %4852 = vmatpush.bf16.msra.mxu0 %v7149_v52 }
 0x31d   : > { %13721 = vst [vmem:[#allocation29_spill] sm:$0xff] %v11526_v19  ;;  %3988 = vmatmul.bf16.vlgmr.msrb.gmra.mxu2 %v13722_v46  ;;  %4037 = vmatmul.bf16.vlgmr.msrb.gmra.mxu3 %v13723_v30  ;;  %v7677_v46 = vld [vmem:[%s13227_s5 + $0x2d4] sm:$0xf]  ;;  %v6982_v30 = vld [vmem:[%s13227_s5 + $0x2d8] sm:$0xf0] }
 0x31e   : > { %4140 = vmatmul.bf16.gmra.mxu1 %v13698_v41  ;;  %v7808_v41 = vld [vmem:[%s13227_s5 + $0x6e4] sm:$0xf0]  ;;  %v6985_v24 = vor.u32 %v7677_v46, %v6982_v30  ;;  %4178 = vmatpush.bf16.msra.mxu2 %v6921_v15 }
 0x31f   : > { %v11533_v12 = vpop.f32.mrf.mxu0  ;;  %v7213_v56 = vor.u32 %v7808_v41, %v7212_v28 }
 0x320   : > { %v3793_v49 = vpop.f32.mrf.mxu2  ;;  %v3842_v61 = vpop.f32.mrf.mxu3  ;;  %4227 = vmatpush.bf16.msra.mxu3 %v6985_v24  ;;  %v7659_v24 = vld [vmem:[%s13227_s5 + $0x244] sm:$0xf] }
 0x321   : > { %v3794_v48 = vadd.f32 %v3793_v49, %v11175_v8  ;;  %4901 = vmatpush.bf16.msra.mxu1 %v7213_v56  ;;  %v13726_v56 = vld [vmem:[#allocation23_spill] sm:$0xff] }
 0x323   : > { %v3843_v29 = vadd.f32 %v3842_v61, %v3794_v48  ;;  %v3947_v19 = vpop.f32.mrf.mxu1  ;;  %v13725_v48 = vld [vmem:[#allocation22_spill] sm:$0xff] }
 0x325   : > { %v3892_v55 = vadd.f32 %v11484_v1, %v3843_v29  ;;  %v6910_v29 = vld [vmem:[%s13227_s5 + $0x248] sm:$0xf0] }
 0x327   : > { %v11561_v8 = vadd.f32 %v3940_v5, %v3892_v55  ;;  %v11563_v28 = vpop.f32.mrf.mxu0  ;;  %v7790_v5 = vld [vmem:[%s13227_s5 + $0x654] sm:$0xf0] }
 0x328   : > { %v3795_v49 = vpop.f32.mrf.mxu2  ;;  %v3844_v41 = vpop.f32.mrf.mxu3 }
 0x329   : > { %13724 = vst [vmem:[#allocation36_spill] sm:$0xff] %v11561_v8  ;;  %v3796_v58 = vadd.f32 %v3795_v49, %v11199_v32  ;;  %v7140_v32 = vld [vmem:[%s13227_s5 + $0x650] sm:$0xf] }
 0x32a   : > { %4096 = vmatmul.bf16.gmra.mxu0 %v13699_v59  ;;  %v7141_v30 = vor.u32 %v7790_v5, %v7140_v32 }
 0x32b   : > { %v3845_v17 = vadd.f32 %v3844_v41, %v3796_v58  ;;  %v11567_v52 = vpop.f32.mrf.mxu1  ;;  %v6913_v58 = vor.u32 %v7659_v24, %v6910_v29 }
 0x32c   : > { %4853 = vmatpush.bf16.msra.mxu0 %v7141_v30 }
 0x32d   : > { %v3894_v61 = vadd.f32 %v11493_v20, %v3845_v17  ;;  %3993 = vmatmul.bf16.gmra.mxu2 %v13725_v48  ;;  %4042 = vmatmul.bf16.gmra.mxu3 %v13726_v56  ;;  %v7204_v20 = vld [vmem:[%s13227_s5 + $0x6d0] sm:$0xf]  ;;  %v7675_v17 = vld [vmem:[%s13227_s5 + $0x2c4] sm:$0xf] }
 0x32e   : > { %4145 = vmatmul.bf16.gmra.mxu1 %v13700_v37  ;;  %4179 = vmatpush.bf16.msra.mxu2 %v6913_v58  ;;  %v7788_v58 = vld [vmem:[%s13227_s5 + $0x644] sm:$0xf0] }
 0x32f   : > { %v11573_v1 = vadd.f32 %v3942_v23, %v3894_v61  ;;  %v11575_v55 = vpop.f32.mrf.mxu0  ;;  %v7806_v23 = vld [vmem:[%s13227_s5 + $0x6d4] sm:$0xf0]  ;;  %v6974_v61 = vld [vmem:[%s13227_s5 + $0x2c8] sm:$0xf0] }
 0x330   : > { %v3798_v15 = vpop.f32.mrf.mxu2  ;;  %v3847_v46 = vpop.f32.mrf.mxu3  ;;  %v7205_v41 = vor.u32 %v7806_v23, %v7204_v20  ;;  %v6977_v48 = vor.u32 %v7675_v17, %v6974_v61 }
 0x331   : > { %13727 = vst [vmem:[#allocation43_spill] sm:$0xff] %v11573_v1  ;;  %v3799_v49 = vadd.f32 %v3798_v15, %v11215_v18  ;;  %v7300_v1 = vld [vmem:[%s13227_s5 + $0x790] sm:$0xf] }
 0x332   : > { %4902 = vmatpush.bf16.msra.mxu1 %v7205_v41  ;;  %4228 = vmatpush.bf16.msra.mxu3 %v6977_v48  ;;  %v13730_v41 = vld [vmem:[#allocation31_spill] sm:$0xff] }
 0x333   : > { %v3848_v56 = vadd.f32 %v3847_v46, %v3799_v49  ;;  %v3952_v32 = vpop.f32.mrf.mxu1  ;;  %v13729_v49 = vld [vmem:[#allocation30_spill] sm:$0xff] }
 0x335   : > { %v3897_v5 = vadd.f32 %v11522_v43, %v3848_v56  ;;  %v7657_v56 = vld [vmem:[%s13227_s5 + $0x234] sm:$0xf] }
 0x337   : > { %v11604_v18 = vadd.f32 %v11528_v27, %v3897_v5  ;;  %v11606_v20 = vpop.f32.mrf.mxu0  ;;  %v6902_v5 = vld [vmem:[%s13227_s5 + $0x238] sm:$0xf0] }
 0x338   : > { %v3800_v15 = vpop.f32.mrf.mxu2  ;;  %v3849_v23 = vpop.f32.mrf.mxu3 }
 0x339   : > { %13728 = vst [vmem:[#allocation44_spill] sm:$0xff] %v11604_v18  ;;  %v3801_v24 = vadd.f32 %v3800_v15, %v11242_v45  ;;  %v7132_v45 = vld [vmem:[%s13227_s5 + $0x640] sm:$0xf] }
 0x33a   : > { %4101 = vmatmul.bf16.gmra.mxu0 %v9437_v38  ;;  %v7133_v48 = vor.u32 %v7788_v58, %v7132_v45 }
 0x33b   : > { %v3850_v30 = vadd.f32 %v3849_v23, %v3801_v24  ;;  %v11610_v29 = vpop.f32.mrf.mxu1  ;;  %v6905_v24 = vor.u32 %v7657_v56, %v6902_v5 }
 0x33c   : > { %4854 = vmatpush.bf16.msra.mxu0 %v7133_v48 }
 0x33d   : > { %v3899_v46 = vadd.f32 %v11533_v12, %v3850_v30  ;;  %3998 = vmatmul.bf16.gmra.mxu2 %v13729_v49  ;;  %4047 = vmatmul.bf16.gmra.mxu3 %v13730_v41  ;;  %v7196_v12 = vld [vmem:[%s13227_s5 + $0x6c0] sm:$0xf]  ;;  %v7673_v30 = vld [vmem:[%s13227_s5 + $0x2b4] sm:$0xf] }
 0x33e   : > { %4150 = vmatmul.bf16.gmra.mxu1 %v13701_v14  ;;  %4180 = vmatpush.bf16.msra.mxu2 %v6905_v24 }
 0x33f   : > { %v11616_v43 = vadd.f32 %v3947_v19, %v3899_v46  ;;  %v11618_v27 = vpop.f32.mrf.mxu0  ;;  %v7804_v19 = vld [vmem:[%s13227_s5 + $0x6c4] sm:$0xf0]  ;;  %v6966_v46 = vld [vmem:[%s13227_s5 + $0x2b8] sm:$0xf0] }
 0x340   : > { %v3803_v17 = vpop.f32.mrf.mxu2  ;;  %v3852_v61 = vpop.f32.mrf.mxu3  ;;  %v7197_v23 = vor.u32 %v7804_v19, %v7196_v12  ;;  %v6969_v45 = vor.u32 %v7673_v30, %v6966_v46 }
 0x341   : > { %13731 = vst [vmem:[#allocation24_spill] sm:$0xff] %v11616_v43  ;;  %v3804_v15 = vadd.f32 %v3803_v17, %v11258_v40 }
 0x342   : > { %4903 = vmatpush.bf16.msra.mxu1 %v7197_v23  ;;  %4229 = vmatpush.bf16.msra.mxu3 %v6969_v45  ;;  %v13734_v23 = vld [vmem:[#allocation38_spill] sm:$0xff]  ;;  %v7655_v45 = vld [vmem:[%s13227_s5 + $0x224] sm:$0xf] }
 0x343   : > { %v3853_v58 = vadd.f32 %v3852_v61, %v3804_v15  ;;  %v3957_v43 = vpop.f32.mrf.mxu1  ;;  %v13733_v15 = vld [vmem:[#allocation37_spill] sm:$0xff] }
 0x345   : > { %v3902_v18 = vadd.f32 %v11563_v28, %v3853_v58  ;;  %v6894_v58 = vld [vmem:[%s13227_s5 + $0x228] sm:$0xf0] }
 0x347   : > { %v11647_v40 = vadd.f32 %v11567_v52, %v3902_v18  ;;  %v11649_v12 = vpop.f32.mrf.mxu0  ;;  %v7786_v18 = vld [vmem:[%s13227_s5 + $0x634] sm:$0xf0] }
 0x348   : > { %v3805_v17 = vpop.f32.mrf.mxu2  ;;  %v3854_v19 = vpop.f32.mrf.mxu3 }
 0x349   : > { %13732 = vst [vmem:[#allocation25_spill] sm:$0xff] %v11647_v40  ;;  %v3806_v56 = vadd.f32 %v3805_v17, %v11282_v36  ;;  %v7124_v36 = vld [vmem:[%s13227_s5 + $0x630] sm:$0xf] }
 0x34a   : > { %4106 = vmatmul.bf16.gmra.mxu0 %v13702_v25  ;;  %v7125_v46 = vor.u32 %v7786_v18, %v7124_v36 }
 0x34b   : > { %v3855_v48 = vadd.f32 %v3854_v19, %v3806_v56  ;;  %v11653_v5 = vpop.f32.mrf.mxu1  ;;  %v6897_v56 = vor.u32 %v7655_v45, %v6894_v58 }
 0x34c   : > { %4855 = vmatpush.bf16.msra.mxu0 %v7125_v46 }
 0x34d   : > { %v3904_v61 = vadd.f32 %v11575_v55, %v3855_v48  ;;  %4003 = vmatmul.bf16.gmra.mxu2 %v13733_v15  ;;  %4052 = vmatmul.bf16.gmra.mxu3 %v13734_v23  ;;  %v7188_v55 = vld [vmem:[%s13227_s5 + $0x6b0] sm:$0xf]  ;;  %v7671_v48 = vld [vmem:[%s13227_s5 + $0x2a4] sm:$0xf] }
 0x34e   : > { %4155 = vmatmul.bf16.gmra.mxu1 %v13703_v10  ;;  %4181 = vmatpush.bf16.msra.mxu2 %v6897_v56 }
 0x34f   : > { %v11659_v28 = vadd.f32 %v3952_v32, %v3904_v61  ;;  %v11661_v52 = vpop.f32.mrf.mxu0  ;;  %v7802_v32 = vld [vmem:[%s13227_s5 + $0x6b4] sm:$0xf0]  ;;  %v6958_v61 = vld [vmem:[%s13227_s5 + $0x2a8] sm:$0xf0] }
 0x350   : > { %v3808_v24 = vpop.f32.mrf.mxu2  ;;  %v3857_v30 = vpop.f32.mrf.mxu3  ;;  %v7189_v19 = vor.u32 %v7802_v32, %v7188_v55  ;;  %v6961_v36 = vor.u32 %v7671_v48, %v6958_v61 }
 0x351   : > { %13735 = vst [vmem:[#allocation71_spill] sm:$0xff] %v11659_v28  ;;  %v3809_v17 = vadd.f32 %v3808_v24, %v11298_v53 }
 0x352   : > { %4904 = vmatpush.bf16.msra.mxu1 %v7189_v19  ;;  %4230 = vmatpush.bf16.msra.mxu3 %v6961_v36  ;;  %v13738_v19 = vld [vmem:[#allocation46_spill] sm:$0xff]  ;;  %v7653_v36 = vld [vmem:[%s13227_s5 + $0x214] sm:$0xf] }
 0x353   : > { %v3858_v18 = vadd.f32 %v3857_v30, %v3809_v17  ;;  %v3962_v28 = vpop.f32.mrf.mxu1  ;;  %v13737_v17 = vld [vmem:[#allocation45_spill] sm:$0xff] }
 0x355   : > { %v3907_v40 = vadd.f32 %v11606_v20, %v3858_v18  ;;  %v6886_v18 = vld [vmem:[%s13227_s5 + $0x218] sm:$0xf0] }
 0x357   : > { %v11690_v53 = vadd.f32 %v11610_v29, %v3907_v40  ;;  %v11692_v55 = vpop.f32.mrf.mxu0  ;;  %v7784_v40 = vld [vmem:[%s13227_s5 + $0x624] sm:$0xf0] }
 0x358   : > { %v3810_v24 = vpop.f32.mrf.mxu2  ;;  %v3859_v32 = vpop.f32.mrf.mxu3 }
 0x359   : > { %13736 = vst [vmem:[#allocation32_spill] sm:$0xff] %v11690_v53  ;;  %v3811_v45 = vadd.f32 %v3810_v24, %v11322_v54  ;;  %v7116_v54 = vld [vmem:[%s13227_s5 + $0x620] sm:$0xf] }
 0x35a   : > { %4111 = vmatmul.bf16.gmra.mxu0 %v13706_v63  ;;  %v7117_v61 = vor.u32 %v7784_v40, %v7116_v54 }
 0x35b   : > { %v3860_v46 = vadd.f32 %v3859_v32, %v3811_v45  ;;  %v11696_v58 = vpop.f32.mrf.mxu1  ;;  %v6889_v45 = vor.u32 %v7653_v36, %v6886_v18 }
 0x35c   : > { %4856 = vmatpush.bf16.msra.mxu0 %v7117_v61 }
 0x35d   : > { %v3909_v30 = vadd.f32 %v11618_v27, %v3860_v46  ;;  %4008 = vmatmul.bf16.gmra.mxu2 %v13737_v17  ;;  %4057 = vmatmul.bf16.gmra.mxu3 %v13738_v19  ;;  %v7180_v27 = vld [vmem:[%s13227_s5 + $0x6a0] sm:$0xf]  ;;  %v7669_v46 = vld [vmem:[%s13227_s5 + $0x294] sm:$0xf] }
 0x35e   : > { %4160 = vmatmul.bf16.gmra.mxu1 %v13707_v26  ;;  %4182 = vmatpush.bf16.msra.mxu2 %v6889_v45 }
 0x35f   : > { %v11702_v20 = vadd.f32 %v3957_v43, %v3909_v30  ;;  %v11704_v29 = vpop.f32.mrf.mxu0  ;;  %v7800_v43 = vld [vmem:[%s13227_s5 + $0x6a4] sm:$0xf0]  ;;  %v6950_v30 = vld [vmem:[%s13227_s5 + $0x298] sm:$0xf0] }
 0x360   : > { %v3813_v56 = vpop.f32.mrf.mxu2  ;;  %v3862_v48 = vpop.f32.mrf.mxu3  ;;  %v7181_v32 = vor.u32 %v7800_v43, %v7180_v27  ;;  %v6953_v54 = vor.u32 %v7669_v46, %v6950_v30 }
 0x361   : > { %13739 = vst [vmem:[#allocation33_spill] sm:$0xff] %v11702_v20  ;;  %v3814_v24 = vadd.f32 %v3813_v56, %v11338_v50 }
 0x362   : > { %4905 = vmatpush.bf16.msra.mxu1 %v7181_v32  ;;  %4231 = vmatpush.bf16.msra.mxu3 %v6953_v54  ;;  %v13742_v32 = vld [vmem:[#allocation27_spill] sm:$0xff] }
 0x363   : > { %v3863_v40 = vadd.f32 %v3862_v48, %v3814_v24  ;;  %v3967_v20 = vpop.f32.mrf.mxu1  ;;  %v13741_v24 = vld [vmem:[#allocation26_spill] sm:$0xff]  ;;  %v7651_v54 = vld [vmem:[%s13227_s5 + $0x204] sm:$0xf] }
 0x365   : > { %v3912_v53 = vadd.f32 %v11649_v12, %v3863_v40  ;;  %v6878_v40 = vld [vmem:[%s13227_s5 + $0x208] sm:$0xf0] }
 0x367   : > { %v11733_v50 = vadd.f32 %v11653_v5, %v3912_v53  ;;  %v11735_v27 = vpop.f32.mrf.mxu0  ;;  %v7782_v53 = vld [vmem:[%s13227_s5 + $0x614] sm:$0xf0] }
 0x368   : > { %v3815_v56 = vpop.f32.mrf.mxu2  ;;  %v3864_v43 = vpop.f32.mrf.mxu3 }
 0x369   : > { %13740 = vst [vmem:[#allocation70_spill] sm:$0xff] %v11733_v50  ;;  %v3816_v36 = vadd.f32 %v3815_v56, %v11362_v39  ;;  %v7108_v39 = vld [vmem:[%s13227_s5 + $0x610] sm:$0xf] }
 0x36a   : > { %4116 = vmatmul.bf16.gmra.mxu0 %v13712_v62  ;;  %v7109_v30 = vor.u32 %v7782_v53, %v7108_v39 }
 0x36b   : > { %v3865_v61 = vadd.f32 %v3864_v43, %v3816_v36  ;;  %v11739_v18 = vpop.f32.mrf.mxu1  ;;  %v6881_v36 = vor.u32 %v7651_v54, %v6878_v40 }
 0x36c   : > { %4857 = vmatpush.bf16.msra.mxu0 %v7109_v30 }
 0x36d   : > { %v3914_v48 = vadd.f32 %v11661_v52, %v3865_v61  ;;  %4013 = vmatmul.bf16.gmra.mxu2 %v13741_v24  ;;  %4062 = vmatmul.bf16.gmra.mxu3 %v13742_v32  ;;  %v7172_v52 = vld [vmem:[%s13227_s5 + $0x690] sm:$0xf]  ;;  %v7667_v61 = vld [vmem:[%s13227_s5 + $0x284] sm:$0xf] }
 0x36e   : > { %4165 = vmatmul.bf16.gmra.mxu1 %v13713_v47  ;;  %4183 = vmatpush.bf16.msra.mxu2 %v6881_v36 }
 0x36f   : > { %v11745_v12 = vadd.f32 %v3962_v28, %v3914_v48  ;;  %v11747_v5 = vpop.f32.mrf.mxu0  ;;  %v7798_v28 = vld [vmem:[%s13227_s5 + $0x694] sm:$0xf0]  ;;  %v6942_v48 = vld [vmem:[%s13227_s5 + $0x288] sm:$0xf0] }
 0x370   : > { %v3818_v45 = vpop.f32.mrf.mxu2  ;;  %v3867_v46 = vpop.f32.mrf.mxu3  ;;  %v7173_v43 = vor.u32 %v7798_v28, %v7172_v52  ;;  %v6945_v39 = vor.u32 %v7667_v61, %v6942_v48 }
 0x371   : > { %13743 = vst [vmem:[#allocation39_spill] sm:$0xff] %v11745_v12  ;;  %v3819_v56 = vadd.f32 %v3818_v45, %v11378_v44 }
 0x372   : > { %4906 = vmatpush.bf16.msra.mxu1 %v7173_v43  ;;  %4232 = vmatpush.bf16.msra.mxu3 %v6945_v39  ;;  %v13746_v43 = vld [vmem:[#allocation35_spill] sm:$0xff]  ;;  %v7284_v39 = vld [vmem:[%s13227_s5 + $0x770] sm:$0xf] }
 0x373   : > { %v3868_v53 = vadd.f32 %v3867_v46, %v3819_v56  ;;  %v3972_v12 = vpop.f32.mrf.mxu1  ;;  %v13745_v56 = vld [vmem:[#allocation34_spill] sm:$0xff] }
 0x375   : > { %v3917_v50 = vadd.f32 %v11692_v55, %v3868_v53  ;;  %v7826_v53 = vld [vmem:[%s13227_s5 + $0x774] sm:$0xf0] }
 0x377   : > { %v11776_v44 = vadd.f32 %v11696_v58, %v3917_v50  ;;  %v11778_v52 = vpop.f32.mrf.mxu0  ;;  %v7780_v50 = vld [vmem:[%s13227_s5 + $0x604] sm:$0xf0] }
 0x378   : > { %v3820_v45 = vpop.f32.mrf.mxu2  ;;  %v3869_v28 = vpop.f32.mrf.mxu3 }
 0x379   : > { %13744 = vst [vmem:[#allocation64_spill] sm:$0xff] %v11776_v44  ;;  %v3821_v54 = vadd.f32 %v3820_v45, %v11402_v7  ;;  %v7100_v7 = vld [vmem:[%s13227_s5 + $0x600] sm:$0xf] }
 0x37a   : > { %4121 = vmatmul.bf16.gmra.mxu0 %v13718_v9  ;;  %v7101_v48 = vor.u32 %v7780_v50, %v7100_v7 }
 0x37b   : > { %v3870_v30 = vadd.f32 %v3869_v28, %v3821_v54  ;;  %v11782_v40 = vpop.f32.mrf.mxu1  ;;  %v7285_v54 = vor.u32 %v7826_v53, %v7284_v39 }
 0x37c   : > { %4858 = vmatpush.bf16.msra.mxu0 %v7101_v48 }
 0x37d   : > { %v3919_v46 = vadd.f32 %v11704_v29, %v3870_v30  ;;  %4018 = vmatmul.bf16.gmra.mxu2 %v13745_v56  ;;  %4067 = vmatmul.bf16.gmra.mxu3 %v13746_v43  ;;  %v7164_v29 = vld [vmem:[%s13227_s5 + $0x680] sm:$0xf]  ;;  %v7348_v30 = vld [vmem:[%s13227_s5 + $0x7f0] sm:$0xf] }
 0x37e   : > { %4170 = vmatmul.bf16.gmra.mxu1 %v13719_v51  ;;  %4949 = vmatpush.bf16.msrb.mxu2 %v7285_v54 }
 0x37f   : > { %v11788_v55 = vadd.f32 %v3967_v20, %v3919_v46  ;;  %v11790_v58 = vpop.f32.mrf.mxu0  ;;  %v7796_v20 = vld [vmem:[%s13227_s5 + $0x684] sm:$0xf0]  ;;  %v7842_v46 = vld [vmem:[%s13227_s5 + $0x7f4] sm:$0xf0] }
 0x380   : > { %v3823_v36 = vpop.f32.mrf.mxu2  ;;  %v3872_v61 = vpop.f32.mrf.mxu3  ;;  %v7165_v28 = vor.u32 %v7796_v20, %v7164_v29  ;;  %v7349_v7 = vor.u32 %v7842_v46, %v7348_v30 }
 0x381   : > { %13747 = vst [vmem:[#allocation69_spill] sm:$0xff] %v11788_v55  ;;  %v3824_v45 = vadd.f32 %v3823_v36, %v11418_v33 }
 0x382   : > { %4907 = vmatpush.bf16.msra.mxu1 %v7165_v28  ;;  %4998 = vmatpush.bf16.msrb.mxu3 %v7349_v7  ;;  %v13750_v28 = vld [vmem:[#allocation42_spill] sm:$0xff]  ;;  %v7276_v7 = vld [vmem:[%s13227_s5 + $0x760] sm:$0xf] }
 0x383   : > { %v3873_v50 = vadd.f32 %v3872_v61, %v3824_v45  ;;  %v3977_v55 = vpop.f32.mrf.mxu1  ;;  %v13749_v45 = vld [vmem:[#allocation41_spill] sm:$0xff] }
 0x385   : > { %v3922_v44 = vadd.f32 %v11735_v27, %v3873_v50  ;;  %v7824_v50 = vld [vmem:[%s13227_s5 + $0x764] sm:$0xf0] }
 0x387   : > { %v11819_v33 = vadd.f32 %v11739_v18, %v3922_v44  ;;  %v11821_v29 = vpop.f32.mrf.mxu0  ;;  %v7858_v44 = vld [vmem:[%s13227_s5 + $0x874] sm:$0xf0] }
 0x388   : > { %v3825_v36 = vpop.f32.mrf.mxu2  ;;  %v3874_v20 = vpop.f32.mrf.mxu3 }
 0x389   : > { %13748 = vst [vmem:[#allocation22_spill] sm:$0xff] %v11819_v33  ;;  %v3826_v39 = vadd.f32 %v3825_v36, %v11442_v22  ;;  %v7412_v22 = vld [vmem:[%s13227_s5 + $0x870] sm:$0xf] }
 0x38a   : > { %4859 = vmatmul.bf16.vlgmr.msra.gmra.mxu0 %v13729_v49  ;;  %v7413_v46 = vor.u32 %v7858_v44, %v7412_v22 }
 0x38b   : > { %v3875_v48 = vadd.f32 %v3874_v20, %v3826_v39  ;;  %v11825_v53 = vpop.f32.mrf.mxu1  ;;  %v7277_v39 = vor.u32 %v7824_v50, %v7276_v7 }
 0x38c   : > { %5047 = vmatpush.bf16.msrb.mxu0 %v7413_v46 }
 0x38d   : > { %v3924_v61 = vadd.f32 %v11747_v5, %v3875_v48  ;;  %4023 = vmatmul.bf16.gmra.mxu2 %v13749_v45  ;;  %4072 = vmatmul.bf16.gmra.mxu3 %v13750_v28  ;;  %v7476_v5 = vld [vmem:[%s13227_s5 + $0x8f0] sm:$0xf]  ;;  %v7340_v48 = vld [vmem:[%s13227_s5 + $0x7e0] sm:$0xf] }
 0x38e   : > { %4908 = vmatmul.bf16.vlgmr.msra.gmra.mxu1 %v13730_v41  ;;  %4950 = vmatpush.bf16.msrb.mxu2 %v7277_v39 }
 0x38f   : > { %v11831_v27 = vadd.f32 %v3972_v12, %v3924_v61  ;;  %v11833_v18 = vpop.f32.mrf.mxu0  ;;  %v7874_v12 = vld [vmem:[%s13227_s5 + $0x8f4] sm:$0xf0]  ;;  %v7840_v61 = vld [vmem:[%s13227_s5 + $0x7e4] sm:$0xf0] }
 0x390   : > { %v3828_v54 = vpop.f32.mrf.mxu2  ;;  %v3877_v30 = vpop.f32.mrf.mxu3  ;;  %v7477_v20 = vor.u32 %v7874_v12, %v7476_v5  ;;  %v7341_v22 = vor.u32 %v7840_v61, %v7340_v48 }
 0x391   : > { %13751 = vst [vmem:[#allocation23_spill] sm:$0xff] %v11831_v27  ;;  %v3829_v36 = vadd.f32 %v3828_v54, %v11458_v3 }
 0x392   : > { %5096 = vmatpush.bf16.msrb.mxu1 %v7477_v20  ;;  %4999 = vmatpush.bf16.msrb.mxu3 %v7341_v22  ;;  %v13754_v20 = vld [vmem:[#allocation50_spill] sm:$0xff]  ;;  %v7268_v22 = vld [vmem:[%s13227_s5 + $0x750] sm:$0xf] }
 0x393   : > { %v3878_v44 = vadd.f32 %v3877_v30, %v3829_v36  ;;  %v4138_v27 = vpop.f32.mrf.mxu1  ;;  %v13753_v36 = vld [vmem:[#allocation72_spill] sm:$0xff] }
 0x395   : > { %v3927_v33 = vadd.f32 %v11778_v52, %v3878_v44  ;;  %v7822_v44 = vld [vmem:[%s13227_s5 + $0x754] sm:$0xf0] }
 0x397   : > { %v11862_v3 = vadd.f32 %v11782_v40, %v3927_v33  ;;  %v11864_v5 = vpop.f32.mrf.mxu0  ;;  %v7856_v33 = vld [vmem:[%s13227_s5 + $0x864] sm:$0xf0] }
 0x398   : > { %v3830_v54 = vpop.f32.mrf.mxu2  ;;  %v3879_v12 = vpop.f32.mrf.mxu3 }
 0x399   : > { %13752 = vst [vmem:[#allocation73_spill] sm:$0xff] %v11862_v3  ;;  %v3831_v7 = vadd.f32 %v3830_v54, %v11482_v13  ;;  %v7404_v13 = vld [vmem:[%s13227_s5 + $0x860] sm:$0xf] }
 0x39a   : > { %4864 = vmatmul.bf16.gmra.mxu0 %v13733_v15  ;;  %v7405_v61 = vor.u32 %v7856_v33, %v7404_v13 }
 0x39b   : > { %v3880_v46 = vadd.f32 %v3879_v12, %v3831_v7  ;;  %v11868_v50 = vpop.f32.mrf.mxu1  ;;  %v7269_v7 = vor.u32 %v7822_v44, %v7268_v22  ;;  %v7396_v44 = vld [vmem:[%s13227_s5 + $0x850] sm:$0xf] }
 0x39c   : > { %5048 = vmatpush.bf16.msrb.mxu0 %v7405_v61 }
 0x39d   : > { %v3929_v30 = vadd.f32 %v11790_v58, %v3880_v46  ;;  %4184 = vmatmul.bf16.vlgmr.msra.gmra.mxu2 %v13753_v36  ;;  %4233 = vmatmul.bf16.vlgmr.msra.gmra.mxu3 %v13754_v20  ;;  %v7468_v58 = vld [vmem:[%s13227_s5 + $0x8e0] sm:$0xf]  ;;  %v7332_v46 = vld [vmem:[%s13227_s5 + $0x7d0] sm:$0xf] }
 0x39e   : > { %4913 = vmatmul.bf16.gmra.mxu1 %v13734_v23  ;;  %4951 = vmatpush.bf16.msrb.mxu2 %v7269_v7  ;;  %v7260_v7 = vld [vmem:[%s13227_s5 + $0x740] sm:$0xf]  ;;  %v7830_v23 = vld [vmem:[%s13227_s5 + $0x794] sm:$0xf0] }
 0x39f   : > { %v11874_v52 = vadd.f32 %v3977_v55, %v3929_v30  ;;  %v11876_v40 = vpop.f32.mrf.mxu0  ;;  %v7872_v55 = vld [vmem:[%s13227_s5 + $0x8e4] sm:$0xf0]  ;;  %v7838_v30 = vld [vmem:[%s13227_s5 + $0x7d4] sm:$0xf0]  ;;  %v7301_v8 = vor.u32 %v7830_v23, %v7300_v1 }
 0x3a0   : > { %v3989_v39 = vpop.f32.mrf.mxu2  ;;  %v4038_v48 = vpop.f32.mrf.mxu3  ;;  %v7469_v12 = vor.u32 %v7872_v55, %v7468_v58  ;;  %v7333_v36 = vor.u32 %v7838_v30, %v7332_v46  ;;  %v7820_v46 = vld [vmem:[%s13227_s5 + $0x744] sm:$0xf0] }
 0x3a1   : > { %13755 = vst [vmem:[#allocation72_spill] sm:$0xff] %v11874_v52  ;;  %v3990_v54 = vadd.f32 %v3989_v39, %v11240_v11  ;;  %v13760_v52 = vld [vmem:[#allocation18_spill] sm:$0xff] }
 0x3a2   : > { %5097 = vmatpush.bf16.msrb.mxu1 %v7469_v12  ;;  %5000 = vmatpush.bf16.msrb.mxu3 %v7333_v36 }
 0x3a3   : > { %v4039_v20 = vadd.f32 %v4038_v48, %v3990_v54  ;;  %v4143_v13 = vpop.f32.mrf.mxu1 }
 0x3a5   : > { %v4088_v33 = vadd.f32 %v11821_v29, %v4039_v20  ;;  %v7261_v20 = vor.u32 %v7820_v46, %v7260_v7  ;;  %v7852_v7 = vld [vmem:[%s13227_s5 + $0x844] sm:$0xf0] }
 0x3a7   : > { %v11905_v11 = vadd.f32 %v11825_v53, %v4088_v33  ;;  %v11907_v58 = vpop.f32.mrf.mxu0  ;;  %v7324_v33 = vld [vmem:[%s13227_s5 + $0x7c0] sm:$0xf]  ;;  %4952 = vmatpush.bf16.msrb.mxu2 %v7261_v20  ;;  %v7252_v20 = vld [vmem:[%s13227_s5 + $0x730] sm:$0xf] }
 0x3a8   : > { %v3991_v39 = vpop.f32.mrf.mxu2  ;;  %v4040_v55 = vpop.f32.mrf.mxu3 }
 0x3a9   : > { %v3992_v22 = vadd.f32 %v3991_v39, %v11247_v21  ;;  %v7836_v39 = vld [vmem:[%s13227_s5 + $0x7c4] sm:$0xf0] }
 0x3aa   : > { %4869 = vmatmul.bf16.gmra.mxu0 %v13737_v17 }
 0x3ab   : > { %v4041_v48 = vadd.f32 %v4040_v55, %v3992_v22  ;;  %v11916_v61 = vpop.f32.mrf.mxu1  ;;  %v7325_v55 = vor.u32 %v7836_v39, %v7324_v33  ;;  %v7818_v33 = vld [vmem:[%s13227_s5 + $0x734] sm:$0xf0] }
 0x3ad   : > { %v4090_v29 = vadd.f32 %v11833_v18, %v4041_v48  ;;  %4189 = vmatmul.bf16.gmra.mxu2 %v13671_v34  ;;  %4238 = vmatmul.bf16.gmra.mxu3 %v13672_v57  ;;  %v7854_v18 = vld [vmem:[%s13227_s5 + $0x854] sm:$0xf0]  ;;  %v7460_v34 = vld [vmem:[%s13227_s5 + $0x8d0] sm:$0xf] }
 0x3ae   : > { %4918 = vmatmul.bf16.gmra.mxu1 %v13738_v19  ;;  %v7397_v12 = vor.u32 %v7854_v18, %v7396_v44  ;;  %5001 = vmatpush.bf16.msrb.mxu3 %v7325_v55  ;;  %v13764_v19 = vld [vmem:[#allocation51_spill] sm:$0xff] }
 0x3af   : > { %v11926_v21 = vadd.f32 %v4138_v27, %v4090_v29  ;;  %v11928_v53 = vpop.f32.mrf.mxu0  ;;  %v7870_v27 = vld [vmem:[%s13227_s5 + $0x8d4] sm:$0xf0] }
 0x3b0   : > { %v3994_v57 = vpop.f32.mrf.mxu2  ;;  %v4043_v54 = vpop.f32.mrf.mxu3  ;;  %v7461_v36 = vor.u32 %v7870_v27, %v7460_v34  ;;  %5049 = vmatpush.bf16.msrb.mxu0 %v7397_v12 }
 0x3b1   : > { %v3995_v30 = vadd.f32 %v3994_v57, %v11280_v4 }
 0x3b2   : > { %5098 = vmatpush.bf16.msrb.mxu1 %v7461_v36 }
 0x3b3   : > { %v4044_v22 = vadd.f32 %v4043_v54, %v3995_v30  ;;  %v11955_v48 = vpop.f32.mrf.mxu1 }
 0x3b5   : > { %v4093_v4 = vadd.f32 %v11864_v5, %v4044_v22  ;;  %v7253_v22 = vor.u32 %v7818_v33, %v7252_v20 }
 0x3b7   : > { %v11962_v29 = vadd.f32 %v11868_v50, %v4093_v4  ;;  %v11964_v44 = vpop.f32.mrf.mxu0  ;;  %v7316_v4 = vld [vmem:[%s13227_s5 + $0x7b0] sm:$0xf]  ;;  %4953 = vmatpush.bf16.msrb.mxu2 %v7253_v22 }
 0x3b8   : > { %v3996_v18 = vpop.f32.mrf.mxu2  ;;  %v4045_v34 = vpop.f32.mrf.mxu3 }
 0x3b9   : > { %v3997_v57 = vadd.f32 %v3996_v18, %v11287_v6  ;;  %v7388_v6 = vld [vmem:[%s13227_s5 + $0x840] sm:$0xf]  ;;  %v7834_v18 = vld [vmem:[%s13227_s5 + $0x7b4] sm:$0xf0] }
 0x3ba   : > { %4874 = vmatmul.bf16.gmra.mxu0 %v13741_v24  ;;  %v7389_v36 = vor.u32 %v7852_v7, %v7388_v6  ;;  %v609_v6 = vld [vmem:[%s564_s20 + $0x8] sm:$0xff] }
 0x3bb   : > { %v4046_v54 = vadd.f32 %v4045_v34, %v3997_v57  ;;  %v11968_v12 = vpop.f32.mrf.mxu1  ;;  %v7317_v34 = vor.u32 %v7834_v18, %v7316_v4  ;;  %v726_v33 = vunpack.c.h.bf16 %v609_v6  ;;  %v13758_v4 = vld [vmem:[#allocation16_spill] sm:$0xff] }
 0x3bc   : > { %5050 = vmatpush.bf16.msrb.mxu0 %v7389_v36  ;;  %v725_v36 = vunpack.c.l.bf16 %v609_v6 }
 0x3bd   : > { %v4095_v27 = vadd.f32 %v11876_v40, %v4046_v54  ;;  %4194 = vmatmul.bf16.gmra.mxu2 %v13675_v42  ;;  %4243 = vmatmul.bf16.gmra.mxu3 %v13676_v35  ;;  %v7452_v40 = vld [vmem:[%s13227_s5 + $0x8c0] sm:$0xf] }
 0x3be   : > { %4923 = vmatmul.bf16.gmra.mxu1 %v13742_v32  ;;  %5002 = vmatpush.bf16.msrb.mxu3 %v7317_v34 }
 0x3bf   : > { %v11975_v5 = vadd.f32 %v4143_v13, %v4095_v27  ;;  %v11977_v50 = vpop.f32.mrf.mxu0  ;;  %v7868_v13 = vld [vmem:[%s13227_s5 + $0x8c4] sm:$0xf0]  ;;  %v608_v27 = vld [vmem:[%s564_s20] sm:$0xff]  ;;  %s817_s20 = scvt.s32.f32 %s12167_s26  ;;  %s521_s26 = sand.u32 1, %s8219_s14  }
 0x3c0   : > { %v3999_v46 = vpop.f32.mrf.mxu2  ;;  %v4048_v30 = vpop.f32.mrf.mxu3  ;;  %v7453_v55 = vor.u32 %v7868_v13, %v7452_v40  ;;  %s6070_s3 = sshll.u32 %s521_s26, 8  ;;  %s5869_s18 = scalar_lea.sflag [#allocation3], %s521_s26 }
 0x3c1   : > { %v4000_v39 = vadd.f32 %v3999_v46, %v11320_v16  ;;  %v723_v46 = vunpack.c.l.bf16 %v608_v27  ;;  %s13027_s19 = scalar_lea.vmem [#allocation2], %s6070_s3 }
 0x3c2   : > { %5099 = vmatpush.bf16.msrb.mxu1 %v7453_v55  ;;  %v13757_v55 = vld [vmem:[#allocation15_spill] sm:$0xff]  ;;  %s5884_s30 = sshll.u32 %s13027_s19, 4  ;;  %s5885_s30 = int_to_ptr.vmem [resolvable:$true] %s5884_s30 }
 0x3c3   : > { %v4049_v57 = vadd.f32 %v4048_v30, %v4000_v39  ;;  %v12004_v54 = vpop.f32.mrf.mxu1  ;;  %v724_v30 = vunpack.c.h.bf16 %v608_v27  ;;  %v727_v22 = vmul.f32 %v723_v46, %v13757_v55 }
 0x3c5   : > { %v4098_v16 = vadd.f32 %v11907_v58, %v4049_v57  ;;  %v728_v18 = vmul.f32 %v724_v30, %v13758_v4  ;;  %v729_v58 = vmul.f32 %v725_v36, %v13757_v55  ;;  %v13761_v36 = vld [vmem:[#allocation56_spill] sm:$0xff] }
 0x3c7   : > { %v12011_v7 = vadd.f32 %v11916_v61, %v4098_v16  ;;  %v12013_v40 = vpop.f32.mrf.mxu0  ;;  %v730_v61 = vmul.f32 %v726_v33, %v13758_v4  ;;  %v13759_v16 = vld [vmem:[#allocation17_spill] sm:$0xff]  ;;  %v12027_v6 = vadd.f32 %v728_v18, %v13760_v52  ;;  %v7850_v4 = vld [vmem:[%s13227_s5 + $0x834] sm:$0xf0] }
 0x3c8   : > { %v4001_v13 = vpop.f32.mrf.mxu2  ;;  %v4050_v20 = vpop.f32.mrf.mxu3  ;;  %v12024_v27 = vadd.f32 %v727_v22, %v13759_v16  ;;  %v7444_v18 = vld [vmem:[%s13227_s5 + $0x8b0] sm:$0xf] }
 0x3c9   : > { %v4002_v39 = vadd.f32 %v4001_v13, %v11327_v2  ;;  %v12030_v2 = vadd.f32 %v729_v58, %v13759_v16  ;;  %v12033_v46 = vadd.f32 %v730_v61, %v13760_v52  ;;  %v13762_v13 = vld [vmem:[#allocation57_spill] sm:$0xff]  ;;  %v6103_v33 = vmul.f32 -1.442695, %v12027_v6  ;;  %v7244_v16 = vld [vmem:[%s13227_s5 + $0x720] sm:$0xf] }
 0x3ca   : > { %4879 = vmatmul.bf16.gmra.mxu0 %v13745_v56 }
 0x3cb   : > { %v4051_v34 = vadd.f32 %v4050_v20, %v4002_v39  ;;  %v12021_v57 = vpop.f32.mrf.mxu1  ;;  %v6102_v20 = vmul.f32 -1.442695, %v12024_v27  ;;  %v6104_v39 = vmul.f32 -1.442695, %v12030_v2  ;;  %v6105_v55 = vmul.f32 -1.442695, %v12033_v46 }
 0x3cd   : > { %v4100_v30 = vadd.f32 %v11928_v53, %v4051_v34  ;;  %4199 = vmatmul.bf16.gmra.mxu2 %v13761_v36  ;;  %4248 = vmatmul.bf16.gmra.mxu3 %v13762_v13  ;;  %v7380_v53 = vld [vmem:[%s13227_s5 + $0x830] sm:$0xf]  ;;  %8133 = vpow2.f32 %v6102_v20 }
 0x3ce   : > { %4928 = vmatmul.bf16.gmra.mxu1 %v13746_v43  ;;  %v7381_v34 = vor.u32 %v7850_v4, %v7380_v53  ;;  %8135 = vpow2.f32 %v6103_v33  ;;  %v7308_v53 = vld [vmem:[%s13227_s5 + $0x7a0] sm:$0xf]  ;;  %v7832_v4 = vld [vmem:[%s13227_s5 + $0x7a4] sm:$0xf0] }
 0x3cf   : > { %v12044_v22 = vadd.f32 %v11955_v48, %v4100_v30  ;;  %v12046_v52 = vpop.f32.mrf.mxu0  ;;  %v7866_v48 = vld [vmem:[%s13227_s5 + $0x8b4] sm:$0xf0]  ;;  %v7816_v30 = vld [vmem:[%s13227_s5 + $0x724] sm:$0xf0]  ;;  %8137 = vpow2.f32 %v6104_v39  ;;  %v7309_v56 = vor.u32 %v7832_v4, %v7308_v53 }
 0x3d0   : > { %v4004_v58 = vpop.f32.mrf.mxu2  ;;  %v4053_v61 = vpop.f32.mrf.mxu3  ;;  %v7445_v43 = vor.u32 %v7866_v48, %v7444_v18  ;;  %v7245_v20 = vor.u32 %v7816_v30, %v7244_v16  ;;  %5051 = vmatpush.bf16.msrb.mxu0 %v7381_v34  ;;  %8139 = vpow2.f32 %v6105_v55 }
 0x3d1   : > { %v4005_v3 = vadd.f32 %v4004_v58, %v11360_v31  ;;  %5003 = vmatpush.bf16.msrb.mxu3 %v7309_v56 }
 0x3d2   : > { %5100 = vmatpush.bf16.msrb.mxu1 %v7445_v43  ;;  %4954 = vmatpush.bf16.msrb.mxu2 %v7245_v20  ;;  %v13763_v20 = vld [vmem:[#allocation59_spill] sm:$0xff] }
 0x3d3   : > { %v4054_v32 = vadd.f32 %v4053_v61, %v4005_v3  ;;  %v12073_v24 = vpop.f32.mrf.mxu1  ;;  %v8134_v31 = vpop.eup %8133 }
 0x3d4   : > { %v8136_v18 = vpop.eup %8135  ;;  %v12076_v58 = vadd.f32 1.0, %v8134_v31 }
 0x3d5   : > { %v4103_v33 = vadd.f32 %v11964_v44, %v4054_v32  ;;  %v8138_v48 = vpop.eup %8137  ;;  %v12083_v34 = vadd.f32 1.0, %v8136_v18  ;;  %v7436_v18 = vld [vmem:[%s13227_s5 + $0x8a0] sm:$0xf]  ;;  %5004 = vmatpush.bf16.msrb.mxu3 %v7301_v8 }
 0x3d6   : > { %v8140_v3 = vpop.eup %8139  ;;  %v12085_v43 = vadd.f32 1.0, %v8138_v48  ;;  %8141 = vrcp.f32 %v12076_v58  ;;  %vm756_vm14 = vweird.f32 %v12076_v58  ;;  %v760_v8 = vand.u32 2147483647, %v12076_v58 }
 0x3d7   : > { %v12079_v16 = vadd.f32 %v11968_v12, %v4103_v33  ;;  %v12081_v39 = vpop.f32.mrf.mxu0  ;;  %v12089_v56 = vadd.f32 1.0, %v8140_v3  ;;  %8143 = vrcp.f32 %v12083_v34  ;;  %v7372_v33 = vld [vmem:[%s13227_s5 + $0x820] sm:$0xf]  ;;  %v777_v23 = vand.u32 2147483648, %v12083_v34 }
 0x3d8   : > { %v4006_v55 = vpop.f32.mrf.mxu2  ;;  %v4055_v61 = vpop.f32.mrf.mxu3  ;;  %8145 = vrcp.f32 %v12085_v43  ;;  %vm771_vm4 = vweird.f32 %v12083_v34  ;;  %vm761_vm3 = vcmp.eq.f32.partialorder %v760_v8, 8.507059e+37  ;;  %vm786_vm6 = vweird.f32 %v12085_v43 }
 0x3d9   : > { %v4007_v32 = vadd.f32 %v4006_v55, %v11367_v0  ;;  %8147 = vrcp.f32 %v12089_v56  ;;  %vm801_vm9 = vweird.f32 %v12089_v56 }
 0x3da   : > { %4884 = vmatmul.bf16.gmra.mxu0 %v13749_v45 }
 0x3db   : > { %v4056_v44 = vadd.f32 %v4055_v61, %v4007_v32  ;;  %v12094_v12 = vpop.f32.mrf.mxu1  ;;  %v7864_v32 = vld [vmem:[%s13227_s5 + $0x8a4] sm:$0xf0] }
 0x3dc   : > { %v12100_v0 = vpop.eup %8141 }
 0x3dd   : > { %v4105_v30 = vadd.f32 %v11977_v50, %v4056_v44  ;;  %4204 = vmatmul.bf16.gmra.mxu2 %v13679_v60  ;;  %4253 = vmatmul.bf16.gmra.mxu3 %v13763_v20  ;;  %v12103_v53 = vpop.eup %8143  ;;  %v7848_v50 = vld [vmem:[%s13227_s5 + $0x824] sm:$0xf0]  ;;  %v752_v48 = vmul.f32 %v12100_v0, %v12076_v58  ;;  %v7236_v44 = vld [vmem:[%s13227_s5 + $0x710] sm:$0xf]  ;;  %vm757_vm15 = vweird.f32 %v12100_v0 }
 0x3de   : > { %4933 = vmatmul.bf16.gmra.mxu1 %v13750_v28  ;;  %v12121_v3 = vpop.eup %8145  ;;  %v7373_v61 = vor.u32 %v7848_v50, %v7372_v33  ;;  %v767_v28 = vmul.f32 %v12103_v53, %v12083_v34  ;;  %v7437_v50 = vor.u32 %v7864_v32, %v7436_v18  ;;  %vm12158_vm0 = vmor %vm756_vm14, %vm757_vm15  ;;  %vm772_vm2 = vweird.f32 %v12103_v53 }
 0x3df   : > { %v12106_v4 = vadd.f32 %v12004_v54, %v4105_v30  ;;  %v12108_v31 = vpop.f32.mrf.mxu0  ;;  %v7814_v30 = vld [vmem:[%s13227_s5 + $0x714] sm:$0xf0]  ;;  %v12134_v45 = vpop.eup %8147  ;;  %v753_v15 = vsub.f32 1.0, %v752_v48  ;;  %v782_v49 = vmul.f32 %v12121_v3, %v12085_v43  ;;  %v762_v48 = vand.u32 2147483648, %v12076_v58  ;;  %vm773_vm5 = vmor %vm771_vm4, %vm772_vm2 }
 0x3e0   : > { %v4009_v54 = vpop.f32.mrf.mxu2  ;;  %v4058_v55 = vpop.f32.mrf.mxu3  ;;  %v7237_v17 = vor.u32 %v7814_v30, %v7236_v44  ;;  %5052 = vmatpush.bf16.msrb.mxu0 %v7373_v61  ;;  %v768_v41 = vsub.f32 1.0, %v767_v28  ;;  %5101 = vmatpush.bf16.msrb.mxu1 %v7437_v50  ;;  %v775_v58 = vand.u32 2147483647, %v12083_v34  ;;  %v778_v30 = vor.u32 1.1754944e-38, %v777_v23 }
 0x3e1   : > { %v4010_v33 = vadd.f32 %v4009_v54, %v13764_v19  ;;  %v754_v18 = vmul.f32 %v12100_v0, %v753_v15  ;;  %v797_v54 = vmul.f32 %v12134_v45, %v12089_v56  ;;  %v783_v28 = vsub.f32 1.0, %v782_v49 }
 0x3e2   : > { %4955 = vmatpush.bf16.msrb.mxu2 %v7237_v17  ;;  %v769_v1 = vmul.f32 %v12103_v53, %v768_v41  ;;  %v763_v17 = vor.u32 1.1754944e-38, %v762_v48  ;;  %vm776_vm7 = vcmp.eq.f32.partialorder %v775_v58, 8.507059e+37  ;;  %vm787_vm8 = vweird.f32 %v12121_v3  ;;  %v13773_v58 = vld [vmem:[#allocation60_spill] sm:$0xff] }
 0x3e3   : > { %v4059_v51 = vadd.f32 %v4058_v55, %v4010_v33  ;;  %v12146_v19 = vpop.f32.mrf.mxu1  ;;  %v755_v61 = vadd.f32 %v12100_v0, %v754_v18  ;;  %v784_v33 = vmul.f32 %v12121_v3, %v783_v28  ;;  %vm12190_vm10 = vmor %vm786_vm6, %vm787_vm8  ;;  %v798_v15 = vsub.f32 1.0, %v797_v54 }
 0x3e4   : > { %v770_v41 = vadd.f32 %v12103_v53, %v769_v1  ;;  %vm802_vm13 = vweird.f32 %v12134_v45 }
 0x3e5   : > { %v4108_v55 = vadd.f32 %v12013_v40, %v4059_v51  ;;  %v759_v40 = vsel %vm12158_vm0, %v12100_v0, %v755_v61  ;;  %v13768_v0 = vld [vmem:[#allocation52_spill] sm:$0xff]  ;;  %v785_v34 = vadd.f32 %v12121_v3, %v784_v33  ;;  %vm12211_vm14 = vmor %vm801_vm9, %vm802_vm13  ;;  %v7862_v61 = vld [vmem:[%s13227_s5 + $0x894] sm:$0xf0] }
 0x3e6   : > { %v764_v18 = vsel %vm761_vm3, %v763_v17, %v759_v40  ;;  %v774_v48 = vsel %vm773_vm5, %v12103_v53, %v770_v41  ;;  %v792_v53 = vand.u32 2147483648, %v12085_v43  ;;  %v805_v41 = vand.u32 2147483647, %v12089_v56 }
 0x3e7   : > { %v12170_v51 = vadd.f32 %v12021_v57, %v4108_v55  ;;  %v12172_v49 = vpop.f32.mrf.mxu0  ;;  %v13767_v57 = vld [vmem:[#allocation54_spill] sm:$0xff]  ;;  %v779_v1 = vsel %vm776_vm7, %v778_v30, %v774_v48  ;;  %v790_v55 = vand.u32 2147483647, %v12085_v43  ;;  %v789_v8 = vsel %vm12190_vm10, %v12121_v3, %v785_v34  ;;  %v13774_v43 = vld [vmem:[#allocation61_spill] sm:$0xff] }
 0x3e8   : > { %v4011_v32 = vpop.f32.mrf.mxu2  ;;  %v4060_v44 = vpop.f32.mrf.mxu3  ;;  %v793_v54 = vor.u32 1.1754944e-38, %v792_v53  ;;  %v13775_v3 = vld [vmem:[#allocation53_spill] sm:$0xff]  ;;  %vm12215_vm15 = vcmp.eq.f32.partialorder %v805_v41, 8.507059e+37 }
 0x3e9   : > { %v4012_v50 = vadd.f32 %v4011_v32, %v13767_v57  ;;  %vm12199_vm12 = vcmp.eq.f32.partialorder %v790_v55, 8.507059e+37  ;;  %v799_v32 = vmul.f32 %v12134_v45, %v798_v15  ;;  %v812_v57 = vmul.f32 %v779_v1, %v12027_v6  ;;  %v7846_v55 = vld [vmem:[%s13227_s5 + $0x814] sm:$0xf0] }
 0x3ea   : > { %4889 = vmatmul.bf16.gmra.mxu0 %v13768_v0  ;;  %v794_v6 = vsel %vm12199_vm12, %v793_v54, %v789_v8 }
 0x3eb   : > { %v4061_v23 = vadd.f32 %v4060_v44, %v4012_v50  ;;  %v12188_v28 = vpop.f32.mrf.mxu1  ;;  %v807_v44 = vand.u32 2147483648, %v12089_v56  ;;  %v818_v50 = vstv %s817_s20  ;;  %v7364_v56 = vld [vmem:[%s13227_s5 + $0x810] sm:$0xf]  ;;  %v813_v15 = vmul.f32 %v794_v6, %v12030_v2  ;;  %v7292_v2 = vld [vmem:[%s13227_s5 + $0x780] sm:$0xf]  ;;  %s8169_s20 = scalar_lea.hbm %s13872_s23, 1024 }
 0x3ed   : > { %v4110_v40 = vadd.f32 %v12046_v52, %v4061_v23  ;;  %4209 = vmatmul.bf16.gmra.mxu2 %v13773_v58  ;;  %4258 = vmatmul.bf16.gmra.mxu3 %v13774_v43  ;;  %v811_v52 = vmul.f32 %v764_v18, %v12024_v27  ;;  %v7428_v27 = vld [vmem:[%s13227_s5 + $0x890] sm:$0xf]  ;;  %v7365_v23 = vor.u32 %v7846_v55, %v7364_v56  ;;  %v808_v53 = vor.u32 1.1754944e-38, %v807_v44  ;;  %v7812_v56 = vld [vmem:[%s13227_s5 + $0x704] sm:$0xf0] }
 0x3ee   : > { %4938 = vmatmul.bf16.gmra.mxu1 %v13775_v3  ;;  %v13780_v3 = vld [vmem:[#allocation55_spill] sm:$0xff]  ;;  %v7429_v8 = vor.u32 %v7862_v61, %v7428_v27  ;;  %v7828_v44 = vld [vmem:[%s13227_s5 + $0x784] sm:$0xf0]  ;;  %v821_v27 = vmul.f32 %v818_v50, %v813_v15 }
 0x3ef   : > { %v12222_v48 = vadd.f32 %v12073_v24, %v4110_v40  ;;  %v12224_v34 = vpop.f32.mrf.mxu0  ;;  %v800_v24 = vadd.f32 %v12134_v45, %v799_v32  ;;  %v819_v41 = vmul.f32 %v818_v50, %v811_v52  ;;  %v7228_v40 = vld [vmem:[%s13227_s5 + $0x700] sm:$0xf]  ;;  %v820_v32 = vmul.f32 %v818_v50, %v812_v57  ;;  %5053 = vmatpush.bf16.msrb.mxu0 %v7365_v23 }
 0x3f0   : > { %v4014_v18 = vpop.f32.mrf.mxu2  ;;  %v4063_v1 = vpop.f32.mrf.mxu3  ;;  %v7229_v52 = vor.u32 %v7812_v56, %v7228_v40  ;;  %v7293_v30 = vor.u32 %v7828_v44, %v7292_v2  ;;  %5102 = vmatpush.bf16.msrb.mxu1 %v7429_v8  ;;  %v13781_v8 = vld [vmem:[#allocation58_spill] sm:$0xff]  ;;  %v13783_v2 = vld [vmem:[#allocation63_spill] sm:$0xff] }
 0x3f1   : > { %v4015_v17 = vadd.f32 %v4014_v18, %v13780_v3  ;;  %v804_v54 = vsel %vm12211_vm14, %v12134_v45, %v800_v24  ;;  %v1577_v6 = vpack.c.bf16 %v820_v32, %v819_v41 }
 0x3f2   : > { %v809_v3 = vsel %vm12215_vm15, %v808_v53, %v804_v54  ;;  %4956 = vmatpush.bf16.msrb.mxu2 %v7229_v52  ;;  %5005 = vmatpush.bf16.msrb.mxu3 %v7293_v30 }
 0x3f3   : > { %v4064_v45 = vadd.f32 %v4063_v1, %v4015_v17  ;;  %v12260_v57 = vpop.f32.mrf.mxu1  ;;  %v814_v55 = vmul.f32 %v809_v3, %v12033_v46  ;;  %v1635_v53 = vunpack.c.l.b16 %v1577_v6  ;;  %v1636_v1 = vunpack.c.h.b16 %v1577_v6  ;;  %v7356_v6 = vld [vmem:[%s13227_s5 + $0x800] sm:$0xf] }
 0x3f5   : > { %v4113_v24 = vadd.f32 %v12081_v39, %v4064_v45  ;;  %v822_v18 = vmul.f32 %v818_v50, %v814_v55  ;;  %v13782_v50 = vld [vmem:[#allocation62_spill] sm:$0xff] }
 0x3f7   : > { %v12265_v23 = vadd.f32 %v12094_v12, %v4113_v24  ;;  %v12267_v33 = vpop.f32.mrf.mxu0  ;;  %v1578_v61 = vpack.c.bf16 %v822_v18, %v821_v27  ;;  %v7844_v24 = vld [vmem:[%s13227_s5 + $0x804] sm:$0xf0] }
 0x3f8   : > { %v4016_v40 = vpop.f32.mrf.mxu2  ;;  %v4065_v17 = vpop.f32.mrf.mxu3 }
 0x3f9   : > { %v4017_v54 = vadd.f32 %v4016_v40, %v13781_v8  ;;  %v1637_v46 = vunpack.c.l.b16 %v1578_v61  ;;  %v1638_v15 = vunpack.c.h.b16 %v1578_v61  ;;  %v7793_v40 = vld [vmem:[%s13227_s5 + $0x674] sm:$0xf] }
 0x3fb   : > { %v4066_v41 = vadd.f32 %v4065_v17, %v4017_v54  ;;  %v12270_v32 = vpack.c.b16 %v1637_v46, %v1635_v53  ;;  %v12272_v56 = vpop.f32.mrf.mxu1  ;;  %v12274_v39 = vpack.c.b16 %v1638_v15, %v1636_v1  ;;  %v7420_v53 = vld [vmem:[%s13227_s5 + $0x880] sm:$0xf]  ;;  %v7860_v1 = vld [vmem:[%s13227_s5 + $0x884] sm:$0xf0] }
 0x3fc   : > { %v13784_v17 = vld [vmem:[#allocation19_spill] sm:$0xff]  ;;  %v7421_v15 = vor.u32 %v7860_v1, %v7420_v53 }
 0x3fd   : > { %v4115_v12 = vadd.f32 %v12108_v31, %v4066_v41  ;;  %4214 = vmatmul.bf16.gmra.mxu2 %v13782_v50  ;;  %4263 = vmatmul.bf16.gmra.mxu3 %v13783_v2  ;;  %v13414_v44 = vshrl.u32 %v12270_v32, 16  ;;  %v13416_v3 = vshll.u32 %v12270_v32, 16  ;;  %v13413_v52 = vshrl.u32 %v12274_v39, 16  ;;  %v7158_v41 = vld [vmem:[%s13227_s5 + $0x678] sm:$0xf0] }
 0x3fe   : > { %v13415_v30 = vshll.u32 %v12274_v39, 16  ;;  %5103 = vmatpush.bf16.msrb.mxu1 %v7421_v15  ;;  %v7825_v15 = vld [vmem:[%s13227_s5 + $0x774] sm:$0xf] }
 0x3ff   : > { %v12284_v45 = vadd.f32 %v12146_v19, %v4115_v12  ;;  %v1788_v55 = vrot.slane %v13414_v44, 7  ;;  %v12288_v27 = vpop.f32.mrf.mxu0  ;;  %v1795_v31 = vrot.slane %v13413_v52, 7  ;;  %v7357_v19 = vor.u32 %v7844_v24, %v7356_v6  ;;  %v7809_v12 = vld [vmem:[%s13227_s5 + $0x6f4] sm:$0xf]  ;;  %v7222_v6 = vld [vmem:[%s13227_s5 + $0x6f8] sm:$0xf0] }
 0x400   : > { %v4019_v18 = vpop.f32.mrf.mxu2  ;;  %v4068_v61 = vpop.f32.mrf.mxu3  ;;  %v7161_v24 = vor.u32 %v7793_v40, %v7158_v41  ;;  %v13786_v41 = vld [vmem:[#allocation20_spill] sm:$0xff] }
 0x401   : > { %v4020_v8 = vadd.f32 %v4019_v18, %v13784_v17  ;;  %v1791_v54 = vor.u32 %v13416_v3, %v1788_v55  ;;  %v1798_v46 = vor.u32 %v13415_v30, %v1795_v31  ;;  %5054 = vmatpush.bf16.msrb.mxu0 %v7357_v19  ;;  %v7225_v18 = vor.u32 %v7809_v12, %v7222_v6  ;;  %v13789_v52 = vld [vmem:[#allocation28_spill] sm:$0xff] }
 0x402   : > { %5145 = vmatpush.bf16.msra.mxu2 %v7161_v24 }
 0x403   : > { %v4069_v55 = vadd.f32 %v4068_v61, %v4020_v8  ;;  %v12323_v31 = vsel %vm8784_vm1, 0, %v1791_v54  ;;  %v12327_v53 = vsel %vm8784_vm1, 0, %v1798_v46  ;;  %v12329_v1 = vpop.f32.mrf.mxu1  ;;  %5194 = vmatpush.bf16.msra.mxu3 %v7225_v18 }
 0x404   : > { %4894 = vmatmul.bf16.gmra.mxu0 %v12323_v31  ;;  %4943 = vmatmul.bf16.gmra.mxu1 %v12327_v53 }
 0x405   : > { %v4118_v19 = vadd.f32 %v12172_v49, %v4069_v55  ;;  %v7286_v49 = vld [vmem:[%s13227_s5 + $0x778] sm:$0xf0] }
 0x406   : > { %v7289_v18 = vor.u32 %v7825_v15, %v7286_v49  ;;  %v7350_v55 = vld [vmem:[%s13227_s5 + $0x7f8] sm:$0xf0] }
 0x407   : > { %v12335_v61 = vadd.f32 %v12188_v28, %v4118_v19  ;;  %v4860_v40 = vpop.f32.mrf.mxu0  ;;  %v7841_v28 = vld [vmem:[%s13227_s5 + $0x7f4] sm:$0xf] }
 0x408   : > { %v4021_v8 = vpop.f32.mrf.mxu2  ;;  %v4070_v54 = vpop.f32.mrf.mxu3  ;;  %v13787_v19 = vld [vmem:[#allocation65_spill] sm:$0xff]  ;;  %5243 = vmatpush.bf16.msra.mxu0 %v7289_v18 }
 0x409   : > { %v4022_v46 = vadd.f32 %v4021_v8, %v13786_v41  ;;  %v13788_v8 = vld [vmem:[#allocation66_spill] sm:$0xff]  ;;  %v7791_v41 = vld [vmem:[%s13227_s5 + $0x664] sm:$0xf] }
 0x40b   : > { %v4071_v12 = vadd.f32 %v4070_v54, %v4022_v46  ;;  %v4909_v6 = vpop.f32.mrf.mxu1  ;;  %v7353_v54 = vor.u32 %v7841_v28, %v7350_v55  ;;  %v7807_v46 = vld [vmem:[%s13227_s5 + $0x6e4] sm:$0xf] }
 0x40c   : > { %v12347_v24 = vadd.f32 %v4909_v6, %v4860_v40  ;;  %v7150_v40 = vld [vmem:[%s13227_s5 + $0x668] sm:$0xf0] }
 0x40d   : > { %v4120_v17 = vadd.f32 %v12224_v34, %v4071_v12  ;;  %4219 = vmatmul.bf16.gmra.mxu2 %v13787_v19  ;;  %4268 = vmatmul.bf16.gmra.mxu3 %v13788_v8  ;;  %v7153_v6 = vor.u32 %v7791_v41, %v7150_v40  ;;  %v7214_v34 = vld [vmem:[%s13227_s5 + $0x6e8] sm:$0xf0] }
 0x40e   : > { %5292 = vmatpush.bf16.msra.mxu1 %v7353_v54  ;;  %v7217_v49 = vor.u32 %v7807_v46, %v7214_v34  ;;  %v13790_v46 = vld [vmem:[#allocation29_spill] sm:$0xff] }
 0x40f   : > { %v12368_v12 = vadd.f32 %v12260_v57, %v4120_v17  ;;  %v4862_v15 = vpop.f32.mrf.mxu0  ;;  %5146 = vmatpush.bf16.msra.mxu2 %v7153_v6 }
 0x410   : > { %v4024_v28 = vpop.f32.mrf.mxu2  ;;  %v4073_v55 = vpop.f32.mrf.mxu3  ;;  %5195 = vmatpush.bf16.msra.mxu3 %v7217_v49 }
 0x411   : > { %v4025_v44 = vadd.f32 %v4024_v28, %v13789_v52 }
 0x413   : > { %v4074_v30 = vadd.f32 %v4073_v55, %v4025_v44  ;;  %v4911_v3 = vpop.f32.mrf.mxu1  ;;  %v7823_v44 = vld [vmem:[%s13227_s5 + $0x764] sm:$0xf]  ;;  %v7789_v55 = vld [vmem:[%s13227_s5 + $0x654] sm:$0xf] }
 0x414   : > { %5055 = vmatmul.bf16.vlgmr.msrb.gmra.mxu0 %v13675_v42  ;;  %5104 = vmatmul.bf16.vlgmr.msrb.gmra.mxu1 %v13676_v35  ;;  %v12373_v18 = vadd.f32 %v4911_v3, %v4862_v15  ;;  %v7278_v3 = vld [vmem:[%s13227_s5 + $0x768] sm:$0xf0] }
 0x415   : > { %v4123_v57 = vadd.f32 %v12267_v33, %v4074_v30  ;;  %v7839_v33 = vld [vmem:[%s13227_s5 + $0x7e4] sm:$0xf]  ;;  %v7281_v30 = vor.u32 %v7823_v44, %v7278_v3  ;;  %v7342_v15 = vld [vmem:[%s13227_s5 + $0x7e8] sm:$0xf0] }
 0x416   : > { %v7345_v28 = vor.u32 %v7839_v33, %v7342_v15 }
 0x417   : > { %v12377_v17 = vadd.f32 %v12272_v56, %v4123_v57  ;;  %v4865_v54 = vpop.f32.mrf.mxu0  ;;  %v7142_v57 = vld [vmem:[%s13227_s5 + $0x658] sm:$0xf0]  ;;  %5244 = vmatpush.bf16.msra.mxu0 %v7281_v30 }
 0x418   : > { %v4026_v41 = vpop.f32.mrf.mxu2  ;;  %v4075_v40 = vpop.f32.mrf.mxu3  ;;  %5293 = vmatpush.bf16.msra.mxu1 %v7345_v28 }
 0x419   : > { %v4027_v6 = vadd.f32 %v4026_v41, %v13790_v46  ;;  %v7145_v41 = vor.u32 %v7789_v55, %v7142_v57 }
 0x41b   : > { %v4076_v52 = vadd.f32 %v4075_v40, %v4027_v6  ;;  %v4914_v34 = vpop.f32.mrf.mxu1  ;;  %5147 = vmatpush.bf16.msra.mxu2 %v7145_v41  ;;  %v7837_v41 = vld [vmem:[%s13227_s5 + $0x7d4] sm:$0xf] }
 0x41c   : > { %v12389_v56 = vadd.f32 %v4914_v34, %v4865_v54  ;;  %v7805_v54 = vld [vmem:[%s13227_s5 + $0x6d4] sm:$0xf] }
 0x41d   : > { %v4125_v49 = vadd.f32 %v12288_v27, %v4076_v52  ;;  %4957 = vmatmul.bf16.vlgmr.msrb.gmra.mxu2 %v13699_v59  ;;  %5006 = vmatmul.bf16.vlgmr.msrb.gmra.mxu3 %v13700_v37  ;;  %v7206_v27 = vld [vmem:[%s13227_s5 + $0x6d8] sm:$0xf0] }
 0x41e   : > { %v7209_v6 = vor.u32 %v7805_v54, %v7206_v27  ;;  %v7270_v54 = vld [vmem:[%s13227_s5 + $0x758] sm:$0xf0] }
 0x41f   : > { %v12410_v40 = vadd.f32 %v12329_v1, %v4125_v49  ;;  %v4867_v46 = vpop.f32.mrf.mxu0 }
 0x420   : > { %v4185_v52 = vpop.f32.mrf.mxu2  ;;  %v4234_v34 = vpop.f32.mrf.mxu3  ;;  %5196 = vmatpush.bf16.msra.mxu3 %v7209_v6 }
 0x421   : > { %v4186_v44 = vadd.f32 %v4185_v52, %v11905_v11  ;;  %v7821_v11 = vld [vmem:[%s13227_s5 + $0x754] sm:$0xf]  ;;  %v7787_v52 = vld [vmem:[%s13227_s5 + $0x644] sm:$0xf] }
 0x423   : > { %v12413_v3 = vadd.f32 %v4234_v34, %v4186_v44  ;;  %v4916_v33 = vpop.f32.mrf.mxu1  ;;  %v7134_v34 = vld [vmem:[%s13227_s5 + $0x648] sm:$0xf0]  ;;  %v7803_v44 = vld [vmem:[%s13227_s5 + $0x6c4] sm:$0xf] }
 0x424   : > { %5060 = vmatmul.bf16.gmra.mxu0 %v13761_v36  ;;  %5109 = vmatmul.bf16.gmra.mxu1 %v13762_v13  ;;  %v12417_v30 = vadd.f32 %v4916_v33, %v4867_v46  ;;  %v7273_v46 = vor.u32 %v7821_v11, %v7270_v54  ;;  %v7137_v33 = vor.u32 %v7787_v52, %v7134_v34 }
 0x425   : > { %13791 = vst [vmem:[#allocation50_spill] sm:$0xff] %v12413_v3 }
 0x426   : > { %5245 = vmatpush.bf16.msra.mxu0 %v7273_v46  ;;  %5148 = vmatpush.bf16.msra.mxu2 %v7137_v33 }
 0x427   : > { %v4870_v1 = vpop.f32.mrf.mxu0 }
 0x428   : > { %v4187_v15 = vpop.f32.mrf.mxu2  ;;  %v4236_v49 = vpop.f32.mrf.mxu3 }
 0x429   : > { %v4188_v28 = vadd.f32 %v4187_v15, %v11926_v21  ;;  %v7334_v21 = vld [vmem:[%s13227_s5 + $0x7d8] sm:$0xf0] }
 0x42a   : > { %v7337_v6 = vor.u32 %v7837_v41, %v7334_v21 }
 0x42b   : > { %v12420_v55 = vadd.f32 %v4236_v49, %v4188_v28  ;;  %v4919_v57 = vpop.f32.mrf.mxu1 }
 0x42c   : > { %v12431_v27 = vadd.f32 %v4919_v57, %v4870_v1  ;;  %v7198_v1 = vld [vmem:[%s13227_s5 + $0x6c8] sm:$0xf0]  ;;  %5294 = vmatpush.bf16.msra.mxu1 %v7337_v6 }
 0x42d   : > { %13792 = vst [vmem:[#allocation15_spill] sm:$0xff] %v12420_v55  ;;  %4962 = vmatmul.bf16.gmra.mxu2 %v9437_v38  ;;  %5011 = vmatmul.bf16.gmra.mxu3 %v13701_v14  ;;  %v7201_v49 = vor.u32 %v7803_v44, %v7198_v1  ;;  %v7262_v1 = vld [vmem:[%s13227_s5 + $0x748] sm:$0xf0] }
 0x42f   : > { %v4872_v15 = vpop.f32.mrf.mxu0  ;;  %5197 = vmatpush.bf16.msra.mxu3 %v7201_v49 }
 0x430   : > { %v4190_v28 = vpop.f32.mrf.mxu2  ;;  %v4239_v57 = vpop.f32.mrf.mxu3 }
 0x431   : > { %v4191_v11 = vadd.f32 %v4190_v28, %v11962_v29  ;;  %v7819_v29 = vld [vmem:[%s13227_s5 + $0x744] sm:$0xf] }
 0x432   : > { %v7265_v28 = vor.u32 %v7819_v29, %v7262_v1 }
 0x433   : > { %v12451_v54 = vadd.f32 %v4239_v57, %v4191_v11  ;;  %v4921_v41 = vpop.f32.mrf.mxu1  ;;  %v7785_v11 = vld [vmem:[%s13227_s5 + $0x634] sm:$0xf] }
 0x434   : > { %5065 = vmatmul.bf16.gmra.mxu0 %v13679_v60  ;;  %5114 = vmatmul.bf16.gmra.mxu1 %v13763_v20  ;;  %v12455_v46 = vadd.f32 %v4921_v41, %v4872_v15  ;;  %v7835_v15 = vld [vmem:[%s13227_s5 + $0x7c4] sm:$0xf]  ;;  %v7126_v41 = vld [vmem:[%s13227_s5 + $0x638] sm:$0xf0] }
 0x435   : > { %13793 = vst [vmem:[#allocation16_spill] sm:$0xff] %v12451_v54  ;;  %5246 = vmatpush.bf16.msra.mxu0 %v7265_v28 }
 0x437   : > { %v4875_v21 = vpop.f32.mrf.mxu0 }
 0x438   : > { %v4192_v52 = vpop.f32.mrf.mxu2  ;;  %v4241_v34 = vpop.f32.mrf.mxu3 }
 0x439   : > { %v4193_v6 = vadd.f32 %v4192_v52, %v11975_v5  ;;  %v7326_v5 = vld [vmem:[%s13227_s5 + $0x7c8] sm:$0xf0]  ;;  %v7129_v52 = vor.u32 %v7785_v11, %v7126_v41 }
 0x43a   : > { %v7329_v57 = vor.u32 %v7835_v15, %v7326_v5 }
 0x43b   : > { %v12458_v44 = vadd.f32 %v4241_v34, %v4193_v6  ;;  %v4924_v33 = vpop.f32.mrf.mxu1  ;;  %v7190_v34 = vld [vmem:[%s13227_s5 + $0x6b8] sm:$0xf0]  ;;  %5149 = vmatpush.bf16.msra.mxu2 %v7129_v52 }
 0x43c   : > { %v12469_v49 = vadd.f32 %v4924_v33, %v4875_v21  ;;  %v7801_v21 = vld [vmem:[%s13227_s5 + $0x6b4] sm:$0xf]  ;;  %5295 = vmatpush.bf16.msra.mxu1 %v7329_v57 }
 0x43d   : > { %13794 = vst [vmem:[#allocation17_spill] sm:$0xff] %v12458_v44  ;;  %4967 = vmatmul.bf16.gmra.mxu2 %v13702_v25  ;;  %5016 = vmatmul.bf16.gmra.mxu3 %v13703_v10  ;;  %v7193_v33 = vor.u32 %v7801_v21, %v7190_v34  ;;  %v7254_v34 = vld [vmem:[%s13227_s5 + $0x738] sm:$0xf0] }
 0x43f   : > { %v4877_v6 = vpop.f32.mrf.mxu0  ;;  %5198 = vmatpush.bf16.msra.mxu3 %v7193_v33 }
 0x440   : > { %v4195_v29 = vpop.f32.mrf.mxu2  ;;  %v4244_v1 = vpop.f32.mrf.mxu3 }
 0x441   : > { %v4196_v15 = vadd.f32 %v4195_v29, %v12011_v7  ;;  %v7817_v7 = vld [vmem:[%s13227_s5 + $0x734] sm:$0xf]  ;;  %v7783_v29 = vld [vmem:[%s13227_s5 + $0x624] sm:$0xf] }
 0x442   : > { %v7257_v33 = vor.u32 %v7817_v7, %v7254_v34 }
 0x443   : > { %v12489_v5 = vadd.f32 %v4244_v1, %v4196_v15  ;;  %v4926_v44 = vpop.f32.mrf.mxu1  ;;  %v7118_v1 = vld [vmem:[%s13227_s5 + $0x628] sm:$0xf0]  ;;  %v7799_v15 = vld [vmem:[%s13227_s5 + $0x6a4] sm:$0xf] }
 0x444   : > { %5070 = vmatmul.bf16.gmra.mxu0 %v13773_v58  ;;  %5119 = vmatmul.bf16.gmra.mxu1 %v13774_v43  ;;  %v12493_v28 = vadd.f32 %v4926_v44, %v4877_v6  ;;  %v7833_v44 = vld [vmem:[%s13227_s5 + $0x7b4] sm:$0xf] }
 0x445   : > { %13795 = vst [vmem:[#allocation18_spill] sm:$0xff] %v12489_v5  ;;  %5247 = vmatpush.bf16.msra.mxu0 %v7257_v33 }
 0x447   : > { %v4880_v11 = vpop.f32.mrf.mxu0 }
 0x448   : > { %v4197_v41 = vpop.f32.mrf.mxu2  ;;  %v4246_v54 = vpop.f32.mrf.mxu3 }
 0x449   : > { %v4198_v57 = vadd.f32 %v4197_v41, %v12044_v22  ;;  %v7318_v22 = vld [vmem:[%s13227_s5 + $0x7b8] sm:$0xf0]  ;;  %v7182_v41 = vld [vmem:[%s13227_s5 + $0x6a8] sm:$0xf0] }
 0x44b   : > { %v12496_v21 = vadd.f32 %v4246_v54, %v4198_v57  ;;  %v4929_v52 = vpop.f32.mrf.mxu1  ;;  %v7321_v54 = vor.u32 %v7833_v44, %v7318_v22 }
 0x44c   : > { %v12507_v6 = vadd.f32 %v4929_v52, %v4880_v11  ;;  %v7121_v11 = vor.u32 %v7783_v29, %v7118_v1  ;;  %v7185_v52 = vor.u32 %v7799_v15, %v7182_v41  ;;  %v7246_v41 = vld [vmem:[%s13227_s5 + $0x728] sm:$0xf0] }
 0x44d   : > { %13796 = vst [vmem:[#allocation56_spill] sm:$0xff] %v12496_v21  ;;  %4972 = vmatmul.bf16.gmra.mxu2 %v13706_v63  ;;  %5021 = vmatmul.bf16.gmra.mxu3 %v13707_v26 }
 0x44e   : > { %5296 = vmatpush.bf16.msra.mxu1 %v7321_v54  ;;  %5150 = vmatpush.bf16.msra.mxu2 %v7121_v11 }
 0x44f   : > { %v4882_v57 = vpop.f32.mrf.mxu0  ;;  %5199 = vmatpush.bf16.msra.mxu3 %v7185_v52 }
 0x450   : > { %v4200_v7 = vpop.f32.mrf.mxu2  ;;  %v4249_v34 = vpop.f32.mrf.mxu3 }
 0x451   : > { %v4201_v44 = vadd.f32 %v4200_v7, %v12079_v16  ;;  %v7815_v16 = vld [vmem:[%s13227_s5 + $0x724] sm:$0xf]  ;;  %v7781_v7 = vld [vmem:[%s13227_s5 + $0x614] sm:$0xf] }
 0x452   : > { %v7249_v52 = vor.u32 %v7815_v16, %v7246_v41 }
 0x453   : > { %v12527_v22 = vadd.f32 %v4249_v34, %v4201_v44  ;;  %v4931_v21 = vpop.f32.mrf.mxu1  ;;  %v7110_v34 = vld [vmem:[%s13227_s5 + $0x618] sm:$0xf0]  ;;  %v7797_v44 = vld [vmem:[%s13227_s5 + $0x694] sm:$0xf] }
 0x454   : > { %5075 = vmatmul.bf16.gmra.mxu0 %v13782_v50  ;;  %5124 = vmatmul.bf16.gmra.mxu1 %v13783_v2  ;;  %v12531_v33 = vadd.f32 %v4931_v21, %v4882_v57  ;;  %v7831_v21 = vld [vmem:[%s13227_s5 + $0x7a4] sm:$0xf]  ;;  %v13822_v50 = vld [vmem:[#allocation37_spill] sm:$0xff] }
 0x455   : > { %13797 = vst [vmem:[#allocation57_spill] sm:$0xff] %v12527_v22  ;;  %5248 = vmatpush.bf16.msra.mxu0 %v7249_v52 }
 0x457   : > { %v4885_v29 = vpop.f32.mrf.mxu0 }
 0x458   : > { %v4202_v1 = vpop.f32.mrf.mxu2  ;;  %v4251_v5 = vpop.f32.mrf.mxu3 }
 0x459   : > { %v4203_v54 = vadd.f32 %v4202_v1, %v12106_v4  ;;  %v7310_v4 = vld [vmem:[%s13227_s5 + $0x7a8] sm:$0xf0]  ;;  %v7174_v1 = vld [vmem:[%s13227_s5 + $0x698] sm:$0xf0] }
 0x45b   : > { %v12534_v15 = vadd.f32 %v4251_v5, %v4203_v54  ;;  %v4934_v11 = vpop.f32.mrf.mxu1  ;;  %v7313_v5 = vor.u32 %v7831_v21, %v7310_v4 }
 0x45c   : > { %v12545_v57 = vadd.f32 %v4934_v11, %v4885_v29  ;;  %v7113_v29 = vor.u32 %v7781_v7, %v7110_v34  ;;  %v7177_v11 = vor.u32 %v7797_v44, %v7174_v1 }
 0x45d   : > { %13798 = vst [vmem:[#allocation59_spill] sm:$0xff] %v12534_v15  ;;  %4977 = vmatmul.bf16.gmra.mxu2 %v13712_v62  ;;  %5026 = vmatmul.bf16.gmra.mxu3 %v13713_v47 }
 0x45e   : > { %5297 = vmatpush.bf16.msra.mxu1 %v7313_v5  ;;  %5151 = vmatpush.bf16.msra.mxu2 %v7113_v29 }
 0x45f   : > { %v4887_v54 = vpop.f32.mrf.mxu0  ;;  %5200 = vmatpush.bf16.msra.mxu3 %v7177_v11  ;;  %v7238_v11 = vld [vmem:[%s13227_s5 + $0x718] sm:$0xf0] }
 0x460   : > { %v4205_v16 = vpop.f32.mrf.mxu2  ;;  %v4254_v41 = vpop.f32.mrf.mxu3 }
 0x461   : > { %v4206_v21 = vadd.f32 %v4205_v16, %v12170_v51  ;;  %v7813_v51 = vld [vmem:[%s13227_s5 + $0x714] sm:$0xf] }
 0x462   : > { %v7241_v16 = vor.u32 %v7813_v51, %v7238_v11 }
 0x463   : > { %v12565_v4 = vadd.f32 %v4254_v41, %v4206_v21  ;;  %v4936_v15 = vpop.f32.mrf.mxu1  ;;  %v13801_v41 = vld [vmem:[#allocation40_spill] sm:$0xff] }
 0x464   : > { %5080 = vmatmul.bf16.gmra.mxu0 %v13787_v19  ;;  %5129 = vmatmul.bf16.gmra.mxu1 %v13788_v8  ;;  %v12569_v52 = vadd.f32 %v4936_v15, %v4887_v54  ;;  %v7829_v15 = vld [vmem:[%s13227_s5 + $0x794] sm:$0xf] }
 0x465   : > { %13799 = vst [vmem:[#allocation51_spill] sm:$0xff] %v12565_v4  ;;  %5249 = vmatpush.bf16.msra.mxu0 %v7241_v16  ;;  %v13804_v4 = vld [vmem:[#allocation68_spill] sm:$0xff] }
 0x467   : > { %v4890_v44 = vpop.f32.mrf.mxu0 }
 0x468   : > { %v4207_v7 = vpop.f32.mrf.mxu2  ;;  %v4256_v34 = vpop.f32.mrf.mxu3 }
 0x469   : > { %v4208_v5 = vadd.f32 %v4207_v7, %v12222_v48  ;;  %v7302_v48 = vld [vmem:[%s13227_s5 + $0x798] sm:$0xf0]  ;;  %v7779_v7 = vld [vmem:[%s13227_s5 + $0x604] sm:$0xf] }
 0x46a   : > { %v7305_v21 = vor.u32 %v7829_v15, %v7302_v48 }
 0x46b   : > { %v12572_v1 = vadd.f32 %v4256_v34, %v4208_v5  ;;  %v4939_v29 = vpop.f32.mrf.mxu1  ;;  %v7102_v34 = vld [vmem:[%s13227_s5 + $0x608] sm:$0xf0] }
 0x46c   : > { %v12583_v54 = vadd.f32 %v4939_v29, %v4890_v44  ;;  %v7105_v5 = vor.u32 %v7779_v7, %v7102_v34  ;;  %v7795_v44 = vld [vmem:[%s13227_s5 + $0x684] sm:$0xf]  ;;  %v7166_v29 = vld [vmem:[%s13227_s5 + $0x688] sm:$0xf0]  ;;  %5298 = vmatpush.bf16.msra.mxu1 %v7305_v21 }
 0x46d   : > { %13800 = vst [vmem:[#allocation54_spill] sm:$0xff] %v12572_v1  ;;  %4982 = vmatmul.bf16.gmra.mxu2 %v13718_v9  ;;  %5031 = vmatmul.bf16.gmra.mxu3 %v13801_v41  ;;  %v7169_v51 = vor.u32 %v7795_v44, %v7166_v29  ;;  %v13803_v34 = vld [vmem:[#allocation67_spill] sm:$0xff]  ;;  %v13805_v44 = vshll.u32 %v12270_v32, 16 }
 0x46e   : > { %5152 = vmatpush.bf16.msra.mxu2 %v7105_v5 }
 0x46f   : > { %5201 = vmatpush.bf16.msra.mxu3 %v7169_v51  ;;  %v4892_v16 = vpop.f32.mrf.mxu0  ;;  %v1878_v5 = vrot.slane %v13805_v44, 1  ;;  %v13811_v44 = vshrl.u32 %v12274_v39, 16 }
 0x470   : > { %v4210_v11 = vpop.f32.mrf.mxu2  ;;  %v4259_v15 = vpop.f32.mrf.mxu3 }
 0x471   : > { %v4211_v48 = vadd.f32 %v4210_v11, %v12265_v23  ;;  %v13806_v23 = vshll.u32 %v12274_v39, 16  ;;  %v7811_v11 = vld [vmem:[%s13227_s5 + $0x704] sm:$0xf] }
 0x473   : > { %v12603_v1 = vadd.f32 %v4259_v15, %v4211_v48  ;;  %v4941_v7 = vpop.f32.mrf.mxu1  ;;  %v1880_v29 = vrot.slane %v13806_v23, 1  ;;  %v7230_v15 = vld [vmem:[%s13227_s5 + $0x708] sm:$0xf0] }
 0x474   : > { %5085 = vmatmul.bf16.gmra.mxu0 %v13803_v34  ;;  %5134 = vmatmul.bf16.gmra.mxu1 %v13804_v4  ;;  %v12607_v22 = vadd.f32 %v4941_v7, %v4892_v16  ;;  %v7294_v48 = vld [vmem:[%s13227_s5 + $0x788] sm:$0xf0]  ;;  %v13808_v16 = vld [vmem:[#allocation47_spill] sm:$0xff]  ;;  %v13810_v7 = vshrl.u32 %v12270_v32, 16 }
 0x475   : > { %13802 = vst [vmem:[#allocation52_spill] sm:$0xff] %v12603_v1  ;;  %v1881_v23 = vor.u32 %v1880_v29, %v13811_v44  ;;  %v7857_v1 = vld [vmem:[%s13227_s5 + $0x874] sm:$0xf] }
 0x478   : > { %v4212_v55 = vpop.f32.mrf.mxu2  ;;  %v4261_v3 = vpop.f32.mrf.mxu3 }
 0x479   : > { %v4213_v21 = vadd.f32 %v4212_v55, %v12284_v45  ;;  %v7827_v45 = vld [vmem:[%s13227_s5 + $0x784] sm:$0xf]  ;;  %v7233_v55 = vor.u32 %v7811_v11, %v7230_v15  ;;  %v7414_v11 = vld [vmem:[%s13227_s5 + $0x878] sm:$0xf0]  ;;  %v7873_v15 = vld [vmem:[%s13227_s5 + $0x8f4] sm:$0xf] }
 0x47a   : > { %v7417_v4 = vor.u32 %v7857_v1, %v7414_v11  ;;  %v12653_v1 = vsel %vm9975_vm11, %v1881_v23, 0 }
 0x47b   : > { %v12614_v51 = vadd.f32 %v4261_v3, %v4213_v21  ;;  %v13809_v3 = vld [vmem:[#allocation48_spill] sm:$0xff]  ;;  %v1879_v21 = vor.u32 %v1878_v5, %v13810_v7  ;;  %5250 = vmatpush.bf16.msra.mxu0 %v7233_v55  ;;  %v7478_v5 = vld [vmem:[%s13227_s5 + $0x8f8] sm:$0xf0]  ;;  %13814 = vst [vmem:[#allocation55_spill] sm:$0xff] %v12653_v1 }
 0x47c   : > { %v7481_v29 = vor.u32 %v7873_v15, %v7478_v5  ;;  %5341 = vmatpush.bf16.msrb.mxu2 %v7417_v4 }
 0x47d   : > { %13807 = vst [vmem:[#allocation60_spill] sm:$0xff] %v12614_v51  ;;  %4987 = vmatmul.bf16.gmra.mxu2 %v13808_v16  ;;  %5036 = vmatmul.bf16.gmra.mxu3 %v13809_v3  ;;  %v7297_v51 = vor.u32 %v7827_v45, %v7294_v48  ;;  %v12649_v8 = vsel %vm9975_vm11, %v1879_v21, 0 }
 0x47e   : > { %13813 = vst [vmem:[#allocation61_spill] sm:$0xff] %v12649_v8  ;;  %5390 = vmatpush.bf16.msrb.mxu3 %v7481_v29 }
 0x47f   : > { %5299 = vmatpush.bf16.msra.mxu1 %v7297_v51 }
 0x480   : > { %v4215_v45 = vpop.f32.mrf.mxu2  ;;  %v4264_v48 = vpop.f32.mrf.mxu3 }
 0x481   : > { %v4216_v7 = vadd.f32 %v4215_v45, %v12335_v61  ;;  %v4895_v44 = vpop.f32.mrf.mxu0  ;;  %v4944_v19 = vpop.f32.mrf.mxu1 }
 0x482   : > { %v12655_v55 = vadd.f32 %v4944_v19, %v4895_v44  ;;  %v7897_v44 = vld [vmem:[%s13230_s8 + $0x74] sm:$0xf] }
 0x483   : > { %v12657_v51 = vadd.f32 %v4264_v48, %v4216_v7  ;;  %v7898_v7 = vld [vmem:[%s13230_s8 + $0x74] sm:$0xf0] }
 0x484   : > { %5090 = vmatmul.bf16.gmra.mxu0 %v12649_v8  ;;  %5139 = vmatmul.bf16.gmra.mxu1 %v12653_v1 }
 0x485   : > { %13815 = vst [vmem:[#allocation58_spill] sm:$0xff] %v12657_v51  ;;  %v13820_v51 = vld [vmem:[#allocation31_spill] sm:$0xff] }
 0x488   : > { %v4217_v61 = vpop.f32.mrf.mxu2  ;;  %v4266_v4 = vpop.f32.mrf.mxu3 }
 0x489   : > { %v4218_v11 = vadd.f32 %v4217_v61, %v12368_v12  ;;  %v4897_v21 = vpop.f32.mrf.mxu0  ;;  %v4946_v15 = vpop.f32.mrf.mxu1  ;;  %v7572_v12 = vld [vmem:[%s13230_s8 + $0x70] sm:$0xf] }
 0x48a   : > { %v12662_v5 = vadd.f32 %v4946_v15, %v4897_v21  ;;  %v7573_v61 = vor.u32 %v7898_v7, %v7572_v12  ;;  %v7871_v12 = vld [vmem:[%s13227_s5 + $0x8e4] sm:$0xf]  ;;  %v7470_v7 = vld [vmem:[%s13227_s5 + $0x8e8] sm:$0xf0] }
 0x48b   : > { %v12664_v34 = vadd.f32 %v4266_v4, %v4218_v11  ;;  %v7574_v4 = vld [vmem:[%s13230_s8 + $0x78] sm:$0xf0]  ;;  %v7406_v11 = vld [vmem:[%s13227_s5 + $0x868] sm:$0xf0] }
 0x48c   : > { %v7577_v15 = vor.u32 %v7897_v44, %v7574_v4  ;;  %5668 = vmatpush.bf16.msrb.mxu0 %v7573_v61 }
 0x48d   : > { %13816 = vst [vmem:[#allocation19_spill] sm:$0xff] %v12664_v34  ;;  %4992 = vmatmul.bf16.gmra.mxu2 %v12270_v32  ;;  %5041 = vmatmul.bf16.gmra.mxu3 %v12274_v39  ;;  %v7473_v34 = vor.u32 %v7871_v12, %v7470_v7  ;;  %v7398_v12 = vld [vmem:[%s13227_s5 + $0x858] sm:$0xf0] }
 0x48e   : > { %5717 = vmatpush.bf16.msrb.mxu1 %v7577_v15 }
 0x48f   : > { %5391 = vmatpush.bf16.msrb.mxu3 %v7473_v34  ;;  %v7564_v34 = vld [vmem:[%s13230_s8 + $0x60] sm:$0xf] }
 0x490   : > { %v4220_v19 = vpop.f32.mrf.mxu2  ;;  %v4269_v23 = vpop.f32.mrf.mxu3 }
 0x491   : > { %v4221_v29 = vadd.f32 %v4220_v19, %v12377_v17  ;;  %v5056_v45 = vpop.f32.mrf.mxu0  ;;  %v5105_v48 = vpop.f32.mrf.mxu1  ;;  %v7855_v17 = vld [vmem:[%s13227_s5 + $0x864] sm:$0xf] }
 0x492   : > { %v7409_v19 = vor.u32 %v7855_v17, %v7406_v11 }
 0x493   : > { %v12687_v21 = vadd.f32 %v4269_v23, %v4221_v29 }
 0x494   : > { %5251 = vmatmul.bf16.vlgmr.msra.gmra.mxu0 %v13699_v59  ;;  %5300 = vmatmul.bf16.vlgmr.msra.gmra.mxu1 %v13700_v37 }
 0x495   : > { %13817 = vst [vmem:[#allocation21_spill] sm:$0xff] %v12687_v21  ;;  %5342 = vmatpush.bf16.msrb.mxu2 %v7409_v19  ;;  %v13819_v21 = vld [vmem:[#allocation30_spill] sm:$0xff] }
 0x498   : > { %v4222_v23 = vpop.f32.mrf.mxu2  ;;  %v4271_v29 = vpop.f32.mrf.mxu3 }
 0x499   : > { %v4223_v44 = vadd.f32 %v4222_v23, %v12410_v40  ;;  %v5058_v4 = vpop.f32.mrf.mxu0  ;;  %v5107_v17 = vpop.f32.mrf.mxu1  ;;  %v7896_v40 = vld [vmem:[%s13230_s8 + $0x64] sm:$0xf0] }
 0x49a   : > { %v7565_v19 = vor.u32 %v7896_v40, %v7564_v34 }
 0x49b   : > { %v12698_v11 = vadd.f32 %v4271_v29, %v4223_v44  ;;  %v7869_v44 = vld [vmem:[%s13227_s5 + $0x8d4] sm:$0xf] }
 0x49c   : > { %5669 = vmatpush.bf16.msrb.mxu0 %v7565_v19 }
 0x49d   : > { %13818 = vst [vmem:[#allocation20_spill] sm:$0xff] %v12698_v11  ;;  %5153 = vmatmul.bf16.vlgmr.msra.gmra.mxu2 %v13819_v21  ;;  %5202 = vmatmul.bf16.vlgmr.msra.gmra.mxu3 %v13820_v51  ;;  %v7895_v21 = vld [vmem:[%s13230_s8 + $0x64] sm:$0xf]  ;;  %v7566_v51 = vld [vmem:[%s13230_s8 + $0x68] sm:$0xf0] }
 0x49e   : > { %v7569_v23 = vor.u32 %v7895_v21, %v7566_v51  ;;  %v13821_v51 = vld [vmem:[#allocation36_spill] sm:$0xff] }
 0x4a0   : > { %v4958_v59 = vpop.f32.mrf.mxu2  ;;  %v5007_v1 = vpop.f32.mrf.mxu3  ;;  %5718 = vmatpush.bf16.msrb.mxu1 %v7569_v23  ;;  %v13824_v23 = vld [vmem:[#allocation43_spill] sm:$0xff] }
 0x4a1   : > { %v4959_v37 = vadd.f32 %v4958_v59, %v12347_v24  ;;  %v5061_v61 = vpop.f32.mrf.mxu0  ;;  %v5110_v15 = vpop.f32.mrf.mxu1  ;;  %v7853_v24 = vld [vmem:[%s13227_s5 + $0x854] sm:$0xf]  ;;  %v7462_v59 = vld [vmem:[%s13227_s5 + $0x8d8] sm:$0xf0] }
 0x4a2   : > { %v7401_v29 = vor.u32 %v7853_v24, %v7398_v12  ;;  %v7465_v34 = vor.u32 %v7869_v44, %v7462_v59 }
 0x4a3   : > { %v5008_v7 = vadd.f32 %v5007_v1, %v4959_v37 }
 0x4a4   : > { %5256 = vmatmul.bf16.gmra.mxu0 %v9437_v38  ;;  %5305 = vmatmul.bf16.gmra.mxu1 %v13701_v14  ;;  %v13823_v14 = vld [vmem:[#allocation38_spill] sm:$0xff] }
 0x4a5   : > { %v5057_v40 = vadd.f32 %v5056_v45, %v5008_v7  ;;  %5343 = vmatpush.bf16.msrb.mxu2 %v7401_v29  ;;  %5392 = vmatpush.bf16.msrb.mxu3 %v7465_v34  ;;  %v7390_v34 = vld [vmem:[%s13227_s5 + $0x848] sm:$0xf0] }
 0x4a7   : > { %v5106_v1 = vadd.f32 %v5105_v48, %v5057_v40 }
 0x4a8   : > { %v4960_v37 = vpop.f32.mrf.mxu2  ;;  %v5009_v21 = vpop.f32.mrf.mxu3 }
 0x4a9   : > { %v12730_v24 = vadd.f32 %v5106_v1, %v13821_v51  ;;  %v4961_v12 = vadd.f32 %v4960_v37, %v12373_v18  ;;  %v5063_v11 = vpop.f32.mrf.mxu0  ;;  %v5112_v8 = vpop.f32.mrf.mxu1  ;;  %v7556_v18 = vld [vmem:[%s13230_s8 + $0x50] sm:$0xf]  ;;  %v7454_v51 = vld [vmem:[%s13227_s5 + $0x8c8] sm:$0xf0] }
 0x4ab   : > { %v5010_v2 = vadd.f32 %v5009_v21, %v4961_v12  ;;  %v7867_v21 = vld [vmem:[%s13227_s5 + $0x8c4] sm:$0xf] }
 0x4ac   : > { %v7457_v12 = vor.u32 %v7867_v21, %v7454_v51  ;;  %v7550_v51 = vld [vmem:[%s13230_s8 + $0x48] sm:$0xf0] }
 0x4ad   : > { %v5059_v38 = vadd.f32 %v5058_v4, %v5010_v2  ;;  %5158 = vmatmul.bf16.gmra.mxu2 %v13822_v50  ;;  %5207 = vmatmul.bf16.gmra.mxu3 %v13823_v14  ;;  %v7894_v50 = vld [vmem:[%s13230_s8 + $0x54] sm:$0xf0]  ;;  %v7893_v2 = vld [vmem:[%s13230_s8 + $0x54] sm:$0xf] }
 0x4ae   : > { %v7557_v4 = vor.u32 %v7894_v50, %v7556_v18  ;;  %5393 = vmatpush.bf16.msrb.mxu3 %v7457_v12  ;;  %v7382_v12 = vld [vmem:[%s13227_s5 + $0x838] sm:$0xf0] }
 0x4af   : > { %v5108_v45 = vadd.f32 %v5107_v17, %v5059_v38  ;;  %v7558_v17 = vld [vmem:[%s13230_s8 + $0x58] sm:$0xf0] }
 0x4b0   : > { %v4963_v19 = vpop.f32.mrf.mxu2  ;;  %v5012_v7 = vpop.f32.mrf.mxu3  ;;  %v7561_v1 = vor.u32 %v7893_v2, %v7558_v17  ;;  %5670 = vmatpush.bf16.msrb.mxu0 %v7557_v4  ;;  %v13826_v17 = vld [vmem:[#allocation45_spill] sm:$0xff] }
 0x4b1   : > { %v12736_v48 = vadd.f32 %v5108_v45, %v13824_v23  ;;  %v4964_v29 = vadd.f32 %v4963_v19, %v12389_v56  ;;  %v5066_v44 = vpop.f32.mrf.mxu0  ;;  %v5115_v59 = vpop.f32.mrf.mxu1  ;;  %v7851_v56 = vld [vmem:[%s13227_s5 + $0x844] sm:$0xf] }
 0x4b2   : > { %v7393_v37 = vor.u32 %v7851_v56, %v7390_v34  ;;  %5719 = vmatpush.bf16.msrb.mxu1 %v7561_v1  ;;  %v13828_v34 = vld [vmem:[#allocation24_spill] sm:$0xff] }
 0x4b3   : > { %v5013_v40 = vadd.f32 %v5012_v7, %v4964_v29  ;;  %v13825_v7 = vld [vmem:[#allocation44_spill] sm:$0xff] }
 0x4b4   : > { %5261 = vmatmul.bf16.gmra.mxu0 %v13702_v25  ;;  %5310 = vmatmul.bf16.gmra.mxu1 %v13703_v10  ;;  %v13827_v10 = vld [vmem:[#allocation46_spill] sm:$0xff] }
 0x4b5   : > { %v5062_v38 = vadd.f32 %v5061_v61, %v5013_v40  ;;  %5344 = vmatpush.bf16.msrb.mxu2 %v7393_v37 }
 0x4b7   : > { %v5111_v14 = vadd.f32 %v5110_v15, %v5062_v38 }
 0x4b8   : > { %v4965_v45 = vpop.f32.mrf.mxu2  ;;  %v5014_v19 = vpop.f32.mrf.mxu3 }
 0x4b9   : > { %v12766_v23 = vadd.f32 %v5111_v14, %v13825_v7  ;;  %v4966_v29 = vadd.f32 %v4965_v45, %v12417_v30  ;;  %v5068_v18 = vpop.f32.mrf.mxu0  ;;  %v5117_v50 = vpop.f32.mrf.mxu1  ;;  %v7548_v30 = vld [vmem:[%s13230_s8 + $0x40] sm:$0xf]  ;;  %v7446_v7 = vld [vmem:[%s13227_s5 + $0x8b8] sm:$0xf0] }
 0x4bb   : > { %v5015_v2 = vadd.f32 %v5014_v19, %v4966_v29  ;;  %v7865_v19 = vld [vmem:[%s13227_s5 + $0x8b4] sm:$0xf] }
 0x4bc   : > { %v7449_v29 = vor.u32 %v7865_v19, %v7446_v7  ;;  %v7374_v19 = vld [vmem:[%s13227_s5 + $0x828] sm:$0xf0] }
 0x4bd   : > { %v5064_v25 = vadd.f32 %v5063_v11, %v5015_v2  ;;  %5163 = vmatmul.bf16.gmra.mxu2 %v13826_v17  ;;  %5212 = vmatmul.bf16.gmra.mxu3 %v13827_v10  ;;  %v7892_v11 = vld [vmem:[%s13230_s8 + $0x44] sm:$0xf0] }
 0x4be   : > { %v7549_v21 = vor.u32 %v7892_v11, %v7548_v30  ;;  %5394 = vmatpush.bf16.msrb.mxu3 %v7449_v29  ;;  %v13830_v11 = vld [vmem:[#allocation26_spill] sm:$0xff] }
 0x4bf   : > { %v5113_v61 = vadd.f32 %v5112_v8, %v5064_v25  ;;  %v7891_v8 = vld [vmem:[%s13230_s8 + $0x44] sm:$0xf] }
 0x4c0   : > { %v4968_v4 = vpop.f32.mrf.mxu2  ;;  %v5017_v56 = vpop.f32.mrf.mxu3  ;;  %v7553_v14 = vor.u32 %v7891_v8, %v7550_v51  ;;  %5671 = vmatpush.bf16.msrb.mxu0 %v7549_v21  ;;  %v13832_v51 = vld [vmem:[#allocation71_spill] sm:$0xff] }
 0x4c1   : > { %v12772_v15 = vadd.f32 %v5113_v61, %v13828_v34  ;;  %v4969_v40 = vadd.f32 %v4968_v4, %v12431_v27  ;;  %v5071_v1 = vpop.f32.mrf.mxu0  ;;  %v5120_v37 = vpop.f32.mrf.mxu1  ;;  %v7849_v27 = vld [vmem:[%s13227_s5 + $0x834] sm:$0xf] }
 0x4c2   : > { %v7385_v45 = vor.u32 %v7849_v27, %v7382_v12  ;;  %5720 = vmatpush.bf16.msrb.mxu1 %v7553_v14  ;;  %v13829_v61 = vld [vmem:[#allocation25_spill] sm:$0xff] }
 0x4c3   : > { %v5018_v38 = vadd.f32 %v5017_v56, %v4969_v40 }
 0x4c4   : > { %5266 = vmatmul.bf16.gmra.mxu0 %v13706_v63  ;;  %5315 = vmatmul.bf16.gmra.mxu1 %v13707_v26  ;;  %v13831_v26 = vld [vmem:[#allocation27_spill] sm:$0xff] }
 0x4c5   : > { %v5067_v2 = vadd.f32 %v5066_v44, %v5018_v38  ;;  %5345 = vmatpush.bf16.msrb.mxu2 %v7385_v45  ;;  %v7542_v45 = vld [vmem:[%s13230_s8 + $0x38] sm:$0xf0] }
 0x4c7   : > { %v5116_v25 = vadd.f32 %v5115_v59, %v5067_v2 }
 0x4c8   : > { %v4970_v17 = vpop.f32.mrf.mxu2  ;;  %v5019_v10 = vpop.f32.mrf.mxu3 }
 0x4c9   : > { %v12802_v4 = vadd.f32 %v5116_v25, %v13829_v61  ;;  %v4971_v56 = vadd.f32 %v4970_v17, %v12455_v46  ;;  %v5073_v34 = vpop.f32.mrf.mxu0  ;;  %v5122_v40 = vpop.f32.mrf.mxu1  ;;  %v7540_v46 = vld [vmem:[%s13230_s8 + $0x30] sm:$0xf]  ;;  %v7863_v25 = vld [vmem:[%s13227_s5 + $0x8a4] sm:$0xf]  ;;  %v7438_v17 = vld [vmem:[%s13227_s5 + $0x8a8] sm:$0xf0] }
 0x4cb   : > { %v5020_v30 = vadd.f32 %v5019_v10, %v4971_v56  ;;  %v7441_v10 = vor.u32 %v7863_v25, %v7438_v17 }
 0x4cd   : > { %v5069_v63 = vadd.f32 %v5068_v18, %v5020_v30  ;;  %5168 = vmatmul.bf16.gmra.mxu2 %v13830_v11  ;;  %5217 = vmatmul.bf16.gmra.mxu3 %v13831_v26  ;;  %v7890_v18 = vld [vmem:[%s13230_s8 + $0x34] sm:$0xf0]  ;;  %v13833_v11 = vld [vmem:[#allocation32_spill] sm:$0xff] }
 0x4ce   : > { %v7541_v14 = vor.u32 %v7890_v18, %v7540_v46  ;;  %5395 = vmatpush.bf16.msrb.mxu3 %v7441_v10  ;;  %v7861_v10 = vld [vmem:[%s13227_s5 + $0x894] sm:$0xf] }
 0x4cf   : > { %v5118_v44 = vadd.f32 %v5117_v50, %v5069_v63  ;;  %v7889_v50 = vld [vmem:[%s13230_s8 + $0x34] sm:$0xf] }
 0x4d0   : > { %v4973_v8 = vpop.f32.mrf.mxu2  ;;  %v5022_v21 = vpop.f32.mrf.mxu3  ;;  %v7545_v29 = vor.u32 %v7889_v50, %v7542_v45  ;;  %5672 = vmatpush.bf16.msrb.mxu0 %v7541_v14  ;;  %v13836_v50 = vld [vmem:[#allocation33_spill] sm:$0xff] }
 0x4d1   : > { %v12808_v59 = vadd.f32 %v5118_v44, %v13832_v51  ;;  %v4974_v27 = vadd.f32 %v4973_v8, %v12469_v49  ;;  %v5076_v12 = vpop.f32.mrf.mxu0  ;;  %v5125_v38 = vpop.f32.mrf.mxu1  ;;  %v7847_v49 = vld [vmem:[%s13227_s5 + $0x824] sm:$0xf] }
 0x4d2   : > { %v7377_v2 = vor.u32 %v7847_v49, %v7374_v19  ;;  %5721 = vmatpush.bf16.msrb.mxu1 %v7545_v29  ;;  %v7366_v29 = vld [vmem:[%s13227_s5 + $0x818] sm:$0xf0] }
 0x4d3   : > { %v5023_v7 = vadd.f32 %v5022_v21, %v4974_v27  ;;  %v13834_v27 = vld [vmem:[#allocation34_spill] sm:$0xff] }
 0x4d4   : > { %5271 = vmatmul.bf16.gmra.mxu0 %v13712_v62  ;;  %5320 = vmatmul.bf16.gmra.mxu1 %v13713_v47  ;;  %v13835_v47 = vld [vmem:[#allocation35_spill] sm:$0xff] }
 0x4d5   : > { %v5072_v61 = vadd.f32 %v5071_v1, %v5023_v7  ;;  %5346 = vmatpush.bf16.msrb.mxu2 %v7377_v2  ;;  %v7534_v7 = vld [vmem:[%s13230_s8 + $0x28] sm:$0xf0] }
 0x4d7   : > { %v5121_v56 = vadd.f32 %v5120_v37, %v5072_v61  ;;  %v7430_v61 = vld [vmem:[%s13227_s5 + $0x898] sm:$0xf0] }
 0x4d8   : > { %v4975_v30 = vpop.f32.mrf.mxu2  ;;  %v5024_v63 = vpop.f32.mrf.mxu3 }
 0x4d9   : > { %v12838_v26 = vadd.f32 %v5121_v56, %v13833_v11  ;;  %v4976_v44 = vadd.f32 %v4975_v30, %v12493_v28  ;;  %v5078_v8 = vpop.f32.mrf.mxu0  ;;  %v5127_v21 = vpop.f32.mrf.mxu1  ;;  %v7532_v28 = vld [vmem:[%s13230_s8 + $0x20] sm:$0xf]  ;;  %v7433_v56 = vor.u32 %v7861_v10, %v7430_v61  ;;  %v7859_v10 = vld [vmem:[%s13227_s5 + $0x884] sm:$0xf]  ;;  %v7422_v61 = vld [vmem:[%s13227_s5 + $0x888] sm:$0xf0] }
 0x4db   : > { %v5025_v51 = vadd.f32 %v5024_v63, %v4976_v44  ;;  %5396 = vmatpush.bf16.msrb.mxu3 %v7433_v56  ;;  %v7425_v56 = vor.u32 %v7859_v10, %v7422_v61 }
 0x4dd   : > { %v5074_v62 = vadd.f32 %v5073_v34, %v5025_v51  ;;  %5173 = vmatmul.bf16.gmra.mxu2 %v13834_v27  ;;  %5222 = vmatmul.bf16.gmra.mxu3 %v13835_v47  ;;  %v7888_v34 = vld [vmem:[%s13230_s8 + $0x24] sm:$0xf0]  ;;  %v13837_v51 = vld [vmem:[#allocation70_spill] sm:$0xff] }
 0x4de   : > { %v7533_v19 = vor.u32 %v7888_v34, %v7532_v28  ;;  %v13840_v28 = vld [vmem:[#allocation39_spill] sm:$0xff] }
 0x4df   : > { %v5123_v1 = vadd.f32 %v5122_v40, %v5074_v62  ;;  %v7887_v40 = vld [vmem:[%s13230_s8 + $0x24] sm:$0xf]  ;;  %5397 = vmatpush.bf16.msrb.mxu3 %v7425_v56 }
 0x4e0   : > { %v4978_v46 = vpop.f32.mrf.mxu2  ;;  %v5027_v18 = vpop.f32.mrf.mxu3  ;;  %v7537_v25 = vor.u32 %v7887_v40, %v7534_v7  ;;  %5673 = vmatpush.bf16.msrb.mxu0 %v7533_v19 }
 0x4e1   : > { %v12844_v37 = vadd.f32 %v5123_v1, %v13836_v50  ;;  %v4979_v14 = vadd.f32 %v4978_v46, %v12507_v6  ;;  %v5081_v45 = vpop.f32.mrf.mxu0  ;;  %v5130_v49 = vpop.f32.mrf.mxu1  ;;  %v7845_v6 = vld [vmem:[%s13227_s5 + $0x814] sm:$0xf] }
 0x4e2   : > { %v7369_v17 = vor.u32 %v7845_v6, %v7366_v29  ;;  %5722 = vmatpush.bf16.msrb.mxu1 %v7537_v25  ;;  %v7526_v6 = vld [vmem:[%s13230_s8 + $0x18] sm:$0xf0]  ;;  %v7358_v29 = vld [vmem:[%s13227_s5 + $0x808] sm:$0xf0] }
 0x4e3   : > { %v5028_v2 = vadd.f32 %v5027_v18, %v4979_v14  ;;  %v13838_v18 = vld [vmem:[#allocation41_spill] sm:$0xff] }
 0x4e4   : > { %5276 = vmatmul.bf16.gmra.mxu0 %v13718_v9  ;;  %5325 = vmatmul.bf16.gmra.mxu1 %v13801_v41  ;;  %v13839_v41 = vld [vmem:[#allocation42_spill] sm:$0xff] }
 0x4e5   : > { %v5077_v30 = vadd.f32 %v5076_v12, %v5028_v2  ;;  %5347 = vmatpush.bf16.msrb.mxu2 %v7369_v17 }
 0x4e7   : > { %v5126_v63 = vadd.f32 %v5125_v38, %v5077_v30 }
 0x4e8   : > { %v4980_v11 = vpop.f32.mrf.mxu2  ;;  %v5029_v44 = vpop.f32.mrf.mxu3 }
 0x4e9   : > { %v12874_v62 = vadd.f32 %v5126_v63, %v13837_v51  ;;  %v4981_v27 = vadd.f32 %v4980_v11, %v12531_v33  ;;  %v5083_v47 = vpop.f32.mrf.mxu0  ;;  %v5132_v1 = vpop.f32.mrf.mxu1  ;;  %v7524_v33 = vld [vmem:[%s13230_s8 + $0x10] sm:$0xf]  ;;  %v13841_v51 = vld [vmem:[#allocation64_spill] sm:$0xff] }
 0x4eb   : > { %v5030_v46 = vadd.f32 %v5029_v44, %v4981_v27 }
 0x4ed   : > { %v5079_v9 = vadd.f32 %v5078_v8, %v5030_v46  ;;  %5178 = vmatmul.bf16.gmra.mxu2 %v13838_v18  ;;  %5227 = vmatmul.bf16.gmra.mxu3 %v13839_v41  ;;  %v7886_v8 = vld [vmem:[%s13230_s8 + $0x14] sm:$0xf0] }
 0x4ee   : > { %v7525_v7 = vor.u32 %v7886_v8, %v7524_v33  ;;  %v7518_v8 = vld [vmem:[%s13230_s8 + $0x8] sm:$0xf0] }
 0x4ef   : > { %v5128_v12 = vadd.f32 %v5127_v21, %v5079_v9  ;;  %v7885_v21 = vld [vmem:[%s13230_s8 + $0x14] sm:$0xf] }
 0x4f0   : > { %v4983_v50 = vpop.f32.mrf.mxu2  ;;  %v5032_v14 = vpop.f32.mrf.mxu3  ;;  %v7529_v25 = vor.u32 %v7885_v21, %v7526_v6  ;;  %5674 = vmatpush.bf16.msrb.mxu0 %v7525_v7 }
 0x4f1   : > { %v12880_v38 = vadd.f32 %v5128_v12, %v13840_v28  ;;  %v4984_v34 = vadd.f32 %v4983_v50, %v12545_v57  ;;  %v5086_v40 = vpop.f32.mrf.mxu0  ;;  %v5135_v19 = vpop.f32.mrf.mxu1  ;;  %v7843_v57 = vld [vmem:[%s13227_s5 + $0x804] sm:$0xf]  ;;  %v13843_v50 = vld [vmem:[#allocation69_spill] sm:$0xff] }
 0x4f2   : > { %v7361_v17 = vor.u32 %v7843_v57, %v7358_v29  ;;  %5723 = vmatpush.bf16.msrb.mxu1 %v7529_v25 }
 0x4f3   : > { %v5033_v2 = vadd.f32 %v5032_v14, %v4984_v34 }
 0x4f4   : > { %5281 = vmatmul.bf16.gmra.mxu0 %v13808_v16  ;;  %5330 = vmatmul.bf16.gmra.mxu1 %v13809_v3  ;;  %v13842_v3 = vld [vmem:[#allocation53_spill] sm:$0xff] }
 0x4f5   : > { %v5082_v30 = vadd.f32 %v5081_v45, %v5033_v2  ;;  %5348 = vmatpush.bf16.msrb.mxu2 %v7361_v17  ;;  %v13844_v2 = vld [vmem:[#allocation22_spill] sm:$0xff] }
 0x4f7   : > { %v5131_v63 = vadd.f32 %v5130_v49, %v5082_v30  ;;  %v7875_v30 = vld [vmem:[%s12944_s11] sm:$0xff] }
 0x4f8   : > { %v4985_v11 = vpop.f32.mrf.mxu2  ;;  %v5034_v44 = vpop.f32.mrf.mxu3 }
 0x4f9   : > { %v12910_v27 = vadd.f32 %v5131_v63, %v13841_v51  ;;  %v4986_v46 = vadd.f32 %v4985_v11, %v12569_v52  ;;  %v5088_v9 = vpop.f32.mrf.mxu0  ;;  %v5137_v18 = vpop.f32.mrf.mxu1 }
 0x4fb   : > { %v5035_v41 = vadd.f32 %v5034_v44, %v4986_v46 }
 0x4fd   : > { %v5084_v16 = vadd.f32 %v5083_v47, %v5035_v41  ;;  %5183 = vmatmul.bf16.gmra.mxu2 %v13768_v0  ;;  %5232 = vmatmul.bf16.gmra.mxu3 %v13842_v3  ;;  %v7516_v47 = vld [vmem:[%s13230_s8] sm:$0xf]  ;;  %v7884_v0 = vld [vmem:[%s13230_s8 + $0x4] sm:$0xf0] }
 0x4fe   : > { %v7517_v33 = vor.u32 %v7884_v0, %v7516_v47 }
 0x4ff   : > { %v5133_v45 = vadd.f32 %v5132_v1, %v5084_v16  ;;  %v7883_v1 = vld [vmem:[%s13230_s8 + $0x4] sm:$0xf]  ;;  %v13846_v16 = vld [vmem:[#allocation73_spill] sm:$0xff] }
 0x500   : > { %v4988_v12 = vpop.f32.mrf.mxu2  ;;  %v5037_v49 = vpop.f32.mrf.mxu3  ;;  %v7521_v21 = vor.u32 %v7883_v1, %v7518_v8  ;;  %5675 = vmatpush.bf16.msrb.mxu0 %v7517_v33 }
 0x501   : > { %v12916_v14 = vadd.f32 %v5133_v45, %v13843_v50  ;;  %v4989_v28 = vadd.f32 %v4988_v12, %v12583_v54  ;;  %v5091_v34 = vpop.f32.mrf.mxu0  ;;  %v5140_v52 = vpop.f32.mrf.mxu1 }
 0x502   : > { %5724 = vmatpush.bf16.msrb.mxu1 %v7521_v21 }
 0x503   : > { %v5038_v54 = vadd.f32 %v5037_v49, %v4989_v28 }
 0x504   : > { %5286 = vmatmul.bf16.gmra.mxu0 %v12270_v32  ;;  %5335 = vmatmul.bf16.gmra.mxu1 %v12274_v39 }
 0x505   : > { %v5087_v7 = vadd.f32 %v5086_v40, %v5038_v54 }
 0x507   : > { %v5136_v6 = vadd.f32 %v5135_v19, %v5087_v7 }
 0x508   : > { %v4990_v57 = vpop.f32.mrf.mxu2  ;;  %v5039_v29 = vpop.f32.mrf.mxu3 }
 0x509   : > { %v12936_v25 = vadd.f32 %v5136_v6, %v13844_v2  ;;  %v4991_v17 = vadd.f32 %v4990_v57, %v12607_v22  ;;  %v5093_v10 = vpop.f32.mrf.mxu0  ;;  %v5142_v61 = vpop.f32.mrf.mxu1  ;;  %v13845_v22 = vld [vmem:[#allocation23_spill] sm:$0xff] }
 0x50b   : > { %v5040_v32 = vadd.f32 %v5039_v29, %v4991_v17 }
 0x50d   : > { %v5089_v56 = vadd.f32 %v5088_v9, %v5040_v32  ;;  %5188 = vmatmul.bf16.gmra.mxu2 %v12323_v31  ;;  %5237 = vmatmul.bf16.gmra.mxu3 %v12327_v53 }
 0x50f   : > { %v5138_v39 = vadd.f32 %v5137_v18, %v5089_v56 }
 0x510   : > { %v4993_v40 = vpop.f32.mrf.mxu2  ;;  %v5042_v19 = vpop.f32.mrf.mxu3 }
 0x511   : > { %v12948_v63 = vadd.f32 %v5138_v39, %v13845_v22  ;;  %v4994_v11 = vadd.f32 %v4993_v40, %v12655_v55  ;;  %v5252_v44 = vpop.f32.mrf.mxu0  ;;  %v5301_v51 = vpop.f32.mrf.mxu1 }
 0x513   : > { %v5043_v31 = vadd.f32 %v5042_v19, %v4994_v11 }
 0x514   : > { %5676 = vmatmul.bf16.vlgmr.msrb.gmra.mxu0 %v7875_v30  ;;  %5725 = vmatmul.bf16.vlgmr.msrb.gmra.mxu1 %v7875_v30 }
 0x515   : > { %v5092_v53 = vadd.f32 %v5091_v34, %v5043_v31  ;;  %v7876_v34 = vld [vmem:[%s12944_s11 + $0x8] sm:$0xff] }
 0x517   : > { %v5141_v46 = vadd.f32 %v5140_v52, %v5092_v53  ;;  %v13847_v52 = vld [vmem:[#allocation72_spill] sm:$0xff]  ;;  %v7878_v53 = vld [vmem:[%s12944_s11 + $0x18] sm:$0xff] }
 0x518   : > { %v4995_v9 = vpop.f32.mrf.mxu2  ;;  %v5044_v41 = vpop.f32.mrf.mxu3 }
 0x519   : > { %v12952_v18 = vadd.f32 %v5141_v46, %v13846_v16  ;;  %v4996_v3 = vadd.f32 %v4995_v9, %v12662_v5  ;;  %v5254_v45 = vpop.f32.mrf.mxu0  ;;  %v5303_v12 = vpop.f32.mrf.mxu1 }
 0x51b   : > { %v5045_v49 = vadd.f32 %v5044_v41, %v4996_v3 }
 0x51d   : > { %v5094_v50 = vadd.f32 %v5093_v10, %v5045_v49  ;;  %5349 = vmatmul.bf16.vlgmr.msrb.gmra.mxu2 %v13675_v42  ;;  %5398 = vmatmul.bf16.vlgmr.msrb.gmra.mxu3 %v13676_v35  ;;  %v7877_v10 = vld [vmem:[%s12944_s11 + $0x10] sm:$0xff] }
 0x51f   : > { %v5143_v55 = vadd.f32 %v5142_v61, %v5094_v50 }
 0x520   : > { %v5154_v28 = vpop.f32.mrf.mxu2  ;;  %v5203_v47 = vpop.f32.mrf.mxu3 }
 0x521   : > { %v12959_v0 = vadd.f32 %v5143_v55, %v13847_v52  ;;  %v5204_v1 = vadd.f32 %v5203_v47, %v5154_v28  ;;  %v5257_v33 = vpop.f32.mrf.mxu0  ;;  %v5306_v8 = vpop.f32.mrf.mxu1 }
 0x523   : > { %v5253_v5 = vadd.f32 %v5252_v44, %v5204_v1 }
 0x524   : > { %5681 = vmatmul.bf16.gmra.mxu0 %v7876_v34  ;;  %5730 = vmatmul.bf16.gmra.mxu1 %v7876_v34  ;;  %v7879_v34 = vld [vmem:[%s12944_s11 + $0x20] sm:$0xff] }
 0x525   : > { %v12961_v54 = vadd.f32 %v5301_v51, %v5253_v5 }
 0x528   : > { %v5156_v21 = vpop.f32.mrf.mxu2  ;;  %v5205_v42 = vpop.f32.mrf.mxu3 }
 0x529   : > { %v5206_v7 = vadd.f32 %v5205_v42, %v5156_v21  ;;  %v5259_v35 = vpop.f32.mrf.mxu0  ;;  %v5308_v6 = vpop.f32.mrf.mxu1 }
 0x52b   : > { %v5255_v57 = vadd.f32 %v5254_v45, %v5206_v7 }
 0x52d   : > { %v12963_v29 = vadd.f32 %v5303_v12, %v5255_v57  ;;  %5354 = vmatmul.bf16.gmra.mxu2 %v13761_v36  ;;  %5403 = vmatmul.bf16.gmra.mxu3 %v13762_v13 }
 0x530   : > { %v5159_v2 = vpop.f32.mrf.mxu2  ;;  %v5208_v17 = vpop.f32.mrf.mxu3 }
 0x531   : > { %v5209_v61 = vadd.f32 %v5208_v17, %v5159_v2  ;;  %v5262_v32 = vpop.f32.mrf.mxu0  ;;  %v5311_v56 = vpop.f32.mrf.mxu1  ;;  %v13849_v2 = vld [vmem:[#allocation63_spill] sm:$0xff] }
 0x533   : > { %v5258_v39 = vadd.f32 %v5257_v33, %v5209_v61  ;;  %v7880_v61 = vld [vmem:[%s12944_s11 + $0x28] sm:$0xff] }
 0x534   : > { %5686 = vmatmul.bf16.gmra.mxu0 %v7877_v10  ;;  %5735 = vmatmul.bf16.gmra.mxu1 %v7877_v10 }
 0x535   : > { %v12968_v40 = vadd.f32 %v5306_v8, %v5258_v39 }
 0x538   : > { %v5161_v19 = vpop.f32.mrf.mxu2  ;;  %v5210_v30 = vpop.f32.mrf.mxu3 }
 0x539   : > { %v5211_v22 = vadd.f32 %v5210_v30, %v5161_v19  ;;  %v5264_v11 = vpop.f32.mrf.mxu0  ;;  %v5313_v44 = vpop.f32.mrf.mxu1 }
 0x53b   : > { %v5260_v36 = vadd.f32 %v5259_v35, %v5211_v22 }
 0x53d   : > { %v12970_v51 = vadd.f32 %v5308_v6, %v5260_v36  ;;  %5359 = vmatmul.bf16.gmra.mxu2 %v13679_v60  ;;  %5408 = vmatmul.bf16.gmra.mxu3 %v13763_v20 }
 0x540   : > { %v5164_v13 = vpop.f32.mrf.mxu2  ;;  %v5213_v31 = vpop.f32.mrf.mxu3 }
 0x541   : > { %v5214_v46 = vadd.f32 %v5213_v31, %v5164_v13  ;;  %v5267_v9 = vpop.f32.mrf.mxu0  ;;  %v5316_v41 = vpop.f32.mrf.mxu1 }
 0x543   : > { %v5263_v16 = vadd.f32 %v5262_v32, %v5214_v46  ;;  %v13850_v46 = vld [vmem:[#allocation65_spill] sm:$0xff] }
 0x544   : > { %5691 = vmatmul.bf16.gmra.mxu0 %v7878_v53  ;;  %5740 = vmatmul.bf16.gmra.mxu1 %v7878_v53 }
 0x545   : > { %v12975_v3 = vadd.f32 %v5311_v56, %v5263_v16 }
 0x548   : > { %v5166_v45 = vpop.f32.mrf.mxu2  ;;  %v5215_v12 = vpop.f32.mrf.mxu3 }
 0x549   : > { %v5216_v49 = vadd.f32 %v5215_v12, %v5166_v45  ;;  %v5269_v50 = vpop.f32.mrf.mxu0  ;;  %v5318_v55 = vpop.f32.mrf.mxu1  ;;  %v7881_v45 = vld [vmem:[%s12944_s11 + $0x30] sm:$0xff] }
 0x54b   : > { %v5265_v60 = vadd.f32 %v5264_v11, %v5216_v49 }
 0x54d   : > { %v12977_v28 = vadd.f32 %v5313_v44, %v5265_v60  ;;  %5364 = vmatmul.bf16.gmra.mxu2 %v13773_v58  ;;  %5413 = vmatmul.bf16.gmra.mxu3 %v13774_v43  ;;  %v13848_v43 = vld [vmem:[#allocation62_spill] sm:$0xff] }
 0x550   : > { %v5169_v20 = vpop.f32.mrf.mxu2  ;;  %v5218_v47 = vpop.f32.mrf.mxu3 }
 0x551   : > { %v5219_v52 = vadd.f32 %v5218_v47, %v5169_v20  ;;  %v5272_v1 = vpop.f32.mrf.mxu0  ;;  %v5321_v33 = vpop.f32.mrf.mxu1 }
 0x553   : > { %v5268_v8 = vadd.f32 %v5267_v9, %v5219_v52  ;;  %v13851_v9 = vld [vmem:[#allocation66_spill] sm:$0xff] }
 0x554   : > { %5696 = vmatmul.bf16.gmra.mxu0 %v7879_v34  ;;  %5745 = vmatmul.bf16.gmra.mxu1 %v7879_v34 }
 0x555   : > { %v12982_v5 = vadd.f32 %v5316_v41, %v5268_v8 }
 0x558   : > { %v5171_v21 = vpop.f32.mrf.mxu2  ;;  %v5220_v42 = vpop.f32.mrf.mxu3 }
 0x559   : > { %v5221_v7 = vadd.f32 %v5220_v42, %v5171_v21  ;;  %v5274_v35 = vpop.f32.mrf.mxu0  ;;  %v5323_v6 = vpop.f32.mrf.mxu1  ;;  %v13852_v21 = vld [vmem:[#allocation67_spill] sm:$0xff]  ;;  %v13853_v42 = vld [vmem:[#allocation68_spill] sm:$0xff] }
 0x55b   : > { %v5270_v58 = vadd.f32 %v5269_v50, %v5221_v7 }
 0x55d   : > { %v12984_v57 = vadd.f32 %v5318_v55, %v5270_v58  ;;  %5369 = vmatmul.bf16.gmra.mxu2 %v13848_v43  ;;  %5418 = vmatmul.bf16.gmra.mxu3 %v13849_v2 }
 0x560   : > { %v5174_v17 = vpop.f32.mrf.mxu2  ;;  %v5223_v10 = vpop.f32.mrf.mxu3 }
 0x561   : > { %v5224_v32 = vadd.f32 %v5223_v10, %v5174_v17  ;;  %v5277_v56 = vpop.f32.mrf.mxu0  ;;  %v5326_v39 = vpop.f32.mrf.mxu1 }
 0x563   : > { %v5273_v19 = vadd.f32 %v5272_v1, %v5224_v32 }
 0x564   : > { %5701 = vmatmul.bf16.gmra.mxu0 %v7880_v61  ;;  %5750 = vmatmul.bf16.gmra.mxu1 %v7880_v61 }
 0x565   : > { %v12989_v30 = vadd.f32 %v5321_v33, %v5273_v19 }
 0x568   : > { %v5176_v22 = vpop.f32.mrf.mxu2  ;;  %v5225_v11 = vpop.f32.mrf.mxu3 }
 0x569   : > { %v5226_v44 = vadd.f32 %v5225_v11, %v5176_v22  ;;  %v5279_v36 = vpop.f32.mrf.mxu0  ;;  %v5328_v13 = vpop.f32.mrf.mxu1  ;;  %v612_v22 = vld [vmem:[%s13228_s6] sm:$0x3] }
 0x56b   : > { %v5275_v31 = vadd.f32 %v5274_v35, %v5226_v44  ;;  %v13008_v44 = vperm.slane %v612_v22, 0 }
 0x56d   : > { %v12991_v53 = vadd.f32 %v5323_v6, %v5275_v31  ;;  %5374 = vmatmul.bf16.gmra.mxu2 %v13850_v46  ;;  %5423 = vmatmul.bf16.gmra.mxu3 %v13851_v9  ;;  %v7882_v6 = vld [vmem:[%s12944_s11 + $0x38] sm:$0xff]  ;;  %v13855_v31 = vld [vmem:[#allocation55_spill] sm:$0xff]  ;;  %s8165_s11 = scalar_lea.hbm %s8164_s29, 256 }
 0x56e   : > { %v5798_v46 = vld [vmem:[%s13231_s9] sm:$0x3]  ;;  %p8166_p6 = scmp.ne.s32.totalorder %s8164_s29, %s8165_s11  ;;  %p8171_p11 = scmp.lt.s32.totalorder %s8169_s20, %s8165_s11 }
 0x570   : > { %v5179_v41 = vpop.f32.mrf.mxu2  ;;  %v5228_v16 = vpop.f32.mrf.mxu3  ;;  %p8167_p7 = pnand %p8166_p6, %p8353_p3  ;;  %p8172_p12 = por %p8171_p11, %p8170_p10 }
 0x571   : > { %v5229_v12 = vadd.f32 %v5228_v16, %v5179_v41  ;;  %v5282_v49 = vpop.f32.mrf.mxu0  ;;  %v5331_v50 = vpop.f32.mrf.mxu1  ;;  %v5476_v16 = vadd.f32 %v13008_v44, %v12730_v24  ;;  %v5478_v24 = vadd.f32 %v13008_v44, %v12736_v48 }
 0x572   : > { %p8168_p9 = pneg %p8167_p7 }
 0x573   : > { %v5278_v55 = vadd.f32 %v5277_v56, %v5229_v12 }
 0x574   : > { %5706 = vmatmul.bf16.gmra.mxu0 %v7881_v45  ;;  %5755 = vmatmul.bf16.gmra.mxu1 %v7881_v45  ;;  %v13022_v45 = vperm.slane %v5798_v46, 0  ;;  %p8173_p13 = pnand %p8172_p12, %p8168_p9 }
 0x575   : > { %v12996_v60 = vadd.f32 %v5326_v39, %v5278_v55 }
 0x578   : > { %v5181_v20 = vpop.f32.mrf.mxu2  ;;  %v5230_v47 = vpop.f32.mrf.mxu3 }
 0x579   : > { %v5231_v34 = vadd.f32 %v5230_v47, %v5181_v20  ;;  %v5284_v52 = vpop.f32.mrf.mxu0  ;;  %v5333_v1 = vpop.f32.mrf.mxu1 }
 0x57b   : > { %v5280_v33 = vadd.f32 %v5279_v36, %v5231_v34 }
 0x57d   : > { %v12998_v8 = vadd.f32 %v5328_v13, %v5280_v33  ;;  %5379 = vmatmul.bf16.gmra.mxu2 %v13852_v21  ;;  %5428 = vmatmul.bf16.gmra.mxu3 %v13853_v42  ;;  %v13854_v13 = vld [vmem:[#allocation61_spill] sm:$0xff] }
 0x580   : > { %v5184_v7 = vpop.f32.mrf.mxu2  ;;  %v5233_v35 = vpop.f32.mrf.mxu3 }
 0x581   : > { %v5234_v58 = vadd.f32 %v5233_v35, %v5184_v7  ;;  %v5287_v43 = vpop.f32.mrf.mxu0  ;;  %v5336_v2 = vpop.f32.mrf.mxu1 }
 0x583   : > { %v5283_v17 = vadd.f32 %v5282_v49, %v5234_v58 }
 0x584   : > { %5711 = vmatmul.bf16.gmra.mxu0 %v7882_v6  ;;  %5760 = vmatmul.bf16.gmra.mxu1 %v7882_v6 }
 0x585   : > { %v13003_v10 = vadd.f32 %v5331_v50, %v5283_v17  ;;  %v5480_v17 = vadd.f32 %v13008_v44, %v12766_v23 }
 0x588   : > { %v5186_v61 = vpop.f32.mrf.mxu2  ;;  %v5235_v32 = vpop.f32.mrf.mxu3 }
 0x589   : > { %v5236_v56 = vadd.f32 %v5235_v32, %v5186_v61  ;;  %v5289_v39 = vpop.f32.mrf.mxu0  ;;  %v5338_v19 = vpop.f32.mrf.mxu1 }
 0x58b   : > { %v5285_v11 = vadd.f32 %v5284_v52, %v5236_v56 }
 0x58d   : > { %v13010_v36 = vadd.f32 %v5333_v1, %v5285_v11  ;;  %5384 = vmatmul.bf16.gmra.mxu2 %v13854_v13  ;;  %5433 = vmatmul.bf16.gmra.mxu3 %v13855_v31  ;;  %v13039_v13 = vperm.slane %v612_v22, 1  ;;  %v13856_v31 = vld [vmem:[#allocation50_spill] sm:$0xff] }
 0x590   : > { %v5189_v9 = vpop.f32.mrf.mxu2  ;;  %v5238_v41 = vpop.f32.mrf.mxu3 }
 0x591   : > { %v5239_v12 = vadd.f32 %v5238_v41, %v5189_v9  ;;  %v5677_v49 = vpop.f32.mrf.mxu0  ;;  %v5726_v50 = vpop.f32.mrf.mxu1  ;;  %v13045_v41 = vperm.slane %v5798_v46, 1  ;;  %v13857_v46 = vld [vmem:[#allocation15_spill] sm:$0xff] }
 0x592   : > { %v5766_v55 = vadd.f32 %v5677_v49, %v5476_v16 }
 0x593   : > { %v5288_v20 = vadd.f32 %v5287_v43, %v5239_v12 }
 0x594   : > { %v5804_v47 = vadd.f32 %v13022_v45, %v5766_v55 }
 0x595   : > { %v13025_v34 = vadd.f32 %v5336_v2, %v5288_v20 }
 0x596   : > { %5836 = vst [vmem:[%s13027_s19] sm:$0xff] %v5804_v47 }
 0x598   : > { %v5191_v52 = vpop.f32.mrf.mxu2  ;;  %v5240_v1 = vpop.f32.mrf.mxu3 }
 0x599   : > { %v5241_v33 = vadd.f32 %v5240_v1, %v5191_v52  ;;  %v5679_v21 = vpop.f32.mrf.mxu0  ;;  %v5728_v42 = vpop.f32.mrf.mxu1 }
 0x59a   : > { %v5768_v7 = vadd.f32 %v5679_v21, %v5478_v24 }
 0x59b   : > { %v5290_v35 = vadd.f32 %v5289_v39, %v5241_v33 }
 0x59c   : > { %v5806_v6 = vadd.f32 %v13022_v45, %v5768_v7 }
 0x59d   : > { %v13033_v58 = vadd.f32 %v5338_v19, %v5290_v35 }
 0x59e   : > { %5838 = vst [vmem:[%s13027_s19 + $0x10] sm:$0xff] %v5806_v6 }
 0x5a0   : > { %v5350_v43 = vpop.f32.mrf.mxu2  ;;  %v5399_v2 = vpop.f32.mrf.mxu3 }
 0x5a1   : > { %v5351_v61 = vadd.f32 %v5350_v43, %v12961_v54  ;;  %v5682_v32 = vpop.f32.mrf.mxu0  ;;  %v5731_v48 = vpop.f32.mrf.mxu1  ;;  %v5482_v54 = vadd.f32 %v13008_v44, %v12772_v15 }
 0x5a2   : > { %v5770_v56 = vadd.f32 %v5682_v32, %v5480_v17  ;;  %v13858_v32 = vld [vmem:[#allocation16_spill] sm:$0xff] }
 0x5a3   : > { %v5400_v11 = vadd.f32 %v5399_v2, %v5351_v61 }
 0x5a4   : > { %v5808_v39 = vadd.f32 %v13022_v45, %v5770_v56 }
 0x5a5   : > { %v5440_v19 = vadd.f32 %v5400_v11, %v13856_v31 }
 0x5a6   : > { %5840 = vst [vmem:[%s13027_s19 + $0x20] sm:$0xff] %v5808_v39 }
 0x5a7   : > { %v5477_v9 = vadd.f32 %v13039_v13, %v5440_v19 }
 0x5a8   : > { %v5352_v23 = vpop.f32.mrf.mxu2  ;;  %v5401_v16 = vpop.f32.mrf.mxu3 }
 0x5a9   : > { %v5767_v12 = vadd.f32 %v5726_v50, %v5477_v9  ;;  %v5353_v22 = vadd.f32 %v5352_v23, %v12963_v29  ;;  %v5684_v49 = vpop.f32.mrf.mxu0  ;;  %v5733_v55 = vpop.f32.mrf.mxu1  ;;  %v5484_v29 = vadd.f32 %v13008_v44, %v12802_v4 }
 0x5aa   : > { %v5772_v20 = vadd.f32 %v5684_v49, %v5482_v54 }
 0x5ab   : > { %v5805_v47 = vadd.f32 %v13045_v41, %v5767_v12  ;;  %v5402_v52 = vadd.f32 %v5401_v16, %v5353_v22  ;;  %v13859_v22 = vld [vmem:[#allocation17_spill] sm:$0xff] }
 0x5ac   : > { %v5810_v1 = vadd.f32 %v13022_v45, %v5772_v20 }
 0x5ad   : > { %5837 = vst [vmem:[%s13027_s19 + $0x8] sm:$0xff] %v5805_v47  ;;  %v5442_v24 = vadd.f32 %v5402_v52, %v13857_v46 }
 0x5ae   : > { %5842 = vst [vmem:[%s13027_s19 + $0x30] sm:$0xff] %v5810_v1 }
 0x5af   : > { %v5479_v33 = vadd.f32 %v13039_v13, %v5442_v24 }
 0x5b0   : > { %v5355_v15 = vpop.f32.mrf.mxu2  ;;  %v5404_v50 = vpop.f32.mrf.mxu3 }
 0x5b1   : > { %v5769_v21 = vadd.f32 %v5728_v42, %v5479_v33  ;;  %v5356_v7 = vadd.f32 %v5355_v15, %v12968_v40  ;;  %v5687_v35 = vpop.f32.mrf.mxu0  ;;  %v5736_v6 = vpop.f32.mrf.mxu1  ;;  %v5486_v40 = vadd.f32 %v13008_v44, %v12808_v59 }
 0x5b2   : > { %v5774_v43 = vadd.f32 %v5687_v35, %v5484_v29 }
 0x5b3   : > { %v5807_v2 = vadd.f32 %v13045_v41, %v5769_v21  ;;  %v5405_v17 = vadd.f32 %v5404_v50, %v5356_v7  ;;  %v13860_v50 = vld [vmem:[#allocation18_spill] sm:$0xff] }
 0x5b4   : > { %v5812_v61 = vadd.f32 %v13022_v45, %v5774_v43 }
 0x5b5   : > { %5839 = vst [vmem:[%s13027_s19 + $0x18] sm:$0xff] %v5807_v2  ;;  %v5444_v56 = vadd.f32 %v5405_v17, %v13858_v32 }
 0x5b6   : > { %5844 = vst [vmem:[%s13027_s19 + $0x40] sm:$0xff] %v5812_v61 }
 0x5b7   : > { %v5481_v11 = vadd.f32 %v13039_v13, %v5444_v56 }
 0x5b8   : > { %v5357_v4 = vpop.f32.mrf.mxu2  ;;  %v5406_v42 = vpop.f32.mrf.mxu3 }
 0x5b9   : > { %v5771_v39 = vadd.f32 %v5731_v48, %v5481_v11  ;;  %v5358_v31 = vadd.f32 %v5357_v4, %v12970_v51  ;;  %v5689_v19 = vpop.f32.mrf.mxu0  ;;  %v5738_v54 = vpop.f32.mrf.mxu1  ;;  %v5488_v51 = vadd.f32 %v13008_v44, %v12838_v26  ;;  %v13861_v11 = vld [vmem:[#allocation56_spill] sm:$0xff] }
 0x5ba   : > { %v5776_v9 = vadd.f32 %v5689_v19, %v5486_v40 }
 0x5bb   : > { %v5809_v23 = vadd.f32 %v13045_v41, %v5771_v39  ;;  %v5407_v16 = vadd.f32 %v5406_v42, %v5358_v31 }
 0x5bc   : > { %v5814_v12 = vadd.f32 %v13022_v45, %v5776_v9 }
 0x5bd   : > { %5841 = vst [vmem:[%s13027_s19 + $0x28] sm:$0xff] %v5809_v23  ;;  %v5446_v49 = vadd.f32 %v5407_v16, %v13859_v22  ;;  %v13862_v22 = vld [vmem:[#allocation57_spill] sm:$0xff] }
 0x5be   : > { %5846 = vst [vmem:[%s13027_s19 + $0x50] sm:$0xff] %v5814_v12 }
 0x5bf   : > { %v5483_v20 = vadd.f32 %v13039_v13, %v5446_v49 }
 0x5c0   : > { %v5360_v59 = vpop.f32.mrf.mxu2  ;;  %v5409_v48 = vpop.f32.mrf.mxu3 }
 0x5c1   : > { %v5773_v47 = vadd.f32 %v5733_v55, %v5483_v20  ;;  %v5361_v52 = vadd.f32 %v5360_v59, %v12975_v3  ;;  %v5692_v1 = vpop.f32.mrf.mxu0  ;;  %v5741_v21 = vpop.f32.mrf.mxu1  ;;  %v5490_v3 = vadd.f32 %v13008_v44, %v12844_v37 }
 0x5c2   : > { %v5778_v46 = vadd.f32 %v5692_v1, %v5488_v51 }
 0x5c3   : > { %v5811_v24 = vadd.f32 %v13045_v41, %v5773_v47  ;;  %v5410_v33 = vadd.f32 %v5409_v48, %v5361_v52 }
 0x5c4   : > { %v5816_v15 = vadd.f32 %v13022_v45, %v5778_v46 }
 0x5c5   : > { %5843 = vst [vmem:[%s13027_s19 + $0x38] sm:$0xff] %v5811_v24  ;;  %v5448_v29 = vadd.f32 %v5410_v33, %v13860_v50  ;;  %v13863_v33 = vld [vmem:[#allocation59_spill] sm:$0xff] }
 0x5c6   : > { %5848 = vst [vmem:[%s13027_s19 + $0x60] sm:$0xff] %v5816_v15 }
 0x5c7   : > { %v5485_v7 = vadd.f32 %v13039_v13, %v5448_v29 }
 0x5c8   : > { %v5362_v26 = vpop.f32.mrf.mxu2  ;;  %v5411_v55 = vpop.f32.mrf.mxu3 }
 0x5c9   : > { %v5775_v35 = vadd.f32 %v5736_v6, %v5485_v7  ;;  %v5363_v43 = vadd.f32 %v5362_v26, %v12977_v28  ;;  %v5694_v2 = vpop.f32.mrf.mxu0  ;;  %v5743_v40 = vpop.f32.mrf.mxu1  ;;  %v5492_v28 = vadd.f32 %v13008_v44, %v12874_v62 }
 0x5ca   : > { %v5780_v17 = vadd.f32 %v5694_v2, %v5490_v3 }
 0x5cb   : > { %v5813_v61 = vadd.f32 %v13045_v41, %v5775_v35  ;;  %v5412_v32 = vadd.f32 %v5411_v55, %v5363_v43 }
 0x5cc   : > { %v5818_v56 = vadd.f32 %v13022_v45, %v5780_v17  ;;  %v13864_v17 = vld [vmem:[#allocation51_spill] sm:$0xff] }
 0x5cd   : > { %5845 = vst [vmem:[%s13027_s19 + $0x48] sm:$0xff] %v5813_v61  ;;  %v5450_v4 = vadd.f32 %v5412_v32, %v13861_v11 }
 0x5ce   : > { %5850 = vst [vmem:[%s13027_s19 + $0x70] sm:$0xff] %v5818_v56 }
 0x5cf   : > { %v5487_v42 = vadd.f32 %v13039_v13, %v5450_v4 }
 0x5d0   : > { %v5365_v37 = vpop.f32.mrf.mxu2  ;;  %v5414_v6 = vpop.f32.mrf.mxu3 }
 0x5d1   : > { %v5777_v39 = vadd.f32 %v5738_v54, %v5487_v42  ;;  %v5366_v31 = vadd.f32 %v5365_v37, %v12982_v5  ;;  %v5697_v19 = vpop.f32.mrf.mxu0  ;;  %v5494_v5 = vadd.f32 %v13008_v44, %v12880_v38  ;;  %v5746_v51 = vpop.f32.mrf.mxu1 }
 0x5d2   : > { %v5782_v9 = vadd.f32 %v5697_v19, %v5492_v28 }
 0x5d3   : > { %v5815_v23 = vadd.f32 %v13045_v41, %v5777_v39  ;;  %v5415_v16 = vadd.f32 %v5414_v6, %v5366_v31  ;;  %v13865_v39 = vld [vmem:[#allocation54_spill] sm:$0xff] }
 0x5d4   : > { %v5820_v12 = vadd.f32 %v13022_v45, %v5782_v9 }
 0x5d5   : > { %5847 = vst [vmem:[%s13027_s19 + $0x58] sm:$0xff] %v5815_v23  ;;  %v5452_v49 = vadd.f32 %v5415_v16, %v13862_v22 }
 0x5d6   : > { %5852 = vst [vmem:[%s13027_s19 + $0x80] sm:$0xff] %v5820_v12 }
 0x5d7   : > { %v5489_v20 = vadd.f32 %v13039_v13, %v5452_v49 }
 0x5d8   : > { %v5367_v59 = vpop.f32.mrf.mxu2  ;;  %v5416_v62 = vpop.f32.mrf.mxu3 }
 0x5d9   : > { %v5779_v54 = vadd.f32 %v5741_v21, %v5489_v20  ;;  %v5368_v48 = vadd.f32 %v5367_v59, %v12984_v57  ;;  %v5699_v47 = vpop.f32.mrf.mxu0  ;;  %v5496_v57 = vadd.f32 %v13008_v44, %v12910_v27  ;;  %v5748_v43 = vpop.f32.mrf.mxu1 }
 0x5da   : > { %v5784_v52 = vadd.f32 %v5699_v47, %v5494_v5  ;;  %v13866_v5 = vld [vmem:[#allocation52_spill] sm:$0xff] }
 0x5db   : > { %v5817_v1 = vadd.f32 %v13045_v41, %v5779_v54  ;;  %v5417_v46 = vadd.f32 %v5416_v62, %v5368_v48 }
 0x5dc   : > { %v5822_v24 = vadd.f32 %v13022_v45, %v5784_v52 }
 0x5dd   : > { %5849 = vst [vmem:[%s13027_s19 + $0x68] sm:$0xff] %v5817_v1  ;;  %v5454_v15 = vadd.f32 %v5417_v46, %v13863_v33 }
 0x5de   : > { %5854 = vst [vmem:[%s13027_s19 + $0x90] sm:$0xff] %v5822_v24 }
 0x5df   : > { %v5491_v50 = vadd.f32 %v13039_v13, %v5454_v15 }
 0x5e0   : > { %v5370_v38 = vpop.f32.mrf.mxu2  ;;  %v5419_v29 = vpop.f32.mrf.mxu3 }
 0x5e1   : > { %v5781_v21 = vadd.f32 %v5743_v40, %v5491_v50  ;;  %v5371_v7 = vadd.f32 %v5370_v38, %v12989_v30  ;;  %v5702_v26 = vpop.f32.mrf.mxu0  ;;  %v5498_v30 = vadd.f32 %v13008_v44, %v12916_v14  ;;  %v5751_v19 = vpop.f32.mrf.mxu1  ;;  %v13867_v38 = vld [vmem:[#allocation60_spill] sm:$0xff] }
 0x5e2   : > { %v5786_v55 = vadd.f32 %v5702_v26, %v5496_v57 }
 0x5e3   : > { %v5819_v3 = vadd.f32 %v13045_v41, %v5781_v21  ;;  %v5420_v35 = vadd.f32 %v5419_v29, %v5371_v7 }
 0x5e4   : > { %v5824_v2 = vadd.f32 %v13022_v45, %v5786_v55 }
 0x5e5   : > { %5851 = vst [vmem:[%s13027_s19 + $0x78] sm:$0xff] %v5819_v3  ;;  %v5456_v61 = vadd.f32 %v5420_v35, %v13864_v17 }
 0x5e6   : > { %5856 = vst [vmem:[%s13027_s19 + $0xa0] sm:$0xff] %v5824_v2 }
 0x5e7   : > { %v5493_v32 = vadd.f32 %v13039_v13, %v5456_v61  ;;  %v13868_v61 = vld [vmem:[#allocation58_spill] sm:$0xff] }
 0x5e8   : > { %v5372_v27 = vpop.f32.mrf.mxu2  ;;  %v5421_v56 = vpop.f32.mrf.mxu3 }
 0x5e9   : > { %v5783_v11 = vadd.f32 %v5746_v51, %v5493_v32  ;;  %v5373_v4 = vadd.f32 %v5372_v27, %v12991_v53  ;;  %v5704_v42 = vpop.f32.mrf.mxu0  ;;  %v5500_v53 = vadd.f32 %v13008_v44, %v12936_v25  ;;  %v5753_v51 = vpop.f32.mrf.mxu1 }
 0x5ea   : > { %v5788_v40 = vadd.f32 %v5704_v42, %v5498_v30 }
 0x5eb   : > { %v5821_v37 = vadd.f32 %v13045_v41, %v5783_v11  ;;  %v5422_v6 = vadd.f32 %v5421_v56, %v5373_v4 }
 0x5ec   : > { %v5826_v28 = vadd.f32 %v13022_v45, %v5788_v40 }
 0x5ed   : > { %5853 = vst [vmem:[%s13027_s19 + $0x88] sm:$0xff] %v5821_v37  ;;  %v5458_v31 = vadd.f32 %v5422_v6, %v13865_v39  ;;  %v13869_v39 = vld [vmem:[#allocation19_spill] sm:$0xff] }
 0x5ee   : > { %5858 = vst [vmem:[%s13027_s19 + $0xb0] sm:$0xff] %v5826_v28 }
 0x5ef   : > { %v5495_v9 = vadd.f32 %v13039_v13, %v5458_v31 }
 0x5f0   : > { %v5375_v14 = vpop.f32.mrf.mxu2  ;;  %v5424_v23 = vpop.f32.mrf.mxu3 }
 0x5f1   : > { %v5785_v16 = vadd.f32 %v5748_v43, %v5495_v9  ;;  %v5376_v12 = vadd.f32 %v5375_v14, %v12996_v60  ;;  %v5707_v22 = vpop.f32.mrf.mxu0  ;;  %v5502_v60 = vadd.f32 %v13008_v44, %v12948_v63  ;;  %v5756_v3 = vpop.f32.mrf.mxu1 }
 0x5f2   : > { %v5790_v49 = vadd.f32 %v5707_v22, %v5500_v53  ;;  %v13870_v53 = vld [vmem:[#allocation21_spill] sm:$0xff] }
 0x5f3   : > { %v5823_v20 = vadd.f32 %v13045_v41, %v5785_v16  ;;  %v5425_v59 = vadd.f32 %v5424_v23, %v5376_v12 }
 0x5f4   : > { %v5828_v62 = vadd.f32 %v13022_v45, %v5790_v49 }
 0x5f5   : > { %5855 = vst [vmem:[%s13027_s19 + $0x98] sm:$0xff] %v5823_v20  ;;  %v5460_v54 = vadd.f32 %v5425_v59, %v13866_v5  ;;  %v13871_v5 = vld [vmem:[#allocation20_spill] sm:$0xff] }
 0x5f6   : > { %5860 = vst [vmem:[%s13027_s19 + $0xc0] sm:$0xff] %v5828_v62 }
 0x5f7   : > { %v5497_v48 = vadd.f32 %v13039_v13, %v5460_v54 }
 0x5f8   : > { %v5377_v25 = vpop.f32.mrf.mxu2  ;;  %v5426_v47 = vpop.f32.mrf.mxu3 }
 0x5f9   : > { %v5787_v52 = vadd.f32 %v5751_v19, %v5497_v48  ;;  %v5378_v1 = vadd.f32 %v5377_v25, %v12998_v8  ;;  %v5709_v46 = vpop.f32.mrf.mxu0  ;;  %v5504_v8 = vadd.f32 %v13008_v44, %v12952_v18  ;;  %v5758_v6 = vpop.f32.mrf.mxu1 }
 0x5fa   : > { %v5792_v24 = vadd.f32 %v5709_v46, %v5502_v60 }
 0x5fb   : > { %v5825_v33 = vadd.f32 %v13045_v41, %v5787_v52  ;;  %v5427_v15 = vadd.f32 %v5426_v47, %v5378_v1 }
 0x5fc   : > { %v5830_v50 = vadd.f32 %v13022_v45, %v5792_v24 }
 0x5fd   : > { %5857 = vst [vmem:[%s13027_s19 + $0xa8] sm:$0xff] %v5825_v33  ;;  %v5462_v29 = vadd.f32 %v5427_v15, %v13867_v38 }
 0x5fe   : > { %5862 = vst [vmem:[%s13027_s19 + $0xd0] sm:$0xff] %v5830_v50 }
 0x5ff   : > { %v5499_v57 = vadd.f32 %v13039_v13, %v5462_v29 }
 0x600   : > { %v5380_v21 = vpop.f32.mrf.mxu2  ;;  %v5429_v63 = vpop.f32.mrf.mxu3 }
 0x601   : > { %v5789_v7 = vadd.f32 %v5753_v51, %v5499_v57  ;;  %v5381_v26 = vadd.f32 %v5380_v21, %v13003_v10  ;;  %v5712_v55 = vpop.f32.mrf.mxu0  ;;  %v5506_v10 = vadd.f32 %v13008_v44, %v12959_v0  ;;  %v5761_v16 = vpop.f32.mrf.mxu1 }
 0x602   : > { %v5794_v35 = vadd.f32 %v5712_v55, %v5504_v8 }
 0x603   : > { %v5827_v43 = vadd.f32 %v13045_v41, %v5789_v7  ;;  %v5430_v2 = vadd.f32 %v5429_v63, %v5381_v26 }
 0x604   : > { %v5832_v17 = vadd.f32 %v13022_v45, %v5794_v35 }
 0x605   : > { %5859 = vst [vmem:[%s13027_s19 + $0xb8] sm:$0xff] %v5827_v43  ;;  %v5464_v32 = vadd.f32 %v5430_v2, %v13868_v61 }
 0x606   : > { %5864 = vst [vmem:[%s13027_s19 + $0xe0] sm:$0xff] %v5832_v17 }
 0x607   : > { %v5501_v27 = vadd.f32 %v13039_v13, %v5464_v32 }
 0x608   : > { %v5382_v18 = vpop.f32.mrf.mxu2  ;;  %v5431_v56 = vpop.f32.mrf.mxu3 }
 0x609   : > { %v5791_v30 = vadd.f32 %v5756_v3, %v5501_v27  ;;  %v5383_v11 = vadd.f32 %v5382_v18, %v13010_v36  ;;  %v5714_v4 = vpop.f32.mrf.mxu0  ;;  %v5763_v51 = vpop.f32.mrf.mxu1 }
 0x60a   : > { %v5796_v42 = vadd.f32 %v5714_v4, %v5506_v10 }
 0x60b   : > { %v5829_v40 = vadd.f32 %v13045_v41, %v5791_v30  ;;  %v5432_v37 = vadd.f32 %v5431_v56, %v5383_v11 }
 0x60c   : > { %v5834_v28 = vadd.f32 %v13022_v45, %v5796_v42 }
 0x60d   : > { %5861 = vst [vmem:[%s13027_s19 + $0xc8] sm:$0xff] %v5829_v40  ;;  %v5466_v31 = vadd.f32 %v5432_v37, %v13869_v39 }
 0x60e   : > { %5866 = vst [vmem:[%s13027_s19 + $0xf0] sm:$0xff] %v5834_v28 }
 0x60f   : > { %v5503_v0 = vadd.f32 %v13039_v13, %v5466_v31 }
 0x610   : > { %v5385_v44 = vpop.f32.mrf.mxu2  ;;  %v5434_v19 = vpop.f32.mrf.mxu3 }
 0x611   : > { %v5793_v36 = vadd.f32 %v5758_v6, %v5503_v0  ;;  %v5386_v9 = vadd.f32 %v5385_v44, %v13025_v34 }
 0x613   : > { %v5831_v14 = vadd.f32 %v13045_v41, %v5793_v36  ;;  %v5435_v23 = vadd.f32 %v5434_v19, %v5386_v9 }
 0x615   : > { %5863 = vst [vmem:[%s13027_s19 + $0xd8] sm:$0xff] %v5831_v14  ;;  %v5468_v45 = vadd.f32 %v5435_v23, %v13870_v53 }
 0x617   : > { %v5505_v12 = vadd.f32 %v13039_v13, %v5468_v45 }
 0x618   : > { %v5387_v22 = vpop.f32.mrf.mxu2  ;;  %v5436_v34 = vpop.f32.mrf.mxu3 }
 0x619   : > { %v5795_v49 = vadd.f32 %v5761_v16, %v5505_v12  ;;  %v5388_v20 = vadd.f32 %v5387_v22, %v13033_v58 }
 0x61b   : > { %v5833_v59 = vadd.f32 %v13045_v41, %v5795_v49  ;;  %v5437_v62 = vadd.f32 %v5436_v34, %v5388_v20 }
 0x61d   : > { %5865 = vst [vmem:[%s13027_s19 + $0xe8] sm:$0xff] %v5833_v59  ;;  %v5470_v54 = vadd.f32 %v5437_v62, %v13871_v5 }
 0x61f   : > { %v5507_v48 = vadd.f32 %v13039_v13, %v5470_v54 }
 0x621   : > { %v5797_v58 = vadd.f32 %v5763_v51, %v5507_v48 }
 0x623   : > { %v5835_v25 = vadd.f32 %v13045_v41, %v5797_v58 }
 0x625   : > { %5867 = vst [vmem:[%s13027_s19 + $0xf8] sm:$0xff] %v5835_v25 }
 0x626   : > { %8176 = shalt.err (!%p8173_p13)
}
 0x627   : > { %s8245_s26 = smov 256   ;;  %s8246_s19 = smov 16  }
 0x628   : > { %7916 = dma.vmem_to_hbm [thread:$0]  (%p8353_p3), %s5885_s30, 4096, %s5887_s15, %s5869_s18, %s8245_s26, %s8245_s26, %s8246_s19  }
 0x629 PF: > { %s13874_s10 = sld [smem:[#allocation9_spill]] }
 0x62a   : > { %s13875_s24 = sld [smem:[#allocation5_spill]] }
 0x62f   : > { %p7922_p0 = scmp.ge.s32.totalorder %s13874_s10, 2 }
 0x630   : > { %s5901_s21 = sand.u32 1, %s13875_s24  }
 0x631   : > { %p7919_p1 = pnand %p7922_p0, %p8362_p8  ;;  %s5902_s16 = scalar_lea.sflag [#allocation3], %s5901_s21 }
 0x633   : > { %p7920_p2 = pneg %p7919_p1 }
 0x635   : > { %8210 = dma.done.wait (%p7920_p2), %s5902_s16, 4096  }
 0x636   : > { %8212 = vsyncadd (%p7920_p2), %s5902_s16, 4294963200  ;;  %s23_s20 = sadd.s32 1, %s13874_s10   ;;  %s13877_s17 = sld [smem:[#allocation6_spill]] }
 0x637   : > { %p20_p4 = scmp.ge.s32.totalorder %s23_s20, 6   ;;  %s13878_s15 = sld [smem:[#allocation14_spill]] }
 0x638   : > { %s13879_s16 = sld [smem:[#allocation7_spill]]  ;;  %s13883_s13 = smov %s8219_s14 }
 0x639   : > { %s13880_s22 = sld [smem:[#allocation8_spill]] }
 0x63a   : > { %s13881_s18 = sld [smem:[#allocation10_spill]] }
 0x63b   : > { %s13882_s19 = sld [smem:[#allocation12_spill]]  ;;  %22 = sbr.rel (!%p20_p4) target bundleno = 8 (0x8), region = 112 }
 0x63c   : > { %s13884_s14 = smov %s13877_s17 }
 0x63f   : > { %s13885_s17 = smov %s13880_s22 }
 0x640   :  { %5908 = vsyncpa [#allocation3], 1 }
 0x641   :  { %5910 = vsyncpa [#allocation3 + $0x1], 1 }

</bundles_post_ra>
